<compile_context>
chip_gen: v7x
topology: tpu7x:2x2x1
jax: 0.10.0
libtpu: 0.0.40
codegen_flags: <defaults>
</compile_context>

<pallas_src>
import functools

import jax
import jax.numpy as jnp
from jax import lax
from jax.experimental import pallas as pl
from jax.experimental.pallas import tpu as pltpu


CP = 128   # lane-padded channel width (all real channel counts <= 128)
ZP = 128   # lane-padded codebook size

_VMEM_LIMIT = 32 * 1024 * 1024


# ----------------------------- Pallas kernels -----------------------------

def _conv_bn_silu_kernel(x_ref, w_ref, b_ref, g_ref, bt_ref, o_ref, acc_ref,
                         *, eps, tm):
    """Fused (phase-batched) matmul-conv + bias + BatchNorm + SiLU.

    x_ref:  (P, M, K)  bf16 im2col patches (P = sub-pixel phases, 1 for conv)
    w_ref:  (P, K, N)  bf16 weights (N = 128 lane-padded cout)
    b/g/bt: (1, N)     f32 bias / gamma / beta (zero on padded channels)
    o_ref:  (P, M, N)  bf16 output
    acc_ref:(P, M, N)  f32 VMEM scratch (keeps live vregs bounded at M=512)
    """
    P, M, K = x_ref.shape
    N = w_ref.shape[-1]
    n_chunks = M // tm
    inv_n = 1.0 / float(P * M)
    ones_row = jnp.ones((1, tm), jnp.float32)
    bias = b_ref[...]
    s1 = jnp.zeros((1, N), jnp.float32)
    s2 = jnp.zeros((1, N), jnp.float32)
    # pass 1: bf16 MXU matmul per (phase, row-chunk); batch stats via MXU sums
    for p in range(P):
        w = w_ref[p]
        for c in range(n_chunks):
            rows = pl.ds(c * tm, tm)
            acc = jnp.dot(x_ref[p, rows, :], w,
                          preferred_element_type=jnp.float32) + bias
            acc_ref[p, rows, :] = acc
            s1 = s1 + jnp.dot(ones_row, acc, preferred_element_type=jnp.float32)
            s2 = s2 + jnp.dot(ones_row, acc * acc,
                              preferred_element_type=jnp.float32)
    mu = s1 * inv_n
    var = jnp.maximum(s2 * inv_n - mu * mu, 0.0)   # clamp f32 cancellation
    scale = lax.rsqrt(var + eps) * g_ref[...]
    shift = bt_ref[...] - mu * scale
    # pass 2: normalize + SiLU + lane-dense bf16 store, chunked
    for p in range(P):
        for c in range(n_chunks):
            rows = pl.ds(c * tm, tm)
            y = acc_ref[p, rows, :] * scale + shift
            o_ref[p, rows, :] = (y * jax.nn.sigmoid(y)).astype(o_ref.dtype)


def _preq_vq_postq_kernel(x_ref, pw_ref, pb_ref, et_ref, e_ref, e2_ref,
                          qw_ref, qb_ref, d_ref, loss_ref, *, z_real):
    """Fused pre-quant 1x1 conv + vector quantization + post-quant 1x1 conv."""
    # pre-quant conv (bf16 MXU, f32 accumulate); padded channels stay 0
    z = jnp.dot(x_ref[...], pw_ref[...],
                preferred_element_type=jnp.float32) + pb_ref[...]
    M, C = z.shape
    Z = e_ref.shape[0]
    # squared distances in f32 (1e30 penalty keeps padded codebook rows out)
    x2 = jnp.sum(z * z, axis=-1, keepdims=True)                        # (M,1)
    xe = jnp.dot(z, et_ref[...], preferred_element_type=jnp.float32)   # (M,Z)
    col = lax.broadcasted_iota(jnp.int32, (M, Z), 1)
    pen = jnp.where(col >= z_real, jnp.float32(1e30), jnp.float32(0.0))
    d2 = x2 + e2_ref[...] - 2.0 * xe + pen
    dmin = jnp.min(d2, axis=-1, keepdims=True)
    idx = jnp.min(jnp.where(d2 == dmin, col, Z), axis=-1, keepdims=True)
    onehot = (col == idx).astype(jnp.float32)
    q = jnp.dot(onehot, e_ref[...], preferred_element_type=jnp.float32)  # (M,C)
    # VQ loss numerator: sum over real rows/channels (padded diffs are 0)
    diff = q - z
    sq = jnp.sum(diff * diff, axis=1, keepdims=True)
    loss_ref[...] = jnp.sum(sq, axis=0, keepdims=True)
    # straight-through forward value == q; post-quant conv
    d = jnp.dot(q.astype(jnp.bfloat16), qw_ref[...],
                preferred_element_type=jnp.float32) + qb_ref[...]
    d_ref[...] = d.astype(d_ref.dtype)


def _mm_bias_tanh_kernel(x_ref, w_ref, b_ref, o_ref):
    acc = jnp.dot(x_ref[...], w_ref[...],
                  preferred_element_type=jnp.float32) + b_ref[...]
    o_ref[...] = jnp.tanh(acc)


# --------------------------- pallas_call wrappers ---------------------------

def conv_bn_silu(x_pmk, w_pkn, b, g, bt, eps=1e-5):
    P, M, K = x_pmk.shape
    N = w_pkn.shape[-1]
    tm = 128 if M >= 128 else M
    assert M % tm == 0
    return pl.pallas_call(
        functools.partial(_conv_bn_silu_kernel, eps=eps, tm=tm),
        out_shape=jax.ShapeDtypeStruct((P, M, N), jnp.bfloat16),
        grid=(1,),
        in_specs=[
            pl.BlockSpec((P, M, K), lambda i: (0, 0, 0)),
            pl.BlockSpec((P, K, N), lambda i: (0, 0, 0)),
            pl.BlockSpec((1, N), lambda i: (0, 0)),
            pl.BlockSpec((1, N), lambda i: (0, 0)),
            pl.BlockSpec((1, N), lambda i: (0, 0)),
        ],
        out_specs=pl.BlockSpec((P, M, N), lambda i: (0, 0, 0)),
        scratch_shapes=[pltpu.VMEM((P, M, N), jnp.float32)],
        compiler_params=pltpu.CompilerParams(
            dimension_semantics=("arbitrary",),
            vmem_limit_bytes=_VMEM_LIMIT),
    )(x_pmk, w_pkn, b, g, bt)


def preq_vq_postq(x, pw, pb, et, e, e2, qw, qb, *, z_real):
    M, C = x.shape
    Z = e.shape[0]
    d, loss_sum = pl.pallas_call(
        functools.partial(_preq_vq_postq_kernel, z_real=z_real),
        out_shape=(jax.ShapeDtypeStruct((M, C), jnp.bfloat16),
                   jax.ShapeDtypeStruct((1, 1), jnp.float32)),
        grid=(1,),
        in_specs=[
            pl.BlockSpec((M, C), lambda i: (0, 0)),
            pl.BlockSpec((C, C), lambda i: (0, 0)),
            pl.BlockSpec((1, C), lambda i: (0, 0)),
            pl.BlockSpec((C, Z), lambda i: (0, 0)),
            pl.BlockSpec((Z, C), lambda i: (0, 0)),
            pl.BlockSpec((1, Z), lambda i: (0, 0)),
            pl.BlockSpec((C, C), lambda i: (0, 0)),
            pl.BlockSpec((1, C), lambda i: (0, 0)),
        ],
        out_specs=(pl.BlockSpec((M, C), lambda i: (0, 0)),
                   pl.BlockSpec((1, 1), lambda i: (0, 0))),
        compiler_params=pltpu.CompilerParams(
            dimension_semantics=("arbitrary",),
            vmem_limit_bytes=_VMEM_LIMIT),
    )(x, pw, pb, et, e, e2, qw, qb)
    return d, loss_sum


def conv1x1_tanh(x, w, b):
    M, K = x.shape
    N = w.shape[1]
    block_m = 256 if M % 256 == 0 else M
    nblk = M // block_m
    return pl.pallas_call(
        _mm_bias_tanh_kernel,
        out_shape=jax.ShapeDtypeStruct((M, N), jnp.float32),
        grid=(nblk,),
        in_specs=[
            pl.BlockSpec((block_m, K), lambda i: (i, 0)),
            pl.BlockSpec((K, N), lambda i: (0, 0)),
            pl.BlockSpec((1, N), lambda i: (0, 0)),
        ],
        out_specs=pl.BlockSpec((block_m, N), lambda i: (i, 0)),
        compiler_params=pltpu.CompilerParams(
            dimension_semantics=("parallel",),       # 2 blocks -> both v7x TCs
            vmem_limit_bytes=_VMEM_LIMIT),
    )(x, w, b)


# ------------------------------- JAX glue ----------------------------------
# im2col via contiguous (trimmed-cin, bf16) strided slices; transposed conv
# via 4 sub-pixel phases (no dilated zeros); pixel-shuffle interleave.

def _conv4x4_s2_patches(x, cin):
    """x: (N,H,W,CP) bf16 -> patches (1, N*Ho*Wo, 16*cin), rows (ky,kx,ci)."""
    N, H, W, _ = x.shape
    xp = jnp.pad(x[..., :cin], ((0, 0), (1, 1), (1, 1), (0, 0)))
    Ho, Wo = H // 2, W // 2
    taps = []
    for ky in range(4):
        for kx in range(4):
            taps.append(lax.slice(
                xp, (0, ky, kx, 0),
                (N, ky + 2 * (Ho - 1) + 1, kx + 2 * (Wo - 1) + 1, cin),
                (1, 2, 2, 1)))
    patches = jnp.concatenate(taps, axis=-1)          # (N, Ho, Wo, 16*cin)
    return patches.reshape(1, N * Ho * Wo, 16 * cin), (N, Ho, Wo)


def _convt4x4_s2_phase_patches(x, cin):
    """ConvT(k=4,s=2,p=1) sub-pixel phases: (4, N*H*W, 4*cin), rows (dy,dx,ci)."""
    N, H, W, _ = x.shape
    xp = jnp.pad(x[..., :cin], ((0, 0), (1, 1), (1, 1), (0, 0)))
    phases = []
    for py in range(2):
        for px in range(2):
            taps = [lax.slice(xp, (0, py + dy, px + dx, 0),
                              (N, py + dy + H, px + dx + W, cin))
                    for dy in range(2) for dx in range(2)]
            phases.append(jnp.concatenate(taps, axis=-1).reshape(N * H * W,
                                                                 4 * cin))
    return jnp.stack(phases, axis=0), (N, H, W)


def _pixel_shuffle(y, N, H, W, C):
    """y: (4, N*H*W, C) phase-major -> (N, 2H, 2W, C)."""
    y = y.reshape(2, 2, N, H, W, C)                   # (py, px, n, iy, ix, c)
    y = jnp.transpose(y, (2, 3, 0, 4, 1, 5))          # (n, iy, py, ix, px, c)
    return y.reshape(N, 2 * H, 2 * W, C)


# ------------------------------ parameters ---------------------------------

def init_raw_params(key, in_c, out_c, st_c, down, latent_c, z_size):
    keys = iter(jax.random.split(key, 32))

    def u(shape, lo=-0.1, hi=0.1):
        return jax.random.uniform(next(keys), shape, jnp.float32, lo, hi)

    raw = {}
    raw["in"] = dict(w=u((in_c, st_c)), b=u((st_c,)),
                     g=jnp.ones((st_c,), jnp.float32),
                     bt=jnp.zeros((st_c,), jnp.float32))
    enc, c = [], st_c
    for _ in range(down):
        co = c * 2
        enc.append(dict(w4=u((4, 4, c, co)), b=u((co,)),
                        g=jnp.ones((co,), jnp.float32),
                        bt=jnp.zeros((co,), jnp.float32)))
        c = co
    raw["enc"] = enc
    raw["preq"] = dict(w=u((c, latent_c)), b=u((latent_c,)))
    raw["cb"] = jax.random.uniform(next(keys), (z_size, latent_c),
                                   jnp.float32, -1.0, 1.0)
    raw["postq"] = dict(w=u((latent_c, c)), b=u((c,)))
    dec = []
    for _ in range(down):
        co = c // 2
        # w4[ky,kx,cin,cout] == torch ConvTranspose2d weight.permute(2,3,0,1)
        dec.append(dict(w4=u((4, 4, c, co)), b=u((co,)),
                        g=jnp.ones((co,), jnp.float32),
                        bt=jnp.zeros((co,), jnp.float32)))
        c = co
    raw["dec"] = dec
    raw["out"] = dict(w=u((c, out_c)), b=u((out_c,)))
    return raw


def pack_params(raw, cp=CP, zp=ZP):
    bf16 = jnp.bfloat16

    def padc(v, n=cp):
        return jnp.zeros((1, n), jnp.float32).at[0, :v.shape[0]].set(v)

    def pad_mat(w):
        return jnp.zeros((cp, cp), jnp.float32).at[:w.shape[0], :w.shape[1]].set(w)

    p = {}
    p["in"] = dict(w=pad_mat(raw["in"]["w"]).astype(bf16).reshape(1, cp, cp),
                   b=padc(raw["in"]["b"]), g=padc(raw["in"]["g"]),
                   bt=padc(raw["in"]["bt"]))
    enc = []
    for L in raw["enc"]:
        w4 = L["w4"]
        cin, co = w4.shape[2], w4.shape[3]
        wk = jnp.zeros((16 * cin, cp), jnp.float32).at[:, :co].set(
            w4.reshape(16 * cin, co))                     # rows (ky,kx,ci)
        enc.append(dict(w=wk.astype(bf16).reshape(1, 16 * cin, cp),
                        b=padc(L["b"]), g=padc(L["g"]), bt=padc(L["bt"])))
    p["enc"] = enc
    p["preq"] = dict(w=pad_mat(raw["preq"]["w"]).astype(bf16),
                     b=padc(raw["preq"]["b"]))
    e = jnp.zeros((zp, cp), jnp.float32).at[
        :raw["cb"].shape[0], :raw["cb"].shape[1]].set(raw["cb"])
    p["cb"] = dict(e=e, et=e.T, e2=jnp.sum(e * e, axis=1).reshape(1, zp))
    p["postq"] = dict(w=pad_mat(raw["postq"]["w"]).astype(bf16),
                      b=padc(raw["postq"]["b"]))
    dec = []
    for L in raw["dec"]:
        w4 = L["w4"]
        cin, co = w4.shape[2], w4.shape[3]
        phase_ws = []
        for py in range(2):
            for px in range(2):
                # sub-pixel phase (py,px): tap (dy,dx) uses kernel index (3-p)-2d
                taps = [w4[(3 - py) - 2 * dy, (3 - px) - 2 * dx]
                        for dy in range(2) for dx in range(2)]     # (cin,co) each
                wph = jnp.concatenate(taps, axis=0)                # (4*cin, co)
                phase_ws.append(
                    jnp.zeros((4 * cin, cp), jnp.float32).at[:, :co].set(wph))
        dec.append(dict(w=jnp.stack(phase_ws, 0).astype(bf16),     # (4,4*cin,cp)
                        b=padc(L["b"]), g=padc(L["g"]), bt=padc(L["bt"])))
    p["dec"] = dec
    p["out"] = dict(w=pad_mat(raw["out"]["w"]).astype(bf16),
                    b=padc(raw["out"]["b"]))
    return p


# ------------------------------ VQVAE forward -------------------------------

def vqvae_forward(params, x_nchw, *, out_c, latent_c, z_size, beta=0.2):
    cp = CP
    N, cin0, H, W = x_nchw.shape
    x = jnp.transpose(x_nchw, (0, 2, 3, 1)).astype(jnp.bfloat16)   # NCHW->NHWC
    x = jnp.pad(x, ((0, 0), (0, 0), (0, 0), (0, cp - cin0)))       # lane-dense

    # input layer: fused 1x1 conv + BN + SiLU
    y = conv_bn_silu(x.reshape(1, N * H * W, cp), params["in"]["w"],
                     params["in"]["b"], params["in"]["g"], params["in"]["bt"])
    x = y.reshape(N, H, W, cp)

    # encoder: fused [conv 4x4 s2 + BN + SiLU] * down (trimmed-K patches)
    for layer in params["enc"]:
        cin = layer["w"].shape[1] // 16
        patches, (N, H, W) = _conv4x4_s2_patches(x, cin)
        y = conv_bn_silu(patches, layer["w"], layer["b"],
                         layer["g"], layer["bt"])
        x = y.reshape(N, H, W, cp)

    # fused pre-quant conv + vector quantization + post-quant conv
    M = N * H * W
    d_flat, loss_sum = preq_vq_postq(
        x.reshape(M, cp), params["preq"]["w"], params["preq"]["b"],
        params["cb"]["et"], params["cb"]["e"], params["cb"]["e2"],
        params["postq"]["w"], params["postq"]["b"], z_real=z_size)
    # forward value: codebook_loss == commitment_loss == mse
    quantize_losses = (1.0 + beta) * loss_sum[0, 0] / jnp.float32(M * latent_c)
    d = d_flat.reshape(N, H, W, cp)

    # decoder: fused [convT 4x4 s2 (4 sub-pixel phases) + BN + SiLU] * down
    for layer in params["dec"]:
        cin = layer["w"].shape[1] // 4
        patches, (N, H, W) = _convt4x4_s2_phase_patches(d, cin)
        y = conv_bn_silu(patches, layer["w"], layer["b"],
                         layer["g"], layer["bt"])
        d = _pixel_shuffle(y, N, H, W, cp)
        H, W = 2 * H, 2 * W

    # output layer: 1x1 conv + tanh, then drop channel padding
    out = conv1x1_tanh(d.reshape(N * H * W, cp),
                       params["out"]["w"], params["out"]["b"])
    out = out.reshape(N, H, W, cp)[..., :out_c]
    return jnp.transpose(out, (0, 3, 1, 2)), quantize_losses       # NCHW


# --------------------------- pure-JAX reference -----------------------------

def vqvae_reference(raw, x_nchw, *, beta=0.2, eps=1e-5):
    bf16 = jnp.bfloat16

    def bn_silu(y, g, b):
        mu = jnp.mean(y, axis=(0, 1, 2), keepdims=True)
        var = jnp.var(y, axis=(0, 1, 2), keepdims=True)
        yy = (y - mu) * lax.rsqrt(var + eps) * g + b
        return yy * jax.nn.sigmoid(yy)

    def conv1x1(x, w, b):
        return jnp.einsum("nhwc,cd->nhwd", x.astype(bf16), w.astype(bf16),
                          preferred_element_type=jnp.float32) + b

    x = jnp.transpose(x_nchw, (0, 2, 3, 1)).astype(bf16)
    x = bn_silu(conv1x1(x, raw["in"]["w"], raw["in"]["b"]),
                raw["in"]["g"], raw["in"]["bt"]).astype(bf16)
    for L in raw["enc"]:
        y = lax.conv_general_dilated(
            x, L["w4"].astype(bf16), (2, 2), ((1, 1), (1, 1)),
            dimension_numbers=("NHWC", "HWIO", "NHWC"),
            preferred_element_type=jnp.float32) + L["b"]
        x = bn_silu(y, L["g"], L["bt"]).astype(bf16)
    z = conv1x1(x, raw["preq"]["w"], raw["preq"]["b"])
    N, H, W, Cl = z.shape
    zf = z.reshape(-1, Cl)
    e = raw["cb"]
    d2 = (jnp.sum(zf * zf, 1, keepdims=True) + jnp.sum(e * e, 1)[None, :]
          - 2.0 * zf @ e.T)
    q = e[jnp.argmin(d2, axis=-1)]
    loss = (1.0 + beta) * jnp.mean((q - zf) ** 2)
    d = conv1x1(q.reshape(N, H, W, Cl), raw["postq"]["w"],
                raw["postq"]["b"]).astype(bf16)
    for L in raw["dec"]:
        wf = jnp.flip(L["w4"], (0, 1)).astype(bf16)
        y = lax.conv_general_dilated(
            d, wf, (1, 1), ((2, 2), (2, 2)), lhs_dilation=(2, 2),
            dimension_numbers=("NHWC", "HWIO", "NHWC"),
            preferred_element_type=jnp.float32) + L["b"]
        d = bn_silu(y, L["g"], L["bt"]).astype(bf16)
    out = jnp.tanh(conv1x1(d, raw["out"]["w"], raw["out"]["b"]))
    return jnp.transpose(out, (0, 3, 1, 2)), loss


# ---------------------------------- main ------------------------------------

if __name__ == "__main__":
    # VQVAE(in_c=4, out_c=4, st_c=8, down_sampling_times=2,
    #       encode_laten_channel=8, Z_size=16); input (2, 4, 16, 16)
    in_c, out_c, st_c, down, latent_c, z_size = 4, 4, 8, 2, 8, 16
    key = jax.random.PRNGKey(0)
    pkey, xkey = jax.random.split(key)
    raw = init_raw_params(pkey, in_c, out_c, st_c, down, latent_c, z_size)
    params = pack_params(raw)
    x = jax.random.normal(xkey, (2, in_c, 16, 16), dtype=jnp.float32)

    fwd = jax.jit(functools.partial(vqvae_forward, out_c=out_c,
                                    latent_c=latent_c, z_size=z_size, beta=0.2))
    out, loss = jax.block_until_ready(fwd(params, x))

    ref = jax.jit(functools.partial(vqvae_reference, beta=0.2))
    out_r, loss_r = jax.block_until_ready(ref(raw, x))

    assert out.shape == (2, out_c, 16, 16), out.shape
    assert loss.shape == (), loss.shape
    assert bool(jnp.isfinite(out).all()) and bool(jnp.isfinite(loss))
    assert bool(jnp.allclose(out, out_r, atol=5e-2, rtol=5e-2)), \
        float(jnp.max(jnp.abs(out - out_r)))
    assert abs(float(loss) - float(loss_r)) <= 5e-3 + 5e-2 * abs(float(loss_r)), \
        (float(loss), float(loss_r))
    print("KERNEL_OK")
</pallas_src>

<mosaic_0001>
module attributes {stable_mosaic.version = 11 : i64} {
  func.func @_conv_bn_silu_kernel(%arg0: i32, %arg1: memref<1x512x128xbf16, #tpu.memory_space<vmem>>, %arg2: memref<1x128x128xbf16, #tpu.memory_space<vmem>>, %arg3: memref<1x128xf32, #tpu.memory_space<vmem>>, %arg4: memref<1x128xf32, #tpu.memory_space<vmem>>, %arg5: memref<1x128xf32, #tpu.memory_space<vmem>>, %arg6: memref<1x512x128xbf16, #tpu.memory_space<vmem>>, %arg7: memref<1x512x128xf32, #tpu.memory_space<vmem>>) attributes {dimension_semantics = [#tpu.dimension_semantics<arbitrary>], iteration_bounds = array<i64: 1>, scalar_prefetch = 0 : i64, scratch_operands = 1 : i64, tpu.core_type = #tpu.core_type<tc>, window_params = [{pipeline_mode = #tpu.pipeline_mode<synchronous>, transform_indices = @transform_0, window_bounds = array<i64: 1, 512, 128>}, {pipeline_mode = #tpu.pipeline_mode<synchronous>, transform_indices = @transform_1, window_bounds = array<i64: 1, 128, 128>}, {pipeline_mode = #tpu.pipeline_mode<synchronous>, transform_indices = @transform_2, window_bounds = array<i64: 1, 128>}, {pipeline_mode = #tpu.pipeline_mode<synchronous>, transform_indices = @transform_3, window_bounds = array<i64: 1, 128>}, {pipeline_mode = #tpu.pipeline_mode<synchronous>, transform_indices = @transform_4, window_bounds = array<i64: 1, 128>}, {pipeline_mode = #tpu.pipeline_mode<synchronous>, transform_indices = @transform_5, window_bounds = array<i64: 1, 512, 128>}]} {
    %cst = arith.constant 1.000000e+00 : f32
    %0 = vector.broadcast %cst : f32 to vector<1x128xf32>
    %c0 = arith.constant 0 : index
    %c0_0 = arith.constant 0 : index
    %1 = vector.load %arg3[%c0, %c0_0] : memref<1x128xf32, #tpu.memory_space<vmem>>, vector<1x128xf32>
    %cst_1 = arith.constant 0.000000e+00 : f32
    %2 = vector.broadcast %cst_1 : f32 to vector<1x128xf32>
    %cst_2 = arith.constant 0.000000e+00 : f32
    %3 = vector.broadcast %cst_2 : f32 to vector<1x128xf32>
    %c0_3 = arith.constant 0 : index
    %c0_4 = arith.constant 0 : index
    %c0_5 = arith.constant 0 : index
    %4 = vector.load %arg2[%c0_3, %c0_4, %c0_5] : memref<1x128x128xbf16, #tpu.memory_space<vmem>>, vector<1x128x128xbf16>
    %5 = vector.shape_cast %4 : vector<1x128x128xbf16> to vector<128x128xbf16>
    %c0_6 = arith.constant 0 : index
    %c0_7 = arith.constant 0 : index
    %c0_8 = arith.constant 0 : index
    %6 = vector.load %arg1[%c0_6, %c0_7, %c0_8] : memref<1x512x128xbf16, #tpu.memory_space<vmem>>, vector<1x128x128xbf16>
    %7 = vector.shape_cast %6 : vector<1x128x128xbf16> to vector<128x128xbf16>
    %cst_9 = arith.constant dense<0.000000e+00> : vector<128x128xf32>
    %8 = tpu.matmul %7, %5, %cst_9 {dimension_numbers = #tpu.dot_dimension_numbers<[1], [0], [0], [1], [0, 0, 1, 1], [], []>} : vector<128x128xbf16>, vector<128x128xbf16>, vector<128x128xf32> -> vector<128x128xf32>
    %9 = vector.broadcast %1 : vector<1x128xf32> to vector<128x128xf32>
    %10 = arith.addf %8, %9 : vector<128x128xf32>
    %c0_10 = arith.constant 0 : index
    %c0_11 = arith.constant 0 : index
    %c0_12 = arith.constant 0 : index
    %11 = vector.load %arg7[%c0_10, %c0_11, %c0_12] : memref<1x512x128xf32, #tpu.memory_space<vmem>>, vector<1x128x128xf32>
    %12 = vector.shape_cast %11 : vector<1x128x128xf32> to vector<128x128xf32>
    %13 = vector.shape_cast %10 : vector<128x128xf32> to vector<1x128x128xf32>
    tpu.vector_store %arg7[%c0_10, %c0_11, %c0_12], %13 {strides = array<i32>} : memref<1x512x128xf32, #tpu.memory_space<vmem>>, vector<1x128x128xf32>,
    %cst_13 = arith.constant dense<0.000000e+00> : vector<1x128xf32>
    %14 = tpu.matmul %0, %10, %cst_13 {dimension_numbers = #tpu.dot_dimension_numbers<[1], [0], [0], [1], [0, 0, 1, 1], [], []>} : vector<1x128xf32>, vector<128x128xf32>, vector<1x128xf32> -> vector<1x128xf32>
    %15 = arith.addf %2, %14 : vector<1x128xf32>
    %16 = arith.mulf %10, %10 : vector<128x128xf32>
    %cst_14 = arith.constant dense<0.000000e+00> : vector<1x128xf32>
    %17 = tpu.matmul %0, %16, %cst_14 {dimension_numbers = #tpu.dot_dimension_numbers<[1], [0], [0], [1], [0, 0, 1, 1], [], []>} : vector<1x128xf32>, vector<128x128xf32>, vector<1x128xf32> -> vector<1x128xf32>
    %18 = arith.addf %3, %17 : vector<1x128xf32>
    %c0_15 = arith.constant 0 : index
    %c128 = arith.constant 128 : index
    %c0_16 = arith.constant 0 : index
    %19 = vector.load %arg1[%c0_15, %c128, %c0_16] : memref<1x512x128xbf16, #tpu.memory_space<vmem>>, vector<1x128x128xbf16>
    %20 = vector.shape_cast %19 : vector<1x128x128xbf16> to vector<128x128xbf16>
    %cst_17 = arith.constant dense<0.000000e+00> : vector<128x128xf32>
    %21 = tpu.matmul %20, %5, %cst_17 {dimension_numbers = #tpu.dot_dimension_numbers<[1], [0], [0], [1], [0, 0, 1, 1], [], []>} : vector<128x128xbf16>, vector<128x128xbf16>, vector<128x128xf32> -> vector<128x128xf32>
    %22 = vector.broadcast %1 : vector<1x128xf32> to vector<128x128xf32>
    %23 = arith.addf %21, %22 : vector<128x128xf32>
    %c0_18 = arith.constant 0 : index
    %c128_19 = arith.constant 128 : index
    %c0_20 = arith.constant 0 : index
    %24 = vector.load %arg7[%c0_18, %c128_19, %c0_20] : memref<1x512x128xf32, #tpu.memory_space<vmem>>, vector<1x128x128xf32>
    %25 = vector.shape_cast %24 : vector<1x128x128xf32> to vector<128x128xf32>
    %26 = vector.shape_cast %23 : vector<128x128xf32> to vector<1x128x128xf32>
    tpu.vector_store %arg7[%c0_18, %c128_19, %c0_20], %26 {strides = array<i32>} : memref<1x512x128xf32, #tpu.memory_space<vmem>>, vector<1x128x128xf32>,
    %cst_21 = arith.constant dense<0.000000e+00> : vector<1x128xf32>
    %27 = tpu.matmul %0, %23, %cst_21 {dimension_numbers = #tpu.dot_dimension_numbers<[1], [0], [0], [1], [0, 0, 1, 1], [], []>} : vector<1x128xf32>, vector<128x128xf32>, vector<1x128xf32> -> vector<1x128xf32>
    %28 = arith.addf %15, %27 : vector<1x128xf32>
    %29 = arith.mulf %23, %23 : vector<128x128xf32>
    %cst_22 = arith.constant dense<0.000000e+00> : vector<1x128xf32>
    %30 = tpu.matmul %0, %29, %cst_22 {dimension_numbers = #tpu.dot_dimension_numbers<[1], [0], [0], [1], [0, 0, 1, 1], [], []>} : vector<1x128xf32>, vector<128x128xf32>, vector<1x128xf32> -> vector<1x128xf32>
    %31 = arith.addf %18, %30 : vector<1x128xf32>
    %c0_23 = arith.constant 0 : index
    %c256 = arith.constant 256 : index
    %c0_24 = arith.constant 0 : index
    %32 = vector.load %arg1[%c0_23, %c256, %c0_24] : memref<1x512x128xbf16, #tpu.memory_space<vmem>>, vector<1x128x128xbf16>
    %33 = vector.shape_cast %32 : vector<1x128x128xbf16> to vector<128x128xbf16>
    %cst_25 = arith.constant dense<0.000000e+00> : vector<128x128xf32>
    %34 = tpu.matmul %33, %5, %cst_25 {dimension_numbers = #tpu.dot_dimension_numbers<[1], [0], [0], [1], [0, 0, 1, 1], [], []>} : vector<128x128xbf16>, vector<128x128xbf16>, vector<128x128xf32> -> vector<128x128xf32>
    %35 = vector.broadcast %1 : vector<1x128xf32> to vector<128x128xf32>
    %36 = arith.addf %34, %35 : vector<128x128xf32>
    %c0_26 = arith.constant 0 : index
    %c256_27 = arith.constant 256 : index
    %c0_28 = arith.constant 0 : index
    %37 = vector.load %arg7[%c0_26, %c256_27, %c0_28] : memref<1x512x128xf32, #tpu.memory_space<vmem>>, vector<1x128x128xf32>
    %38 = vector.shape_cast %37 : vector<1x128x128xf32> to vector<128x128xf32>
    %39 = vector.shape_cast %36 : vector<128x128xf32> to vector<1x128x128xf32>
    tpu.vector_store %arg7[%c0_26, %c256_27, %c0_28], %39 {strides = array<i32>} : memref<1x512x128xf32, #tpu.memory_space<vmem>>, vector<1x128x128xf32>,
    %cst_29 = arith.constant dense<0.000000e+00> : vector<1x128xf32>
    %40 = tpu.matmul %0, %36, %cst_29 {dimension_numbers = #tpu.dot_dimension_numbers<[1], [0], [0], [1], [0, 0, 1, 1], [], []>} : vector<1x128xf32>, vector<128x128xf32>, vector<1x128xf32> -> vector<1x128xf32>
    %41 = arith.addf %28, %40 : vector<1x128xf32>
    %42 = arith.mulf %36, %36 : vector<128x128xf32>
    %cst_30 = arith.constant dense<0.000000e+00> : vector<1x128xf32>
    %43 = tpu.matmul %0, %42, %cst_30 {dimension_numbers = #tpu.dot_dimension_numbers<[1], [0], [0], [1], [0, 0, 1, 1], [], []>} : vector<1x128xf32>, vector<128x128xf32>, vector<1x128xf32> -> vector<1x128xf32>
    %44 = arith.addf %31, %43 : vector<1x128xf32>
    %c0_31 = arith.constant 0 : index
    %c384 = arith.constant 384 : index
    %c0_32 = arith.constant 0 : index
    %45 = vector.load %arg1[%c0_31, %c384, %c0_32] : memref<1x512x128xbf16, #tpu.memory_space<vmem>>, vector<1x128x128xbf16>
    %46 = vector.shape_cast %45 : vector<1x128x128xbf16> to vector<128x128xbf16>
    %cst_33 = arith.constant dense<0.000000e+00> : vector<128x128xf32>
    %47 = tpu.matmul %46, %5, %cst_33 {dimension_numbers = #tpu.dot_dimension_numbers<[1], [0], [0], [1], [0, 0, 1, 1], [], []>} : vector<128x128xbf16>, vector<128x128xbf16>, vector<128x128xf32> -> vector<128x128xf32>
    %48 = vector.broadcast %1 : vector<1x128xf32> to vector<128x128xf32>
    %49 = arith.addf %47, %48 : vector<128x128xf32>
    %c0_34 = arith.constant 0 : index
    %c384_35 = arith.constant 384 : index
    %c0_36 = arith.constant 0 : index
    %50 = vector.load %arg7[%c0_34, %c384_35, %c0_36] : memref<1x512x128xf32, #tpu.memory_space<vmem>>, vector<1x128x128xf32>
    %51 = vector.shape_cast %50 : vector<1x128x128xf32> to vector<128x128xf32>
    %52 = vector.shape_cast %49 : vector<128x128xf32> to vector<1x128x128xf32>
    tpu.vector_store %arg7[%c0_34, %c384_35, %c0_36], %52 {strides = array<i32>} : memref<1x512x128xf32, #tpu.memory_space<vmem>>, vector<1x128x128xf32>,
    %cst_37 = arith.constant dense<0.000000e+00> : vector<1x128xf32>
    %53 = tpu.matmul %0, %49, %cst_37 {dimension_numbers = #tpu.dot_dimension_numbers<[1], [0], [0], [1], [0, 0, 1, 1], [], []>} : vector<1x128xf32>, vector<128x128xf32>, vector<1x128xf32> -> vector<1x128xf32>
    %54 = arith.addf %41, %53 : vector<1x128xf32>
    %55 = arith.mulf %49, %49 : vector<128x128xf32>
    %cst_38 = arith.constant dense<0.000000e+00> : vector<1x128xf32>
    %56 = tpu.matmul %0, %55, %cst_38 {dimension_numbers = #tpu.dot_dimension_numbers<[1], [0], [0], [1], [0, 0, 1, 1], [], []>} : vector<1x128xf32>, vector<128x128xf32>, vector<1x128xf32> -> vector<1x128xf32>
    %57 = arith.addf %44, %56 : vector<1x128xf32>
    %cst_39 = arith.constant 0.001953125 : f32
    %58 = vector.broadcast %cst_39 : f32 to vector<1x128xf32>
    %59 = arith.mulf %54, %58 : vector<1x128xf32>
    %cst_40 = arith.constant 0.001953125 : f32
    %60 = vector.broadcast %cst_40 : f32 to vector<1x128xf32>
    %61 = arith.mulf %57, %60 : vector<1x128xf32>
    %62 = arith.mulf %59, %59 : vector<1x128xf32>
    %63 = arith.subf %61, %62 : vector<1x128xf32>
    %cst_41 = arith.constant 0.000000e+00 : f32
    %64 = vector.broadcast %cst_41 : f32 to vector<1x128xf32>
    %65 = arith.maximumf %63, %64 : vector<1x128xf32>
    %cst_42 = arith.constant 9.99999974E-6 : f32
    %66 = vector.broadcast %cst_42 : f32 to vector<1x128xf32>
    %67 = arith.addf %65, %66 : vector<1x128xf32>
    %68 = math.rsqrt %67 : vector<1x128xf32>
    %c0_43 = arith.constant 0 : index
    %c0_44 = arith.constant 0 : index
    %69 = vector.load %arg4[%c0_43, %c0_44] : memref<1x128xf32, #tpu.memory_space<vmem>>, vector<1x128xf32>
    %70 = arith.mulf %68, %69 : vector<1x128xf32>
    %c0_45 = arith.constant 0 : index
    %c0_46 = arith.constant 0 : index
    %71 = vector.load %arg5[%c0_45, %c0_46] : memref<1x128xf32, #tpu.memory_space<vmem>>, vector<1x128xf32>
    %72 = arith.mulf %59, %70 : vector<1x128xf32>
    %73 = arith.subf %71, %72 : vector<1x128xf32>
    %c0_47 = arith.constant 0 : index
    %c0_48 = arith.constant 0 : index
    %c0_49 = arith.constant 0 : index
    %74 = vector.load %arg7[%c0_47, %c0_48, %c0_49] : memref<1x512x128xf32, #tpu.memory_space<vmem>>, vector<1x128x128xf32>
    %75 = vector.shape_cast %74 : vector<1x128x128xf32> to vector<128x128xf32>
    %76 = vector.broadcast %70 : vector<1x128xf32> to vector<128x128xf32>
    %77 = arith.mulf %75, %76 : vector<128x128xf32>
    %78 = vector.broadcast %73 : vector<1x128xf32> to vector<128x128xf32>
    %79 = arith.addf %77, %78 : vector<128x128xf32>
    %80 = arith.negf %79 : vector<128x128xf32>
    %81 = math.exp %80 : vector<128x128xf32>
    %cst_50 = arith.constant 1.000000e+00 : f32
    %82 = vector.broadcast %cst_50 : f32 to vector<128x128xf32>
    %83 = arith.addf %82, %81 : vector<128x128xf32>
    %84 = arith.divf %82, %83 : vector<128x128xf32>
    %85 = arith.mulf %79, %84 : vector<128x128xf32>
    %86 = arith.truncf %85 : vector<128x128xf32> to vector<128x128xbf16>
    %c0_51 = arith.constant 0 : index
    %c0_52 = arith.constant 0 : index
    %c0_53 = arith.constant 0 : index
    %87 = vector.load %arg6[%c0_51, %c0_52, %c0_53] : memref<1x512x128xbf16, #tpu.memory_space<vmem>>, vector<1x128x128xbf16>
    %88 = vector.shape_cast %87 : vector<1x128x128xbf16> to vector<128x128xbf16>
    %89 = vector.shape_cast %86 : vector<128x128xbf16> to vector<1x128x128xbf16>
    tpu.vector_store %arg6[%c0_51, %c0_52, %c0_53], %89 {strides = array<i32>} : memref<1x512x128xbf16, #tpu.memory_space<vmem>>, vector<1x128x128xbf16>,
    %c0_54 = arith.constant 0 : index
    %c128_55 = arith.constant 128 : index
    %c0_56 = arith.constant 0 : index
    %90 = vector.load %arg7[%c0_54, %c128_55, %c0_56] : memref<1x512x128xf32, #tpu.memory_space<vmem>>, vector<1x128x128xf32>
    %91 = vector.shape_cast %90 : vector<1x128x128xf32> to vector<128x128xf32>
    %92 = vector.broadcast %70 : vector<1x128xf32> to vector<128x128xf32>
    %93 = arith.mulf %91, %92 : vector<128x128xf32>
    %94 = vector.broadcast %73 : vector<1x128xf32> to vector<128x128xf32>
    %95 = arith.addf %93, %94 : vector<128x128xf32>
    %96 = arith.negf %95 : vector<128x128xf32>
    %97 = math.exp %96 : vector<128x128xf32>
    %cst_57 = arith.constant 1.000000e+00 : f32
    %98 = vector.broadcast %cst_57 : f32 to vector<128x128xf32>
    %99 = arith.addf %98, %97 : vector<128x128xf32>
    %100 = arith.divf %98, %99 : vector<128x128xf32>
    %101 = arith.mulf %95, %100 : vector<128x128xf32>
    %102 = arith.truncf %101 : vector<128x128xf32> to vector<128x128xbf16>
    %c0_58 = arith.constant 0 : index
    %c128_59 = arith.constant 128 : index
    %c0_60 = arith.constant 0 : index
    %103 = vector.load %arg6[%c0_58, %c128_59, %c0_60] : memref<1x512x128xbf16, #tpu.memory_space<vmem>>, vector<1x128x128xbf16>
    %104 = vector.shape_cast %103 : vector<1x128x128xbf16> to vector<128x128xbf16>
    %105 = vector.shape_cast %102 : vector<128x128xbf16> to vector<1x128x128xbf16>
    tpu.vector_store %arg6[%c0_58, %c128_59, %c0_60], %105 {strides = array<i32>} : memref<1x512x128xbf16, #tpu.memory_space<vmem>>, vector<1x128x128xbf16>,
    %c0_61 = arith.constant 0 : index
    %c256_62 = arith.constant 256 : index
    %c0_63 = arith.constant 0 : index
    %106 = vector.load %arg7[%c0_61, %c256_62, %c0_63] : memref<1x512x128xf32, #tpu.memory_space<vmem>>, vector<1x128x128xf32>
    %107 = vector.shape_cast %106 : vector<1x128x128xf32> to vector<128x128xf32>
    %108 = vector.broadcast %70 : vector<1x128xf32> to vector<128x128xf32>
    %109 = arith.mulf %107, %108 : vector<128x128xf32>
    %110 = vector.broadcast %73 : vector<1x128xf32> to vector<128x128xf32>
    %111 = arith.addf %109, %110 : vector<128x128xf32>
    %112 = arith.negf %111 : vector<128x128xf32>
    %113 = math.exp %112 : vector<128x128xf32>
    %cst_64 = arith.constant 1.000000e+00 : f32
    %114 = vector.broadcast %cst_64 : f32 to vector<128x128xf32>
    %115 = arith.addf %114, %113 : vector<128x128xf32>
    %116 = arith.divf %114, %115 : vector<128x128xf32>
    %117 = arith.mulf %111, %116 : vector<128x128xf32>
    %118 = arith.truncf %117 : vector<128x128xf32> to vector<128x128xbf16>
    %c0_65 = arith.constant 0 : index
    %c256_66 = arith.constant 256 : index
    %c0_67 = arith.constant 0 : index
    %119 = vector.load %arg6[%c0_65, %c256_66, %c0_67] : memref<1x512x128xbf16, #tpu.memory_space<vmem>>, vector<1x128x128xbf16>
    %120 = vector.shape_cast %119 : vector<1x128x128xbf16> to vector<128x128xbf16>
    %121 = vector.shape_cast %118 : vector<128x128xbf16> to vector<1x128x128xbf16>
    tpu.vector_store %arg6[%c0_65, %c256_66, %c0_67], %121 {strides = array<i32>} : memref<1x512x128xbf16, #tpu.memory_space<vmem>>, vector<1x128x128xbf16>,
    %c0_68 = arith.constant 0 : index
    %c384_69 = arith.constant 384 : index
    %c0_70 = arith.constant 0 : index
    %122 = vector.load %arg7[%c0_68, %c384_69, %c0_70] : memref<1x512x128xf32, #tpu.memory_space<vmem>>, vector<1x128x128xf32>
    %123 = vector.shape_cast %122 : vector<1x128x128xf32> to vector<128x128xf32>
    %124 = vector.broadcast %70 : vector<1x128xf32> to vector<128x128xf32>
    %125 = arith.mulf %123, %124 : vector<128x128xf32>
    %126 = vector.broadcast %73 : vector<1x128xf32> to vector<128x128xf32>
    %127 = arith.addf %125, %126 : vector<128x128xf32>
    %128 = arith.negf %127 : vector<128x128xf32>
    %129 = math.exp %128 : vector<128x128xf32>
    %cst_71 = arith.constant 1.000000e+00 : f32
    %130 = vector.broadcast %cst_71 : f32 to vector<128x128xf32>
    %131 = arith.addf %130, %129 : vector<128x128xf32>
    %132 = arith.divf %130, %131 : vector<128x128xf32>
    %133 = arith.mulf %127, %132 : vector<128x128xf32>
    %134 = arith.truncf %133 : vector<128x128xf32> to vector<128x128xbf16>
    %c0_72 = arith.constant 0 : index
    %c384_73 = arith.constant 384 : index
    %c0_74 = arith.constant 0 : index
    %135 = vector.load %arg6[%c0_72, %c384_73, %c0_74] : memref<1x512x128xbf16, #tpu.memory_space<vmem>>, vector<1x128x128xbf16>
    %136 = vector.shape_cast %135 : vector<1x128x128xbf16> to vector<128x128xbf16>
    %137 = vector.shape_cast %134 : vector<128x128xbf16> to vector<1x128x128xbf16>
    tpu.vector_store %arg6[%c0_72, %c384_73, %c0_74], %137 {strides = array<i32>} : memref<1x512x128xbf16, #tpu.memory_space<vmem>>, vector<1x128x128xbf16>,
    return
  }
  func.func @transform_0(%arg0: i32) -> (i32, i32, i32) {
    %c0_i32 = arith.constant 0 : i32
    %c0_i32_0 = arith.constant 0 : i32
    %c0_i32_1 = arith.constant 0 : i32
    %c0_i32_2 = arith.constant 0 : i32
    return %c0_i32, %c0_i32_0, %c0_i32_1 : i32, i32, i32
  }
  func.func @transform_1(%arg0: i32) -> (i32, i32, i32) {
    %c0_i32 = arith.constant 0 : i32
    %c0_i32_0 = arith.constant 0 : i32
    %c0_i32_1 = arith.constant 0 : i32
    %c0_i32_2 = arith.constant 0 : i32
    return %c0_i32, %c0_i32_0, %c0_i32_1 : i32, i32, i32
  }
  func.func @transform_2(%arg0: i32) -> (i32, i32) {
    %c0_i32 = arith.constant 0 : i32
    %c0_i32_0 = arith.constant 0 : i32
    %c0_i32_1 = arith.constant 0 : i32
    return %c0_i32, %c0_i32_0 : i32, i32
  }
  func.func @transform_3(%arg0: i32) -> (i32, i32) {
    %c0_i32 = arith.constant 0 : i32
    %c0_i32_0 = arith.constant 0 : i32
    %c0_i32_1 = arith.constant 0 : i32
    return %c0_i32, %c0_i32_0 : i32, i32
  }
  func.func @transform_4(%arg0: i32) -> (i32, i32) {
    %c0_i32 = arith.constant 0 : i32
    %c0_i32_0 = arith.constant 0 : i32
    %c0_i32_1 = arith.constant 0 : i32
    return %c0_i32, %c0_i32_0 : i32, i32
  }
  func.func @transform_5(%arg0: i32) -> (i32, i32, i32) {
    %c0_i32 = arith.constant 0 : i32
    %c0_i32_0 = arith.constant 0 : i32
    %c0_i32_1 = arith.constant 0 : i32
    %c0_i32_2 = arith.constant 0 : i32
    return %c0_i32, %c0_i32_0, %c0_i32_1 : i32, i32, i32
  }
}

module attributes {stable_mosaic.version = 11 : i64} {
  func.func @_conv_bn_silu_kernel(%arg0: i32, %arg1: memref<1x128x128xbf16, #tpu.memory_space<vmem>>, %arg2: memref<1x128x128xbf16, #tpu.memory_space<vmem>>, %arg3: memref<1x128xf32, #tpu.memory_space<vmem>>, %arg4: memref<1x128xf32, #tpu.memory_space<vmem>>, %arg5: memref<1x128xf32, #tpu.memory_space<vmem>>, %arg6: memref<1x128x128xbf16, #tpu.memory_space<vmem>>, %arg7: memref<1x128x128xf32, #tpu.memory_space<vmem>>) attributes {dimension_semantics = [#tpu.dimension_semantics<arbitrary>], iteration_bounds = array<i64: 1>, scalar_prefetch = 0 : i64, scratch_operands = 1 : i64, tpu.core_type = #tpu.core_type<tc>, window_params = [{pipeline_mode = #tpu.pipeline_mode<synchronous>, transform_indices = @transform_0, window_bounds = array<i64: 1, 128, 128>}, {pipeline_mode = #tpu.pipeline_mode<synchronous>, transform_indices = @transform_1, window_bounds = array<i64: 1, 128, 128>}, {pipeline_mode = #tpu.pipeline_mode<synchronous>, transform_indices = @transform_2, window_bounds = array<i64: 1, 128>}, {pipeline_mode = #tpu.pipeline_mode<synchronous>, transform_indices = @transform_3, window_bounds = array<i64: 1, 128>}, {pipeline_mode = #tpu.pipeline_mode<synchronous>, transform_indices = @transform_4, window_bounds = array<i64: 1, 128>}, {pipeline_mode = #tpu.pipeline_mode<synchronous>, transform_indices = @transform_5, window_bounds = array<i64: 1, 128, 128>}]} {
    %cst = arith.constant 1.000000e+00 : f32
    %0 = vector.broadcast %cst : f32 to vector<1x128xf32>
    %c0 = arith.constant 0 : index
    %c0_0 = arith.constant 0 : index
    %1 = vector.load %arg3[%c0, %c0_0] : memref<1x128xf32, #tpu.memory_space<vmem>>, vector<1x128xf32>
    %cst_1 = arith.constant 0.000000e+00 : f32
    %2 = vector.broadcast %cst_1 : f32 to vector<1x128xf32>
    %cst_2 = arith.constant 0.000000e+00 : f32
    %3 = vector.broadcast %cst_2 : f32 to vector<1x128xf32>
    %c0_3 = arith.constant 0 : index
    %c0_4 = arith.constant 0 : index
    %c0_5 = arith.constant 0 : index
    %4 = vector.load %arg2[%c0_3, %c0_4, %c0_5] : memref<1x128x128xbf16, #tpu.memory_space<vmem>>, vector<1x128x128xbf16>
    %5 = vector.shape_cast %4 : vector<1x128x128xbf16> to vector<128x128xbf16>
    %c0_6 = arith.constant 0 : index
    %c0_7 = arith.constant 0 : index
    %c0_8 = arith.constant 0 : index
    %6 = vector.load %arg1[%c0_6, %c0_7, %c0_8] : memref<1x128x128xbf16, #tpu.memory_space<vmem>>, vector<1x128x128xbf16>
    %7 = vector.shape_cast %6 : vector<1x128x128xbf16> to vector<128x128xbf16>
    %cst_9 = arith.constant dense<0.000000e+00> : vector<128x128xf32>
    %8 = tpu.matmul %7, %5, %cst_9 {dimension_numbers = #tpu.dot_dimension_numbers<[1], [0], [0], [1], [0, 0, 1, 1], [], []>} : vector<128x128xbf16>, vector<128x128xbf16>, vector<128x128xf32> -> vector<128x128xf32>
    %9 = vector.broadcast %1 : vector<1x128xf32> to vector<128x128xf32>
    %10 = arith.addf %8, %9 : vector<128x128xf32>
    %c0_10 = arith.constant 0 : index
    %c0_11 = arith.constant 0 : index
    %c0_12 = arith.constant 0 : index
    %11 = vector.load %arg7[%c0_10, %c0_11, %c0_12] : memref<1x128x128xf32, #tpu.memory_space<vmem>>, vector<1x128x128xf32>
    %12 = vector.shape_cast %11 : vector<1x128x128xf32> to vector<128x128xf32>
    %13 = vector.shape_cast %10 : vector<128x128xf32> to vector<1x128x128xf32>
    tpu.vector_store %arg7[%c0_10, %c0_11, %c0_12], %13 {strides = array<i32>} : memref<1x128x128xf32, #tpu.memory_space<vmem>>, vector<1x128x128xf32>,
    %cst_13 = arith.constant dense<0.000000e+00> : vector<1x128xf32>
    %14 = tpu.matmul %0, %10, %cst_13 {dimension_numbers = #tpu.dot_dimension_numbers<[1], [0], [0], [1], [0, 0, 1, 1], [], []>} : vector<1x128xf32>, vector<128x128xf32>, vector<1x128xf32> -> vector<1x128xf32>
    %15 = arith.addf %2, %14 : vector<1x128xf32>
    %16 = arith.mulf %10, %10 : vector<128x128xf32>
    %cst_14 = arith.constant dense<0.000000e+00> : vector<1x128xf32>
    %17 = tpu.matmul %0, %16, %cst_14 {dimension_numbers = #tpu.dot_dimension_numbers<[1], [0], [0], [1], [0, 0, 1, 1], [], []>} : vector<1x128xf32>, vector<128x128xf32>, vector<1x128xf32> -> vector<1x128xf32>
    %18 = arith.addf %3, %17 : vector<1x128xf32>
    %cst_15 = arith.constant 7.812500e-03 : f32
    %19 = vector.broadcast %cst_15 : f32 to vector<1x128xf32>
    %20 = arith.mulf %15, %19 : vector<1x128xf32>
    %cst_16 = arith.constant 7.812500e-03 : f32
    %21 = vector.broadcast %cst_16 : f32 to vector<1x128xf32>
    %22 = arith.mulf %18, %21 : vector<1x128xf32>
    %23 = arith.mulf %20, %20 : vector<1x128xf32>
    %24 = arith.subf %22, %23 : vector<1x128xf32>
    %cst_17 = arith.constant 0.000000e+00 : f32
    %25 = vector.broadcast %cst_17 : f32 to vector<1x128xf32>
    %26 = arith.maximumf %24, %25 : vector<1x128xf32>
    %cst_18 = arith.constant 9.99999974E-6 : f32
    %27 = vector.broadcast %cst_18 : f32 to vector<1x128xf32>
    %28 = arith.addf %26, %27 : vector<1x128xf32>
    %29 = math.rsqrt %28 : vector<1x128xf32>
    %c0_19 = arith.constant 0 : index
    %c0_20 = arith.constant 0 : index
    %30 = vector.load %arg4[%c0_19, %c0_20] : memref<1x128xf32, #tpu.memory_space<vmem>>, vector<1x128xf32>
    %31 = arith.mulf %29, %30 : vector<1x128xf32>
    %c0_21 = arith.constant 0 : index
    %c0_22 = arith.constant 0 : index
    %32 = vector.load %arg5[%c0_21, %c0_22] : memref<1x128xf32, #tpu.memory_space<vmem>>, vector<1x128xf32>
    %33 = arith.mulf %20, %31 : vector<1x128xf32>
    %34 = arith.subf %32, %33 : vector<1x128xf32>
    %c0_23 = arith.constant 0 : index
    %c0_24 = arith.constant 0 : index
    %c0_25 = arith.constant 0 : index
    %35 = vector.load %arg7[%c0_23, %c0_24, %c0_25] : memref<1x128x128xf32, #tpu.memory_space<vmem>>, vector<1x128x128xf32>
    %36 = vector.shape_cast %35 : vector<1x128x128xf32> to vector<128x128xf32>
    %37 = vector.broadcast %31 : vector<1x128xf32> to vector<128x128xf32>
    %38 = arith.mulf %36, %37 : vector<128x128xf32>
    %39 = vector.broadcast %34 : vector<1x128xf32> to vector<128x128xf32>
    %40 = arith.addf %38, %39 : vector<128x128xf32>
    %41 = arith.negf %40 : vector<128x128xf32>
    %42 = math.exp %41 : vector<128x128xf32>
    %cst_26 = arith.constant 1.000000e+00 : f32
    %43 = vector.broadcast %cst_26 : f32 to vector<128x128xf32>
    %44 = arith.addf %43, %42 : vector<128x128xf32>
    %45 = arith.divf %43, %44 : vector<128x128xf32>
    %46 = arith.mulf %40, %45 : vector<128x128xf32>
    %47 = arith.truncf %46 : vector<128x128xf32> to vector<128x128xbf16>
    %c0_27 = arith.constant 0 : index
    %c0_28 = arith.constant 0 : index
    %c0_29 = arith.constant 0 : index
    %48 = vector.load %arg6[%c0_27, %c0_28, %c0_29] : memref<1x128x128xbf16, #tpu.memory_space<vmem>>, vector<1x128x128xbf16>
    %49 = vector.shape_cast %48 : vector<1x128x128xbf16> to vector<128x128xbf16>
    %50 = vector.shape_cast %47 : vector<128x128xbf16> to vector<1x128x128xbf16>
    tpu.vector_store %arg6[%c0_27, %c0_28, %c0_29], %50 {strides = array<i32>} : memref<1x128x128xbf16, #tpu.memory_space<vmem>>, vector<1x128x128xbf16>,
    return
  }
  func.func @transform_0(%arg0: i32) -> (i32, i32, i32) {
    %c0_i32 = arith.constant 0 : i32
    %c0_i32_0 = arith.constant 0 : i32
    %c0_i32_1 = arith.constant 0 : i32
    %c0_i32_2 = arith.constant 0 : i32
    return %c0_i32, %c0_i32_0, %c0_i32_1 : i32, i32, i32
  }
  func.func @transform_1(%arg0: i32) -> (i32, i32, i32) {
    %c0_i32 = arith.constant 0 : i32
    %c0_i32_0 = arith.constant 0 : i32
    %c0_i32_1 = arith.constant 0 : i32
    %c0_i32_2 = arith.constant 0 : i32
    return %c0_i32, %c0_i32_0, %c0_i32_1 : i32, i32, i32
  }
  func.func @transform_2(%arg0: i32) -> (i32, i32) {
    %c0_i32 = arith.constant 0 : i32
    %c0_i32_0 = arith.constant 0 : i32
    %c0_i32_1 = arith.constant 0 : i32
    return %c0_i32, %c0_i32_0 : i32, i32
  }
  func.func @transform_3(%arg0: i32) -> (i32, i32) {
    %c0_i32 = arith.constant 0 : i32
    %c0_i32_0 = arith.constant 0 : i32
    %c0_i32_1 = arith.constant 0 : i32
    return %c0_i32, %c0_i32_0 : i32, i32
  }
  func.func @transform_4(%arg0: i32) -> (i32, i32) {
    %c0_i32 = arith.constant 0 : i32
    %c0_i32_0 = arith.constant 0 : i32
    %c0_i32_1 = arith.constant 0 : i32
    return %c0_i32, %c0_i32_0 : i32, i32
  }
  func.func @transform_5(%arg0: i32) -> (i32, i32, i32) {
    %c0_i32 = arith.constant 0 : i32
    %c0_i32_0 = arith.constant 0 : i32
    %c0_i32_1 = arith.constant 0 : i32
    %c0_i32_2 = arith.constant 0 : i32
    return %c0_i32, %c0_i32_0, %c0_i32_1 : i32, i32, i32
  }
}

module attributes {stable_mosaic.version = 11 : i64} {
  func.func @_conv_bn_silu_kernel(%arg0: i32, %arg1: memref<1x32x256xbf16, #tpu.memory_space<vmem>>, %arg2: memref<1x256x128xbf16, #tpu.memory_space<vmem>>, %arg3: memref<1x128xf32, #tpu.memory_space<vmem>>, %arg4: memref<1x128xf32, #tpu.memory_space<vmem>>, %arg5: memref<1x128xf32, #tpu.memory_space<vmem>>, %arg6: memref<1x32x128xbf16, #tpu.memory_space<vmem>>, %arg7: memref<1x32x128xf32, #tpu.memory_space<vmem>>) attributes {dimension_semantics = [#tpu.dimension_semantics<arbitrary>], iteration_bounds = array<i64: 1>, scalar_prefetch = 0 : i64, scratch_operands = 1 : i64, tpu.core_type = #tpu.core_type<tc>, window_params = [{pipeline_mode = #tpu.pipeline_mode<synchronous>, transform_indices = @transform_0, window_bounds = array<i64: 1, 32, 256>}, {pipeline_mode = #tpu.pipeline_mode<synchronous>, transform_indices = @transform_1, window_bounds = array<i64: 1, 256, 128>}, {pipeline_mode = #tpu.pipeline_mode<synchronous>, transform_indices = @transform_2, window_bounds = array<i64: 1, 128>}, {pipeline_mode = #tpu.pipeline_mode<synchronous>, transform_indices = @transform_3, window_bounds = array<i64: 1, 128>}, {pipeline_mode = #tpu.pipeline_mode<synchronous>, transform_indices = @transform_4, window_bounds = array<i64: 1, 128>}, {pipeline_mode = #tpu.pipeline_mode<synchronous>, transform_indices = @transform_5, window_bounds = array<i64: 1, 32, 128>}]} {
    %cst = arith.constant 1.000000e+00 : f32
    %0 = vector.broadcast %cst : f32 to vector<1x32xf32>
    %c0 = arith.constant 0 : index
    %c0_0 = arith.constant 0 : index
    %1 = vector.load %arg3[%c0, %c0_0] : memref<1x128xf32, #tpu.memory_space<vmem>>, vector<1x128xf32>
    %cst_1 = arith.constant 0.000000e+00 : f32
    %2 = vector.broadcast %cst_1 : f32 to vector<1x128xf32>
    %cst_2 = arith.constant 0.000000e+00 : f32
    %3 = vector.broadcast %cst_2 : f32 to vector<1x128xf32>
    %c0_3 = arith.constant 0 : index
    %c0_4 = arith.constant 0 : index
    %c0_5 = arith.constant 0 : index
    %4 = vector.load %arg2[%c0_3, %c0_4, %c0_5] : memref<1x256x128xbf16, #tpu.memory_space<vmem>>, vector<1x256x128xbf16>
    %5 = vector.shape_cast %4 : vector<1x256x128xbf16> to vector<256x128xbf16>
    %c0_6 = arith.constant 0 : index
    %c0_7 = arith.constant 0 : index
    %c0_8 = arith.constant 0 : index
    %6 = vector.load %arg1[%c0_6, %c0_7, %c0_8] : memref<1x32x256xbf16, #tpu.memory_space<vmem>>, vector<1x32x256xbf16>
    %7 = vector.shape_cast %6 : vector<1x32x256xbf16> to vector<32x256xbf16>
    %cst_9 = arith.constant dense<0.000000e+00> : vector<32x128xf32>
    %8 = tpu.matmul %7, %5, %cst_9 {dimension_numbers = #tpu.dot_dimension_numbers<[1], [0], [0], [1], [0, 0, 1, 1], [], []>} : vector<32x256xbf16>, vector<256x128xbf16>, vector<32x128xf32> -> vector<32x128xf32>
    %9 = vector.broadcast %1 : vector<1x128xf32> to vector<32x128xf32>
    %10 = arith.addf %8, %9 : vector<32x128xf32>
    %c0_10 = arith.constant 0 : index
    %c0_11 = arith.constant 0 : index
    %c0_12 = arith.constant 0 : index
    %11 = vector.load %arg7[%c0_10, %c0_11, %c0_12] : memref<1x32x128xf32, #tpu.memory_space<vmem>>, vector<1x32x128xf32>
    %12 = vector.shape_cast %11 : vector<1x32x128xf32> to vector<32x128xf32>
    %13 = vector.shape_cast %10 : vector<32x128xf32> to vector<1x32x128xf32>
    tpu.vector_store %arg7[%c0_10, %c0_11, %c0_12], %13 {strides = array<i32>} : memref<1x32x128xf32, #tpu.memory_space<vmem>>, vector<1x32x128xf32>,
    %cst_13 = arith.constant dense<0.000000e+00> : vector<1x128xf32>
    %14 = tpu.matmul %0, %10, %cst_13 {dimension_numbers = #tpu.dot_dimension_numbers<[1], [0], [0], [1], [0, 0, 1, 1], [], []>} : vector<1x32xf32>, vector<32x128xf32>, vector<1x128xf32> -> vector<1x128xf32>
    %15 = arith.addf %2, %14 : vector<1x128xf32>
    %16 = arith.mulf %10, %10 : vector<32x128xf32>
    %cst_14 = arith.constant dense<0.000000e+00> : vector<1x128xf32>
    %17 = tpu.matmul %0, %16, %cst_14 {dimension_numbers = #tpu.dot_dimension_numbers<[1], [0], [0], [1], [0, 0, 1, 1], [], []>} : vector<1x32xf32>, vector<32x128xf32>, vector<1x128xf32> -> vector<1x128xf32>
    %18 = arith.addf %3, %17 : vector<1x128xf32>
    %cst_15 = arith.constant 3.125000e-02 : f32
    %19 = vector.broadcast %cst_15 : f32 to vector<1x128xf32>
    %20 = arith.mulf %15, %19 : vector<1x128xf32>
    %cst_16 = arith.constant 3.125000e-02 : f32
    %21 = vector.broadcast %cst_16 : f32 to vector<1x128xf32>
    %22 = arith.mulf %18, %21 : vector<1x128xf32>
    %23 = arith.mulf %20, %20 : vector<1x128xf32>
    %24 = arith.subf %22, %23 : vector<1x128xf32>
    %cst_17 = arith.constant 0.000000e+00 : f32
    %25 = vector.broadcast %cst_17 : f32 to vector<1x128xf32>
    %26 = arith.maximumf %24, %25 : vector<1x128xf32>
    %cst_18 = arith.constant 9.99999974E-6 : f32
    %27 = vector.broadcast %cst_18 : f32 to vector<1x128xf32>
    %28 = arith.addf %26, %27 : vector<1x128xf32>
    %29 = math.rsqrt %28 : vector<1x128xf32>
    %c0_19 = arith.constant 0 : index
    %c0_20 = arith.constant 0 : index
    %30 = vector.load %arg4[%c0_19, %c0_20] : memref<1x128xf32, #tpu.memory_space<vmem>>, vector<1x128xf32>
    %31 = arith.mulf %29, %30 : vector<1x128xf32>
    %c0_21 = arith.constant 0 : index
    %c0_22 = arith.constant 0 : index
    %32 = vector.load %arg5[%c0_21, %c0_22] : memref<1x128xf32, #tpu.memory_space<vmem>>, vector<1x128xf32>
    %33 = arith.mulf %20, %31 : vector<1x128xf32>
    %34 = arith.subf %32, %33 : vector<1x128xf32>
    %c0_23 = arith.constant 0 : index
    %c0_24 = arith.constant 0 : index
    %c0_25 = arith.constant 0 : index
    %35 = vector.load %arg7[%c0_23, %c0_24, %c0_25] : memref<1x32x128xf32, #tpu.memory_space<vmem>>, vector<1x32x128xf32>
    %36 = vector.shape_cast %35 : vector<1x32x128xf32> to vector<32x128xf32>
    %37 = vector.broadcast %31 : vector<1x128xf32> to vector<32x128xf32>
    %38 = arith.mulf %36, %37 : vector<32x128xf32>
    %39 = vector.broadcast %34 : vector<1x128xf32> to vector<32x128xf32>
    %40 = arith.addf %38, %39 : vector<32x128xf32>
    %41 = arith.negf %40 : vector<32x128xf32>
    %42 = math.exp %41 : vector<32x128xf32>
    %cst_26 = arith.constant 1.000000e+00 : f32
    %43 = vector.broadcast %cst_26 : f32 to vector<32x128xf32>
    %44 = arith.addf %43, %42 : vector<32x128xf32>
    %45 = arith.divf %43, %44 : vector<32x128xf32>
    %46 = arith.mulf %40, %45 : vector<32x128xf32>
    %47 = arith.truncf %46 : vector<32x128xf32> to vector<32x128xbf16>
    %c0_27 = arith.constant 0 : index
    %c0_28 = arith.constant 0 : index
    %c0_29 = arith.constant 0 : index
    %48 = vector.load %arg6[%c0_27, %c0_28, %c0_29] : memref<1x32x128xbf16, #tpu.memory_space<vmem>>, vector<1x32x128xbf16>
    %49 = vector.shape_cast %48 : vector<1x32x128xbf16> to vector<32x128xbf16>
    %50 = vector.shape_cast %47 : vector<32x128xbf16> to vector<1x32x128xbf16>
    tpu.vector_store %arg6[%c0_27, %c0_28, %c0_29], %50 {strides = array<i32>} : memref<1x32x128xbf16, #tpu.memory_space<vmem>>, vector<1x32x128xbf16>,
    return
  }
  func.func @transform_0(%arg0: i32) -> (i32, i32, i32) {
    %c0_i32 = arith.constant 0 : i32
    %c0_i32_0 = arith.constant 0 : i32
    %c0_i32_1 = arith.constant 0 : i32
    %c0_i32_2 = arith.constant 0 : i32
    return %c0_i32, %c0_i32_0, %c0_i32_1 : i32, i32, i32
  }
  func.func @transform_1(%arg0: i32) -> (i32, i32, i32) {
    %c0_i32 = arith.constant 0 : i32
    %c0_i32_0 = arith.constant 0 : i32
    %c0_i32_1 = arith.constant 0 : i32
    %c0_i32_2 = arith.constant 0 : i32
    return %c0_i32, %c0_i32_0, %c0_i32_1 : i32, i32, i32
  }
  func.func @transform_2(%arg0: i32) -> (i32, i32) {
    %c0_i32 = arith.constant 0 : i32
    %c0_i32_0 = arith.constant 0 : i32
    %c0_i32_1 = arith.constant 0 : i32
    return %c0_i32, %c0_i32_0 : i32, i32
  }
  func.func @transform_3(%arg0: i32) -> (i32, i32) {
    %c0_i32 = arith.constant 0 : i32
    %c0_i32_0 = arith.constant 0 : i32
    %c0_i32_1 = arith.constant 0 : i32
    return %c0_i32, %c0_i32_0 : i32, i32
  }
  func.func @transform_4(%arg0: i32) -> (i32, i32) {
    %c0_i32 = arith.constant 0 : i32
    %c0_i32_0 = arith.constant 0 : i32
    %c0_i32_1 = arith.constant 0 : i32
    return %c0_i32, %c0_i32_0 : i32, i32
  }
  func.func @transform_5(%arg0: i32) -> (i32, i32, i32) {
    %c0_i32 = arith.constant 0 : i32
    %c0_i32_0 = arith.constant 0 : i32
    %c0_i32_1 = arith.constant 0 : i32
    %c0_i32_2 = arith.constant 0 : i32
    return %c0_i32, %c0_i32_0, %c0_i32_1 : i32, i32, i32
  }
}

module attributes {stable_mosaic.version = 11 : i64} {
  func.func @_preq_vq_postq_kernel(%arg0: i32, %arg1: memref<32x128xbf16, #tpu.memory_space<vmem>>, %arg2: memref<128x128xbf16, #tpu.memory_space<vmem>>, %arg3: memref<1x128xf32, #tpu.memory_space<vmem>>, %arg4: memref<128x128xf32, #tpu.memory_space<vmem>>, %arg5: memref<128x128xf32, #tpu.memory_space<vmem>>, %arg6: memref<1x128xf32, #tpu.memory_space<vmem>>, %arg7: memref<128x128xbf16, #tpu.memory_space<vmem>>, %arg8: memref<1x128xf32, #tpu.memory_space<vmem>>, %arg9: memref<32x128xbf16, #tpu.memory_space<vmem>>, %arg10: memref<1x1xf32, #tpu.memory_space<vmem>>) attributes {dimension_semantics = [#tpu.dimension_semantics<arbitrary>], iteration_bounds = array<i64: 1>, scalar_prefetch = 0 : i64, scratch_operands = 0 : i64, tpu.core_type = #tpu.core_type<tc>, window_params = [{pipeline_mode = #tpu.pipeline_mode<synchronous>, transform_indices = @transform_0, window_bounds = array<i64: 32, 128>}, {pipeline_mode = #tpu.pipeline_mode<synchronous>, transform_indices = @transform_1, window_bounds = array<i64: 128, 128>}, {pipeline_mode = #tpu.pipeline_mode<synchronous>, transform_indices = @transform_2, window_bounds = array<i64: 1, 128>}, {pipeline_mode = #tpu.pipeline_mode<synchronous>, transform_indices = @transform_3, window_bounds = array<i64: 128, 128>}, {pipeline_mode = #tpu.pipeline_mode<synchronous>, transform_indices = @transform_4, window_bounds = array<i64: 128, 128>}, {pipeline_mode = #tpu.pipeline_mode<synchronous>, transform_indices = @transform_5, window_bounds = array<i64: 1, 128>}, {pipeline_mode = #tpu.pipeline_mode<synchronous>, transform_indices = @transform_6, window_bounds = array<i64: 128, 128>}, {pipeline_mode = #tpu.pipeline_mode<synchronous>, transform_indices = @transform_7, window_bounds = array<i64: 1, 128>}, {pipeline_mode = #tpu.pipeline_mode<synchronous>, transform_indices = @transform_8, window_bounds = array<i64: 32, 128>}, {pipeline_mode = #tpu.pipeline_mode<synchronous>, transform_indices = @transform_9, window_bounds = array<i64: 1, 1>}]} {
    %c0 = arith.constant 0 : index
    %c0_0 = arith.constant 0 : index
    %0 = vector.load %arg1[%c0, %c0_0] : memref<32x128xbf16, #tpu.memory_space<vmem>>, vector<32x128xbf16>
    %c0_1 = arith.constant 0 : index
    %c0_2 = arith.constant 0 : index
    %1 = vector.load %arg2[%c0_1, %c0_2] : memref<128x128xbf16, #tpu.memory_space<vmem>>, vector<128x128xbf16>
    %cst = arith.constant dense<0.000000e+00> : vector<32x128xf32>
    %2 = tpu.matmul %0, %1, %cst {dimension_numbers = #tpu.dot_dimension_numbers<[1], [0], [0], [1], [0, 0, 1, 1], [], []>} : vector<32x128xbf16>, vector<128x128xbf16>, vector<32x128xf32> -> vector<32x128xf32>
    %c0_3 = arith.constant 0 : index
    %c0_4 = arith.constant 0 : index
    %3 = vector.load %arg3[%c0_3, %c0_4] : memref<1x128xf32, #tpu.memory_space<vmem>>, vector<1x128xf32>
    %4 = vector.broadcast %3 : vector<1x128xf32> to vector<32x128xf32>
    %5 = arith.addf %2, %4 : vector<32x128xf32>
    %6 = arith.mulf %5, %5 : vector<32x128xf32>
    %cst_5 = arith.constant dense<0.000000e+00> : vector<32xf32>
    %7 = vector.multi_reduction <add>, %6, %cst_5 [1] : vector<32x128xf32> to vector<32xf32>
    %8 = vector.shape_cast %7 : vector<32xf32> to vector<32x1xf32>
    %c0_6 = arith.constant 0 : index
    %c0_7 = arith.constant 0 : index
    %9 = vector.load %arg4[%c0_6, %c0_7] : memref<128x128xf32, #tpu.memory_space<vmem>>, vector<128x128xf32>
    %cst_8 = arith.constant dense<0.000000e+00> : vector<32x128xf32>
    %10 = tpu.matmul %5, %9, %cst_8 {dimension_numbers = #tpu.dot_dimension_numbers<[1], [0], [0], [1], [0, 0, 1, 1], [], []>} : vector<32x128xf32>, vector<128x128xf32>, vector<32x128xf32> -> vector<32x128xf32>
    %11 = tpu.iota {dimensions = array<i32: 1>} : vector<32x128xi32>
    %c16_i32 = arith.constant 16 : i32
    %12 = vector.broadcast %c16_i32 : i32 to vector<32x128xi32>
    %13 = arith.cmpi sge, %11, %12 : vector<32x128xi32>
    %cst_9 = arith.constant 1.000000e+30 : f32
    %cst_10 = arith.constant 0.000000e+00 : f32
    %14 = vector.broadcast %cst_9 : f32 to vector<32x128xf32>
    %15 = vector.broadcast %cst_10 : f32 to vector<32x128xf32>
    %16 = arith.select %13, %14, %15 : vector<32x128xi1>, vector<32x128xf32>
    %c0_11 = arith.constant 0 : index
    %c0_12 = arith.constant 0 : index
    %17 = vector.load %arg6[%c0_11, %c0_12] : memref<1x128xf32, #tpu.memory_space<vmem>>, vector<1x128xf32>
    %18 = vector.broadcast %8 : vector<32x1xf32> to vector<32x128xf32>
    %19 = vector.broadcast %17 : vector<1x128xf32> to vector<32x128xf32>
    %20 = arith.addf %18, %19 : vector<32x128xf32>
    %cst_13 = arith.constant 2.000000e+00 : f32
    %21 = vector.broadcast %cst_13 : f32 to vector<32x128xf32>
    %22 = arith.mulf %21, %10 : vector<32x128xf32>
    %23 = arith.subf %20, %22 : vector<32x128xf32>
    %24 = arith.addf %23, %16 : vector<32x128xf32>
    %cst_14 = arith.constant dense<0x7F800000> : vector<32xf32>
    %25 = vector.multi_reduction <minimumf>, %24, %cst_14 [1] : vector<32x128xf32> to vector<32xf32>
    %26 = vector.shape_cast %25 : vector<32xf32> to vector<32x1xf32>
    %27 = vector.broadcast %26 : vector<32x1xf32> to vector<32x128xf32>
    %28 = arith.cmpf oeq, %24, %27 : vector<32x128xf32>
    %c128_i32 = arith.constant 128 : i32
    %29 = vector.broadcast %c128_i32 : i32 to vector<32x128xi32>
    %30 = arith.select %28, %11, %29 : vector<32x128xi1>, vector<32x128xi32>
    %cst_15 = arith.constant dense<2147483647> : vector<32xi32>
    %31 = vector.multi_reduction <minsi>, %30, %cst_15 [1] : vector<32x128xi32> to vector<32xi32>
    %32 = vector.shape_cast %31 : vector<32xi32> to vector<32x1xi32>
    %33 = vector.broadcast %32 : vector<32x1xi32> to vector<32x128xi32>
    %34 = arith.cmpi eq, %11, %33 : vector<32x128xi32>
    %35 = arith.extui %34 : vector<32x128xi1> to vector<32x128xi32>
    %36 = arith.sitofp %35 : vector<32x128xi32> to vector<32x128xf32>
    %c0_16 = arith.constant 0 : index
    %c0_17 = arith.constant 0 : index
    %37 = vector.load %arg5[%c0_16, %c0_17] : memref<128x128xf32, #tpu.memory_space<vmem>>, vector<128x128xf32>
    %cst_18 = arith.constant dense<0.000000e+00> : vector<32x128xf32>
    %38 = tpu.matmul %36, %37, %cst_18 {dimension_numbers = #tpu.dot_dimension_numbers<[1], [0], [0], [1], [0, 0, 1, 1], [], []>} : vector<32x128xf32>, vector<128x128xf32>, vector<32x128xf32> -> vector<32x128xf32>
    %39 = arith.subf %38, %5 : vector<32x128xf32>
    %40 = arith.mulf %39, %39 : vector<32x128xf32>
    %cst_19 = arith.constant dense<0.000000e+00> : vector<32xf32>
    %41 = vector.multi_reduction <add>, %40, %cst_19 [1] : vector<32x128xf32> to vector<32xf32>
    %42 = vector.shape_cast %41 : vector<32xf32> to vector<32x1xf32>
    %cst_20 = arith.constant dense<0.000000e+00> : vector<1xf32>
    %43 = vector.multi_reduction <add>, %42, %cst_20 [0] : vector<32x1xf32> to vector<1xf32>
    %44 = vector.shape_cast %43 : vector<1xf32> to vector<1x1xf32>
    %c0_21 = arith.constant 0 : index
    %c0_22 = arith.constant 0 : index
    %45 = vector.load %arg10[%c0_21, %c0_22] : memref<1x1xf32, #tpu.memory_space<vmem>>, vector<1x1xf32>
    tpu.vector_store %arg10[%c0_21, %c0_22], %44 {strides = array<i32>} : memref<1x1xf32, #tpu.memory_space<vmem>>, vector<1x1xf32>,
    %46 = arith.truncf %38 : vector<32x128xf32> to vector<32x128xbf16>
    %c0_23 = arith.constant 0 : index
    %c0_24 = arith.constant 0 : index
    %47 = vector.load %arg7[%c0_23, %c0_24] : memref<128x128xbf16, #tpu.memory_space<vmem>>, vector<128x128xbf16>
    %cst_25 = arith.constant dense<0.000000e+00> : vector<32x128xf32>
    %48 = tpu.matmul %46, %47, %cst_25 {dimension_numbers = #tpu.dot_dimension_numbers<[1], [0], [0], [1], [0, 0, 1, 1], [], []>} : vector<32x128xbf16>, vector<128x128xbf16>, vector<32x128xf32> -> vector<32x128xf32>
    %c0_26 = arith.constant 0 : index
    %c0_27 = arith.constant 0 : index
    %49 = vector.load %arg8[%c0_26, %c0_27] : memref<1x128xf32, #tpu.memory_space<vmem>>, vector<1x128xf32>
    %50 = vector.broadcast %49 : vector<1x128xf32> to vector<32x128xf32>
    %51 = arith.addf %48, %50 : vector<32x128xf32>
    %52 = arith.truncf %51 : vector<32x128xf32> to vector<32x128xbf16>
    %c0_28 = arith.constant 0 : index
    %c0_29 = arith.constant 0 : index
    %53 = vector.load %arg9[%c0_28, %c0_29] : memref<32x128xbf16, #tpu.memory_space<vmem>>, vector<32x128xbf16>
    tpu.vector_store %arg9[%c0_28, %c0_29], %52 {strides = array<i32>} : memref<32x128xbf16, #tpu.memory_space<vmem>>, vector<32x128xbf16>,
    return
  }
  func.func @transform_0(%arg0: i32) -> (i32, i32) {
    %c0_i32 = arith.constant 0 : i32
    %c0_i32_0 = arith.constant 0 : i32
    %c0_i32_1 = arith.constant 0 : i32
    return %c0_i32, %c0_i32_0 : i32, i32
  }
  func.func @transform_1(%arg0: i32) -> (i32, i32) {
    %c0_i32 = arith.constant 0 : i32
    %c0_i32_0 = arith.constant 0 : i32
    %c0_i32_1 = arith.constant 0 : i32
    return %c0_i32, %c0_i32_0 : i32, i32
  }
  func.func @transform_2(%arg0: i32) -> (i32, i32) {
    %c0_i32 = arith.constant 0 : i32
    %c0_i32_0 = arith.constant 0 : i32
    %c0_i32_1 = arith.constant 0 : i32
    return %c0_i32, %c0_i32_0 : i32, i32
  }
  func.func @transform_3(%arg0: i32) -> (i32, i32) {
    %c0_i32 = arith.constant 0 : i32
    %c0_i32_0 = arith.constant 0 : i32
    %c0_i32_1 = arith.constant 0 : i32
    return %c0_i32, %c0_i32_0 : i32, i32
  }
  func.func @transform_4(%arg0: i32) -> (i32, i32) {
    %c0_i32 = arith.constant 0 : i32
    %c0_i32_0 = arith.constant 0 : i32
    %c0_i32_1 = arith.constant 0 : i32
    return %c0_i32, %c0_i32_0 : i32, i32
  }
  func.func @transform_5(%arg0: i32) -> (i32, i32) {
    %c0_i32 = arith.constant 0 : i32
    %c0_i32_0 = arith.constant 0 : i32
    %c0_i32_1 = arith.constant 0 : i32
    return %c0_i32, %c0_i32_0 : i32, i32
  }
  func.func @transform_6(%arg0: i32) -> (i32, i32) {
    %c0_i32 = arith.constant 0 : i32
    %c0_i32_0 = arith.constant 0 : i32
    %c0_i32_1 = arith.constant 0 : i32
    return %c0_i32, %c0_i32_0 : i32, i32
  }
  func.func @transform_7(%arg0: i32) -> (i32, i32) {
    %c0_i32 = arith.constant 0 : i32
    %c0_i32_0 = arith.constant 0 : i32
    %c0_i32_1 = arith.constant 0 : i32
    return %c0_i32, %c0_i32_0 : i32, i32
  }
  func.func @transform_8(%arg0: i32) -> (i32, i32) {
    %c0_i32 = arith.constant 0 : i32
    %c0_i32_0 = arith.constant 0 : i32
    %c0_i32_1 = arith.constant 0 : i32
    return %c0_i32, %c0_i32_0 : i32, i32
  }
  func.func @transform_9(%arg0: i32) -> (i32, i32) {
    %c0_i32 = arith.constant 0 : i32
    %c0_i32_0 = arith.constant 0 : i32
    %c0_i32_1 = arith.constant 0 : i32
    return %c0_i32, %c0_i32_0 : i32, i32
  }
}

module attributes {stable_mosaic.version = 11 : i64} {
  func.func @_conv_bn_silu_kernel(%arg0: i32, %arg1: memref<4x32x128xbf16, #tpu.memory_space<vmem>>, %arg2: memref<4x128x128xbf16, #tpu.memory_space<vmem>>, %arg3: memref<1x128xf32, #tpu.memory_space<vmem>>, %arg4: memref<1x128xf32, #tpu.memory_space<vmem>>, %arg5: memref<1x128xf32, #tpu.memory_space<vmem>>, %arg6: memref<4x32x128xbf16, #tpu.memory_space<vmem>>, %arg7: memref<4x32x128xf32, #tpu.memory_space<vmem>>) attributes {dimension_semantics = [#tpu.dimension_semantics<arbitrary>], iteration_bounds = array<i64: 1>, scalar_prefetch = 0 : i64, scratch_operands = 1 : i64, tpu.core_type = #tpu.core_type<tc>, window_params = [{pipeline_mode = #tpu.pipeline_mode<synchronous>, transform_indices = @transform_0, window_bounds = array<i64: 4, 32, 128>}, {pipeline_mode = #tpu.pipeline_mode<synchronous>, transform_indices = @transform_1, window_bounds = array<i64: 4, 128, 128>}, {pipeline_mode = #tpu.pipeline_mode<synchronous>, transform_indices = @transform_2, window_bounds = array<i64: 1, 128>}, {pipeline_mode = #tpu.pipeline_mode<synchronous>, transform_indices = @transform_3, window_bounds = array<i64: 1, 128>}, {pipeline_mode = #tpu.pipeline_mode<synchronous>, transform_indices = @transform_4, window_bounds = array<i64: 1, 128>}, {pipeline_mode = #tpu.pipeline_mode<synchronous>, transform_indices = @transform_5, window_bounds = array<i64: 4, 32, 128>}]} {
    %cst = arith.constant 1.000000e+00 : f32
    %0 = vector.broadcast %cst : f32 to vector<1x32xf32>
    %c0 = arith.constant 0 : index
    %c0_0 = arith.constant 0 : index
    %1 = vector.load %arg3[%c0, %c0_0] : memref<1x128xf32, #tpu.memory_space<vmem>>, vector<1x128xf32>
    %cst_1 = arith.constant 0.000000e+00 : f32
    %2 = vector.broadcast %cst_1 : f32 to vector<1x128xf32>
    %cst_2 = arith.constant 0.000000e+00 : f32
    %3 = vector.broadcast %cst_2 : f32 to vector<1x128xf32>
    %c0_3 = arith.constant 0 : index
    %c0_4 = arith.constant 0 : index
    %c0_5 = arith.constant 0 : index
    %4 = vector.load %arg2[%c0_3, %c0_4, %c0_5] : memref<4x128x128xbf16, #tpu.memory_space<vmem>>, vector<1x128x128xbf16>
    %5 = vector.shape_cast %4 : vector<1x128x128xbf16> to vector<128x128xbf16>
    %c0_6 = arith.constant 0 : index
    %c0_7 = arith.constant 0 : index
    %c0_8 = arith.constant 0 : index
    %6 = vector.load %arg1[%c0_6, %c0_7, %c0_8] : memref<4x32x128xbf16, #tpu.memory_space<vmem>>, vector<1x32x128xbf16>
    %7 = vector.shape_cast %6 : vector<1x32x128xbf16> to vector<32x128xbf16>
    %cst_9 = arith.constant dense<0.000000e+00> : vector<32x128xf32>
    %8 = tpu.matmul %7, %5, %cst_9 {dimension_numbers = #tpu.dot_dimension_numbers<[1], [0], [0], [1], [0, 0, 1, 1], [], []>} : vector<32x128xbf16>, vector<128x128xbf16>, vector<32x128xf32> -> vector<32x128xf32>
    %9 = vector.broadcast %1 : vector<1x128xf32> to vector<32x128xf32>
    %10 = arith.addf %8, %9 : vector<32x128xf32>
    %c0_10 = arith.constant 0 : index
    %c0_11 = arith.constant 0 : index
    %c0_12 = arith.constant 0 : index
    %11 = vector.load %arg7[%c0_10, %c0_11, %c0_12] : memref<4x32x128xf32, #tpu.memory_space<vmem>>, vector<1x32x128xf32>
    %12 = vector.shape_cast %11 : vector<1x32x128xf32> to vector<32x128xf32>
    %13 = vector.shape_cast %10 : vector<32x128xf32> to vector<1x32x128xf32>
    tpu.vector_store %arg7[%c0_10, %c0_11, %c0_12], %13 {strides = array<i32>} : memref<4x32x128xf32, #tpu.memory_space<vmem>>, vector<1x32x128xf32>,
    %cst_13 = arith.constant dense<0.000000e+00> : vector<1x128xf32>
    %14 = tpu.matmul %0, %10, %cst_13 {dimension_numbers = #tpu.dot_dimension_numbers<[1], [0], [0], [1], [0, 0, 1, 1], [], []>} : vector<1x32xf32>, vector<32x128xf32>, vector<1x128xf32> -> vector<1x128xf32>
    %15 = arith.addf %2, %14 : vector<1x128xf32>
    %16 = arith.mulf %10, %10 : vector<32x128xf32>
    %cst_14 = arith.constant dense<0.000000e+00> : vector<1x128xf32>
    %17 = tpu.matmul %0, %16, %cst_14 {dimension_numbers = #tpu.dot_dimension_numbers<[1], [0], [0], [1], [0, 0, 1, 1], [], []>} : vector<1x32xf32>, vector<32x128xf32>, vector<1x128xf32> -> vector<1x128xf32>
    %18 = arith.addf %3, %17 : vector<1x128xf32>
    %c1 = arith.constant 1 : index
    %c0_15 = arith.constant 0 : index
    %c0_16 = arith.constant 0 : index
    %19 = vector.load %arg2[%c1, %c0_15, %c0_16] : memref<4x128x128xbf16, #tpu.memory_space<vmem>>, vector<1x128x128xbf16>
    %20 = vector.shape_cast %19 : vector<1x128x128xbf16> to vector<128x128xbf16>
    %c1_17 = arith.constant 1 : index
    %c0_18 = arith.constant 0 : index
    %c0_19 = arith.constant 0 : index
    %21 = vector.load %arg1[%c1_17, %c0_18, %c0_19] : memref<4x32x128xbf16, #tpu.memory_space<vmem>>, vector<1x32x128xbf16>
    %22 = vector.shape_cast %21 : vector<1x32x128xbf16> to vector<32x128xbf16>
    %cst_20 = arith.constant dense<0.000000e+00> : vector<32x128xf32>
    %23 = tpu.matmul %22, %20, %cst_20 {dimension_numbers = #tpu.dot_dimension_numbers<[1], [0], [0], [1], [0, 0, 1, 1], [], []>} : vector<32x128xbf16>, vector<128x128xbf16>, vector<32x128xf32> -> vector<32x128xf32>
    %24 = vector.broadcast %1 : vector<1x128xf32> to vector<32x128xf32>
    %25 = arith.addf %23, %24 : vector<32x128xf32>
    %c1_21 = arith.constant 1 : index
    %c0_22 = arith.constant 0 : index
    %c0_23 = arith.constant 0 : index
    %26 = vector.load %arg7[%c1_21, %c0_22, %c0_23] : memref<4x32x128xf32, #tpu.memory_space<vmem>>, vector<1x32x128xf32>
    %27 = vector.shape_cast %26 : vector<1x32x128xf32> to vector<32x128xf32>
    %28 = vector.shape_cast %25 : vector<32x128xf32> to vector<1x32x128xf32>
    tpu.vector_store %arg7[%c1_21, %c0_22, %c0_23], %28 {strides = array<i32>} : memref<4x32x128xf32, #tpu.memory_space<vmem>>, vector<1x32x128xf32>,
    %cst_24 = arith.constant dense<0.000000e+00> : vector<1x128xf32>
    %29 = tpu.matmul %0, %25, %cst_24 {dimension_numbers = #tpu.dot_dimension_numbers<[1], [0], [0], [1], [0, 0, 1, 1], [], []>} : vector<1x32xf32>, vector<32x128xf32>, vector<1x128xf32> -> vector<1x128xf32>
    %30 = arith.addf %15, %29 : vector<1x128xf32>
    %31 = arith.mulf %25, %25 : vector<32x128xf32>
    %cst_25 = arith.constant dense<0.000000e+00> : vector<1x128xf32>
    %32 = tpu.matmul %0, %31, %cst_25 {dimension_numbers = #tpu.dot_dimension_numbers<[1], [0], [0], [1], [0, 0, 1, 1], [], []>} : vector<1x32xf32>, vector<32x128xf32>, vector<1x128xf32> -> vector<1x128xf32>
    %33 = arith.addf %18, %32 : vector<1x128xf32>
    %c2 = arith.constant 2 : index
    %c0_26 = arith.constant 0 : index
    %c0_27 = arith.constant 0 : index
    %34 = vector.load %arg2[%c2, %c0_26, %c0_27] : memref<4x128x128xbf16, #tpu.memory_space<vmem>>, vector<1x128x128xbf16>
    %35 = vector.shape_cast %34 : vector<1x128x128xbf16> to vector<128x128xbf16>
    %c2_28 = arith.constant 2 : index
    %c0_29 = arith.constant 0 : index
    %c0_30 = arith.constant 0 : index
    %36 = vector.load %arg1[%c2_28, %c0_29, %c0_30] : memref<4x32x128xbf16, #tpu.memory_space<vmem>>, vector<1x32x128xbf16>
    %37 = vector.shape_cast %36 : vector<1x32x128xbf16> to vector<32x128xbf16>
    %cst_31 = arith.constant dense<0.000000e+00> : vector<32x128xf32>
    %38 = tpu.matmul %37, %35, %cst_31 {dimension_numbers = #tpu.dot_dimension_numbers<[1], [0], [0], [1], [0, 0, 1, 1], [], []>} : vector<32x128xbf16>, vector<128x128xbf16>, vector<32x128xf32> -> vector<32x128xf32>
    %39 = vector.broadcast %1 : vector<1x128xf32> to vector<32x128xf32>
    %40 = arith.addf %38, %39 : vector<32x128xf32>
    %c2_32 = arith.constant 2 : index
    %c0_33 = arith.constant 0 : index
    %c0_34 = arith.constant 0 : index
    %41 = vector.load %arg7[%c2_32, %c0_33, %c0_34] : memref<4x32x128xf32, #tpu.memory_space<vmem>>, vector<1x32x128xf32>
    %42 = vector.shape_cast %41 : vector<1x32x128xf32> to vector<32x128xf32>
    %43 = vector.shape_cast %40 : vector<32x128xf32> to vector<1x32x128xf32>
    tpu.vector_store %arg7[%c2_32, %c0_33, %c0_34], %43 {strides = array<i32>} : memref<4x32x128xf32, #tpu.memory_space<vmem>>, vector<1x32x128xf32>,
    %cst_35 = arith.constant dense<0.000000e+00> : vector<1x128xf32>
    %44 = tpu.matmul %0, %40, %cst_35 {dimension_numbers = #tpu.dot_dimension_numbers<[1], [0], [0], [1], [0, 0, 1, 1], [], []>} : vector<1x32xf32>, vector<32x128xf32>, vector<1x128xf32> -> vector<1x128xf32>
    %45 = arith.addf %30, %44 : vector<1x128xf32>
    %46 = arith.mulf %40, %40 : vector<32x128xf32>
    %cst_36 = arith.constant dense<0.000000e+00> : vector<1x128xf32>
    %47 = tpu.matmul %0, %46, %cst_36 {dimension_numbers = #tpu.dot_dimension_numbers<[1], [0], [0], [1], [0, 0, 1, 1], [], []>} : vector<1x32xf32>, vector<32x128xf32>, vector<1x128xf32> -> vector<1x128xf32>
    %48 = arith.addf %33, %47 : vector<1x128xf32>
    %c3 = arith.constant 3 : index
    %c0_37 = arith.constant 0 : index
    %c0_38 = arith.constant 0 : index
    %49 = vector.load %arg2[%c3, %c0_37, %c0_38] : memref<4x128x128xbf16, #tpu.memory_space<vmem>>, vector<1x128x128xbf16>
    %50 = vector.shape_cast %49 : vector<1x128x128xbf16> to vector<128x128xbf16>
    %c3_39 = arith.constant 3 : index
    %c0_40 = arith.constant 0 : index
    %c0_41 = arith.constant 0 : index
    %51 = vector.load %arg1[%c3_39, %c0_40, %c0_41] : memref<4x32x128xbf16, #tpu.memory_space<vmem>>, vector<1x32x128xbf16>
    %52 = vector.shape_cast %51 : vector<1x32x128xbf16> to vector<32x128xbf16>
    %cst_42 = arith.constant dense<0.000000e+00> : vector<32x128xf32>
    %53 = tpu.matmul %52, %50, %cst_42 {dimension_numbers = #tpu.dot_dimension_numbers<[1], [0], [0], [1], [0, 0, 1, 1], [], []>} : vector<32x128xbf16>, vector<128x128xbf16>, vector<32x128xf32> -> vector<32x128xf32>
    %54 = vector.broadcast %1 : vector<1x128xf32> to vector<32x128xf32>
    %55 = arith.addf %53, %54 : vector<32x128xf32>
    %c3_43 = arith.constant 3 : index
    %c0_44 = arith.constant 0 : index
    %c0_45 = arith.constant 0 : index
    %56 = vector.load %arg7[%c3_43, %c0_44, %c0_45] : memref<4x32x128xf32, #tpu.memory_space<vmem>>, vector<1x32x128xf32>
    %57 = vector.shape_cast %56 : vector<1x32x128xf32> to vector<32x128xf32>
    %58 = vector.shape_cast %55 : vector<32x128xf32> to vector<1x32x128xf32>
    tpu.vector_store %arg7[%c3_43, %c0_44, %c0_45], %58 {strides = array<i32>} : memref<4x32x128xf32, #tpu.memory_space<vmem>>, vector<1x32x128xf32>,
    %cst_46 = arith.constant dense<0.000000e+00> : vector<1x128xf32>
    %59 = tpu.matmul %0, %55, %cst_46 {dimension_numbers = #tpu.dot_dimension_numbers<[1], [0], [0], [1], [0, 0, 1, 1], [], []>} : vector<1x32xf32>, vector<32x128xf32>, vector<1x128xf32> -> vector<1x128xf32>
    %60 = arith.addf %45, %59 : vector<1x128xf32>
    %61 = arith.mulf %55, %55 : vector<32x128xf32>
    %cst_47 = arith.constant dense<0.000000e+00> : vector<1x128xf32>
    %62 = tpu.matmul %0, %61, %cst_47 {dimension_numbers = #tpu.dot_dimension_numbers<[1], [0], [0], [1], [0, 0, 1, 1], [], []>} : vector<1x32xf32>, vector<32x128xf32>, vector<1x128xf32> -> vector<1x128xf32>
    %63 = arith.addf %48, %62 : vector<1x128xf32>
    %cst_48 = arith.constant 7.812500e-03 : f32
    %64 = vector.broadcast %cst_48 : f32 to vector<1x128xf32>
    %65 = arith.mulf %60, %64 : vector<1x128xf32>
    %cst_49 = arith.constant 7.812500e-03 : f32
    %66 = vector.broadcast %cst_49 : f32 to vector<1x128xf32>
    %67 = arith.mulf %63, %66 : vector<1x128xf32>
    %68 = arith.mulf %65, %65 : vector<1x128xf32>
    %69 = arith.subf %67, %68 : vector<1x128xf32>
    %cst_50 = arith.constant 0.000000e+00 : f32
    %70 = vector.broadcast %cst_50 : f32 to vector<1x128xf32>
    %71 = arith.maximumf %69, %70 : vector<1x128xf32>
    %cst_51 = arith.constant 9.99999974E-6 : f32
    %72 = vector.broadcast %cst_51 : f32 to vector<1x128xf32>
    %73 = arith.addf %71, %72 : vector<1x128xf32>
    %74 = math.rsqrt %73 : vector<1x128xf32>
    %c0_52 = arith.constant 0 : index
    %c0_53 = arith.constant 0 : index
    %75 = vector.load %arg4[%c0_52, %c0_53] : memref<1x128xf32, #tpu.memory_space<vmem>>, vector<1x128xf32>
    %76 = arith.mulf %74, %75 : vector<1x128xf32>
    %c0_54 = arith.constant 0 : index
    %c0_55 = arith.constant 0 : index
    %77 = vector.load %arg5[%c0_54, %c0_55] : memref<1x128xf32, #tpu.memory_space<vmem>>, vector<1x128xf32>
    %78 = arith.mulf %65, %76 : vector<1x128xf32>
    %79 = arith.subf %77, %78 : vector<1x128xf32>
    %c0_56 = arith.constant 0 : index
    %c0_57 = arith.constant 0 : index
    %c0_58 = arith.constant 0 : index
    %80 = vector.load %arg7[%c0_56, %c0_57, %c0_58] : memref<4x32x128xf32, #tpu.memory_space<vmem>>, vector<1x32x128xf32>
    %81 = vector.shape_cast %80 : vector<1x32x128xf32> to vector<32x128xf32>
    %82 = vector.broadcast %76 : vector<1x128xf32> to vector<32x128xf32>
    %83 = arith.mulf %81, %82 : vector<32x128xf32>
    %84 = vector.broadcast %79 : vector<1x128xf32> to vector<32x128xf32>
    %85 = arith.addf %83, %84 : vector<32x128xf32>
    %86 = arith.negf %85 : vector<32x128xf32>
    %87 = math.exp %86 : vector<32x128xf32>
    %cst_59 = arith.constant 1.000000e+00 : f32
    %88 = vector.broadcast %cst_59 : f32 to vector<32x128xf32>
    %89 = arith.addf %88, %87 : vector<32x128xf32>
    %90 = arith.divf %88, %89 : vector<32x128xf32>
    %91 = arith.mulf %85, %90 : vector<32x128xf32>
    %92 = arith.truncf %91 : vector<32x128xf32> to vector<32x128xbf16>
    %c0_60 = arith.constant 0 : index
    %c0_61 = arith.constant 0 : index
    %c0_62 = arith.constant 0 : index
    %93 = vector.load %arg6[%c0_60, %c0_61, %c0_62] : memref<4x32x128xbf16, #tpu.memory_space<vmem>>, vector<1x32x128xbf16>
    %94 = vector.shape_cast %93 : vector<1x32x128xbf16> to vector<32x128xbf16>
    %95 = vector.shape_cast %92 : vector<32x128xbf16> to vector<1x32x128xbf16>
    tpu.vector_store %arg6[%c0_60, %c0_61, %c0_62], %95 {strides = array<i32>} : memref<4x32x128xbf16, #tpu.memory_space<vmem>>, vector<1x32x128xbf16>,
    %c1_63 = arith.constant 1 : index
    %c0_64 = arith.constant 0 : index
    %c0_65 = arith.constant 0 : index
    %96 = vector.load %arg7[%c1_63, %c0_64, %c0_65] : memref<4x32x128xf32, #tpu.memory_space<vmem>>, vector<1x32x128xf32>
    %97 = vector.shape_cast %96 : vector<1x32x128xf32> to vector<32x128xf32>
    %98 = vector.broadcast %76 : vector<1x128xf32> to vector<32x128xf32>
    %99 = arith.mulf %97, %98 : vector<32x128xf32>
    %100 = vector.broadcast %79 : vector<1x128xf32> to vector<32x128xf32>
    %101 = arith.addf %99, %100 : vector<32x128xf32>
    %102 = arith.negf %101 : vector<32x128xf32>
    %103 = math.exp %102 : vector<32x128xf32>
    %cst_66 = arith.constant 1.000000e+00 : f32
    %104 = vector.broadcast %cst_66 : f32 to vector<32x128xf32>
    %105 = arith.addf %104, %103 : vector<32x128xf32>
    %106 = arith.divf %104, %105 : vector<32x128xf32>
    %107 = arith.mulf %101, %106 : vector<32x128xf32>
    %108 = arith.truncf %107 : vector<32x128xf32> to vector<32x128xbf16>
    %c1_67 = arith.constant 1 : index
    %c0_68 = arith.constant 0 : index
    %c0_69 = arith.constant 0 : index
    %109 = vector.load %arg6[%c1_67, %c0_68, %c0_69] : memref<4x32x128xbf16, #tpu.memory_space<vmem>>, vector<1x32x128xbf16>
    %110 = vector.shape_cast %109 : vector<1x32x128xbf16> to vector<32x128xbf16>
    %111 = vector.shape_cast %108 : vector<32x128xbf16> to vector<1x32x128xbf16>
    tpu.vector_store %arg6[%c1_67, %c0_68, %c0_69], %111 {strides = array<i32>} : memref<4x32x128xbf16, #tpu.memory_space<vmem>>, vector<1x32x128xbf16>,
    %c2_70 = arith.constant 2 : index
    %c0_71 = arith.constant 0 : index
    %c0_72 = arith.constant 0 : index
    %112 = vector.load %arg7[%c2_70, %c0_71, %c0_72] : memref<4x32x128xf32, #tpu.memory_space<vmem>>, vector<1x32x128xf32>
    %113 = vector.shape_cast %112 : vector<1x32x128xf32> to vector<32x128xf32>
    %114 = vector.broadcast %76 : vector<1x128xf32> to vector<32x128xf32>
    %115 = arith.mulf %113, %114 : vector<32x128xf32>
    %116 = vector.broadcast %79 : vector<1x128xf32> to vector<32x128xf32>
    %117 = arith.addf %115, %116 : vector<32x128xf32>
    %118 = arith.negf %117 : vector<32x128xf32>
    %119 = math.exp %118 : vector<32x128xf32>
    %cst_73 = arith.constant 1.000000e+00 : f32
    %120 = vector.broadcast %cst_73 : f32 to vector<32x128xf32>
    %121 = arith.addf %120, %119 : vector<32x128xf32>
    %122 = arith.divf %120, %121 : vector<32x128xf32>
    %123 = arith.mulf %117, %122 : vector<32x128xf32>
    %124 = arith.truncf %123 : vector<32x128xf32> to vector<32x128xbf16>
    %c2_74 = arith.constant 2 : index
    %c0_75 = arith.constant 0 : index
    %c0_76 = arith.constant 0 : index
    %125 = vector.load %arg6[%c2_74, %c0_75, %c0_76] : memref<4x32x128xbf16, #tpu.memory_space<vmem>>, vector<1x32x128xbf16>
    %126 = vector.shape_cast %125 : vector<1x32x128xbf16> to vector<32x128xbf16>
    %127 = vector.shape_cast %124 : vector<32x128xbf16> to vector<1x32x128xbf16>
    tpu.vector_store %arg6[%c2_74, %c0_75, %c0_76], %127 {strides = array<i32>} : memref<4x32x128xbf16, #tpu.memory_space<vmem>>, vector<1x32x128xbf16>,
    %c3_77 = arith.constant 3 : index
    %c0_78 = arith.constant 0 : index
    %c0_79 = arith.constant 0 : index
    %128 = vector.load %arg7[%c3_77, %c0_78, %c0_79] : memref<4x32x128xf32, #tpu.memory_space<vmem>>, vector<1x32x128xf32>
    %129 = vector.shape_cast %128 : vector<1x32x128xf32> to vector<32x128xf32>
    %130 = vector.broadcast %76 : vector<1x128xf32> to vector<32x128xf32>
    %131 = arith.mulf %129, %130 : vector<32x128xf32>
    %132 = vector.broadcast %79 : vector<1x128xf32> to vector<32x128xf32>
    %133 = arith.addf %131, %132 : vector<32x128xf32>
    %134 = arith.negf %133 : vector<32x128xf32>
    %135 = math.exp %134 : vector<32x128xf32>
    %cst_80 = arith.constant 1.000000e+00 : f32
    %136 = vector.broadcast %cst_80 : f32 to vector<32x128xf32>
    %137 = arith.addf %136, %135 : vector<32x128xf32>
    %138 = arith.divf %136, %137 : vector<32x128xf32>
    %139 = arith.mulf %133, %138 : vector<32x128xf32>
    %140 = arith.truncf %139 : vector<32x128xf32> to vector<32x128xbf16>
    %c3_81 = arith.constant 3 : index
    %c0_82 = arith.constant 0 : index
    %c0_83 = arith.constant 0 : index
    %141 = vector.load %arg6[%c3_81, %c0_82, %c0_83] : memref<4x32x128xbf16, #tpu.memory_space<vmem>>, vector<1x32x128xbf16>
    %142 = vector.shape_cast %141 : vector<1x32x128xbf16> to vector<32x128xbf16>
    %143 = vector.shape_cast %140 : vector<32x128xbf16> to vector<1x32x128xbf16>
    tpu.vector_store %arg6[%c3_81, %c0_82, %c0_83], %143 {strides = array<i32>} : memref<4x32x128xbf16, #tpu.memory_space<vmem>>, vector<1x32x128xbf16>,
    return
  }
  func.func @transform_0(%arg0: i32) -> (i32, i32, i32) {
    %c0_i32 = arith.constant 0 : i32
    %c0_i32_0 = arith.constant 0 : i32
    %c0_i32_1 = arith.constant 0 : i32
    %c0_i32_2 = arith.constant 0 : i32
    return %c0_i32, %c0_i32_0, %c0_i32_1 : i32, i32, i32
  }
  func.func @transform_1(%arg0: i32) -> (i32, i32, i32) {
    %c0_i32 = arith.constant 0 : i32
    %c0_i32_0 = arith.constant 0 : i32
    %c0_i32_1 = arith.constant 0 : i32
    %c0_i32_2 = arith.constant 0 : i32
    return %c0_i32, %c0_i32_0, %c0_i32_1 : i32, i32, i32
  }
  func.func @transform_2(%arg0: i32) -> (i32, i32) {
    %c0_i32 = arith.constant 0 : i32
    %c0_i32_0 = arith.constant 0 : i32
    %c0_i32_1 = arith.constant 0 : i32
    return %c0_i32, %c0_i32_0 : i32, i32
  }
  func.func @transform_3(%arg0: i32) -> (i32, i32) {
    %c0_i32 = arith.constant 0 : i32
    %c0_i32_0 = arith.constant 0 : i32
    %c0_i32_1 = arith.constant 0 : i32
    return %c0_i32, %c0_i32_0 : i32, i32
  }
  func.func @transform_4(%arg0: i32) -> (i32, i32) {
    %c0_i32 = arith.constant 0 : i32
    %c0_i32_0 = arith.constant 0 : i32
    %c0_i32_1 = arith.constant 0 : i32
    return %c0_i32, %c0_i32_0 : i32, i32
  }
  func.func @transform_5(%arg0: i32) -> (i32, i32, i32) {
    %c0_i32 = arith.constant 0 : i32
    %c0_i32_0 = arith.constant 0 : i32
    %c0_i32_1 = arith.constant 0 : i32
    %c0_i32_2 = arith.constant 0 : i32
    return %c0_i32, %c0_i32_0, %c0_i32_1 : i32, i32, i32
  }
}

module attributes {stable_mosaic.version = 11 : i64} {
  func.func @_conv_bn_silu_kernel(%arg0: i32, %arg1: memref<4x128x64xbf16, #tpu.memory_space<vmem>>, %arg2: memref<4x64x128xbf16, #tpu.memory_space<vmem>>, %arg3: memref<1x128xf32, #tpu.memory_space<vmem>>, %arg4: memref<1x128xf32, #tpu.memory_space<vmem>>, %arg5: memref<1x128xf32, #tpu.memory_space<vmem>>, %arg6: memref<4x128x128xbf16, #tpu.memory_space<vmem>>, %arg7: memref<4x128x128xf32, #tpu.memory_space<vmem>>) attributes {dimension_semantics = [#tpu.dimension_semantics<arbitrary>], iteration_bounds = array<i64: 1>, scalar_prefetch = 0 : i64, scratch_operands = 1 : i64, tpu.core_type = #tpu.core_type<tc>, window_params = [{pipeline_mode = #tpu.pipeline_mode<synchronous>, transform_indices = @transform_0, window_bounds = array<i64: 4, 128, 64>}, {pipeline_mode = #tpu.pipeline_mode<synchronous>, transform_indices = @transform_1, window_bounds = array<i64: 4, 64, 128>}, {pipeline_mode = #tpu.pipeline_mode<synchronous>, transform_indices = @transform_2, window_bounds = array<i64: 1, 128>}, {pipeline_mode = #tpu.pipeline_mode<synchronous>, transform_indices = @transform_3, window_bounds = array<i64: 1, 128>}, {pipeline_mode = #tpu.pipeline_mode<synchronous>, transform_indices = @transform_4, window_bounds = array<i64: 1, 128>}, {pipeline_mode = #tpu.pipeline_mode<synchronous>, transform_indices = @transform_5, window_bounds = array<i64: 4, 128, 128>}]} {
    %cst = arith.constant 1.000000e+00 : f32
    %0 = vector.broadcast %cst : f32 to vector<1x128xf32>
    %c0 = arith.constant 0 : index
    %c0_0 = arith.constant 0 : index
    %1 = vector.load %arg3[%c0, %c0_0] : memref<1x128xf32, #tpu.memory_space<vmem>>, vector<1x128xf32>
    %cst_1 = arith.constant 0.000000e+00 : f32
    %2 = vector.broadcast %cst_1 : f32 to vector<1x128xf32>
    %cst_2 = arith.constant 0.000000e+00 : f32
    %3 = vector.broadcast %cst_2 : f32 to vector<1x128xf32>
    %c0_3 = arith.constant 0 : index
    %c0_4 = arith.constant 0 : index
    %c0_5 = arith.constant 0 : index
    %4 = vector.load %arg2[%c0_3, %c0_4, %c0_5] : memref<4x64x128xbf16, #tpu.memory_space<vmem>>, vector<1x64x128xbf16>
    %5 = vector.shape_cast %4 : vector<1x64x128xbf16> to vector<64x128xbf16>
    %c0_6 = arith.constant 0 : index
    %c0_7 = arith.constant 0 : index
    %c0_8 = arith.constant 0 : index
    %6 = vector.load %arg1[%c0_6, %c0_7, %c0_8] : memref<4x128x64xbf16, #tpu.memory_space<vmem>>, vector<1x128x64xbf16>
    %7 = vector.shape_cast %6 : vector<1x128x64xbf16> to vector<128x64xbf16>
    %cst_9 = arith.constant dense<0.000000e+00> : vector<128x128xf32>
    %8 = tpu.matmul %7, %5, %cst_9 {dimension_numbers = #tpu.dot_dimension_numbers<[1], [0], [0], [1], [0, 0, 1, 1], [], []>} : vector<128x64xbf16>, vector<64x128xbf16>, vector<128x128xf32> -> vector<128x128xf32>
    %9 = vector.broadcast %1 : vector<1x128xf32> to vector<128x128xf32>
    %10 = arith.addf %8, %9 : vector<128x128xf32>
    %c0_10 = arith.constant 0 : index
    %c0_11 = arith.constant 0 : index
    %c0_12 = arith.constant 0 : index
    %11 = vector.load %arg7[%c0_10, %c0_11, %c0_12] : memref<4x128x128xf32, #tpu.memory_space<vmem>>, vector<1x128x128xf32>
    %12 = vector.shape_cast %11 : vector<1x128x128xf32> to vector<128x128xf32>
    %13 = vector.shape_cast %10 : vector<128x128xf32> to vector<1x128x128xf32>
    tpu.vector_store %arg7[%c0_10, %c0_11, %c0_12], %13 {strides = array<i32>} : memref<4x128x128xf32, #tpu.memory_space<vmem>>, vector<1x128x128xf32>,
    %cst_13 = arith.constant dense<0.000000e+00> : vector<1x128xf32>
    %14 = tpu.matmul %0, %10, %cst_13 {dimension_numbers = #tpu.dot_dimension_numbers<[1], [0], [0], [1], [0, 0, 1, 1], [], []>} : vector<1x128xf32>, vector<128x128xf32>, vector<1x128xf32> -> vector<1x128xf32>
    %15 = arith.addf %2, %14 : vector<1x128xf32>
    %16 = arith.mulf %10, %10 : vector<128x128xf32>
    %cst_14 = arith.constant dense<0.000000e+00> : vector<1x128xf32>
    %17 = tpu.matmul %0, %16, %cst_14 {dimension_numbers = #tpu.dot_dimension_numbers<[1], [0], [0], [1], [0, 0, 1, 1], [], []>} : vector<1x128xf32>, vector<128x128xf32>, vector<1x128xf32> -> vector<1x128xf32>
    %18 = arith.addf %3, %17 : vector<1x128xf32>
    %c1 = arith.constant 1 : index
    %c0_15 = arith.constant 0 : index
    %c0_16 = arith.constant 0 : index
    %19 = vector.load %arg2[%c1, %c0_15, %c0_16] : memref<4x64x128xbf16, #tpu.memory_space<vmem>>, vector<1x64x128xbf16>
    %20 = vector.shape_cast %19 : vector<1x64x128xbf16> to vector<64x128xbf16>
    %c1_17 = arith.constant 1 : index
    %c0_18 = arith.constant 0 : index
    %c0_19 = arith.constant 0 : index
    %21 = vector.load %arg1[%c1_17, %c0_18, %c0_19] : memref<4x128x64xbf16, #tpu.memory_space<vmem>>, vector<1x128x64xbf16>
    %22 = vector.shape_cast %21 : vector<1x128x64xbf16> to vector<128x64xbf16>
    %cst_20 = arith.constant dense<0.000000e+00> : vector<128x128xf32>
    %23 = tpu.matmul %22, %20, %cst_20 {dimension_numbers = #tpu.dot_dimension_numbers<[1], [0], [0], [1], [0, 0, 1, 1], [], []>} : vector<128x64xbf16>, vector<64x128xbf16>, vector<128x128xf32> -> vector<128x128xf32>
    %24 = vector.broadcast %1 : vector<1x128xf32> to vector<128x128xf32>
    %25 = arith.addf %23, %24 : vector<128x128xf32>
    %c1_21 = arith.constant 1 : index
    %c0_22 = arith.constant 0 : index
    %c0_23 = arith.constant 0 : index
    %26 = vector.load %arg7[%c1_21, %c0_22, %c0_23] : memref<4x128x128xf32, #tpu.memory_space<vmem>>, vector<1x128x128xf32>
    %27 = vector.shape_cast %26 : vector<1x128x128xf32> to vector<128x128xf32>
    %28 = vector.shape_cast %25 : vector<128x128xf32> to vector<1x128x128xf32>
    tpu.vector_store %arg7[%c1_21, %c0_22, %c0_23], %28 {strides = array<i32>} : memref<4x128x128xf32, #tpu.memory_space<vmem>>, vector<1x128x128xf32>,
    %cst_24 = arith.constant dense<0.000000e+00> : vector<1x128xf32>
    %29 = tpu.matmul %0, %25, %cst_24 {dimension_numbers = #tpu.dot_dimension_numbers<[1], [0], [0], [1], [0, 0, 1, 1], [], []>} : vector<1x128xf32>, vector<128x128xf32>, vector<1x128xf32> -> vector<1x128xf32>
    %30 = arith.addf %15, %29 : vector<1x128xf32>
    %31 = arith.mulf %25, %25 : vector<128x128xf32>
    %cst_25 = arith.constant dense<0.000000e+00> : vector<1x128xf32>
    %32 = tpu.matmul %0, %31, %cst_25 {dimension_numbers = #tpu.dot_dimension_numbers<[1], [0], [0], [1], [0, 0, 1, 1], [], []>} : vector<1x128xf32>, vector<128x128xf32>, vector<1x128xf32> -> vector<1x128xf32>
    %33 = arith.addf %18, %32 : vector<1x128xf32>
    %c2 = arith.constant 2 : index
    %c0_26 = arith.constant 0 : index
    %c0_27 = arith.constant 0 : index
    %34 = vector.load %arg2[%c2, %c0_26, %c0_27] : memref<4x64x128xbf16, #tpu.memory_space<vmem>>, vector<1x64x128xbf16>
    %35 = vector.shape_cast %34 : vector<1x64x128xbf16> to vector<64x128xbf16>
    %c2_28 = arith.constant 2 : index
    %c0_29 = arith.constant 0 : index
    %c0_30 = arith.constant 0 : index
    %36 = vector.load %arg1[%c2_28, %c0_29, %c0_30] : memref<4x128x64xbf16, #tpu.memory_space<vmem>>, vector<1x128x64xbf16>
    %37 = vector.shape_cast %36 : vector<1x128x64xbf16> to vector<128x64xbf16>
    %cst_31 = arith.constant dense<0.000000e+00> : vector<128x128xf32>
    %38 = tpu.matmul %37, %35, %cst_31 {dimension_numbers = #tpu.dot_dimension_numbers<[1], [0], [0], [1], [0, 0, 1, 1], [], []>} : vector<128x64xbf16>, vector<64x128xbf16>, vector<128x128xf32> -> vector<128x128xf32>
    %39 = vector.broadcast %1 : vector<1x128xf32> to vector<128x128xf32>
    %40 = arith.addf %38, %39 : vector<128x128xf32>
    %c2_32 = arith.constant 2 : index
    %c0_33 = arith.constant 0 : index
    %c0_34 = arith.constant 0 : index
    %41 = vector.load %arg7[%c2_32, %c0_33, %c0_34] : memref<4x128x128xf32, #tpu.memory_space<vmem>>, vector<1x128x128xf32>
    %42 = vector.shape_cast %41 : vector<1x128x128xf32> to vector<128x128xf32>
    %43 = vector.shape_cast %40 : vector<128x128xf32> to vector<1x128x128xf32>
    tpu.vector_store %arg7[%c2_32, %c0_33, %c0_34], %43 {strides = array<i32>} : memref<4x128x128xf32, #tpu.memory_space<vmem>>, vector<1x128x128xf32>,
    %cst_35 = arith.constant dense<0.000000e+00> : vector<1x128xf32>
    %44 = tpu.matmul %0, %40, %cst_35 {dimension_numbers = #tpu.dot_dimension_numbers<[1], [0], [0], [1], [0, 0, 1, 1], [], []>} : vector<1x128xf32>, vector<128x128xf32>, vector<1x128xf32> -> vector<1x128xf32>
    %45 = arith.addf %30, %44 : vector<1x128xf32>
    %46 = arith.mulf %40, %40 : vector<128x128xf32>
    %cst_36 = arith.constant dense<0.000000e+00> : vector<1x128xf32>
    %47 = tpu.matmul %0, %46, %cst_36 {dimension_numbers = #tpu.dot_dimension_numbers<[1], [0], [0], [1], [0, 0, 1, 1], [], []>} : vector<1x128xf32>, vector<128x128xf32>, vector<1x128xf32> -> vector<1x128xf32>
    %48 = arith.addf %33, %47 : vector<1x128xf32>
    %c3 = arith.constant 3 : index
    %c0_37 = arith.constant 0 : index
    %c0_38 = arith.constant 0 : index
    %49 = vector.load %arg2[%c3, %c0_37, %c0_38] : memref<4x64x128xbf16, #tpu.memory_space<vmem>>, vector<1x64x128xbf16>
    %50 = vector.shape_cast %49 : vector<1x64x128xbf16> to vector<64x128xbf16>
    %c3_39 = arith.constant 3 : index
    %c0_40 = arith.constant 0 : index
    %c0_41 = arith.constant 0 : index
    %51 = vector.load %arg1[%c3_39, %c0_40, %c0_41] : memref<4x128x64xbf16, #tpu.memory_space<vmem>>, vector<1x128x64xbf16>
    %52 = vector.shape_cast %51 : vector<1x128x64xbf16> to vector<128x64xbf16>
    %cst_42 = arith.constant dense<0.000000e+00> : vector<128x128xf32>
    %53 = tpu.matmul %52, %50, %cst_42 {dimension_numbers = #tpu.dot_dimension_numbers<[1], [0], [0], [1], [0, 0, 1, 1], [], []>} : vector<128x64xbf16>, vector<64x128xbf16>, vector<128x128xf32> -> vector<128x128xf32>
    %54 = vector.broadcast %1 : vector<1x128xf32> to vector<128x128xf32>
    %55 = arith.addf %53, %54 : vector<128x128xf32>
    %c3_43 = arith.constant 3 : index
    %c0_44 = arith.constant 0 : index
    %c0_45 = arith.constant 0 : index
    %56 = vector.load %arg7[%c3_43, %c0_44, %c0_45] : memref<4x128x128xf32, #tpu.memory_space<vmem>>, vector<1x128x128xf32>
    %57 = vector.shape_cast %56 : vector<1x128x128xf32> to vector<128x128xf32>
    %58 = vector.shape_cast %55 : vector<128x128xf32> to vector<1x128x128xf32>
    tpu.vector_store %arg7[%c3_43, %c0_44, %c0_45], %58 {strides = array<i32>} : memref<4x128x128xf32, #tpu.memory_space<vmem>>, vector<1x128x128xf32>,
    %cst_46 = arith.constant dense<0.000000e+00> : vector<1x128xf32>
    %59 = tpu.matmul %0, %55, %cst_46 {dimension_numbers = #tpu.dot_dimension_numbers<[1], [0], [0], [1], [0, 0, 1, 1], [], []>} : vector<1x128xf32>, vector<128x128xf32>, vector<1x128xf32> -> vector<1x128xf32>
    %60 = arith.addf %45, %59 : vector<1x128xf32>
    %61 = arith.mulf %55, %55 : vector<128x128xf32>
    %cst_47 = arith.constant dense<0.000000e+00> : vector<1x128xf32>
    %62 = tpu.matmul %0, %61, %cst_47 {dimension_numbers = #tpu.dot_dimension_numbers<[1], [0], [0], [1], [0, 0, 1, 1], [], []>} : vector<1x128xf32>, vector<128x128xf32>, vector<1x128xf32> -> vector<1x128xf32>
    %63 = arith.addf %48, %62 : vector<1x128xf32>
    %cst_48 = arith.constant 0.001953125 : f32
    %64 = vector.broadcast %cst_48 : f32 to vector<1x128xf32>
    %65 = arith.mulf %60, %64 : vector<1x128xf32>
    %cst_49 = arith.constant 0.001953125 : f32
    %66 = vector.broadcast %cst_49 : f32 to vector<1x128xf32>
    %67 = arith.mulf %63, %66 : vector<1x128xf32>
    %68 = arith.mulf %65, %65 : vector<1x128xf32>
    %69 = arith.subf %67, %68 : vector<1x128xf32>
    %cst_50 = arith.constant 0.000000e+00 : f32
    %70 = vector.broadcast %cst_50 : f32 to vector<1x128xf32>
    %71 = arith.maximumf %69, %70 : vector<1x128xf32>
    %cst_51 = arith.constant 9.99999974E-6 : f32
    %72 = vector.broadcast %cst_51 : f32 to vector<1x128xf32>
    %73 = arith.addf %71, %72 : vector<1x128xf32>
    %74 = math.rsqrt %73 : vector<1x128xf32>
    %c0_52 = arith.constant 0 : index
    %c0_53 = arith.constant 0 : index
    %75 = vector.load %arg4[%c0_52, %c0_53] : memref<1x128xf32, #tpu.memory_space<vmem>>, vector<1x128xf32>
    %76 = arith.mulf %74, %75 : vector<1x128xf32>
    %c0_54 = arith.constant 0 : index
    %c0_55 = arith.constant 0 : index
    %77 = vector.load %arg5[%c0_54, %c0_55] : memref<1x128xf32, #tpu.memory_space<vmem>>, vector<1x128xf32>
    %78 = arith.mulf %65, %76 : vector<1x128xf32>
    %79 = arith.subf %77, %78 : vector<1x128xf32>
    %c0_56 = arith.constant 0 : index
    %c0_57 = arith.constant 0 : index
    %c0_58 = arith.constant 0 : index
    %80 = vector.load %arg7[%c0_56, %c0_57, %c0_58] : memref<4x128x128xf32, #tpu.memory_space<vmem>>, vector<1x128x128xf32>
    %81 = vector.shape_cast %80 : vector<1x128x128xf32> to vector<128x128xf32>
    %82 = vector.broadcast %76 : vector<1x128xf32> to vector<128x128xf32>
    %83 = arith.mulf %81, %82 : vector<128x128xf32>
    %84 = vector.broadcast %79 : vector<1x128xf32> to vector<128x128xf32>
    %85 = arith.addf %83, %84 : vector<128x128xf32>
    %86 = arith.negf %85 : vector<128x128xf32>
    %87 = math.exp %86 : vector<128x128xf32>
    %cst_59 = arith.constant 1.000000e+00 : f32
    %88 = vector.broadcast %cst_59 : f32 to vector<128x128xf32>
    %89 = arith.addf %88, %87 : vector<128x128xf32>
    %90 = arith.divf %88, %89 : vector<128x128xf32>
    %91 = arith.mulf %85, %90 : vector<128x128xf32>
    %92 = arith.truncf %91 : vector<128x128xf32> to vector<128x128xbf16>
    %c0_60 = arith.constant 0 : index
    %c0_61 = arith.constant 0 : index
    %c0_62 = arith.constant 0 : index
    %93 = vector.load %arg6[%c0_60, %c0_61, %c0_62] : memref<4x128x128xbf16, #tpu.memory_space<vmem>>, vector<1x128x128xbf16>
    %94 = vector.shape_cast %93 : vector<1x128x128xbf16> to vector<128x128xbf16>
    %95 = vector.shape_cast %92 : vector<128x128xbf16> to vector<1x128x128xbf16>
    tpu.vector_store %arg6[%c0_60, %c0_61, %c0_62], %95 {strides = array<i32>} : memref<4x128x128xbf16, #tpu.memory_space<vmem>>, vector<1x128x128xbf16>,
    %c1_63 = arith.constant 1 : index
    %c0_64 = arith.constant 0 : index
    %c0_65 = arith.constant 0 : index
    %96 = vector.load %arg7[%c1_63, %c0_64, %c0_65] : memref<4x128x128xf32, #tpu.memory_space<vmem>>, vector<1x128x128xf32>
    %97 = vector.shape_cast %96 : vector<1x128x128xf32> to vector<128x128xf32>
    %98 = vector.broadcast %76 : vector<1x128xf32> to vector<128x128xf32>
    %99 = arith.mulf %97, %98 : vector<128x128xf32>
    %100 = vector.broadcast %79 : vector<1x128xf32> to vector<128x128xf32>
    %101 = arith.addf %99, %100 : vector<128x128xf32>
    %102 = arith.negf %101 : vector<128x128xf32>
    %103 = math.exp %102 : vector<128x128xf32>
    %cst_66 = arith.constant 1.000000e+00 : f32
    %104 = vector.broadcast %cst_66 : f32 to vector<128x128xf32>
    %105 = arith.addf %104, %103 : vector<128x128xf32>
    %106 = arith.divf %104, %105 : vector<128x128xf32>
    %107 = arith.mulf %101, %106 : vector<128x128xf32>
    %108 = arith.truncf %107 : vector<128x128xf32> to vector<128x128xbf16>
    %c1_67 = arith.constant 1 : index
    %c0_68 = arith.constant 0 : index
    %c0_69 = arith.constant 0 : index
    %109 = vector.load %arg6[%c1_67, %c0_68, %c0_69] : memref<4x128x128xbf16, #tpu.memory_space<vmem>>, vector<1x128x128xbf16>
    %110 = vector.shape_cast %109 : vector<1x128x128xbf16> to vector<128x128xbf16>
    %111 = vector.shape_cast %108 : vector<128x128xbf16> to vector<1x128x128xbf16>
    tpu.vector_store %arg6[%c1_67, %c0_68, %c0_69], %111 {strides = array<i32>} : memref<4x128x128xbf16, #tpu.memory_space<vmem>>, vector<1x128x128xbf16>,
    %c2_70 = arith.constant 2 : index
    %c0_71 = arith.constant 0 : index
    %c0_72 = arith.constant 0 : index
    %112 = vector.load %arg7[%c2_70, %c0_71, %c0_72] : memref<4x128x128xf32, #tpu.memory_space<vmem>>, vector<1x128x128xf32>
    %113 = vector.shape_cast %112 : vector<1x128x128xf32> to vector<128x128xf32>
    %114 = vector.broadcast %76 : vector<1x128xf32> to vector<128x128xf32>
    %115 = arith.mulf %113, %114 : vector<128x128xf32>
    %116 = vector.broadcast %79 : vector<1x128xf32> to vector<128x128xf32>
    %117 = arith.addf %115, %116 : vector<128x128xf32>
    %118 = arith.negf %117 : vector<128x128xf32>
    %119 = math.exp %118 : vector<128x128xf32>
    %cst_73 = arith.constant 1.000000e+00 : f32
    %120 = vector.broadcast %cst_73 : f32 to vector<128x128xf32>
    %121 = arith.addf %120, %119 : vector<128x128xf32>
    %122 = arith.divf %120, %121 : vector<128x128xf32>
    %123 = arith.mulf %117, %122 : vector<128x128xf32>
    %124 = arith.truncf %123 : vector<128x128xf32> to vector<128x128xbf16>
    %c2_74 = arith.constant 2 : index
    %c0_75 = arith.constant 0 : index
    %c0_76 = arith.constant 0 : index
    %125 = vector.load %arg6[%c2_74, %c0_75, %c0_76] : memref<4x128x128xbf16, #tpu.memory_space<vmem>>, vector<1x128x128xbf16>
    %126 = vector.shape_cast %125 : vector<1x128x128xbf16> to vector<128x128xbf16>
    %127 = vector.shape_cast %124 : vector<128x128xbf16> to vector<1x128x128xbf16>
    tpu.vector_store %arg6[%c2_74, %c0_75, %c0_76], %127 {strides = array<i32>} : memref<4x128x128xbf16, #tpu.memory_space<vmem>>, vector<1x128x128xbf16>,
    %c3_77 = arith.constant 3 : index
    %c0_78 = arith.constant 0 : index
    %c0_79 = arith.constant 0 : index
    %128 = vector.load %arg7[%c3_77, %c0_78, %c0_79] : memref<4x128x128xf32, #tpu.memory_space<vmem>>, vector<1x128x128xf32>
    %129 = vector.shape_cast %128 : vector<1x128x128xf32> to vector<128x128xf32>
    %130 = vector.broadcast %76 : vector<1x128xf32> to vector<128x128xf32>
    %131 = arith.mulf %129, %130 : vector<128x128xf32>
    %132 = vector.broadcast %79 : vector<1x128xf32> to vector<128x128xf32>
    %133 = arith.addf %131, %132 : vector<128x128xf32>
    %134 = arith.negf %133 : vector<128x128xf32>
    %135 = math.exp %134 : vector<128x128xf32>
    %cst_80 = arith.constant 1.000000e+00 : f32
    %136 = vector.broadcast %cst_80 : f32 to vector<128x128xf32>
    %137 = arith.addf %136, %135 : vector<128x128xf32>
    %138 = arith.divf %136, %137 : vector<128x128xf32>
    %139 = arith.mulf %133, %138 : vector<128x128xf32>
    %140 = arith.truncf %139 : vector<128x128xf32> to vector<128x128xbf16>
    %c3_81 = arith.constant 3 : index
    %c0_82 = arith.constant 0 : index
    %c0_83 = arith.constant 0 : index
    %141 = vector.load %arg6[%c3_81, %c0_82, %c0_83] : memref<4x128x128xbf16, #tpu.memory_space<vmem>>, vector<1x128x128xbf16>
    %142 = vector.shape_cast %141 : vector<1x128x128xbf16> to vector<128x128xbf16>
    %143 = vector.shape_cast %140 : vector<128x128xbf16> to vector<1x128x128xbf16>
    tpu.vector_store %arg6[%c3_81, %c0_82, %c0_83], %143 {strides = array<i32>} : memref<4x128x128xbf16, #tpu.memory_space<vmem>>, vector<1x128x128xbf16>,
    return
  }
  func.func @transform_0(%arg0: i32) -> (i32, i32, i32) {
    %c0_i32 = arith.constant 0 : i32
    %c0_i32_0 = arith.constant 0 : i32
    %c0_i32_1 = arith.constant 0 : i32
    %c0_i32_2 = arith.constant 0 : i32
    return %c0_i32, %c0_i32_0, %c0_i32_1 : i32, i32, i32
  }
  func.func @transform_1(%arg0: i32) -> (i32, i32, i32) {
    %c0_i32 = arith.constant 0 : i32
    %c0_i32_0 = arith.constant 0 : i32
    %c0_i32_1 = arith.constant 0 : i32
    %c0_i32_2 = arith.constant 0 : i32
    return %c0_i32, %c0_i32_0, %c0_i32_1 : i32, i32, i32
  }
  func.func @transform_2(%arg0: i32) -> (i32, i32) {
    %c0_i32 = arith.constant 0 : i32
    %c0_i32_0 = arith.constant 0 : i32
    %c0_i32_1 = arith.constant 0 : i32
    return %c0_i32, %c0_i32_0 : i32, i32
  }
  func.func @transform_3(%arg0: i32) -> (i32, i32) {
    %c0_i32 = arith.constant 0 : i32
    %c0_i32_0 = arith.constant 0 : i32
    %c0_i32_1 = arith.constant 0 : i32
    return %c0_i32, %c0_i32_0 : i32, i32
  }
  func.func @transform_4(%arg0: i32) -> (i32, i32) {
    %c0_i32 = arith.constant 0 : i32
    %c0_i32_0 = arith.constant 0 : i32
    %c0_i32_1 = arith.constant 0 : i32
    return %c0_i32, %c0_i32_0 : i32, i32
  }
  func.func @transform_5(%arg0: i32) -> (i32, i32, i32) {
    %c0_i32 = arith.constant 0 : i32
    %c0_i32_0 = arith.constant 0 : i32
    %c0_i32_1 = arith.constant 0 : i32
    %c0_i32_2 = arith.constant 0 : i32
    return %c0_i32, %c0_i32_0, %c0_i32_1 : i32, i32, i32
  }
}

module attributes {stable_mosaic.version = 11 : i64} {
  func.func @_mm_bias_tanh_kernel(%arg0: i32, %arg1: memref<256x128xbf16, #tpu.memory_space<vmem>>, %arg2: memref<128x128xbf16, #tpu.memory_space<vmem>>, %arg3: memref<1x128xf32, #tpu.memory_space<vmem>>, %arg4: memref<256x128xf32, #tpu.memory_space<vmem>>) attributes {dimension_semantics = [#tpu.dimension_semantics<parallel>], iteration_bounds = array<i64: 2>, scalar_prefetch = 0 : i64, scratch_operands = 0 : i64, tpu.core_type = #tpu.core_type<tc>, window_params = [{transform_indices = @transform_0, window_bounds = array<i64: 256, 128>}, {pipeline_mode = #tpu.pipeline_mode<synchronous>, transform_indices = @transform_1, window_bounds = array<i64: 128, 128>}, {pipeline_mode = #tpu.pipeline_mode<synchronous>, transform_indices = @transform_2, window_bounds = array<i64: 1, 128>}, {transform_indices = @transform_3, window_bounds = array<i64: 256, 128>}]} {
    %c0 = arith.constant 0 : index
    %c0_0 = arith.constant 0 : index
    %0 = vector.load %arg1[%c0, %c0_0] : memref<256x128xbf16, #tpu.memory_space<vmem>>, vector<256x128xbf16>
    %c0_1 = arith.constant 0 : index
    %c0_2 = arith.constant 0 : index
    %1 = vector.load %arg2[%c0_1, %c0_2] : memref<128x128xbf16, #tpu.memory_space<vmem>>, vector<128x128xbf16>
    %cst = arith.constant dense<0.000000e+00> : vector<256x128xf32>
    %2 = tpu.matmul %0, %1, %cst {dimension_numbers = #tpu.dot_dimension_numbers<[1], [0], [0], [1], [0, 0, 1, 1], [], []>} : vector<256x128xbf16>, vector<128x128xbf16>, vector<256x128xf32> -> vector<256x128xf32>
    %c0_3 = arith.constant 0 : index
    %c0_4 = arith.constant 0 : index
    %3 = vector.load %arg3[%c0_3, %c0_4] : memref<1x128xf32, #tpu.memory_space<vmem>>, vector<1x128xf32>
    %4 = vector.broadcast %3 : vector<1x128xf32> to vector<256x128xf32>
    %5 = arith.addf %2, %4 : vector<256x128xf32>
    %6 = math.tanh %5 : vector<256x128xf32>
    %c0_5 = arith.constant 0 : index
    %c0_6 = arith.constant 0 : index
    %7 = vector.load %arg4[%c0_5, %c0_6] : memref<256x128xf32, #tpu.memory_space<vmem>>, vector<256x128xf32>
    tpu.vector_store %arg4[%c0_5, %c0_6], %6 {strides = array<i32>} : memref<256x128xf32, #tpu.memory_space<vmem>>, vector<256x128xf32>,
    return
  }
  func.func @transform_0(%arg0: i32) -> (i32, i32) {
    %c0_i32 = arith.constant 0 : i32
    %c0_i32_0 = arith.constant 0 : i32
    return %arg0, %c0_i32 : i32, i32
  }
  func.func @transform_1(%arg0: i32) -> (i32, i32) {
    %c0_i32 = arith.constant 0 : i32
    %c0_i32_0 = arith.constant 0 : i32
    %c0_i32_1 = arith.constant 0 : i32
    return %c0_i32, %c0_i32_0 : i32, i32
  }
  func.func @transform_2(%arg0: i32) -> (i32, i32) {
    %c0_i32 = arith.constant 0 : i32
    %c0_i32_0 = arith.constant 0 : i32
    %c0_i32_1 = arith.constant 0 : i32
    return %c0_i32, %c0_i32_0 : i32, i32
  }
  func.func @transform_3(%arg0: i32) -> (i32, i32) {
    %c0_i32 = arith.constant 0 : i32
    %c0_i32_0 = arith.constant 0 : i32
    return %arg0, %c0_i32 : i32, i32
  }
}

</mosaic_0001>

<bundles_post_ra>
// kernel: vqvae_forward.7
= control target key start
LH: loop header
LB: loop body
LE: loop exit
PB: predicated region body
PF: predicated region fallthrough
CT: control target
= control target key end

     0   :  { %v3952_v24 = vmov 0.0|0.0   ;;  %vm3953_vm0 = vmmov 0   ;;  %v5298_v25 = vmov 0.0   ;;  %s5292_s1 = inlined_call_operand.vmem [shape: bf16[1,128,128], index: 1, kind: input, shape index: {}]   ;;  %s5293_s0 = inlined_call_operand.vmem [shape: bf16[1,512,128], index: 0, kind: input, shape index: {}]   ;;  %s5294_s2 = inlined_call_operand.vmem [shape: f32[1,128], index: 2, kind: input, shape index: {}]   ;;  %s5295_s3 = inlined_call_operand.vmem [shape: f32[1,128], index: 3, kind: input, shape index: {}]   ;;  %s5296_s4 = inlined_call_operand.vmem [shape: f32[1,128], index: 4, kind: input, shape index: {}]   ;;  %s5297_s5 = inlined_call_operand.vmem [shape: bf16[1,512,128], index: 5, kind: output, shape index: {}]  }
   0x1   :  { %v3989_v0 = vld [vmem:[%s5292_s1] sm:$0xff]   ;;  %v3994_v1 = vld [vmem:[%s5292_s1 + $0x8] sm:$0xff]   ;;  %v4004_v2 = vld [vmem:[%s5292_s1 + $0x10] sm:$0xff]  }
   0x2   :  { %3070 = vmatprep.subr.bf16.mxu1 %v3989_v0  ;;  %3038 = vmatprep.subr.bf16.mxu0 %v3989_v0  ;;  %v4011_v3 = vld [vmem:[%s5292_s1 + $0x18] sm:$0xff]   ;;  %v3662_v4 = vld [vmem:[%s5293_s0 + $0x40] sm:$0xff]   ;;  %v4032_v6 = vld [vmem:[%s5292_s1 + $0x28] sm:$0xff]  }
   0x3   :  { %3071 = vmatpush3.bf16.msra.mxu1 %v3989_v0  ;;  %3039 = vmatpush3.bf16.msra.mxu0 %v3989_v0  ;;  %v4025_v5 = vld [vmem:[%s5292_s1 + $0x20] sm:$0xff]   ;;  %v4046_v8 = vld [vmem:[%s5292_s1 + $0x30] sm:$0xff]   ;;  %v4055_v9 = vld [vmem:[%s5292_s1 + $0x38] sm:$0xff]  }
   0x4   :  { %3072 = vmatprep.subr.bf16.mxu1 %v3994_v1  ;;  %3040 = vmatprep.subr.bf16.mxu0 %v3994_v1  ;;  %v3670_v7 = vld [vmem:[%s5293_s0] sm:$0xff]   ;;  %v3663_v10 = vld [vmem:[%s5293_s0 + $0x48] sm:$0xff]   ;;  %v3664_v12 = vld [vmem:[%s5293_s0 + $0x50] sm:$0xff]  }
   0x5   :  { %3086 = vmatprep.mubr.bf16.mxu1 %v3662_v4  ;;  %3054 = vmatprep.mubr.bf16.mxu0 %v3670_v7  ;;  %v3671_v11 = vld [vmem:[%s5293_s0 + $0x8] sm:$0xff]   ;;  %v3672_v13 = vld [vmem:[%s5293_s0 + $0x10] sm:$0xff]   ;;  %v3665_v14 = vld [vmem:[%s5293_s0 + $0x58] sm:$0xff]  }
   0x6   :  { %v3673_v15 = vld [vmem:[%s5293_s0 + $0x18] sm:$0xff]   ;;  %v3666_v16 = vld [vmem:[%s5293_s0 + $0x60] sm:$0xff]   ;;  %v3667_v18 = vld [vmem:[%s5293_s0 + $0x68] sm:$0xff]  }
   0x7   :  { %3073 = vmatpush3.bf16.msra.mxu1 %v3994_v1  ;;  %3041 = vmatpush3.bf16.msra.mxu0 %v3994_v1  ;;  %v3674_v17 = vld [vmem:[%s5293_s0 + $0x20] sm:$0xff]   ;;  %v3675_v19 = vld [vmem:[%s5293_s0 + $0x28] sm:$0xff]   ;;  %v3668_v20 = vld [vmem:[%s5293_s0 + $0x70] sm:$0xff]  }
   0x8   :  { %3074 = vmatprep.subr.bf16.mxu1 %v4004_v2  ;;  %3042 = vmatprep.subr.bf16.mxu0 %v4004_v2  ;;  %v3676_v21 = vld [vmem:[%s5293_s0 + $0x30] sm:$0xff]   ;;  %v3669_v22 = vld [vmem:[%s5293_s0 + $0x78] sm:$0xff]   ;;  %v4115_v26 = vld [vmem:[%s5294_s2] ss:$0 sm:$0xff] }
   0x9   :  { %v3677_v23 = vld [vmem:[%s5293_s0 + $0x38] sm:$0xff]  }
   0xb   :  { %3075 = vmatpush3.bf16.msra.mxu1 %v4004_v2  ;;  %3043 = vmatpush3.bf16.msra.mxu0 %v4004_v2 }
   0xc   :  { %3076 = vmatprep.subr.bf16.mxu1 %v4011_v3  ;;  %3044 = vmatprep.subr.bf16.mxu0 %v4011_v3 }
   0xf   :  { %3077 = vmatpush3.bf16.msra.mxu1 %v4011_v3  ;;  %3045 = vmatpush3.bf16.msra.mxu0 %v4011_v3 }
  0x10   :  { %3078 = vmatprep.subr.bf16.mxu1 %v4025_v5  ;;  %3046 = vmatprep.subr.bf16.mxu0 %v4025_v5 }
  0x13   :  { %3079 = vmatpush3.bf16.msra.mxu1 %v4025_v5  ;;  %3047 = vmatpush3.bf16.msra.mxu0 %v4025_v5 }
  0x14   :  { %3080 = vmatprep.subr.bf16.mxu1 %v4032_v6  ;;  %3048 = vmatprep.subr.bf16.mxu0 %v4032_v6 }
  0x17   :  { %3081 = vmatpush3.bf16.msra.mxu1 %v4032_v6  ;;  %3049 = vmatpush3.bf16.msra.mxu0 %v4032_v6 }
  0x18   :  { %3082 = vmatprep.subr.bf16.mxu1 %v4046_v8  ;;  %3050 = vmatprep.subr.bf16.mxu0 %v4046_v8 }
  0x1b   :  { %3083 = vmatpush3.bf16.msra.mxu1 %v4046_v8  ;;  %3051 = vmatpush3.bf16.msra.mxu0 %v4046_v8 }
  0x1c   :  { %3084 = vmatprep.subr.bf16.mxu1 %v4055_v9  ;;  %3052 = vmatprep.subr.bf16.mxu0 %v4055_v9 }
  0x1f   :  { %3085 = vmatpush3.bf16.msra.mxu1 %v4055_v9  ;;  %3053 = vmatpush3.bf16.msra.mxu0 %v4055_v9 }
  0x20   :  { %3446 = vmatprep.subr.bf16.mxu0 %v3952_v24  ;;  %3494 = vmatprep.subr.bf16.mxu1 %v3952_v24 }
  0x22   :  { %3087 = vmatmul.mubr.bf16.vlgmr.msra.gmra.mrb[0].mxu1 %v3663_v10  ;;  %3055 = vmatmul.mubr.bf16.vlgmr.msra.gmra.mrb[0].mxu0 %v3671_v11 }
  0x23   :  { %3090 = vmatprep.mubr.bf16.mxu1 %v3664_v12  ;;  %3058 = vmatprep.mubr.bf16.mxu0 %v3672_v13 }
  0x2a   :  { %3091 = vmatmul.mubr.bf16.gmra.mrb[4].mxu1 %v3665_v14  ;;  %3059 = vmatmul.mubr.bf16.gmra.mrb[4].mxu0 %v3673_v15 }
  0x2b   :  { %3094 = vmatprep.mubr.bf16.mxu1 %v3666_v16  ;;  %3062 = vmatprep.mubr.bf16.mxu0 %v3674_v17 }
  0x32   :  { %3095 = vmatmul.mubr.bf16.gmra.mrb[8].mxu1 %v3667_v18  ;;  %3063 = vmatmul.mubr.bf16.gmra.mrb[8].mxu0 %v3675_v19 }
  0x33   :  { %3098 = vmatprep.mubr.bf16.mxu1 %v3668_v20  ;;  %3066 = vmatprep.mubr.bf16.mxu0 %v3676_v21 }
  0x3a   :  { %3099 = vmatmul.mubr.bf16.gmra.mrb[12].mxu1 %v3669_v22  ;;  %3067 = vmatmul.mubr.bf16.gmra.mrb[12].mxu0 %v3677_v23 }
  0x3b   :  { %3134 = vmatprep.mubr.msk.f32.mxu0 %vm3953_vm0, %v5298_v25  ;;  %3204 = vmatprep.mubr.msk.f32.mxu1 %vm3953_vm0, %v5298_v25 }
  0xf5   :  { %v3088_v27 = vpop.f32.mrb[0].mxu1  ;;  %v4117_v28 = vpop.f32.mrb[0].mxu0 }
  0xf6   :  { %v383_v29 = vpop.f32.mrb[1].mxu1  ;;  %v4119_v30 = vpop.f32.mrb[1].mxu0  ;;  %v4135_v38 = vadd.f32 %v3088_v27, %v4115_v26 }
  0xf7   :  { %v4122_v31 = vadd.f32 %v4115_v26, %v383_v29  ;;  %v3089_v32 = vpop.f32.mrb[2].mxu1  ;;  %v4124_v33 = vpop.f32.mrb[2].mxu0 }
  0xf8   :  { %v386_v34 = vpop.f32.mrb[3].mxu1  ;;  %v4126_v35 = vpop.f32.mrb[3].mxu0  ;;  %v4129_v36 = vadd.f32 %v3089_v32, %v4115_v26  ;;  %v604_v48 = vmul.f32 %v4135_v38, %v4135_v38 }
  0xf9   :  { %v4132_v37 = vadd.f32 %v4115_v26, %v386_v34  ;;  %v602_v39 = vmul.f32 %v4122_v31, %v4122_v31 }
  0xfa   :  { %v605_v42 = vmul.f32 %v4129_v36, %v4129_v36  ;;  %v3450_v49 = vpack.c.bf16 %v4129_v36, %v4135_v38 }
  0xfb   :  { %v3447_v40 = vpack.c.bf16 %v4132_v37, %v4122_v31  ;;  %v603_v41 = vmul.f32 %v4132_v37, %v4132_v37 }
  0xfc   :  { %v3498_v55 = vpack.c.bf16 %v605_v42, %v604_v48 }
  0xfd   :  { %v3495_v43 = vpack.c.bf16 %v603_v41, %v602_v39  ;;  %v3092_v44 = vpop.f32.mrb[4].mxu1  ;;  %3448 = vmatpush3.bf16.msra.mxu0 %v3447_v40  ;;  %v4145_v45 = vpop.f32.mrb[4].mxu0 }
  0xfe   :  { %v399_v46 = vpop.f32.mrb[5].mxu1  ;;  %3449 = vmatprep.subr.bf16.mxu0 %v3952_v24  ;;  %v4148_v47 = vpop.f32.mrb[5].mxu0  ;;  %v4170_v58 = vadd.f32 %v3092_v44, %v4115_v26 }
  0xff   :  { %v4155_v50 = vadd.f32 %v4115_v26, %v399_v46  ;;  %v3093_v51 = vpop.f32.mrb[6].mxu1  ;;  %3496 = vmatpush3.bf16.msra.mxu1 %v3495_v43  ;;  %v4157_v52 = vpop.f32.mrb[6].mxu0 }
 0x100   :  { %v402_v53 = vpop.f32.mrb[7].mxu1  ;;  %3497 = vmatprep.subr.bf16.mxu1 %v3952_v24  ;;  %v4160_v54 = vpop.f32.mrb[7].mxu0  ;;  %v4163_v56 = vadd.f32 %v3093_v51, %v4115_v26  ;;  %v608_v12 = vmul.f32 %v4170_v58, %v4170_v58 }
 0x101   :  { %v4166_v57 = vadd.f32 %v4115_v26, %v402_v53  ;;  %3451 = vmatpush3.bf16.msra.mxu0 %v3450_v49  ;;  %v606_v59 = vmul.f32 %v4155_v50, %v4155_v50 }
 0x102   :  { %3452 = vmatprep.subr.bf16.mxu0 %v3952_v24  ;;  %v609_v62 = vmul.f32 %v4163_v56, %v4163_v56  ;;  %v3456_v13 = vpack.c.bf16 %v4163_v56, %v4170_v58 }
 0x103   :  { %v3453_v60 = vpack.c.bf16 %v4166_v57, %v4155_v50  ;;  %v607_v61 = vmul.f32 %v4166_v57, %v4166_v57  ;;  %3499 = vmatpush3.bf16.msra.mxu1 %v3498_v55 }
 0x104   :  { %3500 = vmatprep.subr.bf16.mxu1 %v3952_v24  ;;  %v3504_v19 = vpack.c.bf16 %v609_v62, %v608_v12 }
 0x105   :  { %v3501_v63 = vpack.c.bf16 %v607_v61, %v606_v59  ;;  %v3096_v4 = vpop.f32.mrb[8].mxu1  ;;  %3454 = vmatpush3.bf16.msra.mxu0 %v3453_v60  ;;  %v4181_v7 = vpop.f32.mrb[8].mxu0 }
 0x106   :  { %v415_v10 = vpop.f32.mrb[9].mxu1  ;;  %3455 = vmatprep.subr.bf16.mxu0 %v3952_v24  ;;  %v4184_v11 = vpop.f32.mrb[9].mxu0  ;;  %v4206_v22 = vadd.f32 %v3096_v4, %v4115_v26 }
 0x107   :  { %v4191_v14 = vadd.f32 %v4115_v26, %v415_v10  ;;  %v3097_v15 = vpop.f32.mrb[10].mxu1  ;;  %3502 = vmatpush3.bf16.msra.mxu1 %v3501_v63  ;;  %v4193_v16 = vpop.f32.mrb[10].mxu0 }
 0x108   :  { %v418_v17 = vpop.f32.mrb[11].mxu1  ;;  %3503 = vmatprep.subr.bf16.mxu1 %v3952_v24  ;;  %v4196_v18 = vpop.f32.mrb[11].mxu0  ;;  %v4199_v20 = vadd.f32 %v3097_v15, %v4115_v26  ;;  %v612_v43 = vmul.f32 %v4206_v22, %v4206_v22  ;;  %v4259_v15 = vadd.f32 %v4115_v26, %v4126_v35 }
 0x109   :  { %v4202_v21 = vadd.f32 %v4115_v26, %v418_v17  ;;  %3457 = vmatpush3.bf16.msra.mxu0 %v3456_v13  ;;  %v610_v23 = vmul.f32 %v4191_v14, %v4191_v14  ;;  %v4255_v13 = vadd.f32 %v4115_v26, %v4119_v30  ;;  %v4272_v30 = vadd.f32 %v4124_v33, %v4115_v26 }
 0x10a   :  { %3458 = vmatprep.subr.bf16.mxu0 %v3952_v24  ;;  %v613_v32 = vmul.f32 %v4199_v20, %v4199_v20  ;;  %v3462_v44 = vpack.c.bf16 %v4199_v20, %v4206_v22 }
 0x10b   :  { %v3459_v27 = vpack.c.bf16 %v4202_v21, %v4191_v14  ;;  %v611_v29 = vmul.f32 %v4202_v21, %v4202_v21  ;;  %3505 = vmatpush3.bf16.msra.mxu1 %v3504_v19 }
 0x10c   :  { %3506 = vmatprep.subr.bf16.mxu1 %v3952_v24  ;;  %v3510_v55 = vpack.c.bf16 %v613_v32, %v612_v43  ;;  %v272_v32 = vmul.f32 %v4272_v30, %v4272_v30  ;;  %v4294_v43 = vadd.f32 %v4115_v26, %v4160_v54 }
 0x10d   :  { %v3507_v34 = vpack.c.bf16 %v611_v29, %v610_v23  ;;  %v3100_v39 = vpop.f32.mrb[12].mxu1  ;;  %3460 = vmatpush3.bf16.msra.mxu0 %v3459_v27  ;;  %v4217_v40 = vpop.f32.mrb[12].mxu0  ;;  %v4268_v23 = vadd.f32 %v4117_v28, %v4115_v26  ;;  %v269_v27 = vmul.f32 %v4255_v13, %v4255_v13  ;;  %v270_v29 = vmul.f32 %v4259_v15, %v4259_v15 }
 0x10e   :  { %v431_v41 = vpop.f32.mrb[13].mxu1  ;;  %3461 = vmatprep.subr.bf16.mxu0 %v3952_v24  ;;  %v4220_v42 = vpop.f32.mrb[13].mxu0  ;;  %v4242_v61 = vadd.f32 %v3100_v39, %v4115_v26  ;;  %v3471_v28 = vpack.c.bf16 %v4259_v15, %v4255_v13 }
 0x10f   :  { %v4227_v46 = vadd.f32 %v4115_v26, %v431_v41  ;;  %v3101_v48 = vpop.f32.mrb[14].mxu1  ;;  %3508 = vmatpush3.bf16.msra.mxu1 %v3507_v34  ;;  %v4229_v49 = vpop.f32.mrb[14].mxu0  ;;  %v271_v33 = vmul.f32 %v4268_v23, %v4268_v23  ;;  %v5300_v34 = vmov 1.0   ;;  %v3519_v39 = vpack.c.bf16 %v270_v29, %v269_v27 }
 0x110   :  { %v434_v51 = vpop.f32.mrb[15].mxu1  ;;  %3509 = vmatprep.subr.bf16.mxu1 %v3952_v24  ;;  %v4232_v53 = vpop.f32.mrb[15].mxu0  ;;  %v4235_v59 = vadd.f32 %v3101_v48, %v4115_v26  ;;  %v616_v17 = vmul.f32 %v4242_v61, %v4242_v61  ;;  %v4290_v41 = vadd.f32 %v4115_v26, %v4148_v47  ;;  %v4306_v47 = vadd.f32 %v4145_v45, %v4115_v26 }
 0x111   :  { %v4238_v60 = vadd.f32 %v4115_v26, %v434_v51  ;;  %3463 = vmatpush3.bf16.msra.mxu0 %v3462_v44  ;;  %v614_v62 = vmul.f32 %v4227_v46, %v4227_v46  ;;  %v3474_v44 = vpack.c.bf16 %v4272_v30, %v4268_v23  ;;  %v3522_v54 = vpack.c.bf16 %v272_v32, %v271_v33 }
 0x112   :  { %3464 = vmatprep.subr.bf16.mxu0 %v3952_v24  ;;  %v617_v10 = vmul.f32 %v4235_v59, %v4235_v59  ;;  %v3468_v19 = vpack.c.bf16 %v4235_v59, %v4242_v61  ;;  %v273_v48 = vmul.f32 %v4290_v41, %v4290_v41  ;;  %v4313_v51 = vadd.f32 %v4157_v52, %v4115_v26 }
 0x113   :  { %v3465_v63 = vpack.c.bf16 %v4238_v60, %v4227_v46  ;;  %v615_v4 = vmul.f32 %v4238_v60, %v4238_v60  ;;  %3511 = vmatpush3.bf16.msra.mxu1 %v3510_v55  ;;  %v274_v55 = vmul.f32 %v4294_v43, %v4294_v43  ;;  %v3477_v45 = vpack.c.bf16 %v4294_v43, %v4290_v41 }
 0x114   :  { %3512 = vmatprep.subr.bf16.mxu1 %v3952_v24  ;;  %v3516_v35 = vpack.c.bf16 %v617_v10, %v616_v17  ;;  %v4331_v10 = vadd.f32 %v4115_v26, %v4196_v18  ;;  %v4338_v17 = vadd.f32 %v4181_v7, %v4115_v26  ;;  %v4363_v33 = vadd.f32 %v4115_v26, %v4232_v53 }
 0x115   :  { %v3513_v12 = vpack.c.bf16 %v615_v4, %v614_v62  ;;  %3466 = vmatpush3.bf16.msra.mxu0 %v3465_v63  ;;  %v275_v62 = vmul.f32 %v4306_v47, %v4306_v47  ;;  %v276_v63 = vmul.f32 %v4313_v51, %v4313_v51  ;;  %v3525_v52 = vpack.c.bf16 %v274_v55, %v273_v48 }
 0x116   :  { %3467 = vmatprep.subr.bf16.mxu0 %v3952_v24  ;;  %v4327_v4 = vadd.f32 %v4115_v26, %v4184_v11  ;;  %v4377_v53 = vadd.f32 %v4229_v49, %v4115_v26 }
 0x117   :  { %3514 = vmatpush3.bf16.msra.mxu1 %v3513_v12  ;;  %v3480_v12 = vpack.c.bf16 %v4313_v51, %v4306_v47  ;;  %v3528_v11 = vpack.c.bf16 %v276_v63, %v275_v62  ;;  %v3678_v63 = vld [vmem:[%s5293_s0 + $0x80] sm:$0xff]  }
 0x118   :  { %3515 = vmatprep.subr.bf16.mxu1 %v3952_v24  ;;  %v277_v18 = vmul.f32 %v4327_v4, %v4327_v4  ;;  %v3483_v7 = vpack.c.bf16 %v4331_v10, %v4327_v4  ;;  %v284_v55 = vmul.f32 %v4377_v53, %v4377_v53 }
 0x119   :  { %3469 = vmatpush3.bf16.msra.mxu0 %v3468_v19  ;;  %v4342_v19 = vadd.f32 %v4193_v16, %v4115_v26  ;;  %v279_v16 = vmul.f32 %v4338_v17, %v4338_v17 }
 0x11a   :  { %3470 = vmatprep.subr.bf16.mxu0 %v3952_v24 }
 0x11b   :  { %3517 = vmatpush3.bf16.msra.mxu1 %v3516_v35  ;;  %v278_v35 = vmul.f32 %v4331_v10, %v4331_v10  ;;  %v280_v27 = vmul.f32 %v4342_v19, %v4342_v19  ;;  %v3486_v32 = vpack.c.bf16 %v4342_v19, %v4338_v17 }
 0x11c   :  { %3135 = vmatmul.mubr.f32.vlgmr.msra.gmra.mrb[16].mxu0 %v5300_v34  ;;  %3518 = vmatprep.subr.bf16.mxu1 %v3952_v24 }
 0x11d   :  { %3472 = vmatpush3.bf16.msra.mxu0 %v3471_v28  ;;  %3169 = vmatprep.mubr.msk.f32.mxu0 %vm3953_vm0, %v5298_v25  ;;  %v3531_v29 = vpack.c.bf16 %v278_v35, %v277_v18  ;;  %v4359_v28 = vadd.f32 %v4115_v26, %v4220_v42  ;;  %v3682_v18 = vld [vmem:[%s5293_s0 + $0xa0] sm:$0xff]   ;;  %v3683_v35 = vld [vmem:[%s5293_s0 + $0xa8] sm:$0xff]  }
 0x11e   :  { %3205 = vmatmul.mubr.f32.vlgmr.msra.gmra.mrb[16].mxu1 %v5300_v34  ;;  %3473 = vmatprep.subr.bf16.mxu0 %v3952_v24 }
 0x11f   :  { %3520 = vmatpush3.bf16.msra.mxu1 %v3519_v39  ;;  %3239 = vmatprep.mubr.msk.f32.mxu1 %vm3953_vm0, %v5298_v25  ;;  %v3534_v39 = vpack.c.bf16 %v280_v27, %v279_v16  ;;  %v281_v42 = vmul.f32 %v4359_v28, %v4359_v28  ;;  %v3489_v48 = vpack.c.bf16 %v4363_v33, %v4359_v28  ;;  %v3685_v16 = vld [vmem:[%s5293_s0 + $0xb8] sm:$0xff]  }
 0x120   :  { %3521 = vmatprep.subr.bf16.mxu1 %v3952_v24 }
 0x121   :  { %3475 = vmatpush3.bf16.msra.mxu0 %v3474_v44  ;;  %v4371_v44 = vadd.f32 %v4217_v40, %v4115_v26 }
 0x122   :  { %3476 = vmatprep.subr.bf16.mxu0 %v3952_v24 }
 0x123   :  { %3523 = vmatpush3.bf16.msra.mxu1 %v3522_v54  ;;  %v282_v54 = vmul.f32 %v4363_v33, %v4363_v33  ;;  %v283_v40 = vmul.f32 %v4371_v44, %v4371_v44 }
 0x124   :  { %3524 = vmatprep.subr.bf16.mxu1 %v3952_v24 }
 0x125   :  { %3478 = vmatpush3.bf16.msra.mxu0 %v3477_v45  ;;  %v3537_v49 = vpack.c.bf16 %v282_v54, %v281_v42  ;;  %v3492_v45 = vpack.c.bf16 %v4377_v53, %v4371_v44  ;;  %v3540_v62 = vpack.c.bf16 %v284_v55, %v283_v40 }
 0x126   :  { %3479 = vmatprep.subr.bf16.mxu0 %v3952_v24 }
 0x127   :  { %3526 = vmatpush3.bf16.msra.mxu1 %v3525_v52  ;;  %v3679_v52 = vld [vmem:[%s5293_s0 + $0x88] sm:$0xff]  }
 0x128   :  { %3527 = vmatprep.subr.bf16.mxu1 %v3952_v24 }
 0x129   :  { %3481 = vmatpush3.bf16.msra.mxu0 %v3480_v12  ;;  %v3680_v12 = vld [vmem:[%s5293_s0 + $0x90] sm:$0xff]  }
 0x12a   :  { %3482 = vmatprep.subr.bf16.mxu0 %v3952_v24 }
 0x12b   :  { %3529 = vmatpush3.bf16.msra.mxu1 %v3528_v11  ;;  %v3681_v11 = vld [vmem:[%s5293_s0 + $0x98] sm:$0xff]  }
 0x12c   :  { %3530 = vmatprep.subr.bf16.mxu1 %v3952_v24 }
 0x12d   :  { %3484 = vmatpush3.bf16.msra.mxu0 %v3483_v7  ;;  %v3684_v7 = vld [vmem:[%s5293_s0 + $0xb0] sm:$0xff]  }
 0x12e   :  { %3485 = vmatprep.subr.bf16.mxu0 %v3952_v24 }
 0x12f   :  { %3532 = vmatpush3.bf16.msra.mxu1 %v3531_v29 }
 0x130   :  { %3533 = vmatprep.subr.bf16.mxu1 %v3952_v24 }
 0x131   :  { %3487 = vmatpush3.bf16.msra.mxu0 %v3486_v32 }
 0x132   :  { %3488 = vmatprep.subr.bf16.mxu0 %v3952_v24 }
 0x133   :  { %3535 = vmatpush3.bf16.msra.mxu1 %v3534_v39 }
 0x134   :  { %3536 = vmatprep.subr.bf16.mxu1 %v3952_v24 }
 0x135   :  { %3490 = vmatpush3.bf16.msra.mxu0 %v3489_v48 }
 0x136   :  { %3491 = vmatprep.subr.bf16.mxu0 %v3952_v24 }
 0x137   :  { %3538 = vmatpush3.bf16.msra.mxu1 %v3537_v49 }
 0x138   :  { %3539 = vmatprep.subr.bf16.mxu1 %v3952_v24 }
 0x139   :  { %3493 = vmatpush3.bf16.msra.mxu0 %v3492_v45 }
 0x13a   :  { %3242 = vmatprep.subr.bf16.mxu0 %v3989_v0 }
 0x13b   :  { %3541 = vmatpush3.bf16.msra.mxu1 %v3540_v62 }
 0x13c   :  { %3170 = vmatmul.mubr.f32.vlgmr.msra.gmra.mrb[16].mxu0 %v5300_v34  ;;  %3566 = vmatprep.subr.bf16.mxu1 %v3952_v24 }
 0x13d   :  { %3243 = vmatpush3.bf16.msra.mxu0 %v3989_v0  ;;  %3258 = vmatprep.mubr.bf16.mxu0 %v3678_v63 }
 0x13e   :  { %3244 = vmatprep.subr.bf16.mxu0 %v3994_v1  ;;  %3240 = vmatmul.mubr.f32.vlgmr.msra.gmra.mrb[16].mxu1 %v5300_v34 }
 0x13f   :  { %3341 = vmatprep.mubr.msk.f32.mxu1 %vm3953_vm0, %v5298_v25 }
 0x141   :  { %3245 = vmatpush3.bf16.msra.mxu0 %v3994_v1 }
 0x142   :  { %3246 = vmatprep.subr.bf16.mxu0 %v4004_v2 }
 0x145   :  { %3247 = vmatpush3.bf16.msra.mxu0 %v4004_v2 }
 0x146   :  { %3248 = vmatprep.subr.bf16.mxu0 %v4011_v3 }
 0x149   :  { %3249 = vmatpush3.bf16.msra.mxu0 %v4011_v3 }
 0x14a   :  { %3250 = vmatprep.subr.bf16.mxu0 %v4025_v5 }
 0x14d   :  { %3251 = vmatpush3.bf16.msra.mxu0 %v4025_v5 }
 0x14e   :  { %3252 = vmatprep.subr.bf16.mxu0 %v4032_v6 }
 0x151   :  { %3253 = vmatpush3.bf16.msra.mxu0 %v4032_v6 }
 0x152   :  { %3254 = vmatprep.subr.bf16.mxu0 %v4046_v8 }
 0x155   :  { %3255 = vmatpush3.bf16.msra.mxu0 %v4046_v8 }
 0x156   :  { %3256 = vmatprep.subr.bf16.mxu0 %v4055_v9 }
 0x159   :  { %3257 = vmatpush3.bf16.msra.mxu0 %v4055_v9 }
 0x15a   :  { %3542 = vmatprep.subr.bf16.mxu0 %v3952_v24 }
 0x15c   :  { %3259 = vmatmul.mubr.bf16.vlgmr.msra.gmra.mrb[20].mxu0 %v3679_v52 }
 0x15d   :  { %3262 = vmatprep.mubr.bf16.mxu0 %v3680_v12 }
 0x164   :  { %3263 = vmatmul.mubr.bf16.gmra.mrb[24].mxu0 %v3681_v11 }
 0x165   :  { %3266 = vmatprep.mubr.bf16.mxu0 %v3682_v18 }
 0x16c   :  { %3267 = vmatmul.mubr.bf16.gmra.mrb[28].mxu0 %v3683_v35 }
 0x16d   :  { %3270 = vmatprep.mubr.bf16.mxu0 %v3684_v7 }
 0x174   :  { %3271 = vmatmul.mubr.bf16.gmra.mrb[32].mxu0 %v3685_v16 }
 0x175   :  { %3306 = vmatprep.mubr.msk.f32.mxu0 %vm3953_vm0, %v5298_v25 }
 0x22f   :  { %v3260_v27 = vpop.f32.mrb[20].mxu0 }
 0x230   :  { %v856_v29 = vpop.f32.mrb[21].mxu0  ;;  %v4451_v40 = vadd.f32 %v3260_v27, %v4115_v26 }
 0x231   :  { %v4442_v32 = vadd.f32 %v4115_v26, %v856_v29  ;;  %v3261_v39 = vpop.f32.mrb[22].mxu0 }
 0x232   :  { %v859_v42 = vpop.f32.mrb[23].mxu0  ;;  %v4445_v54 = vadd.f32 %v3261_v39, %v4115_v26  ;;  %v1008_v11 = vmul.f32 %v4451_v40, %v4451_v40 }
 0x233   :  { %v4448_v48 = vadd.f32 %v4115_v26, %v859_v42  ;;  %v1006_v55 = vmul.f32 %v4442_v32, %v4442_v32 }
 0x234   :  { %v1009_v62 = vmul.f32 %v4445_v54, %v4445_v54  ;;  %v3546_v18 = vpack.c.bf16 %v4445_v54, %v4451_v40 }
 0x235   :  { %v3543_v49 = vpack.c.bf16 %v4448_v48, %v4442_v32  ;;  %v1007_v45 = vmul.f32 %v4448_v48, %v4448_v48 }
 0x236   :  { %v3570_v27 = vpack.c.bf16 %v1009_v62, %v1008_v11 }
 0x237   :  { %v3567_v63 = vpack.c.bf16 %v1007_v45, %v1006_v55  ;;  %v3264_v52 = vpop.f32.mrb[24].mxu0  ;;  %3544 = vmatpush3.bf16.msra.mxu0 %v3543_v49 }
 0x238   :  { %v872_v12 = vpop.f32.mrb[25].mxu0  ;;  %3545 = vmatprep.subr.bf16.mxu0 %v3952_v24  ;;  %v4478_v42 = vadd.f32 %v3264_v52, %v4115_v26 }
 0x239   :  { %v4467_v35 = vadd.f32 %v4115_v26, %v872_v12  ;;  %v3265_v7 = vpop.f32.mrb[26].mxu0  ;;  %3568 = vmatpush3.bf16.msra.mxu1 %v3567_v63 }
 0x23a   :  { %v875_v16 = vpop.f32.mrb[27].mxu0  ;;  %3569 = vmatprep.subr.bf16.mxu1 %v3952_v24  ;;  %v4471_v29 = vadd.f32 %v3265_v7, %v4115_v26  ;;  %v1012_v11 = vmul.f32 %v4478_v42, %v4478_v42 }
 0x23b   :  { %v4474_v39 = vadd.f32 %v4115_v26, %v875_v16  ;;  %3547 = vmatpush3.bf16.msra.mxu0 %v3546_v18  ;;  %v1010_v55 = vmul.f32 %v4467_v35, %v4467_v35 }
 0x23c   :  { %3548 = vmatprep.subr.bf16.mxu0 %v3952_v24  ;;  %v1013_v62 = vmul.f32 %v4471_v29, %v4471_v29  ;;  %v3552_v18 = vpack.c.bf16 %v4471_v29, %v4478_v42 }
 0x23d   :  { %v3549_v49 = vpack.c.bf16 %v4474_v39, %v4467_v35  ;;  %v1011_v45 = vmul.f32 %v4474_v39, %v4474_v39  ;;  %3571 = vmatpush3.bf16.msra.mxu1 %v3570_v27 }
 0x23e   :  { %3572 = vmatprep.subr.bf16.mxu1 %v3952_v24 }
 0x23f   :  { %v3573_v63 = vpack.c.bf16 %v1011_v45, %v1010_v55  ;;  %v3268_v12 = vpop.f32.mrb[28].mxu0  ;;  %3550 = vmatpush3.bf16.msra.mxu0 %v3549_v49  ;;  %v3576_v55 = vpack.c.bf16 %v1013_v62, %v1012_v11 }
 0x240   :  { %v888_v52 = vpop.f32.mrb[29].mxu0  ;;  %3551 = vmatprep.subr.bf16.mxu0 %v3952_v24  ;;  %v4506_v25 = vadd.f32 %v3268_v12, %v4115_v26 }
 0x241   :  { %v4495_v7 = vadd.f32 %v4115_v26, %v888_v52  ;;  %v3269_v16 = vpop.f32.mrb[30].mxu0  ;;  %3574 = vmatpush3.bf16.msra.mxu1 %v3573_v63 }
 0x242   :  { %v891_v27 = vpop.f32.mrb[31].mxu0  ;;  %3575 = vmatprep.subr.bf16.mxu1 %v3952_v24  ;;  %v4499_v49 = vadd.f32 %v3269_v16, %v4115_v26 }
 0x243   :  { %5322 = vst [vmem:[#allocation3_spill] sm:$0xff] %v4495_v7  ;;  %v4502_v45 = vadd.f32 %v4115_v26, %v891_v27  ;;  %3553 = vmatpush3.bf16.msra.mxu0 %v3552_v18  ;;  %v1014_v52 = vmul.f32 %v4495_v7, %v4495_v7  ;;  %v1016_v27 = vmul.f32 %v4506_v25, %v4506_v25 }
 0x244   :  { %5323 = vst [vmem:[#allocation4_spill] sm:$0xff] %v4499_v49  ;;  %3554 = vmatprep.subr.bf16.mxu0 %v3952_v24  ;;  %v1017_v11 = vmul.f32 %v4499_v49, %v4499_v49  ;;  %v3558_v34 = vpack.c.bf16 %v4499_v49, %v4506_v25 }
 0x245   :  { %5324 = vst [vmem:[#allocation5_spill] sm:$0xff] %v4502_v45  ;;  %v3555_v63 = vpack.c.bf16 %v4502_v45, %v4495_v7  ;;  %v1015_v62 = vmul.f32 %v4502_v45, %v4502_v45  ;;  %3577 = vmatpush3.bf16.msra.mxu1 %v3576_v55 }
 0x246   :  { %3578 = vmatprep.subr.bf16.mxu1 %v3952_v24 }
 0x247   :  { %v3579_v18 = vpack.c.bf16 %v1015_v62, %v1014_v52  ;;  %v3272_v16 = vpop.f32.mrb[32].mxu0  ;;  %3556 = vmatpush3.bf16.msra.mxu0 %v3555_v63  ;;  %v3582_v52 = vpack.c.bf16 %v1017_v11, %v1016_v27 }
 0x248   :  { %v904_v12 = vpop.f32.mrb[33].mxu0  ;;  %3557 = vmatprep.subr.bf16.mxu0 %v3952_v24  ;;  %v4534_v49 = vadd.f32 %v3272_v16, %v4115_v26 }
 0x249   :  { %v4523_v45 = vadd.f32 %v4115_v26, %v904_v12  ;;  %v3273_v55 = vpop.f32.mrb[34].mxu0  ;;  %3580 = vmatpush3.bf16.msra.mxu1 %v3579_v18 }
 0x24a   :  { %v907_v7 = vpop.f32.mrb[35].mxu0  ;;  %3581 = vmatprep.subr.bf16.mxu1 %v3952_v24  ;;  %v4527_v63 = vadd.f32 %v3273_v55, %v4115_v26  ;;  %v1020_v16 = vmul.f32 %v4534_v49, %v4534_v49 }
 0x24b   :  { %v4530_v62 = vadd.f32 %v4115_v26, %v907_v7  ;;  %3559 = vmatpush3.bf16.msra.mxu0 %v3558_v34  ;;  %v1018_v12 = vmul.f32 %v4523_v45, %v4523_v45 }
 0x24c   :  { %5325 = vst [vmem:[#allocation6_spill] sm:$0xff] %v4527_v63  ;;  %3560 = vmatprep.subr.bf16.mxu0 %v3952_v24  ;;  %v1021_v34 = vmul.f32 %v4527_v63, %v4527_v63  ;;  %v3564_v27 = vpack.c.bf16 %v4527_v63, %v4534_v49 }
 0x24d   :  { %v3561_v18 = vpack.c.bf16 %v4530_v62, %v4523_v45  ;;  %v1019_v11 = vmul.f32 %v4530_v62, %v4530_v62  ;;  %3583 = vmatpush3.bf16.msra.mxu1 %v3582_v52  ;;  %v3686_v52 = vld [vmem:[%s5293_s0 + $0xc0] sm:$0xff]  }
 0x24e   :  { %3584 = vmatprep.subr.bf16.mxu1 %v3952_v24  ;;  %v3588_v55 = vpack.c.bf16 %v1021_v34, %v1020_v16 }
 0x24f   :  { %v3585_v7 = vpack.c.bf16 %v1019_v11, %v1018_v12  ;;  %3562 = vmatpush3.bf16.msra.mxu0 %v3561_v18  ;;  %v5326_v12 = vmov 1.0   ;;  %v5327_v18 = vmov 0.0  }
 0x250   :  { %3563 = vmatprep.subr.bf16.mxu0 %v3952_v24 }
 0x251   :  { %3586 = vmatpush3.bf16.msra.mxu1 %v3585_v7 }
 0x252   :  { %3587 = vmatprep.subr.bf16.mxu1 %v3952_v24 }
 0x253   :  { %3565 = vmatpush3.bf16.msra.mxu0 %v3564_v27 }
 0x254   :  { %3590 = vmatprep.subr.bf16.mxu0 %v3952_v24 }
 0x255   :  { %3589 = vmatpush3.bf16.msra.mxu1 %v3588_v55 }
 0x256   :  { %3344 = vmatprep.subr.bf16.mxu1 %v3989_v0  ;;  %3307 = vmatmul.mubr.f32.vlgmr.msra.gmra.mrb[16].mxu0 %v5326_v12 }
 0x257   :  { %3408 = vmatprep.mubr.msk.f32.mxu0 %vm3953_vm0, %v5327_v18 }
 0x258   :  { %3342 = vmatmul.mubr.f32.vlgmr.msra.gmra.mrb[16].mxu1 %v5326_v12 }
 0x259   :  { %3345 = vmatpush3.bf16.msra.mxu1 %v3989_v0  ;;  %3360 = vmatprep.mubr.bf16.mxu1 %v3686_v52  ;;  %v3687_v0 = vld [vmem:[%s5293_s0 + $0xc8] sm:$0xff]  }
 0x25a   :  { %3346 = vmatprep.subr.bf16.mxu1 %v3994_v1 }
 0x25d   :  { %3347 = vmatpush3.bf16.msra.mxu1 %v3994_v1  ;;  %v3688_v1 = vld [vmem:[%s5293_s0 + $0xd0] sm:$0xff]  }
 0x25e   :  { %3348 = vmatprep.subr.bf16.mxu1 %v4004_v2 }
 0x261   :  { %3349 = vmatpush3.bf16.msra.mxu1 %v4004_v2  ;;  %v3689_v2 = vld [vmem:[%s5293_s0 + $0xd8] sm:$0xff]  }
 0x262   :  { %3350 = vmatprep.subr.bf16.mxu1 %v4011_v3 }
 0x265   :  { %3351 = vmatpush3.bf16.msra.mxu1 %v4011_v3  ;;  %v3690_v3 = vld [vmem:[%s5293_s0 + $0xe0] sm:$0xff]  }
 0x266   :  { %3352 = vmatprep.subr.bf16.mxu1 %v4025_v5 }
 0x269   :  { %3353 = vmatpush3.bf16.msra.mxu1 %v4025_v5  ;;  %v3691_v5 = vld [vmem:[%s5293_s0 + $0xe8] sm:$0xff]  }
 0x26a   :  { %3354 = vmatprep.subr.bf16.mxu1 %v4032_v6 }
 0x26d   :  { %3355 = vmatpush3.bf16.msra.mxu1 %v4032_v6  ;;  %v3692_v6 = vld [vmem:[%s5293_s0 + $0xf0] sm:$0xff]  }
 0x26e   :  { %3356 = vmatprep.subr.bf16.mxu1 %v4046_v8 }
 0x271   :  { %3357 = vmatpush3.bf16.msra.mxu1 %v4046_v8  ;;  %v3693_v8 = vld [vmem:[%s5293_s0 + $0xf8] sm:$0xff]  }
 0x272   :  { %3358 = vmatprep.subr.bf16.mxu1 %v4055_v9 }
 0x275   :  { %3359 = vmatpush3.bf16.msra.mxu1 %v4055_v9 }
 0x276   :  { %3614 = vmatprep.subr.bf16.mxu1 %v3952_v24 }
 0x278   :  { %3361 = vmatmul.mubr.bf16.vlgmr.msra.gmra.mrb[20].mxu1 %v3687_v0 }
 0x279   :  { %3364 = vmatprep.mubr.bf16.mxu1 %v3688_v1 }
 0x280   :  { %3365 = vmatmul.mubr.bf16.gmra.mrb[24].mxu1 %v3689_v2 }
 0x281   :  { %3368 = vmatprep.mubr.bf16.mxu1 %v3690_v3 }
 0x288   :  { %3369 = vmatmul.mubr.bf16.gmra.mrb[28].mxu1 %v3691_v5 }
 0x289   :  { %3372 = vmatprep.mubr.bf16.mxu1 %v3692_v6 }
 0x290   :  { %3373 = vmatmul.mubr.bf16.gmra.mrb[32].mxu1 %v3693_v8 }
 0x291   :  { %3443 = vmatprep.mubr.msk.f32.mxu1 %vm3953_vm0, %v5327_v18 }
 0x34b   :  { %v3362_v9 = vpop.f32.mrb[20].mxu1 }
 0x34c   :  { %v1191_v11 = vpop.f32.mrb[21].mxu1  ;;  %v4609_v52 = vadd.f32 %v3362_v9, %v4115_v26 }
 0x34d   :  { %v4600_v34 = vadd.f32 %v4115_v26, %v1191_v11  ;;  %v3363_v7 = vpop.f32.mrb[22].mxu1 }
 0x34e   :  { %v1194_v16 = vpop.f32.mrb[23].mxu1  ;;  %v4603_v27 = vadd.f32 %v3363_v7, %v4115_v26  ;;  %5331 = vst [vmem:[#allocation10_spill] sm:$0xff] %v4609_v52  ;;  %v1343_v8 = vmul.f32 %v4609_v52, %v4609_v52 }
 0x34f   :  { %5328 = vst [vmem:[#allocation7_spill] sm:$0xff] %v4600_v34  ;;  %v4606_v55 = vadd.f32 %v4115_v26, %v1194_v16  ;;  %v1341_v0 = vmul.f32 %v4600_v34, %v4600_v34 }
 0x350   :  { %5329 = vst [vmem:[#allocation8_spill] sm:$0xff] %v4603_v27  ;;  %v1344_v2 = vmul.f32 %v4603_v27, %v4603_v27  ;;  %v3594_v9 = vpack.c.bf16 %v4603_v27, %v4609_v52 }
 0x351   :  { %5330 = vst [vmem:[#allocation9_spill] sm:$0xff] %v4606_v55  ;;  %v3591_v18 = vpack.c.bf16 %v4606_v55, %v4600_v34  ;;  %v1342_v1 = vmul.f32 %v4606_v55, %v4606_v55 }
 0x353   :  { %v3615_v3 = vpack.c.bf16 %v1342_v1, %v1341_v0  ;;  %v3366_v5 = vpop.f32.mrb[24].mxu1  ;;  %3592 = vmatpush3.bf16.msra.mxu0 %v3591_v18  ;;  %v3618_v0 = vpack.c.bf16 %v1344_v2, %v1343_v8 }
 0x354   :  { %v1207_v6 = vpop.f32.mrb[25].mxu1  ;;  %3593 = vmatprep.subr.bf16.mxu0 %v3952_v24  ;;  %v4636_v27 = vadd.f32 %v3366_v5, %v4115_v26 }
 0x355   :  { %v4625_v11 = vadd.f32 %v4115_v26, %v1207_v6  ;;  %v3367_v7 = vpop.f32.mrb[26].mxu1  ;;  %3616 = vmatpush3.bf16.msra.mxu1 %v3615_v3 }
 0x356   :  { %v1210_v16 = vpop.f32.mrb[27].mxu1  ;;  %3617 = vmatprep.subr.bf16.mxu1 %v3952_v24  ;;  %v4629_v18 = vadd.f32 %v3367_v7, %v4115_v26  ;;  %5335 = vst [vmem:[#allocation14_spill] sm:$0xff] %v4636_v27 }
 0x357   :  { %5332 = vst [vmem:[#allocation11_spill] sm:$0xff] %v4625_v11  ;;  %v4632_v1 = vadd.f32 %v4115_v26, %v1210_v16  ;;  %3595 = vmatpush3.bf16.msra.mxu0 %v3594_v9  ;;  %v1345_v6 = vmul.f32 %v4625_v11, %v4625_v11  ;;  %v1347_v16 = vmul.f32 %v4636_v27, %v4636_v27 }
 0x358   :  { %5333 = vst [vmem:[#allocation12_spill] sm:$0xff] %v4629_v18  ;;  %3596 = vmatprep.subr.bf16.mxu0 %v3952_v24  ;;  %v1348_v8 = vmul.f32 %v4629_v18, %v4629_v18 }
 0x359   :  { %5334 = vst [vmem:[#allocation13_spill] sm:$0xff] %v4632_v1  ;;  %v3597_v3 = vpack.c.bf16 %v4632_v1, %v4625_v11  ;;  %v1346_v2 = vmul.f32 %v4632_v1, %v4632_v1  ;;  %3619 = vmatpush3.bf16.msra.mxu1 %v3618_v0  ;;  %v3600_v11 = vpack.c.bf16 %v4629_v18, %v4636_v27 }
 0x35a   :  { %3620 = vmatprep.subr.bf16.mxu1 %v3952_v24 }
 0x35b   :  { %v3621_v9 = vpack.c.bf16 %v1346_v2, %v1345_v6  ;;  %v3370_v7 = vpop.f32.mrb[28].mxu1  ;;  %3598 = vmatpush3.bf16.msra.mxu0 %v3597_v3  ;;  %v3624_v6 = vpack.c.bf16 %v1348_v8, %v1347_v16 }
 0x35c   :  { %v1223_v5 = vpop.f32.mrb[29].mxu1  ;;  %3599 = vmatprep.subr.bf16.mxu0 %v3952_v24  ;;  %v4664_v18 = vadd.f32 %v3370_v7, %v4115_v26 }
 0x35d   :  { %v4653_v1 = vadd.f32 %v4115_v26, %v1223_v5  ;;  %v3371_v0 = vpop.f32.mrb[30].mxu1  ;;  %3622 = vmatpush3.bf16.msra.mxu1 %v3621_v9 }
 0x35e   :  { %v1226_v52 = vpop.f32.mrb[31].mxu1  ;;  %3623 = vmatprep.subr.bf16.mxu1 %v3952_v24  ;;  %v4657_v3 = vadd.f32 %v3371_v0, %v4115_v26  ;;  %5339 = vst [vmem:[#allocation18_spill] sm:$0xff] %v4664_v18  ;;  %v1351_v0 = vmul.f32 %v4664_v18, %v4664_v18 }
 0x35f   :  { %5336 = vst [vmem:[#allocation15_spill] sm:$0xff] %v4653_v1  ;;  %v4660_v2 = vadd.f32 %v4115_v26, %v1226_v52  ;;  %3601 = vmatpush3.bf16.msra.mxu0 %v3600_v11  ;;  %v1349_v5 = vmul.f32 %v4653_v1, %v4653_v1 }
 0x360   :  { %5337 = vst [vmem:[#allocation16_spill] sm:$0xff] %v4657_v3  ;;  %3602 = vmatprep.subr.bf16.mxu0 %v3952_v24  ;;  %v1352_v52 = vmul.f32 %v4657_v3, %v4657_v3 }
 0x361   :  { %5338 = vst [vmem:[#allocation17_spill] sm:$0xff] %v4660_v2  ;;  %v3603_v9 = vpack.c.bf16 %v4660_v2, %v4653_v1  ;;  %v1350_v8 = vmul.f32 %v4660_v2, %v4660_v2  ;;  %3625 = vmatpush3.bf16.msra.mxu1 %v3624_v6  ;;  %v3606_v1 = vpack.c.bf16 %v4657_v3, %v4664_v18 }
 0x362   :  { %3626 = vmatprep.subr.bf16.mxu1 %v3952_v24 }
 0x363   :  { %v3627_v11 = vpack.c.bf16 %v1350_v8, %v1349_v5  ;;  %v3374_v16 = vpop.f32.mrb[32].mxu1  ;;  %3604 = vmatpush3.bf16.msra.mxu0 %v3603_v9  ;;  %v3630_v5 = vpack.c.bf16 %v1352_v52, %v1351_v0 }
 0x364   :  { %v1239_v7 = vpop.f32.mrb[33].mxu1  ;;  %3605 = vmatprep.subr.bf16.mxu0 %v3952_v24  ;;  %v4692_v3 = vadd.f32 %v3374_v16, %v4115_v26 }
 0x365   :  { %v4681_v2 = vadd.f32 %v4115_v26, %v1239_v7  ;;  %v3375_v6 = vpop.f32.mrb[34].mxu1  ;;  %3628 = vmatpush3.bf16.msra.mxu1 %v3627_v11 }
 0x366   :  { %v1242_v27 = vpop.f32.mrb[35].mxu1  ;;  %3629 = vmatprep.subr.bf16.mxu1 %v3952_v24  ;;  %v4685_v9 = vadd.f32 %v3375_v6, %v4115_v26  ;;  %5343 = vst [vmem:[#allocation22_spill] sm:$0xff] %v4692_v3 }
 0x367   :  { %5340 = vst [vmem:[#allocation19_spill] sm:$0xff] %v4681_v2  ;;  %v4688_v8 = vadd.f32 %v4115_v26, %v1242_v27  ;;  %3607 = vmatpush3.bf16.msra.mxu0 %v3606_v1  ;;  %v1353_v7 = vmul.f32 %v4681_v2, %v4681_v2  ;;  %v1355_v26 = vmul.f32 %v4692_v3, %v4692_v3 }
 0x368   :  { %5341 = vst [vmem:[#allocation20_spill] sm:$0xff] %v4685_v9  ;;  %3608 = vmatprep.subr.bf16.mxu0 %v3952_v24  ;;  %v1356_v27 = vmul.f32 %v4685_v9, %v4685_v9  ;;  %v3612_v16 = vpack.c.bf16 %v4685_v9, %v4692_v3 }
 0x369   :  { %5342 = vst [vmem:[#allocation21_spill] sm:$0xff] %v4688_v8  ;;  %v3609_v11 = vpack.c.bf16 %v4688_v8, %v4681_v2  ;;  %v1354_v52 = vmul.f32 %v4688_v8, %v4688_v8  ;;  %3631 = vmatpush3.bf16.msra.mxu1 %v3630_v5 }
 0x36a   :  { %3632 = vmatprep.subr.bf16.mxu1 %v3952_v24  ;;  %v3636_v0 = vpack.c.bf16 %v1356_v27, %v1355_v26  ;;  %v1435_v27 = vld [vmem:[%s5295_s3] sm:$0x1] }
 0x36b   :  { %v3633_v1 = vpack.c.bf16 %v1354_v52, %v1353_v7  ;;  %3610 = vmatpush3.bf16.msra.mxu0 %v3609_v11 }
 0x36c   :  { %3611 = vmatprep.subr.bf16.mxu0 %v3952_v24 }
 0x36d   :  { %3634 = vmatpush3.bf16.msra.mxu1 %v3633_v1  ;;  %v1456_v1 = vlaneseq }
 0x36e   :  { %3635 = vmatprep.subr.bf16.mxu1 %v3952_v24 }
 0x36f   :  { %3613 = vmatpush3.bf16.msra.mxu0 %v3612_v16  ;;  %v1457_v24 = vshrl.u32 %v1456_v1, 7 }
 0x371   :  { %3637 = vmatpush3.bf16.msra.mxu1 %v3636_v0  ;;  %v1437_v0 = vld [vmem:[%s5296_s4] sm:$0x1] }
 0x372   :  { %3409 = vmatmul.mubr.f32.vlgmr.msra.gmra.mrb[16].mxu0 %v5326_v12 }
 0x374   :  { %3444 = vmatmul.mubr.f32.vlgmr.msra.gmra.mrb[16].mxu1 %v5326_v12  ;;  %v1458_v12 = vsub.s32 0, %v1457_v24 }
 0x445   :  { %v1336_v6 = vpop.f32.mrb[16].mxu0 }
 0x446   :  { %v1428_v5 = vmul.f32 0.001953125, %v1336_v6  ;;  %v3410_v7 = vpop.f32.mrb[17].mxu0 }
 0x447   :  { %v1423_v11 = vpop.f32.mrb[16].mxu1 }
 0x448   :  { %v1430_v52 = vmul.f32 %v1428_v5, %v1428_v5  ;;  %v1429_v8 = vmul.f32 0.001953125, %v1423_v11  ;;  %v3445_v2 = vpop.f32.mrb[17].mxu1 }
 0x44a   :  { %v1431_v18 = vsub.f32 %v1429_v8, %v1430_v52 }
 0x44c   :  { %v1432_v55 = vmax.f32 %v1431_v18, 0.0 }
 0x44e   :  { %v1433_v9 = vadd.f32 1e-05, %v1432_v55 }
 0x450   :  { %3694 = vrsqrt.f32 %v1433_v9 }
 0x45a   :  { %v3695_v26 = vpop.eup %3694 }
 0x45b   :  { %v1436_v16 = vmul.f32 %v3695_v26, %v1435_v27 }
 0x45d   :  { %v1438_v6 = vmul.f32 %v1436_v16, %v1428_v5  ;;  %v4717_v2 = vrot.slane %v1436_v16, %v1458_v12 }
 0x45f   :  { %v1439_v7 = vsub.f32 %v1437_v0, %v1438_v6  ;;  %v1460_v55 = vmul.f32 %v4717_v2, %v4255_v13  ;;  %v1461_v18 = vmul.f32 %v4717_v2, %v4259_v15  ;;  %v1462_v9 = vmul.f32 %v4717_v2, %v4268_v23 }
 0x460   :  { %v1463_v11 = vmul.f32 %v4717_v2, %v4272_v30  ;;  %v1464_v5 = vmul.f32 %v4717_v2, %v4290_v41  ;;  %v1465_v15 = vmul.f32 %v4717_v2, %v4294_v43  ;;  %v1466_v30 = vmul.f32 %v4717_v2, %v4306_v47 }
 0x461   :  { %v4725_v8 = vrot.slane %v1439_v7, %v1458_v12  ;;  %v1467_v24 = vmul.f32 %v4717_v2, %v4313_v51  ;;  %v1468_v27 = vmul.f32 %v4717_v2, %v4327_v4  ;;  %v1469_v0 = vmul.f32 %v4717_v2, %v4331_v10 }
 0x462   :  { %v1470_v6 = vmul.f32 %v4717_v2, %v4338_v17 }
 0x463   :  { %v4732_v52 = vadd.f32 %v4725_v8, %v1460_v55  ;;  %v4735_v1 = vadd.f32 %v4725_v8, %v1461_v18  ;;  %v4738_v13 = vadd.f32 %v4725_v8, %v1462_v9  ;;  %v4743_v23 = vadd.f32 %v4725_v8, %v1463_v11 }
 0x464   :  { %v4748_v41 = vadd.f32 %v4725_v8, %v1464_v5  ;;  %v4755_v26 = vadd.f32 %v4725_v8, %v1465_v15  ;;  %v4758_v43 = vadd.f32 %v4725_v8, %v1466_v30  ;;  %v4766_v51 = vadd.f32 %v4725_v8, %v1467_v24 }
 0x465   :  { %v2455_v16 = vmul.f32 -1.442695, %v4732_v52  ;;  %v2456_v12 = vmul.f32 -1.442695, %v4735_v1  ;;  %v2457_v47 = vmul.f32 -1.442695, %v4738_v13  ;;  %v4772_v7 = vadd.f32 %v4725_v8, %v1468_v27 }
 0x466   :  { %v2458_v4 = vmul.f32 -1.442695, %v4743_v23  ;;  %v2459_v55 = vmul.f32 -1.442695, %v4748_v41  ;;  %v1471_v18 = vmul.f32 %v4717_v2, %v4342_v19  ;;  %v4778_v9 = vadd.f32 %v4725_v8, %v1469_v0 }
 0x467   :  { %3696 = vpow2.f32 %v2455_v16  ;;  %v2460_v10 = vmul.f32 -1.442695, %v4755_v26  ;;  %v1472_v11 = vmul.f32 %v4717_v2, %v4359_v28  ;;  %v4784_v17 = vadd.f32 %v4725_v8, %v1470_v6 }
 0x468   :  { %3698 = vpow2.f32 %v2456_v12  ;;  %v2461_v5 = vmul.f32 -1.442695, %v4758_v43  ;;  %v1473_v15 = vmul.f32 %v4717_v2, %v4363_v33  ;;  %v4790_v19 = vadd.f32 %v4725_v8, %v1471_v18 }
 0x469   :  { %3700 = vpow2.f32 %v2457_v47  ;;  %v2462_v30 = vmul.f32 -1.442695, %v4766_v51  ;;  %v1474_v24 = vmul.f32 %v4717_v2, %v4371_v44  ;;  %v4796_v28 = vadd.f32 %v4725_v8, %v1472_v11 }
 0x46a   :  { %3702 = vpow2.f32 %v2458_v4  ;;  %v2463_v27 = vmul.f32 -1.442695, %v4772_v7  ;;  %v1475_v16 = vmul.f32 %v4717_v2, %v4377_v53  ;;  %v4802_v33 = vadd.f32 %v4725_v8, %v1473_v15 }
 0x46b   :  { %3704 = vpow2.f32 %v2459_v55  ;;  %v2464_v12 = vmul.f32 -1.442695, %v4778_v9  ;;  %v4806_v47 = vadd.f32 %v4725_v8, %v1474_v24  ;;  %v2465_v44 = vmul.f32 -1.442695, %v4784_v17 }
 0x46c   :  { %3706 = vpow2.f32 %v2460_v10  ;;  %v4810_v0 = vadd.f32 %v4725_v8, %v1475_v16  ;;  %v2466_v4 = vmul.f32 -1.442695, %v4790_v19  ;;  %v2467_v53 = vmul.f32 -1.442695, %v4796_v28 }
 0x46d   :  { %3708 = vpow2.f32 %v2461_v5  ;;  %v2468_v6 = vmul.f32 -1.442695, %v4802_v33  ;;  %v2469_v18 = vmul.f32 -1.442695, %v4806_v47 }
 0x46e   :  { %3710 = vpow2.f32 %v2462_v30  ;;  %v2470_v11 = vmul.f32 -1.442695, %v4810_v0 }
 0x46f   :  { %3712 = vpow2.f32 %v2463_v27 }
 0x470   :  { %3714 = vpow2.f32 %v2464_v12 }
 0x471   :  { %v3697_v55 = vpop.eup %3696  ;;  %3716 = vpow2.f32 %v2465_v44  ;;  %v1706_v44 = vmul.f32 %v4717_v2, %v4122_v31  ;;  %v1711_v31 = vmul.f32 %v4717_v2, %v4166_v57 }
 0x472   :  { %v3699_v10 = vpop.eup %3698  ;;  %3718 = vpow2.f32 %v2466_v4  ;;  %v1546_v15 = vadd.f32 1.0, %v3697_v55  ;;  %v1707_v4 = vmul.f32 %v4717_v2, %v4132_v37 }
 0x473   :  { %v3701_v5 = vpop.eup %3700  ;;  %3720 = vpow2.f32 %v2467_v53  ;;  %v1547_v24 = vadd.f32 1.0, %v3699_v10  ;;  %v1708_v53 = vmul.f32 %v4717_v2, %v4135_v38  ;;  %v1710_v10 = vmul.f32 %v4717_v2, %v4155_v50 }
 0x474   :  { %v3703_v30 = vpop.eup %3702  ;;  %3722 = vpow2.f32 %v2468_v6  ;;  %v1548_v16 = vadd.f32 1.0, %v3701_v5  ;;  %v1709_v6 = vmul.f32 %v4717_v2, %v4129_v36  ;;  %v1712_v5 = vmul.f32 %v4717_v2, %v4170_v58 }
 0x475   :  { %v3705_v27 = vpop.eup %3704  ;;  %3724 = vpow2.f32 %v2469_v18  ;;  %v1549_v3 = vadd.f32 1.0, %v3703_v30  ;;  %v1713_v38 = vmul.f32 %v4717_v2, %v4163_v56  ;;  %v1714_v30 = vmul.f32 %v4717_v2, %v4191_v14 }
 0x476   :  { %v3707_v12 = vpop.eup %3706  ;;  %3726 = vpow2.f32 %v2470_v11  ;;  %v1550_v63 = vadd.f32 1.0, %v3705_v27  ;;  %v1715_v50 = vmul.f32 %v4717_v2, %v4202_v21  ;;  %v1717_v58 = vmul.f32 %v4717_v2, %v4199_v20 }
 0x477   :  { %v3709_v34 = vpop.eup %3708  ;;  %3728 = vrcp.f32 %v1546_v15  ;;  %v1551_v18 = vadd.f32 1.0, %v3707_v12  ;;  %v4845_v14 = vmul.f32 %v4717_v2, %v4238_v60  ;;  %v4853_v20 = vmul.f32 %v4717_v2, %v4235_v59 }
 0x478   :  { %v3711_v55 = vpop.eup %3710  ;;  %3730 = vrcp.f32 %v1547_v24  ;;  %v1552_v37 = vadd.f32 1.0, %v3709_v34  ;;  %v1716_v34 = vmul.f32 %v4717_v2, %v4206_v22  ;;  %v4859_v60 = vadd.f32 %v1707_v4, %v4725_v8 }
 0x479   :  { %v3713_v11 = vpop.eup %3712  ;;  %3732 = vrcp.f32 %v1548_v16  ;;  %v1553_v36 = vadd.f32 1.0, %v3711_v55 }
 0x47a   :  { %v3715_v15 = vpop.eup %3714  ;;  %3734 = vrcp.f32 %v1549_v3  ;;  %v1554_v57 = vadd.f32 1.0, %v3713_v11  ;;  %v1718_v3 = vmul.f32 %v4717_v2, %v4227_v46  ;;  %v4856_v46 = vadd.f32 %v1706_v44, %v4725_v8 }
 0x47b   :  { %v3717_v24 = vpop.eup %3716  ;;  %3736 = vrcp.f32 %v1550_v63  ;;  %v1555_v56 = vadd.f32 1.0, %v3715_v15  ;;  %v4849_v63 = vmul.f32 %v4717_v2, %v4242_v61  ;;  %v4862_v11 = vadd.f32 %v1708_v53, %v4725_v8 }
 0x47c   :  { %v3719_v27 = vpop.eup %3718  ;;  %3738 = vrcp.f32 %v1551_v18  ;;  %v1556_v16 = vadd.f32 1.0, %v3717_v24  ;;  %v4865_v61 = vadd.f32 %v1709_v6, %v4725_v8  ;;  %v4868_v15 = vadd.f32 %v1710_v10, %v4725_v8 }
 0x47d   :  { %v3721_v21 = vpop.eup %3720  ;;  %3740 = vrcp.f32 %v1552_v37  ;;  %v1557_v12 = vadd.f32 1.0, %v3719_v27  ;;  %v4871_v44 = vadd.f32 %v1711_v31, %v4725_v8  ;;  %v4874_v24 = vadd.f32 %v1712_v5, %v4725_v8 }
 0x47e   :  { %v3723_v22 = vpop.eup %3722  ;;  %3742 = vrcp.f32 %v1553_v36  ;;  %v1558_v18 = vadd.f32 1.0, %v3721_v21  ;;  %v4877_v53 = vadd.f32 %v1713_v38, %v4725_v8  ;;  %v4881_v10 = vadd.f32 %v1714_v30, %v4725_v8 }
 0x47f   :  { %v3725_v55 = vpop.eup %3724  ;;  %3744 = vrcp.f32 %v1554_v57  ;;  %v1559_v37 = vadd.f32 1.0, %v3723_v22  ;;  %v4885_v21 = vadd.f32 %v1715_v50, %v4725_v8  ;;  %v2487_v5 = vmul.f32 -1.442695, %v4856_v46 }
 0x480   :  { %v3727_v59 = vpop.eup %3726  ;;  %3746 = vrcp.f32 %v1555_v56  ;;  %v1560_v36 = vadd.f32 1.0, %v3725_v55  ;;  %v4890_v22 = vadd.f32 %v1716_v34, %v4725_v8 }
 0x481   :  { %v3729_v4 = vpop.eup %3728  ;;  %3748 = vrcp.f32 %v1556_v16  ;;  %v1561_v57 = vadd.f32 1.0, %v3727_v59  ;;  %v4897_v59 = vadd.f32 %v1717_v58, %v4725_v8  ;;  %v2492_v58 = vmul.f32 -1.442695, %v4871_v44 }
 0x482   :  { %v3731_v6 = vpop.eup %3730  ;;  %3750 = vrcp.f32 %v1557_v12  ;;  %v1594_v27 = vmul.f32 %v3729_v4, %v4732_v52  ;;  %v2488_v52 = vmul.f32 -1.442695, %v4859_v60  ;;  %v2491_v4 = vmul.f32 -1.442695, %v4868_v15 }
 0x483   :  { %v3733_v56 = vpop.eup %3732  ;;  %3752 = vrcp.f32 %v1558_v18  ;;  %v1595_v31 = vmul.f32 %v3731_v6, %v4735_v1  ;;  %v2489_v1 = vmul.f32 -1.442695, %v4862_v11 }
 0x484   :  { %v3735_v16 = vpop.eup %3734  ;;  %3754 = vrcp.f32 %v1559_v37  ;;  %v1596_v38 = vmul.f32 %v3733_v56, %v4738_v13  ;;  %v2490_v13 = vmul.f32 -1.442695, %v4865_v61  ;;  %v2493_v56 = vmul.f32 -1.442695, %v4874_v24 }
 0x485   :  { %v3737_v30 = vpop.eup %3736  ;;  %3756 = vrcp.f32 %v1560_v36  ;;  %v1597_v12 = vmul.f32 %v3735_v16, %v4743_v23  ;;  %v2650_v55 = vpack.c.bf16 %v1595_v31, %v1594_v27 }
 0x486   :  { %v3739_v50 = vpop.eup %3738  ;;  %3758 = vrcp.f32 %v1561_v57  ;;  %v1598_v18 = vmul.f32 %v3737_v30, %v4748_v41  ;;  %v4907_v41 = vadd.f32 %v1718_v3, %v4725_v8  ;;  %v4918_v3 = vadd.f32 %v4845_v14, %v4725_v8 }
 0x487   :  { %v3741_v34 = vpop.eup %3740  ;;  %v1599_v37 = vmul.f32 %v3739_v50, %v4755_v26  ;;  %2651 = vst [vmem:[%s5297_s5] sm:$0xff] %v2650_v55   ;;  %v2655_v23 = vpack.c.bf16 %v1597_v12, %v1596_v38  ;;  %3760 = vpow2.f32 %v2487_v5  ;;  %v2494_v5 = vmul.f32 -1.442695, %v4877_v53 }
 0x488   :  { %v3743_v36 = vpop.eup %3742  ;;  %v1600_v6 = vmul.f32 %v3741_v34, %v4758_v43  ;;  %3762 = vpow2.f32 %v2488_v52  ;;  %v2495_v52 = vmul.f32 -1.442695, %v4881_v10  ;;  %v4929_v14 = vadd.f32 %v4849_v63, %v4725_v8 }
 0x489   :  { %v3745_v57 = vpop.eup %3744  ;;  %v1601_v26 = vmul.f32 %v3743_v36, %v4766_v51  ;;  %2807 = vst [vmem:[%s5297_s5 + $0x8] sm:$0xff] %v2655_v23   ;;  %v2660_v27 = vpack.c.bf16 %v1599_v37, %v1598_v18  ;;  %3764 = vpow2.f32 %v2489_v1  ;;  %v2496_v12 = vmul.f32 -1.442695, %v4885_v21 }
 0x48a   :  { %v3747_v31 = vpop.eup %3746  ;;  %v1602_v43 = vmul.f32 %v3745_v57, %v4772_v7  ;;  %3766 = vpow2.f32 %v2490_v13  ;;  %v2497_v50 = vmul.f32 -1.442695, %v4890_v22  ;;  %v4940_v63 = vadd.f32 %v4853_v20, %v4725_v8 }
 0x48b   :  { %v3749_v16 = vpop.eup %3748  ;;  %v1603_v51 = vmul.f32 %v3747_v31, %v4778_v9  ;;  %2808 = vst [vmem:[%s5297_s5 + $0x10] sm:$0xff] %v2660_v27   ;;  %v2665_v38 = vpack.c.bf16 %v1601_v26, %v1600_v6  ;;  %3768 = vpow2.f32 %v2491_v4  ;;  %v2498_v13 = vmul.f32 -1.442695, %v4897_v59 }
 0x48c   :  { %v3751_v30 = vpop.eup %3750  ;;  %v1604_v7 = vmul.f32 %v3749_v16, %v4784_v17  ;;  %3770 = vpow2.f32 %v2492_v58  ;;  %v2499_v23 = vmul.f32 -1.442695, %v4907_v41  ;;  %v2500_v20 = vmul.f32 -1.442695, %v4918_v3 }
 0x48d   :  { %v3753_v55 = vpop.eup %3752  ;;  %v1605_v9 = vmul.f32 %v3751_v30, %v4790_v19  ;;  %2809 = vst [vmem:[%s5297_s5 + $0x18] sm:$0xff] %v2665_v38   ;;  %v2670_v1 = vpack.c.bf16 %v1603_v51, %v1602_v43  ;;  %3772 = vpow2.f32 %v2493_v56  ;;  %v2501_v58 = vmul.f32 -1.442695, %v4929_v14 }
 0x48e   :  { %v3755_v18 = vpop.eup %3754  ;;  %v1606_v17 = vmul.f32 %v3753_v55, %v4796_v28  ;;  %3774 = vpow2.f32 %v2494_v5  ;;  %v2502_v26 = vmul.f32 -1.442695, %v4940_v63  ;;  %v1946_v38 = vmul.f32 %v4717_v2, %v4442_v32 }
 0x48f   :  { %v3757_v34 = vpop.eup %3756  ;;  %v1607_v19 = vmul.f32 %v3755_v18, %v4802_v33  ;;  %2810 = vst [vmem:[%s5297_s5 + $0x20] sm:$0xff] %v2670_v1   ;;  %v2675_v37 = vpack.c.bf16 %v1605_v9, %v1604_v7  ;;  %3776 = vpow2.f32 %v2495_v52  ;;  %v1947_v52 = vmul.f32 %v4717_v2, %v4448_v48 }
 0x490   :  { %v3759_v4 = vpop.eup %3758  ;;  %v1608_v28 = vmul.f32 %v3757_v34, %v4806_v47  ;;  %3778 = vpow2.f32 %v2496_v12  ;;  %v1948_v12 = vmul.f32 %v4717_v2, %v4451_v40  ;;  %v1949_v55 = vmul.f32 %v4717_v2, %v4445_v54  ;;  %v5344_v34 = vld [vmem:[#allocation3_spill] sm:$0xff] }
 0x491   :  { %v3761_v36 = vpop.eup %3760  ;;  %v1609_v6 = vmul.f32 %v3759_v4, %v4810_v0  ;;  %2811 = vst [vmem:[%s5297_s5 + $0x28] sm:$0xff] %v2675_v37   ;;  %v2680_v33 = vpack.c.bf16 %v1607_v19, %v1606_v17  ;;  %3780 = vpow2.f32 %v2497_v50  ;;  %v1950_v50 = vmul.f32 %v4717_v2, %v4467_v35  ;;  %v5345_v37 = vld [vmem:[#allocation5_spill] sm:$0xff] }
 0x492   :  { %v3763_v57 = vpop.eup %3762  ;;  %3782 = vpow2.f32 %v2498_v13  ;;  %v1786_v0 = vadd.f32 1.0, %v3761_v36  ;;  %v1951_v32 = vmul.f32 %v4717_v2, %v4474_v39  ;;  %v1952_v17 = vmul.f32 %v4717_v2, %v4478_v42 }
 0x493   :  { %v3765_v27 = vpop.eup %3764  ;;  %2812 = vst [vmem:[%s5297_s5 + $0x30] sm:$0xff] %v2680_v33   ;;  %v2685_v47 = vpack.c.bf16 %v1609_v6, %v1608_v28  ;;  %3784 = vpow2.f32 %v2499_v23  ;;  %v1787_v31 = vadd.f32 1.0, %v3763_v57  ;;  %v1953_v40 = vmul.f32 %v4717_v2, %v4471_v29  ;;  %v5346_v28 = vld [vmem:[#allocation4_spill] sm:$0xff] }
 0x494   :  { %v3767_v56 = vpop.eup %3766  ;;  %3786 = vpow2.f32 %v2500_v20  ;;  %v1788_v5 = vadd.f32 1.0, %v3765_v27  ;;  %v1954_v19 = vmul.f32 %v4717_v2, %v5344_v34  ;;  %v1955_v35 = vmul.f32 %v4717_v2, %v5345_v37 }
 0x495   :  { %v3769_v43 = vpop.eup %3768  ;;  %2813 = vst [vmem:[%s5297_s5 + $0x38] sm:$0xff] %v2685_v47   ;;  %3788 = vpow2.f32 %v2501_v58  ;;  %v1789_v51 = vadd.f32 1.0, %v3767_v56  ;;  %v1956_v4 = vmul.f32 %v4717_v2, %v4506_v25  ;;  %v1957_v42 = vmul.f32 %v4717_v2, %v5346_v28  ;;  %v5347_v25 = vld [vmem:[#allocation6_spill] sm:$0xff] }
 0x496   :  { %v3771_v16 = vpop.eup %3770  ;;  %3790 = vpow2.f32 %v2502_v26  ;;  %v1790_v7 = vadd.f32 1.0, %v3769_v43  ;;  %v1958_v36 = vmul.f32 %v4717_v2, %v4523_v45  ;;  %v4990_v6 = vmul.f32 %v4717_v2, %v4530_v62 }
 0x497   :  { %v3773_v30 = vpop.eup %3772  ;;  %3792 = vrcp.f32 %v1786_v0  ;;  %v1791_v1 = vadd.f32 1.0, %v3771_v16  ;;  %v4994_v57 = vmul.f32 %v4717_v2, %v4534_v49  ;;  %v4998_v26 = vmul.f32 %v4717_v2, %v5347_v25 }
 0x498   :  { %v3775_v9 = vpop.eup %3774  ;;  %3794 = vrcp.f32 %v1787_v31  ;;  %v1792_v48 = vadd.f32 1.0, %v3773_v30  ;;  %v5001_v45 = vadd.f32 %v1946_v38, %v4725_v8  ;;  %v5004_v62 = vadd.f32 %v1947_v52, %v4725_v8 }
 0x499   :  { %v3777_v18 = vpop.eup %3776  ;;  %3796 = vrcp.f32 %v1788_v5  ;;  %v1793_v54 = vadd.f32 1.0, %v3775_v9  ;;  %v5007_v31 = vadd.f32 %v1948_v12, %v4725_v8  ;;  %v5010_v49 = vadd.f32 %v1949_v55, %v4725_v8 }
 0x49a   :  { %v3779_v13 = vpop.eup %3778  ;;  %3798 = vrcp.f32 %v1789_v51  ;;  %v1794_v39 = vadd.f32 1.0, %v3777_v18  ;;  %v5013_v16 = vadd.f32 %v1950_v50, %v4725_v8  ;;  %v5016_v51 = vadd.f32 %v1951_v32, %v4725_v8 }
 0x49b   :  { %v3781_v23 = vpop.eup %3780  ;;  %3800 = vrcp.f32 %v1790_v7  ;;  %v1795_v29 = vadd.f32 1.0, %v3779_v13  ;;  %v5019_v30 = vadd.f32 %v1952_v17, %v4725_v8  ;;  %v5022_v7 = vadd.f32 %v1953_v40, %v4725_v8 }
 0x49c   :  { %v3783_v20 = vpop.eup %3782  ;;  %3802 = vrcp.f32 %v1791_v1  ;;  %v1796_v58 = vadd.f32 1.0, %v3781_v23  ;;  %v5026_v1 = vadd.f32 %v1954_v19, %v4725_v8  ;;  %v5030_v18 = vadd.f32 %v1955_v35, %v4725_v8 }
 0x49d   :  { %v3785_v33 = vpop.eup %3784  ;;  %3804 = vrcp.f32 %v1792_v48  ;;  %v1797_v47 = vadd.f32 1.0, %v3783_v20  ;;  %v2519_v48 = vmul.f32 -1.442695, %v5001_v45  ;;  %v5035_v13 = vadd.f32 %v1956_v4, %v4725_v8 }
 0x49e   :  { %v3787_v27 = vpop.eup %3786  ;;  %3806 = vrcp.f32 %v1793_v54  ;;  %v1798_v56 = vadd.f32 1.0, %v3785_v33  ;;  %v5042_v23 = vadd.f32 %v1957_v42, %v4725_v8  ;;  %v2523_v28 = vmul.f32 -1.442695, %v5013_v16 }
 0x49f   :  { %v3789_v0 = vpop.eup %3788  ;;  %3808 = vrcp.f32 %v1794_v39  ;;  %v1799_v5 = vadd.f32 1.0, %v3787_v27  ;;  %v2524_v42 = vmul.f32 -1.442695, %v5016_v51  ;;  %v2525_v25 = vmul.f32 -1.442695, %v5019_v30 }
 0x4a0   :  { %v3791_v43 = vpop.eup %3790  ;;  %3810 = vrcp.f32 %v1795_v29  ;;  %v1800_v52 = vadd.f32 1.0, %v3789_v0 }
 0x4a1   :  { %v3793_v38 = vpop.eup %3792  ;;  %3812 = vrcp.f32 %v1796_v58  ;;  %v1801_v55 = vadd.f32 1.0, %v3791_v43  ;;  %v2527_v43 = vmul.f32 -1.442695, %v5026_v1 }
 0x4a2   :  { %v3795_v12 = vpop.eup %3794  ;;  %3814 = vrcp.f32 %v1797_v47  ;;  %v1834_v9 = vmul.f32 %v3793_v38, %v4856_v46  ;;  %v2520_v46 = vmul.f32 -1.442695, %v5004_v62  ;;  %v2526_v47 = vmul.f32 -1.442695, %v5022_v7 }
 0x4a3   :  { %v3797_v50 = vpop.eup %3796  ;;  %3816 = vrcp.f32 %v1798_v56  ;;  %v1835_v32 = vmul.f32 %v3795_v12, %v4859_v60  ;;  %v2521_v60 = vmul.f32 -1.442695, %v5007_v31  ;;  %v2528_v38 = vmul.f32 -1.442695, %v5030_v18 }
 0x4a4   :  { %v3799_v17 = vpop.eup %3798  ;;  %3818 = vrcp.f32 %v1799_v5  ;;  %v1836_v40 = vmul.f32 %v3797_v50, %v4862_v11  ;;  %v2522_v11 = vmul.f32 -1.442695, %v5010_v49  ;;  %v2530_v50 = vmul.f32 -1.442695, %v5042_v23 }
 0x4a5   :  { %v3801_v54 = vpop.eup %3800  ;;  %3820 = vrcp.f32 %v1800_v52  ;;  %v1837_v34 = vmul.f32 %v3799_v17, %v4865_v61  ;;  %v2690_v19 = vpack.c.bf16 %v1835_v32, %v1834_v9 }
 0x4a6   :  { %v3803_v37 = vpop.eup %3802  ;;  %3822 = vrcp.f32 %v1801_v55  ;;  %v1838_v35 = vmul.f32 %v3801_v54, %v4868_v15  ;;  %v5052_v15 = vadd.f32 %v1958_v36, %v4725_v8  ;;  %v5063_v36 = vadd.f32 %v4990_v6, %v4725_v8 }
 0x4a7   :  { %v3805_v39 = vpop.eup %3804  ;;  %v1839_v4 = vmul.f32 %v3803_v37, %v4871_v44  ;;  %2814 = vst [vmem:[%s5297_s5 + $0x40] sm:$0xff] %v2690_v19   ;;  %v2695_v61 = vpack.c.bf16 %v1837_v34, %v1836_v40  ;;  %3824 = vpow2.f32 %v2519_v48  ;;  %v5074_v6 = vadd.f32 %v4994_v57, %v4725_v8 }
 0x4a8   :  { %v3807_v20 = vpop.eup %3806  ;;  %v1840_v29 = vmul.f32 %v3805_v39, %v4874_v24  ;;  %3826 = vpow2.f32 %v2520_v46  ;;  %v2529_v55 = vmul.f32 -1.442695, %v5035_v13  ;;  %v5085_v57 = vadd.f32 %v4998_v26, %v4725_v8 }
 0x4a9   :  { %v3809_v33 = vpop.eup %3808  ;;  %v1841_v44 = vmul.f32 %v3807_v20, %v4877_v53  ;;  %2815 = vst [vmem:[%s5297_s5 + $0x48] sm:$0xff] %v2695_v61   ;;  %v2700_v58 = vpack.c.bf16 %v1839_v4, %v1838_v35  ;;  %3828 = vpow2.f32 %v2521_v60  ;;  %v2531_v17 = vmul.f32 -1.442695, %v5052_v15  ;;  %v5348_v20 = vld [vmem:[#allocation7_spill] sm:$0xff] }
 0x4aa   :  { %v3811_v27 = vpop.eup %3810  ;;  %v1842_v24 = vmul.f32 %v3809_v33, %v4881_v10  ;;  %3830 = vpow2.f32 %v2522_v11  ;;  %v2532_v26 = vmul.f32 -1.442695, %v5063_v36  ;;  %v2533_v34 = vmul.f32 -1.442695, %v5074_v6 }
 0x4ab   :  { %v3813_v0 = vpop.eup %3812  ;;  %v1843_v53 = vmul.f32 %v3811_v27, %v4885_v21  ;;  %2816 = vst [vmem:[%s5297_s5 + $0x50] sm:$0xff] %v2700_v58   ;;  %v2705_v56 = vpack.c.bf16 %v1841_v44, %v1840_v29  ;;  %3832 = vpow2.f32 %v2523_v28  ;;  %v2534_v60 = vmul.f32 -1.442695, %v5085_v57 }
 0x4ac   :  { %v3815_v5 = vpop.eup %3814  ;;  %v1844_v10 = vmul.f32 %v3813_v0, %v4890_v22  ;;  %3834 = vpow2.f32 %v2524_v42  ;;  %v2186_v29 = vmul.f32 %v4717_v2, %v5348_v20  ;;  %v5349_v42 = vld [vmem:[#allocation9_spill] sm:$0xff] }
 0x4ad   :  { %v3817_v52 = vpop.eup %3816  ;;  %v1845_v21 = vmul.f32 %v3815_v5, %v4897_v59  ;;  %2817 = vst [vmem:[%s5297_s5 + $0x58] sm:$0xff] %v2705_v56   ;;  %v2710_v12 = vpack.c.bf16 %v1843_v53, %v1842_v24  ;;  %3836 = vpow2.f32 %v2525_v25  ;;  %v2187_v33 = vmul.f32 %v4717_v2, %v5349_v42  ;;  %v5350_v25 = vld [vmem:[#allocation10_spill] sm:$0xff]  ;;  %v5351_v24 = vld [vmem:[#allocation8_spill] sm:$0xff]  ;;  %v5352_v56 = vld [vmem:[#allocation11_spill] sm:$0xff] }
 0x4ae   :  { %v3819_v9 = vpop.eup %3818  ;;  %v1846_v22 = vmul.f32 %v3817_v52, %v4907_v41  ;;  %3838 = vpow2.f32 %v2526_v47  ;;  %v2188_v27 = vmul.f32 %v4717_v2, %v5350_v25  ;;  %v2189_v47 = vmul.f32 %v4717_v2, %v5351_v24  ;;  %v5353_v5 = vld [vmem:[#allocation13_spill] sm:$0xff] }
 0x4af   :  { %v3821_v32 = vpop.eup %3820  ;;  %v1847_v59 = vmul.f32 %v3819_v9, %v4918_v3  ;;  %2818 = vst [vmem:[%s5297_s5 + $0x60] sm:$0xff] %v2710_v12   ;;  %v2715_v48 = vpack.c.bf16 %v1845_v21, %v1844_v10  ;;  %3840 = vpow2.f32 %v2527_v43  ;;  %v2190_v43 = vmul.f32 %v4717_v2, %v5352_v56  ;;  %v5354_v21 = vld [vmem:[#allocation14_spill] sm:$0xff] }
 0x4b0   :  { %v3823_v40 = vpop.eup %3822  ;;  %v1848_v41 = vmul.f32 %v3821_v32, %v4929_v14  ;;  %3842 = vpow2.f32 %v2528_v38  ;;  %v2191_v10 = vmul.f32 %v4717_v2, %v5353_v5  ;;  %v2192_v12 = vmul.f32 %v4717_v2, %v5354_v21  ;;  %v5356_v32 = vld [vmem:[#allocation15_spill] sm:$0xff] }
 0x4b1   :  { %v3825_v46 = vpop.eup %3824  ;;  %v1849_v54 = vmul.f32 %v3823_v40, %v4940_v63  ;;  %2819 = vst [vmem:[%s5297_s5 + $0x68] sm:$0xff] %v2715_v48   ;;  %v2720_v3 = vpack.c.bf16 %v1847_v59, %v1846_v22  ;;  %3844 = vpow2.f32 %v2529_v55  ;;  %v5355_v55 = vld [vmem:[#allocation12_spill] sm:$0xff]  ;;  %v2194_v59 = vmul.f32 %v4717_v2, %v5356_v32  ;;  %v5357_v48 = vld [vmem:[#allocation17_spill] sm:$0xff] }
 0x4b2   :  { %v3827_v19 = vpop.eup %3826  ;;  %3846 = vpow2.f32 %v2530_v50  ;;  %v2026_v63 = vadd.f32 1.0, %v3825_v46  ;;  %v2193_v9 = vmul.f32 %v4717_v2, %v5355_v55  ;;  %v5158_v5 = vadd.f32 %v2190_v43, %v4725_v8 }
 0x4b3   :  { %v3829_v37 = vpop.eup %3828  ;;  %2820 = vst [vmem:[%s5297_s5 + $0x70] sm:$0xff] %v2720_v3   ;;  %v2725_v14 = vpack.c.bf16 %v1849_v54, %v1848_v41  ;;  %3848 = vpow2.f32 %v2531_v17  ;;  %v2027_v11 = vadd.f32 1.0, %v3827_v19  ;;  %v2195_v17 = vmul.f32 %v4717_v2, %v5357_v48  ;;  %v5359_v54 = vld [vmem:[#allocation16_spill] sm:$0xff] }
 0x4b4   :  { %v3831_v35 = vpop.eup %3830  ;;  %3850 = vpow2.f32 %v2532_v26  ;;  %v2028_v4 = vadd.f32 1.0, %v3829_v37  ;;  %v5358_v26 = vld [vmem:[#allocation18_spill] sm:$0xff]  ;;  %v2197_v3 = vmul.f32 %v4717_v2, %v5359_v54  ;;  %v5171_v43 = vadd.f32 %v2194_v59, %v4725_v8 }
 0x4b5   :  { %v3833_v39 = vpop.eup %3832  ;;  %2821 = vst [vmem:[%s5297_s5 + $0x78] sm:$0xff] %v2725_v14   ;;  %3852 = vpow2.f32 %v2533_v34  ;;  %v2029_v28 = vadd.f32 1.0, %v3831_v35  ;;  %v2196_v46 = vmul.f32 %v4717_v2, %v5358_v26  ;;  %v5361_v14 = vld [vmem:[#allocation21_spill] sm:$0xff] }
 0x4b6   :  { %v3835_v61 = vpop.eup %3834  ;;  %3854 = vpow2.f32 %v2534_v60  ;;  %v2030_v58 = vadd.f32 1.0, %v3833_v39  ;;  %v5360_v60 = vld [vmem:[#allocation19_spill] sm:$0xff]  ;;  %v5362_v39 = vld [vmem:[#allocation22_spill] sm:$0xff]  ;;  %v5187_v54 = vadd.f32 %v2197_v3, %v4725_v8 }
 0x4b7   :  { %v3837_v44 = vpop.eup %3836  ;;  %3856 = vrcp.f32 %v2026_v63  ;;  %v2031_v53 = vadd.f32 1.0, %v3835_v61  ;;  %v2198_v37 = vmul.f32 %v4717_v2, %v5360_v60  ;;  %v5135_v63 = vmul.f32 %v4717_v2, %v5361_v14  ;;  %v5363_v61 = vld [vmem:[#allocation20_spill] sm:$0xff] }
 0x4b8   :  { %v3839_v0 = vpop.eup %3838  ;;  %3858 = vrcp.f32 %v2027_v11  ;;  %v2032_v52 = vadd.f32 1.0, %v3837_v44  ;;  %v5146_v44 = vadd.f32 %v2186_v29, %v4725_v8  ;;  %v5161_v29 = vadd.f32 %v2191_v10, %v4725_v8 }
 0x4b9   :  { %v3841_v38 = vpop.eup %3840  ;;  %3860 = vrcp.f32 %v2028_v4  ;;  %v2033_v50 = vadd.f32 1.0, %v3839_v0  ;;  %v5139_v4 = vmul.f32 %v4717_v2, %v5362_v39  ;;  %v5152_v0 = vadd.f32 %v2188_v27, %v4725_v8 }
 0x4ba   :  { %v3843_v22 = vpop.eup %3842  ;;  %3862 = vrcp.f32 %v2029_v28  ;;  %v2034_v41 = vadd.f32 1.0, %v3841_v38  ;;  %v5143_v28 = vmul.f32 %v4717_v2, %v5363_v61  ;;  %v5167_v27 = vadd.f32 %v2193_v9, %v4725_v8 }
 0x4bb   :  { %v3845_v40 = vpop.eup %3844  ;;  %3864 = vrcp.f32 %v2030_v58  ;;  %v2035_v19 = vadd.f32 1.0, %v3843_v22  ;;  %v5149_v58 = vadd.f32 %v2187_v33, %v4725_v8  ;;  %v5180_v48 = vadd.f32 %v2196_v46, %v4725_v8 }
 0x4bc   :  { %v3847_v34 = vpop.eup %3846  ;;  %3866 = vrcp.f32 %v2031_v53  ;;  %v2036_v11 = vadd.f32 1.0, %v3845_v40  ;;  %v5155_v53 = vadd.f32 %v2189_v47, %v4725_v8  ;;  %v2556_v3 = vmul.f32 -1.442695, %v5161_v29 }
 0x4bd   :  { %v3849_v35 = vpop.eup %3848  ;;  %3868 = vrcp.f32 %v2032_v52  ;;  %v2037_v42 = vadd.f32 1.0, %v3847_v34  ;;  %v5164_v52 = vadd.f32 %v2192_v12, %v4725_v8  ;;  %v2551_v12 = vmul.f32 -1.442695, %v5146_v44 }
 0x4be   :  { %v3851_v20 = vpop.eup %3850  ;;  %3870 = vrcp.f32 %v2033_v50  ;;  %v2038_v24 = vadd.f32 1.0, %v3849_v35  ;;  %v5175_v50 = vadd.f32 %v2195_v17, %v4725_v8 }
 0x4bf   :  { %v3853_v25 = vpop.eup %3852  ;;  %3872 = vrcp.f32 %v2034_v41  ;;  %v2039_v56 = vadd.f32 1.0, %v3851_v20  ;;  %v2557_v39 = vmul.f32 -1.442695, %v5164_v52  ;;  %v2558_v20 = vmul.f32 -1.442695, %v5167_v27 }
 0x4c0   :  { %v3855_v2 = vpop.eup %3854  ;;  %3874 = vrcp.f32 %v2035_v19  ;;  %v2040_v38 = vadd.f32 1.0, %v3853_v25  ;;  %v2555_v19 = vmul.f32 -1.442695, %v5158_v5 }
 0x4c1   :  { %v3857_v33 = vpop.eup %3856  ;;  %3876 = vrcp.f32 %v2036_v11  ;;  %v2041_v21 = vadd.f32 1.0, %v3855_v2 }
 0x4c2   :  { %v3859_v47 = vpop.eup %3858  ;;  %3878 = vrcp.f32 %v2037_v42  ;;  %v2074_v55 = vmul.f32 %v3857_v33, %v5001_v45  ;;  %v2552_v45 = vmul.f32 -1.442695, %v5149_v58 }
 0x4c3   :  { %v3861_v22 = vpop.eup %3860  ;;  %3880 = vrcp.f32 %v2038_v24  ;;  %v2075_v10 = vmul.f32 %v3859_v47, %v5004_v62  ;;  %v2553_v62 = vmul.f32 -1.442695, %v5152_v0  ;;  %v2559_v24 = vmul.f32 -1.442695, %v5171_v43 }
 0x4c4   :  { %v3863_v32 = vpop.eup %3862  ;;  %3882 = vrcp.f32 %v2039_v56  ;;  %v2076_v9 = vmul.f32 %v3861_v22, %v5007_v31  ;;  %v2554_v31 = vmul.f32 -1.442695, %v5155_v53  ;;  %v2560_v56 = vmul.f32 -1.442695, %v5175_v50 }
 0x4c5   :  { %v3865_v59 = vpop.eup %3864  ;;  %3884 = vrcp.f32 %v2040_v38  ;;  %v2077_v40 = vmul.f32 %v3863_v32, %v5010_v49  ;;  %v2730_v41 = vpack.c.bf16 %v2075_v10, %v2074_v55  ;;  %v2561_v47 = vmul.f32 -1.442695, %v5180_v48 }
 0x4c6   :  { %v3867_v17 = vpop.eup %3866  ;;  %3886 = vrcp.f32 %v2041_v21  ;;  %v2078_v26 = vmul.f32 %v3865_v59, %v5013_v16  ;;  %v5197_v16 = vadd.f32 %v2198_v37, %v4725_v8  ;;  %v5208_v37 = vadd.f32 %v5135_v63, %v4725_v8 }
 0x4c7   :  { %v3869_v46 = vpop.eup %3868  ;;  %v2079_v34 = vmul.f32 %v3867_v17, %v5016_v51  ;;  %2822 = vst [vmem:[%s5297_s5 + $0x80] sm:$0xff] %v2730_v41   ;;  %v2735_v49 = vpack.c.bf16 %v2077_v40, %v2076_v9  ;;  %3888 = vpow2.f32 %v2551_v12  ;;  %v5219_v63 = vadd.f32 %v5139_v4, %v4725_v8 }
 0x4c8   :  { %v3871_v60 = vpop.eup %3870  ;;  %v2080_v14 = vmul.f32 %v3869_v46, %v5019_v30  ;;  %3890 = vpow2.f32 %v2552_v45  ;;  %v5230_v4 = vadd.f32 %v5143_v28, %v4725_v8  ;;  %v2562_v55 = vmul.f32 -1.442695, %v5187_v54 }
 0x4c9   :  { %v3873_v35 = vpop.eup %3872  ;;  %v2081_v51 = vmul.f32 %v3871_v60, %v5022_v7  ;;  %2823 = vst [vmem:[%s5297_s5 + $0x88] sm:$0xff] %v2735_v49   ;;  %v2740_v11 = vpack.c.bf16 %v2079_v34, %v2078_v26  ;;  %3892 = vpow2.f32 %v2553_v62  ;;  %v2563_v12 = vmul.f32 -1.442695, %v5197_v16 }
 0x4ca   :  { %v3875_v61 = vpop.eup %3874  ;;  %v2082_v30 = vmul.f32 %v3873_v35, %v5026_v1  ;;  %3894 = vpow2.f32 %v2554_v31  ;;  %v2564_v8 = vmul.f32 -1.442695, %v5208_v37  ;;  %v2565_v45 = vmul.f32 -1.442695, %v5219_v63 }
 0x4cb   :  { %v3877_v42 = vpop.eup %3876  ;;  %v2083_v7 = vmul.f32 %v3875_v61, %v5030_v18  ;;  %2824 = vst [vmem:[%s5297_s5 + $0x90] sm:$0xff] %v2740_v11   ;;  %v2745_v25 = vpack.c.bf16 %v2081_v51, %v2080_v14  ;;  %3896 = vpow2.f32 %v2555_v19  ;;  %v2566_v40 = vmul.f32 -1.442695, %v5230_v4 }
 0x4cc   :  { %v3879_v2 = vpop.eup %3878  ;;  %v2084_v1 = vmul.f32 %v3877_v42, %v5035_v13  ;;  %3898 = vpow2.f32 %v2556_v3 }
 0x4cd   :  { %v3881_v33 = vpop.eup %3880  ;;  %v2085_v18 = vmul.f32 %v3879_v2, %v5042_v23  ;;  %2825 = vst [vmem:[%s5297_s5 + $0x98] sm:$0xff] %v2745_v25   ;;  %v2750_v38 = vpack.c.bf16 %v2083_v7, %v2082_v30  ;;  %3900 = vpow2.f32 %v2557_v39 }
 0x4ce   :  { %v3883_v21 = vpop.eup %3882  ;;  %v2086_v13 = vmul.f32 %v3881_v33, %v5052_v15  ;;  %3902 = vpow2.f32 %v2558_v20 }
 0x4cf   :  { %v3885_v22 = vpop.eup %3884  ;;  %v2087_v23 = vmul.f32 %v3883_v21, %v5063_v36  ;;  %2826 = vst [vmem:[%s5297_s5 + $0xa0] sm:$0xff] %v2750_v38   ;;  %v2755_v10 = vpack.c.bf16 %v2085_v18, %v2084_v1  ;;  %3904 = vpow2.f32 %v2559_v24 }
 0x4d0   :  { %v3887_v32 = vpop.eup %3886  ;;  %v2088_v15 = vmul.f32 %v3885_v22, %v5074_v6  ;;  %3906 = vpow2.f32 %v2560_v56 }
 0x4d1   :  { %v3889_v28 = vpop.eup %3888  ;;  %v2089_v9 = vmul.f32 %v3887_v32, %v5085_v57  ;;  %2827 = vst [vmem:[%s5297_s5 + $0xa8] sm:$0xff] %v2755_v10   ;;  %v2760_v36 = vpack.c.bf16 %v2087_v23, %v2086_v13  ;;  %3908 = vpow2.f32 %v2561_v47 }
 0x4d2   :  { %v3891_v59 = vpop.eup %3890  ;;  %3910 = vpow2.f32 %v2562_v55  ;;  %v2266_v57 = vadd.f32 1.0, %v3889_v28 }
 0x4d3   :  { %v3893_v41 = vpop.eup %3892  ;;  %2828 = vst [vmem:[%s5297_s5 + $0xb0] sm:$0xff] %v2760_v36   ;;  %v2765_v6 = vpack.c.bf16 %v2089_v9, %v2088_v15  ;;  %3912 = vpow2.f32 %v2563_v12  ;;  %v2267_v17 = vadd.f32 1.0, %v3891_v59 }
 0x4d4   :  { %v3895_v62 = vpop.eup %3894  ;;  %3914 = vpow2.f32 %v2564_v8  ;;  %v2268_v31 = vadd.f32 1.0, %v3893_v41 }
 0x4d5   :  { %v3897_v26 = vpop.eup %3896  ;;  %2829 = vst [vmem:[%s5297_s5 + $0xb8] sm:$0xff] %v2765_v6   ;;  %3916 = vpow2.f32 %v2565_v45  ;;  %v2269_v34 = vadd.f32 1.0, %v3895_v62 }
 0x4d6   :  { %v3899_v46 = vpop.eup %3898  ;;  %3918 = vpow2.f32 %v2566_v40  ;;  %v2270_v19 = vadd.f32 1.0, %v3897_v26 }
 0x4d7   :  { %v3901_v49 = vpop.eup %3900  ;;  %3920 = vrcp.f32 %v2266_v57  ;;  %v2271_v14 = vadd.f32 1.0, %v3899_v46 }
 0x4d8   :  { %v3903_v60 = vpop.eup %3902  ;;  %3922 = vrcp.f32 %v2267_v17  ;;  %v2272_v35 = vadd.f32 1.0, %v3901_v49 }
 0x4d9   :  { %v3905_v3 = vpop.eup %3904  ;;  %3924 = vrcp.f32 %v2268_v31  ;;  %v2273_v11 = vadd.f32 1.0, %v3903_v60 }
 0x4da   :  { %v3907_v51 = vpop.eup %3906  ;;  %3926 = vrcp.f32 %v2269_v34  ;;  %v2274_v61 = vadd.f32 1.0, %v3905_v3 }
 0x4db   :  { %v3909_v39 = vpop.eup %3908  ;;  %3928 = vrcp.f32 %v2270_v19  ;;  %v2275_v20 = vadd.f32 1.0, %v3907_v51 }
 0x4dc   :  { %v3911_v30 = vpop.eup %3910  ;;  %3930 = vrcp.f32 %v2271_v14  ;;  %v2276_v7 = vadd.f32 1.0, %v3909_v39 }
 0x4dd   :  { %v3913_v42 = vpop.eup %3912  ;;  %3932 = vrcp.f32 %v2272_v35  ;;  %v2277_v24 = vadd.f32 1.0, %v3911_v30 }
 0x4de   :  { %v3915_v25 = vpop.eup %3914  ;;  %3934 = vrcp.f32 %v2273_v11  ;;  %v2278_v1 = vadd.f32 1.0, %v3913_v42 }
 0x4df   :  { %v3917_v2 = vpop.eup %3916  ;;  %3936 = vrcp.f32 %v2274_v61  ;;  %v2279_v33 = vadd.f32 1.0, %v3915_v25 }
 0x4e0   :  { %v3919_v56 = vpop.eup %3918  ;;  %3938 = vrcp.f32 %v2275_v20  ;;  %v2280_v38 = vadd.f32 1.0, %v3917_v2 }
 0x4e1   :  { %v3921_v18 = vpop.eup %3920  ;;  %3940 = vrcp.f32 %v2276_v7  ;;  %v2281_v21 = vadd.f32 1.0, %v3919_v56 }
 0x4e2   :  { %v3923_v47 = vpop.eup %3922  ;;  %3942 = vrcp.f32 %v2277_v24  ;;  %v2314_v13 = vmul.f32 %v3921_v18, %v5146_v44 }
 0x4e3   :  { %v3925_v55 = vpop.eup %3924  ;;  %3944 = vrcp.f32 %v2278_v1  ;;  %v2315_v22 = vmul.f32 %v3923_v47, %v5149_v58 }
 0x4e4   :  { %v3927_v23 = vpop.eup %3926  ;;  %3946 = vrcp.f32 %v2279_v33  ;;  %v2316_v10 = vmul.f32 %v3925_v55, %v5152_v0 }
 0x4e5   :  { %v3929_v12 = vpop.eup %3928  ;;  %3948 = vrcp.f32 %v2280_v38  ;;  %v2317_v32 = vmul.f32 %v3927_v23, %v5155_v53  ;;  %v2770_v15 = vpack.c.bf16 %v2315_v22, %v2314_v13 }
 0x4e6   :  { %v3931_v8 = vpop.eup %3930  ;;  %3950 = vrcp.f32 %v2281_v21  ;;  %v2318_v28 = vmul.f32 %v3929_v12, %v5158_v5 }
 0x4e7   :  { %v3933_v9 = vpop.eup %3932  ;;  %v2319_v44 = vmul.f32 %v3931_v8, %v5161_v29  ;;  %2830 = vst [vmem:[%s5297_s5 + $0xc0] sm:$0xff] %v2770_v15   ;;  %v2775_v58 = vpack.c.bf16 %v2317_v32, %v2316_v10 }
 0x4e8   :  { %v3935_v36 = vpop.eup %3934  ;;  %v2320_v0 = vmul.f32 %v3933_v9, %v5164_v52 }
 0x4e9   :  { %v3937_v45 = vpop.eup %3936  ;;  %v2321_v59 = vmul.f32 %v3935_v36, %v5167_v27  ;;  %2831 = vst [vmem:[%s5297_s5 + $0xc8] sm:$0xff] %v2775_v58   ;;  %v2780_v53 = vpack.c.bf16 %v2319_v44, %v2318_v28 }
 0x4ea   :  { %v3939_v5 = vpop.eup %3938  ;;  %v2322_v40 = vmul.f32 %v3937_v45, %v5171_v43 }
 0x4eb   :  { %v3941_v29 = vpop.eup %3940  ;;  %v2323_v41 = vmul.f32 %v3939_v5, %v5175_v50  ;;  %2832 = vst [vmem:[%s5297_s5 + $0xd0] sm:$0xff] %v2780_v53   ;;  %v2785_v6 = vpack.c.bf16 %v2321_v59, %v2320_v0 }
 0x4ec   :  { %v3943_v52 = vpop.eup %3942  ;;  %v2324_v57 = vmul.f32 %v3941_v29, %v5180_v48 }
 0x4ed   :  { %v3945_v27 = vpop.eup %3944  ;;  %v2325_v62 = vmul.f32 %v3943_v52, %v5187_v54  ;;  %2833 = vst [vmem:[%s5297_s5 + $0xd8] sm:$0xff] %v2785_v6   ;;  %v2790_v17 = vpack.c.bf16 %v2323_v41, %v2322_v40 }
 0x4ee   :  { %v3947_v43 = vpop.eup %3946  ;;  %v2326_v26 = vmul.f32 %v3945_v27, %v5197_v16 }
 0x4ef   :  { %v3949_v50 = vpop.eup %3948  ;;  %v2327_v31 = vmul.f32 %v3947_v43, %v5208_v37  ;;  %2834 = vst [vmem:[%s5297_s5 + $0xe0] sm:$0xff] %v2790_v17   ;;  %v2795_v46 = vpack.c.bf16 %v2325_v62, %v2324_v57 }
 0x4f0   :  { %v3951_v48 = vpop.eup %3950  ;;  %v2328_v34 = vmul.f32 %v3949_v50, %v5219_v63 }
 0x4f1   :  { %v2329_v54 = vmul.f32 %v3951_v48, %v5230_v4  ;;  %2835 = vst [vmem:[%s5297_s5 + $0xe8] sm:$0xff] %v2795_v46   ;;  %v2800_v49 = vpack.c.bf16 %v2327_v31, %v2326_v26 }
 0x4f3   :  { %2836 = vst [vmem:[%s5297_s5 + $0xf0] sm:$0xff] %v2800_v49   ;;  %v2805_v16 = vpack.c.bf16 %v2329_v54, %v2328_v34 }
 0x4f5   :  { %2837 = vst [vmem:[%s5297_s5 + $0xf8] sm:$0xff] %v2805_v16  }

// kernel: vqvae_forward.8
= control target key start
LH: loop header
LB: loop body
LE: loop exit
PB: predicated region body
PF: predicated region fallthrough
CT: control target
= control target key end

     0   :  { %v1089_v16 = vmov 0.0|0.0   ;;  %vm1090_vm0 = vmmov 0   ;;  %v1091_v17 = vmov 0.0   ;;  %s1386_s1 = inlined_call_operand.vmem [shape: bf16[1,128,128], index: 1, kind: input, shape index: {}]   ;;  %s1387_s0 = inlined_call_operand.vmem [shape: bf16[1,128,128], index: 0, kind: input, shape index: {}]   ;;  %s1388_s2 = inlined_call_operand.vmem [shape: f32[1,128], index: 2, kind: input, shape index: {}]   ;;  %s1389_s3 = inlined_call_operand.vmem [shape: f32[1,128], index: 3, kind: input, shape index: {}]   ;;  %s1390_s4 = inlined_call_operand.vmem [shape: f32[1,128], index: 4, kind: input, shape index: {}]   ;;  %s1391_s5 = inlined_call_operand.vmem [shape: bf16[1,128,128], index: 5, kind: output, shape index: {}]  }
   0x1   :  { %v1007_v0 = vld [vmem:[%s1386_s1] sm:$0xff]   ;;  %v1008_v1 = vld [vmem:[%s1386_s1 + $0x8] sm:$0xff]   ;;  %v1009_v2 = vld [vmem:[%s1386_s1 + $0x10] sm:$0xff]   ;;  %955 = vmatprep.subr.bf16.mxu1 %v1089_v16  ;;  %917 = vmatprep.mubr.msk.f32.mxu1 %vm1090_vm0, %v1091_v17 }
   0x2   :  { %853 = vmatprep.subr.bf16.mxu0 %v1007_v0  ;;  %v1010_v3 = vld [vmem:[%s1386_s1 + $0x18] sm:$0xff]   ;;  %v1015_v4 = vld [vmem:[%s1387_s0] sm:$0xff]   ;;  %v1012_v6 = vld [vmem:[%s1386_s1 + $0x28] sm:$0xff]  }
   0x3   :  { %854 = vmatpush3.bf16.msra.mxu0 %v1007_v0  ;;  %869 = vmatprep.mubr.bf16.mxu0 %v1015_v4  ;;  %v1011_v5 = vld [vmem:[%s1386_s1 + $0x20] sm:$0xff]   ;;  %v1013_v7 = vld [vmem:[%s1386_s1 + $0x30] sm:$0xff]   ;;  %v1014_v8 = vld [vmem:[%s1386_s1 + $0x38] sm:$0xff]  }
   0x4   :  { %855 = vmatprep.subr.bf16.mxu0 %v1008_v1  ;;  %v1016_v9 = vld [vmem:[%s1387_s0 + $0x8] sm:$0xff]   ;;  %v1017_v10 = vld [vmem:[%s1387_s0 + $0x10] sm:$0xff]   ;;  %v1018_v11 = vld [vmem:[%s1387_s0 + $0x18] sm:$0xff]  }
   0x5   :  { %v1019_v12 = vld [vmem:[%s1387_s0 + $0x20] sm:$0xff]   ;;  %v1020_v13 = vld [vmem:[%s1387_s0 + $0x28] sm:$0xff]   ;;  %v1021_v14 = vld [vmem:[%s1387_s0 + $0x30] sm:$0xff]  }
   0x6   :  { %v1022_v15 = vld [vmem:[%s1387_s0 + $0x38] sm:$0xff]   ;;  %v1176_v18 = vld [vmem:[%s1388_s2] ss:$0 sm:$0xff] }
   0x7   :  { %856 = vmatpush3.bf16.msra.mxu0 %v1008_v1 }
   0x8   :  { %857 = vmatprep.subr.bf16.mxu0 %v1009_v2 }
   0xb   :  { %858 = vmatpush3.bf16.msra.mxu0 %v1009_v2 }
   0xc   :  { %859 = vmatprep.subr.bf16.mxu0 %v1010_v3 }
   0xf   :  { %860 = vmatpush3.bf16.msra.mxu0 %v1010_v3 }
  0x10   :  { %861 = vmatprep.subr.bf16.mxu0 %v1011_v5 }
  0x13   :  { %862 = vmatpush3.bf16.msra.mxu0 %v1011_v5 }
  0x14   :  { %863 = vmatprep.subr.bf16.mxu0 %v1012_v6 }
  0x17   :  { %864 = vmatpush3.bf16.msra.mxu0 %v1012_v6 }
  0x18   :  { %865 = vmatprep.subr.bf16.mxu0 %v1013_v7 }
  0x1b   :  { %866 = vmatpush3.bf16.msra.mxu0 %v1013_v7 }
  0x1c   :  { %867 = vmatprep.subr.bf16.mxu0 %v1014_v8 }
  0x1f   :  { %868 = vmatpush3.bf16.msra.mxu0 %v1014_v8 }
  0x20   :  { %979 = vmatprep.subr.bf16.mxu0 %v1089_v16 }
  0x22   :  { %870 = vmatmul.mubr.bf16.vlgmr.msra.gmra.mrb[0].mxu0 %v1016_v9 }
  0x23   :  { %873 = vmatprep.mubr.bf16.mxu0 %v1017_v10 }
  0x2a   :  { %874 = vmatmul.mubr.bf16.gmra.mrb[4].mxu0 %v1018_v11 }
  0x2b   :  { %877 = vmatprep.mubr.bf16.mxu0 %v1019_v12 }
  0x32   :  { %878 = vmatmul.mubr.bf16.gmra.mrb[8].mxu0 %v1020_v13 }
  0x33   :  { %881 = vmatprep.mubr.bf16.mxu0 %v1021_v14 }
  0x3a   :  { %882 = vmatmul.mubr.bf16.gmra.mrb[12].mxu0 %v1022_v15 }
  0x3b   :  { %952 = vmatprep.mubr.msk.f32.mxu0 %vm1090_vm0, %v1091_v17 }
  0xf5   :  { %v871_v19 = vpop.f32.mrb[0].mxu0 }
  0xf6   :  { %v190_v20 = vpop.f32.mrb[1].mxu0  ;;  %v1188_v26 = vadd.f32 %v871_v19, %v1176_v18 }
  0xf7   :  { %v1179_v21 = vadd.f32 %v1176_v18, %v190_v20  ;;  %v872_v22 = vpop.f32.mrb[2].mxu0  ;;  %v1092_v20 = vmov 1.0  }
  0xf8   :  { %v193_v23 = vpop.f32.mrb[3].mxu0  ;;  %v1182_v24 = vadd.f32 %v872_v22, %v1176_v18  ;;  %v341_v34 = vmul.f32 %v1188_v26, %v1188_v26 }
  0xf9   :  { %v1185_v25 = vadd.f32 %v1176_v18, %v193_v23  ;;  %v339_v27 = vmul.f32 %v1179_v21, %v1179_v21 }
  0xfa   :  { %v342_v30 = vmul.f32 %v1182_v24, %v1182_v24  ;;  %v959_v37 = vpack.c.bf16 %v1182_v24, %v1188_v26 }
  0xfb   :  { %v340_v28 = vmul.f32 %v1185_v25, %v1185_v25  ;;  %v956_v29 = vpack.c.bf16 %v1185_v25, %v1179_v21 }
  0xfc   :  { %v983_v39 = vpack.c.bf16 %v342_v30, %v341_v34 }
  0xfd   :  { %v980_v31 = vpack.c.bf16 %v340_v28, %v339_v27  ;;  %v875_v32 = vpop.f32.mrb[4].mxu0  ;;  %957 = vmatpush3.bf16.msra.mxu1 %v956_v29 }
  0xfe   :  { %v206_v33 = vpop.f32.mrb[5].mxu0  ;;  %958 = vmatprep.subr.bf16.mxu1 %v1089_v16  ;;  %v1215_v42 = vadd.f32 %v875_v32, %v1176_v18 }
  0xff   :  { %v1202_v35 = vadd.f32 %v1176_v18, %v206_v33  ;;  %v876_v36 = vpop.f32.mrb[6].mxu0  ;;  %981 = vmatpush3.bf16.msra.mxu0 %v980_v31 }
 0x100   :  { %v209_v38 = vpop.f32.mrb[7].mxu0  ;;  %982 = vmatprep.subr.bf16.mxu0 %v1089_v16  ;;  %v1208_v40 = vadd.f32 %v876_v36, %v1176_v18  ;;  %v345_v50 = vmul.f32 %v1215_v42, %v1215_v42  ;;  %v453_v36 = vlaneseq }
 0x101   :  { %v1211_v41 = vadd.f32 %v1176_v18, %v209_v38  ;;  %960 = vmatpush3.bf16.msra.mxu1 %v959_v37  ;;  %v343_v43 = vmul.f32 %v1202_v35, %v1202_v35 }
 0x102   :  { %961 = vmatprep.subr.bf16.mxu1 %v1089_v16  ;;  %v346_v46 = vmul.f32 %v1208_v40, %v1208_v40  ;;  %v965_v53 = vpack.c.bf16 %v1208_v40, %v1215_v42  ;;  %v454_v37 = vshrl.u32 %v453_v36, 7 }
 0x103   :  { %v344_v44 = vmul.f32 %v1211_v41, %v1211_v41  ;;  %984 = vmatpush3.bf16.msra.mxu0 %v983_v39  ;;  %v962_v45 = vpack.c.bf16 %v1211_v41, %v1202_v35 }
 0x104   :  { %985 = vmatprep.subr.bf16.mxu0 %v1089_v16  ;;  %v989_v55 = vpack.c.bf16 %v346_v46, %v345_v50  ;;  %v455_v38 = vsub.s32 0, %v454_v37 }
 0x105   :  { %v986_v47 = vpack.c.bf16 %v344_v44, %v343_v43  ;;  %v879_v48 = vpop.f32.mrb[8].mxu0  ;;  %963 = vmatpush3.bf16.msra.mxu1 %v962_v45  ;;  %v434_v44 = vld [vmem:[%s1390_s4] sm:$0x1] }
 0x106   :  { %v222_v49 = vpop.f32.mrb[9].mxu0  ;;  %964 = vmatprep.subr.bf16.mxu1 %v1089_v16  ;;  %v1243_v58 = vadd.f32 %v879_v48, %v1176_v18 }
 0x107   :  { %v1230_v51 = vadd.f32 %v1176_v18, %v222_v49  ;;  %v880_v52 = vpop.f32.mrb[10].mxu0  ;;  %987 = vmatpush3.bf16.msra.mxu0 %v986_v47 }
 0x108   :  { %v225_v54 = vpop.f32.mrb[11].mxu0  ;;  %988 = vmatprep.subr.bf16.mxu0 %v1089_v16  ;;  %v1236_v56 = vadd.f32 %v880_v52, %v1176_v18  ;;  %v349_v2 = vmul.f32 %v1243_v58, %v1243_v58 }
 0x109   :  { %v1239_v57 = vadd.f32 %v1176_v18, %v225_v54  ;;  %966 = vmatpush3.bf16.msra.mxu1 %v965_v53  ;;  %v347_v59 = vmul.f32 %v1230_v51, %v1230_v51 }
 0x10a   :  { %967 = vmatprep.subr.bf16.mxu1 %v1089_v16  ;;  %v350_v62 = vmul.f32 %v1236_v56, %v1236_v56  ;;  %v971_v5 = vpack.c.bf16 %v1236_v56, %v1243_v58 }
 0x10b   :  { %v348_v60 = vmul.f32 %v1239_v57, %v1239_v57  ;;  %990 = vmatpush3.bf16.msra.mxu0 %v989_v55  ;;  %v968_v61 = vpack.c.bf16 %v1239_v57, %v1230_v51 }
 0x10c   :  { %991 = vmatprep.subr.bf16.mxu0 %v1089_v16  ;;  %v995_v7 = vpack.c.bf16 %v350_v62, %v349_v2 }
 0x10d   :  { %v992_v63 = vpack.c.bf16 %v348_v60, %v347_v59  ;;  %v883_v0 = vpop.f32.mrb[12].mxu0  ;;  %969 = vmatpush3.bf16.msra.mxu1 %v968_v61 }
 0x10e   :  { %v238_v1 = vpop.f32.mrb[13].mxu0  ;;  %970 = vmatprep.subr.bf16.mxu1 %v1089_v16  ;;  %v247_v10 = vadd.f32 %v883_v0, %v1176_v18 }
 0x10f   :  { %v1258_v3 = vadd.f32 %v1176_v18, %v238_v1  ;;  %v884_v4 = vpop.f32.mrb[14].mxu0  ;;  %993 = vmatpush3.bf16.msra.mxu0 %v992_v63 }
 0x110   :  { %v241_v6 = vpop.f32.mrb[15].mxu0  ;;  %994 = vmatprep.subr.bf16.mxu0 %v1089_v16  ;;  %v1264_v8 = vadd.f32 %v884_v4, %v1176_v18  ;;  %v353_v17 = vmul.f32 %v247_v10, %v247_v10 }
 0x111   :  { %v242_v9 = vadd.f32 %v1176_v18, %v241_v6  ;;  %972 = vmatpush3.bf16.msra.mxu1 %v971_v5  ;;  %v351_v11 = vmul.f32 %v1258_v3, %v1258_v3 }
 0x112   :  { %973 = vmatprep.subr.bf16.mxu1 %v1089_v16  ;;  %v354_v14 = vmul.f32 %v1264_v8, %v1264_v8  ;;  %v977_v18 = vpack.c.bf16 %v1264_v8, %v247_v10 }
 0x113   :  { %v352_v12 = vmul.f32 %v242_v9, %v242_v9  ;;  %996 = vmatpush3.bf16.msra.mxu0 %v995_v7  ;;  %v974_v13 = vpack.c.bf16 %v242_v9, %v1258_v3 }
 0x114   :  { %997 = vmatprep.subr.bf16.mxu0 %v1089_v16  ;;  %v1001_v19 = vpack.c.bf16 %v354_v14, %v353_v17 }
 0x115   :  { %v998_v15 = vpack.c.bf16 %v352_v12, %v351_v11  ;;  %975 = vmatpush3.bf16.msra.mxu1 %v974_v13 }
 0x116   :  { %976 = vmatprep.subr.bf16.mxu1 %v1089_v16 }
 0x117   :  { %999 = vmatpush3.bf16.msra.mxu0 %v998_v15 }
 0x118   :  { %1000 = vmatprep.subr.bf16.mxu0 %v1089_v16  ;;  %v432_v16 = vld [vmem:[%s1389_s3] sm:$0x1] }
 0x119   :  { %978 = vmatpush3.bf16.msra.mxu1 %v977_v18 }
 0x11b   :  { %1002 = vmatpush3.bf16.msra.mxu0 %v1001_v19 }
 0x11c   :  { %918 = vmatmul.mubr.f32.vlgmr.msra.gmra.mrb[0].mxu1 %v1092_v20 }
 0x11e   :  { %953 = vmatmul.mubr.f32.vlgmr.msra.gmra.mrb[16].mxu0 %v1092_v20 }
 0x1ef   :  { %v335_v22 = vpop.f32.mrb[0].mxu1 }
 0x1f0   :  { %v425_v23 = vmul.f32 0.0078125, %v335_v22  ;;  %v919_v27 = vpop.f32.mrb[1].mxu1 }
 0x1f1   :  { %v421_v28 = vpop.f32.mrb[16].mxu0 }
 0x1f2   :  { %v427_v29 = vmul.f32 %v425_v23, %v425_v23  ;;  %v426_v30 = vmul.f32 0.0078125, %v421_v28  ;;  %v954_v31 = vpop.f32.mrb[17].mxu0 }
 0x1f4   :  { %v428_v32 = vsub.f32 %v426_v30, %v427_v29 }
 0x1f6   :  { %v429_v33 = vmax.f32 %v428_v32, 0.0 }
 0x1f8   :  { %v430_v34 = vadd.f32 1e-05, %v429_v33 }
 0x1fa   :  { %1023 = vrsqrt.f32 %v430_v34 }
 0x204   :  { %v1024_v39 = vpop.eup %1023 }
 0x205   :  { %v433_v43 = vmul.f32 %v1024_v39, %v432_v16 }
 0x207   :  { %v435_v45 = vmul.f32 %v433_v43, %v425_v23  ;;  %v456_v46 = vrot.slane %v433_v43, %v455_v38 }
 0x209   :  { %v436_v47 = vsub.f32 %v434_v44, %v435_v45  ;;  %v457_v48 = vmul.f32 %v456_v46, %v1179_v21  ;;  %v458_v49 = vmul.f32 %v456_v46, %v1185_v25  ;;  %v459_v50 = vmul.f32 %v456_v46, %v1188_v26 }
 0x20a   :  { %v460_v52 = vmul.f32 %v456_v46, %v1182_v24  ;;  %v461_v53 = vmul.f32 %v456_v46, %v1202_v35  ;;  %v462_v54 = vmul.f32 %v456_v46, %v1211_v41  ;;  %v463_v55 = vmul.f32 %v456_v46, %v1215_v42 }
 0x20b   :  { %v464_v59 = vmul.f32 %v456_v46, %v1208_v40  ;;  %v465_v60 = vmul.f32 %v456_v46, %v1230_v51  ;;  %v466_v61 = vmul.f32 %v456_v46, %v1239_v57  ;;  %v467_v21 = vmul.f32 %v456_v46, %v1243_v58 }
 0x20c   :  { %v468_v25 = vmul.f32 %v456_v46, %v1236_v56  ;;  %v477_v62 = vrot.slane %v436_v47, %v455_v38  ;;  %v469_v26 = vmul.f32 %v456_v46, %v1258_v3  ;;  %v470_v24 = vmul.f32 %v456_v46, %v242_v9 }
 0x20d   :  { %v471_v63 = vmul.f32 %v456_v46, %v247_v10  ;;  %v472_v35 = vmul.f32 %v456_v46, %v1264_v8 }
 0x20e   :  { %v1298_v41 = vadd.f32 %v477_v62, %v457_v48  ;;  %v1300_v42 = vadd.f32 %v477_v62, %v458_v49  ;;  %v1302_v40 = vadd.f32 %v477_v62, %v459_v50  ;;  %v1304_v51 = vadd.f32 %v477_v62, %v460_v52 }
 0x20f   :  { %v1306_v57 = vadd.f32 %v477_v62, %v461_v53  ;;  %v1308_v58 = vadd.f32 %v477_v62, %v462_v54  ;;  %v1310_v56 = vadd.f32 %v477_v62, %v463_v55  ;;  %v1312_v0 = vadd.f32 %v477_v62, %v464_v59 }
 0x210   :  { %v1314_v1 = vadd.f32 %v477_v62, %v465_v60  ;;  %v1316_v2 = vadd.f32 %v477_v62, %v466_v61  ;;  %v1318_v3 = vadd.f32 %v477_v62, %v467_v21  ;;  %v1320_v4 = vadd.f32 %v477_v62, %v468_v25 }
 0x211   :  { %v1322_v5 = vadd.f32 %v477_v62, %v469_v26  ;;  %v1324_v6 = vadd.f32 %v477_v62, %v470_v24  ;;  %v1326_v7 = vadd.f32 %v477_v62, %v471_v63  ;;  %v1328_v8 = vadd.f32 %v477_v62, %v472_v35 }
 0x212   :  { %v708_v9 = vmul.f32 -1.442695, %v1298_v41  ;;  %v709_v10 = vmul.f32 -1.442695, %v1300_v42  ;;  %v710_v11 = vmul.f32 -1.442695, %v1302_v40 }
 0x213   :  { %v711_v12 = vmul.f32 -1.442695, %v1304_v51  ;;  %v712_v13 = vmul.f32 -1.442695, %v1306_v57  ;;  %v713_v14 = vmul.f32 -1.442695, %v1308_v58 }
 0x214   :  { %1025 = vpow2.f32 %v708_v9  ;;  %v714_v15 = vmul.f32 -1.442695, %v1310_v56  ;;  %v715_v17 = vmul.f32 -1.442695, %v1312_v0  ;;  %v716_v18 = vmul.f32 -1.442695, %v1314_v1 }
 0x215   :  { %1027 = vpow2.f32 %v709_v10  ;;  %v717_v19 = vmul.f32 -1.442695, %v1316_v2  ;;  %v718_v20 = vmul.f32 -1.442695, %v1318_v3  ;;  %v719_v22 = vmul.f32 -1.442695, %v1320_v4 }
 0x216   :  { %1029 = vpow2.f32 %v710_v11  ;;  %v720_v23 = vmul.f32 -1.442695, %v1322_v5  ;;  %v721_v27 = vmul.f32 -1.442695, %v1324_v6  ;;  %v722_v29 = vmul.f32 -1.442695, %v1326_v7 }
 0x217   :  { %1031 = vpow2.f32 %v711_v12  ;;  %v723_v31 = vmul.f32 -1.442695, %v1328_v8 }
 0x218   :  { %1033 = vpow2.f32 %v712_v13 }
 0x219   :  { %1035 = vpow2.f32 %v713_v14 }
 0x21a   :  { %1037 = vpow2.f32 %v714_v15 }
 0x21b   :  { %1039 = vpow2.f32 %v715_v17 }
 0x21c   :  { %1041 = vpow2.f32 %v716_v18 }
 0x21d   :  { %1043 = vpow2.f32 %v717_v19 }
 0x21e   :  { %v1026_v28 = vpop.eup %1025  ;;  %1045 = vpow2.f32 %v718_v20 }
 0x21f   :  { %v1028_v30 = vpop.eup %1027  ;;  %1047 = vpow2.f32 %v719_v22  ;;  %v543_v33 = vadd.f32 1.0, %v1026_v28 }
 0x220   :  { %v1030_v32 = vpop.eup %1029  ;;  %1049 = vpow2.f32 %v720_v23  ;;  %v544_v36 = vadd.f32 1.0, %v1028_v30 }
 0x221   :  { %v1032_v34 = vpop.eup %1031  ;;  %1051 = vpow2.f32 %v721_v27  ;;  %v545_v16 = vadd.f32 1.0, %v1030_v32 }
 0x222   :  { %v1034_v37 = vpop.eup %1033  ;;  %1053 = vpow2.f32 %v722_v29  ;;  %v546_v39 = vadd.f32 1.0, %v1032_v34 }
 0x223   :  { %v1036_v38 = vpop.eup %1035  ;;  %1055 = vpow2.f32 %v723_v31  ;;  %v547_v44 = vadd.f32 1.0, %v1034_v37 }
 0x224   :  { %v1038_v43 = vpop.eup %1037  ;;  %1057 = vrcp.f32 %v543_v33  ;;  %v548_v46 = vadd.f32 1.0, %v1036_v38 }
 0x225   :  { %v1040_v45 = vpop.eup %1039  ;;  %1059 = vrcp.f32 %v544_v36  ;;  %v549_v48 = vadd.f32 1.0, %v1038_v43 }
 0x226   :  { %v1042_v47 = vpop.eup %1041  ;;  %1061 = vrcp.f32 %v545_v16  ;;  %v550_v50 = vadd.f32 1.0, %v1040_v45 }
 0x227   :  { %v1044_v49 = vpop.eup %1043  ;;  %1063 = vrcp.f32 %v546_v39  ;;  %v551_v53 = vadd.f32 1.0, %v1042_v47 }
 0x228   :  { %v1046_v52 = vpop.eup %1045  ;;  %1065 = vrcp.f32 %v547_v44  ;;  %v552_v55 = vadd.f32 1.0, %v1044_v49 }
 0x229   :  { %v1048_v54 = vpop.eup %1047  ;;  %1067 = vrcp.f32 %v548_v46  ;;  %v553_v60 = vadd.f32 1.0, %v1046_v52 }
 0x22a   :  { %v1050_v59 = vpop.eup %1049  ;;  %1069 = vrcp.f32 %v549_v48  ;;  %v554_v21 = vadd.f32 1.0, %v1048_v54 }
 0x22b   :  { %v1052_v61 = vpop.eup %1051  ;;  %1071 = vrcp.f32 %v550_v50  ;;  %v555_v62 = vadd.f32 1.0, %v1050_v59 }
 0x22c   :  { %v1054_v25 = vpop.eup %1053  ;;  %1073 = vrcp.f32 %v551_v53  ;;  %v556_v24 = vadd.f32 1.0, %v1052_v61 }
 0x22d   :  { %v1056_v26 = vpop.eup %1055  ;;  %1075 = vrcp.f32 %v552_v55  ;;  %v557_v35 = vadd.f32 1.0, %v1054_v25 }
 0x22e   :  { %v1058_v63 = vpop.eup %1057  ;;  %1077 = vrcp.f32 %v553_v60  ;;  %v558_v10 = vadd.f32 1.0, %v1056_v26 }
 0x22f   :  { %v1060_v9 = vpop.eup %1059  ;;  %1079 = vrcp.f32 %v554_v21  ;;  %v591_v11 = vmul.f32 %v1058_v63, %v1298_v41 }
 0x230   :  { %v1062_v12 = vpop.eup %1061  ;;  %1081 = vrcp.f32 %v555_v62  ;;  %v592_v13 = vmul.f32 %v1060_v9, %v1300_v42 }
 0x231   :  { %v1064_v14 = vpop.eup %1063  ;;  %1083 = vrcp.f32 %v556_v24  ;;  %v593_v15 = vmul.f32 %v1062_v12, %v1302_v40 }
 0x232   :  { %v1066_v17 = vpop.eup %1065  ;;  %1085 = vrcp.f32 %v557_v35  ;;  %v594_v18 = vmul.f32 %v1064_v14, %v1304_v51  ;;  %v759_v19 = vpack.c.bf16 %v592_v13, %v591_v11 }
 0x233   :  { %v1068_v20 = vpop.eup %1067  ;;  %1087 = vrcp.f32 %v558_v10  ;;  %v595_v22 = vmul.f32 %v1066_v17, %v1306_v57 }
 0x234   :  { %v1070_v23 = vpop.eup %1069  ;;  %v596_v41 = vmul.f32 %v1068_v20, %v1308_v58  ;;  %760 = vst [vmem:[%s1391_s5] sm:$0xff] %v759_v19   ;;  %v764_v42 = vpack.c.bf16 %v594_v18, %v593_v15 }
 0x235   :  { %v1072_v27 = vpop.eup %1071  ;;  %v597_v40 = vmul.f32 %v1070_v23, %v1310_v56 }
 0x236   :  { %v1074_v28 = vpop.eup %1073  ;;  %v598_v29 = vmul.f32 %v1072_v27, %v1312_v0  ;;  %796 = vst [vmem:[%s1391_s5 + $0x8] sm:$0xff] %v764_v42   ;;  %v769_v51 = vpack.c.bf16 %v596_v41, %v595_v22 }
 0x237   :  { %v1076_v57 = vpop.eup %1075  ;;  %v599_v30 = vmul.f32 %v1074_v28, %v1314_v1 }
 0x238   :  { %v1078_v58 = vpop.eup %1077  ;;  %v600_v31 = vmul.f32 %v1076_v57, %v1316_v2  ;;  %797 = vst [vmem:[%s1391_s5 + $0x10] sm:$0xff] %v769_v51   ;;  %v774_v32 = vpack.c.bf16 %v598_v29, %v597_v40 }
 0x239   :  { %v1080_v56 = vpop.eup %1079  ;;  %v601_v33 = vmul.f32 %v1078_v58, %v1318_v3 }
 0x23a   :  { %v1082_v0 = vpop.eup %1081  ;;  %v602_v34 = vmul.f32 %v1080_v56, %v1320_v4  ;;  %798 = vst [vmem:[%s1391_s5 + $0x18] sm:$0xff] %v774_v32   ;;  %v779_v36 = vpack.c.bf16 %v600_v31, %v599_v30 }
 0x23b   :  { %v1084_v1 = vpop.eup %1083  ;;  %v603_v37 = vmul.f32 %v1082_v0, %v1322_v5 }
 0x23c   :  { %v1086_v2 = vpop.eup %1085  ;;  %v604_v16 = vmul.f32 %v1084_v1, %v1324_v6  ;;  %799 = vst [vmem:[%s1391_s5 + $0x20] sm:$0xff] %v779_v36   ;;  %v784_v38 = vpack.c.bf16 %v602_v34, %v601_v33 }
 0x23d   :  { %v1088_v3 = vpop.eup %1087  ;;  %v605_v39 = vmul.f32 %v1086_v2, %v1326_v7 }
 0x23e   :  { %v606_v4 = vmul.f32 %v1088_v3, %v1328_v8  ;;  %800 = vst [vmem:[%s1391_s5 + $0x28] sm:$0xff] %v784_v38   ;;  %v789_v43 = vpack.c.bf16 %v604_v16, %v603_v37 }
 0x240   :  { %801 = vst [vmem:[%s1391_s5 + $0x30] sm:$0xff] %v789_v43   ;;  %v794_v5 = vpack.c.bf16 %v606_v4, %v605_v39 }
 0x242   :  { %802 = vst [vmem:[%s1391_s5 + $0x38] sm:$0xff] %v794_v5  }

// kernel: vqvae_forward.9
= control target key start
LH: loop header
LB: loop body
LE: loop exit
PB: predicated region body
PF: predicated region fallthrough
CT: control target
= control target key end

     0   :  { %v629_v20 = vmov 0.0|0.0   ;;  %vm630_vm0 = vmmov 0   ;;  %v631_v21 = vmov 0.0   ;;  %vm233_vm1 = vcmask 261120   ;;  %s740_s1 = inlined_call_operand.vmem [shape: bf16[1,256,128], index: 1, kind: input, shape index: {}]   ;;  %s741_s0 = inlined_call_operand.vmem [shape: bf16[1,32,256], index: 0, kind: input, shape index: {}]   ;;  %s742_s2 = inlined_call_operand.vmem [shape: f32[1,128], index: 2, kind: input, shape index: {}]   ;;  %s743_s3 = inlined_call_operand.vmem [shape: f32[1,128], index: 3, kind: input, shape index: {}]   ;;  %s744_s4 = inlined_call_operand.vmem [shape: f32[1,128], index: 4, kind: input, shape index: {}]   ;;  %s745_s5 = inlined_call_operand.vmem [shape: bf16[1,32,128], index: 5, kind: output, shape index: {}]  }
   0x1   :  { %v589_v0 = vld [vmem:[%s740_s1 + $0x40] sm:$0xff]   ;;  %v591_v2 = vld [vmem:[%s740_s1 + $0x48] sm:$0xff]   ;;  %v593_v4 = vld [vmem:[%s740_s1 + $0x50] sm:$0xff]   ;;  %573 = vmatprep.subr.bf16.mxu1 %v629_v20  ;;  %559 = vmatprep.mubr.msk.f32.mxu1 %vm630_vm0, %v631_v21  ;;  %v632_v45 = vmov 1.0   ;;  %v397_v58 = vlaneseq }
   0x2   :  { %v590_v1 = vld [vmem:[%s740_s1] sm:$0xff]   ;;  %513 = vmatprep.subr.bf16.mxu0 %v589_v0  ;;  %v592_v3 = vld [vmem:[%s740_s1 + $0x8] sm:$0xff]   ;;  %v594_v5 = vld [vmem:[%s740_s1 + $0x10] sm:$0xff]  }
   0x3   :  { %514 = vmatpush3.bf16.msra.mxu0 %v590_v1  ;;  %v595_v6 = vld [vmem:[%s740_s1 + $0x58] sm:$0xff]   ;;  %v597_v8 = vld [vmem:[%s740_s1 + $0x60] sm:$0xff]   ;;  %v599_v10 = vld [vmem:[%s740_s1 + $0x68] sm:$0xff]   ;;  %v398_v59 = vshrl.u32 %v397_v58, 7 }
   0x4   :  { %515 = vmatprep.subr.bf16.mxu0 %v591_v2  ;;  %v596_v7 = vld [vmem:[%s740_s1 + $0x18] sm:$0xff]   ;;  %v598_v9 = vld [vmem:[%s740_s1 + $0x20] sm:$0xff]   ;;  %v600_v12 = vld [vmem:[%s740_s1 + $0x28] sm:$0xff]  }
   0x5   :  { %v607_v11 = vld [vmem:[%s741_s0 + $0x4] ss:$8 sps:$4 sm:$0xff]   ;;  %v601_v13 = vld [vmem:[%s740_s1 + $0x70] sm:$0xff]   ;;  %v603_v15 = vld [vmem:[%s740_s1 + $0x78] sm:$0xff]   ;;  %v399_v61 = vsub.s32 0, %v398_v59 }
   0x6   :  { %212 = vmatprep.mubr.bf16.mxu0 %v607_v11  ;;  %v602_v14 = vld [vmem:[%s740_s1 + $0x30] sm:$0xff]   ;;  %v604_v16 = vld [vmem:[%s740_s1 + $0x38] sm:$0xff]   ;;  %v605_v17 = vld [vmem:[%s741_s0] ss:$8 sps:$4 sm:$0xff]  }
   0x7   :  { %516 = vmatpush3.bf16.msra.mxu0 %v592_v3  ;;  %v608_v18 = vld [vmem:[%s741_s0 + $0x14] ss:$8 sps:$4 sm:$0xff]   ;;  %v610_v19 = vld [vmem:[%s741_s0 + $0x10] ss:$8 sps:$4 sm:$0xff]   ;;  %v467_v26 = vld [vmem:[%s742_s2] ss:$0 sm:$0xff] }
   0x8   :  { %517 = vmatprep.subr.bf16.mxu0 %v593_v4  ;;  %v388_v60 = vld [vmem:[%s743_s3] sm:$0x1] }
   0x9   :  { %v390_v0 = vld [vmem:[%s744_s4] sm:$0x1] }
   0xb   :  { %518 = vmatpush3.bf16.msra.mxu0 %v594_v5 }
   0xc   :  { %519 = vmatprep.subr.bf16.mxu0 %v595_v6 }
   0xf   :  { %520 = vmatpush3.bf16.msra.mxu0 %v596_v7 }
  0x10   :  { %521 = vmatprep.subr.bf16.mxu0 %v597_v8 }
  0x13   :  { %522 = vmatpush3.bf16.msra.mxu0 %v598_v9 }
  0x14   :  { %523 = vmatprep.subr.bf16.mxu0 %v599_v10 }
  0x17   :  { %524 = vmatpush3.bf16.msra.mxu0 %v600_v12 }
  0x18   :  { %525 = vmatprep.subr.bf16.mxu0 %v601_v13 }
  0x1b   :  { %526 = vmatpush3.bf16.msra.mxu0 %v602_v14 }
  0x1c   :  { %527 = vmatprep.subr.bf16.mxu0 %v603_v15 }
  0x1f   :  { %528 = vmatpush3.bf16.msra.mxu0 %v604_v16 }
  0x22   :  { %213 = vmatmul.mubr.bf16.vlgmr.msra.gmra.mrb[0].mxu0 %v605_v17 }
  0x23   :  { %220 = vmatprep.mubr.bf16.mxu0 %v608_v18 }
  0x2a   :  { %221 = vmatmul.mubr.bf16.gmra.mrb[4].mxu0 %v610_v19 }
  0xf5   :  { %v529_v22 = vpop.f32.mrb[0].mxu0 }
  0xf6   :  { %v530_v23 = vpop.f32.mrb[1].mxu0 }
  0xf7   :  { %v531_v24 = vadd.f32 %v530_v23, %v529_v22  ;;  %v532_v25 = vpop.f32.mrb[2].mxu0 }
  0xf8   :  { %v533_v27 = vpop.f32.mrb[3].mxu0 }
  0xf9   :  { %v534_v28 = vadd.f32 %v533_v27, %v532_v25  ;;  %v215_v29 = vadd.f32 %v531_v24, %v467_v26 }
  0xfb   :  { %v218_v30 = vadd.f32 %v534_v28, %v467_v26  ;;  %v307_v42 = vmul.f32 %v215_v29, %v215_v29 }
  0xfd   :  { %v535_v31 = vpop.f32.mrb[4].mxu0  ;;  %v574_v32 = vpack.c.bf16 %v218_v30, %v215_v29  ;;  %v308_v40 = vmul.f32 %v218_v30, %v218_v30 }
  0xfe   :  { %v536_v33 = vpop.f32.mrb[5].mxu0 }
  0xff   :  { %v537_v34 = vadd.f32 %v536_v33, %v535_v31  ;;  %v538_v35 = vpop.f32.mrb[6].mxu0  ;;  %575 = vmatpush3.bf16.msra.mxu1 %v574_v32  ;;  %v580_v44 = vpack.c.bf16 %v308_v40, %v307_v42 }
 0x100   :  { %v539_v36 = vpop.f32.mrb[7].mxu0  ;;  %576 = vmatprep.subr.bf16.mxu1 %v629_v20 }
 0x101   :  { %v540_v37 = vadd.f32 %v539_v36, %v538_v35  ;;  %v223_v38 = vadd.f32 %v537_v34, %v467_v26 }
 0x103   :  { %v226_v39 = vadd.f32 %v540_v37, %v467_v26  ;;  %v309_v46 = vmul.f32 %v223_v38, %v223_v38 }
 0x105   :  { %v577_v41 = vpack.c.bf16 %v226_v39, %v223_v38  ;;  %v310_v43 = vmul.f32 %v226_v39, %v226_v39 }
 0x107   :  { %578 = vmatpush3.bf16.msra.mxu1 %v577_v41  ;;  %v583_v47 = vpack.c.bf16 %v310_v43, %v309_v46 }
 0x108   :  { %579 = vmatprep.subr.bf16.mxu1 %v629_v20 }
 0x10a   :  { %560 = vmatmul.mubr.msk.f32.vlgmr.msra.gmra.mrb[0].mxu1 %vm233_vm1, %v632_v45 }
 0x10b   :  { %581 = vmatpush3.bf16.msra.mxu1 %v580_v44  ;;  %570 = vmatprep.mubr.msk.f32.mxu1 %vm630_vm0, %v631_v21 }
 0x10c   :  { %582 = vmatprep.subr.bf16.mxu1 %v629_v20 }
 0x10f   :  { %584 = vmatpush3.bf16.msra.mxu1 %v583_v47 }
 0x112   :  { %571 = vmatmul.mubr.msk.f32.vlgmr.msra.gmra.mrb[2].mxu1 %vm233_vm1, %v632_v45 }
 0x1dd   :  { %v303_v48 = vpop.f32.mrb[0].mxu1 }
 0x1de   :  { %v561_v49 = vpop.f32.mrb[1].mxu1  ;;  %v381_v50 = vmul.f32 0.03125, %v303_v48 }
 0x1e0   :  { %v383_v52 = vmul.f32 %v381_v50, %v381_v50 }
 0x1e5   :  { %v377_v51 = vpop.f32.mrb[2].mxu1 }
 0x1e6   :  { %v382_v53 = vmul.f32 0.03125, %v377_v51  ;;  %v572_v54 = vpop.f32.mrb[3].mxu1 }
 0x1e8   :  { %v384_v55 = vsub.f32 %v382_v53, %v383_v52 }
 0x1ea   :  { %v385_v56 = vmax.f32 %v384_v55, 0.0 }
 0x1ec   :  { %v386_v57 = vadd.f32 1e-05, %v385_v56 }
 0x1ee   :  { %611 = vrsqrt.f32 %v386_v57 }
 0x1f8   :  { %v612_v62 = vpop.eup %611 }
 0x1f9   :  { %v389_v63 = vmul.f32 %v612_v62, %v388_v60 }
 0x1fb   :  { %v391_v1 = vmul.f32 %v389_v63, %v381_v50  ;;  %v400_v2 = vrot.slane %v389_v63, %v399_v61 }
 0x1fd   :  { %v392_v3 = vsub.f32 %v390_v0, %v391_v1  ;;  %v401_v4 = vmul.f32 %v400_v2, %v215_v29  ;;  %v402_v5 = vmul.f32 %v400_v2, %v218_v30  ;;  %v403_v6 = vmul.f32 %v400_v2, %v223_v38 }
 0x1fe   :  { %v404_v7 = vmul.f32 %v400_v2, %v226_v39 }
 0x1ff   :  { %v409_v8 = vrot.slane %v392_v3, %v399_v61 }
 0x201   :  { %v411_v9 = vadd.f32 %v409_v8, %v401_v4  ;;  %v412_v10 = vadd.f32 %v409_v8, %v402_v5  ;;  %v413_v11 = vadd.f32 %v409_v8, %v403_v6  ;;  %v414_v12 = vadd.f32 %v409_v8, %v404_v7 }
 0x203   :  { %v490_v13 = vmul.f32 -1.442695, %v411_v9  ;;  %v491_v14 = vmul.f32 -1.442695, %v412_v10  ;;  %v492_v15 = vmul.f32 -1.442695, %v413_v11 }
 0x204   :  { %v493_v16 = vmul.f32 -1.442695, %v414_v12 }
 0x205   :  { %613 = vpow2.f32 %v490_v13 }
 0x206   :  { %615 = vpow2.f32 %v491_v14 }
 0x207   :  { %617 = vpow2.f32 %v492_v15 }
 0x208   :  { %619 = vpow2.f32 %v493_v16 }
 0x20f   :  { %v614_v17 = vpop.eup %613 }
 0x210   :  { %v616_v18 = vpop.eup %615  ;;  %v427_v19 = vadd.f32 1.0, %v614_v17 }
 0x211   :  { %v618_v20 = vpop.eup %617  ;;  %v428_v21 = vadd.f32 1.0, %v616_v18 }
 0x212   :  { %v620_v22 = vpop.eup %619  ;;  %v429_v23 = vadd.f32 1.0, %v618_v20  ;;  %621 = vrcp.f32 %v427_v19 }
 0x213   :  { %v430_v24 = vadd.f32 1.0, %v620_v22  ;;  %623 = vrcp.f32 %v428_v21 }
 0x214   :  { %625 = vrcp.f32 %v429_v23 }
 0x215   :  { %627 = vrcp.f32 %v430_v24 }
 0x21c   :  { %v622_v25 = vpop.eup %621 }
 0x21d   :  { %v624_v26 = vpop.eup %623  ;;  %v439_v27 = vmul.f32 %v622_v25, %v411_v9 }
 0x21e   :  { %v626_v28 = vpop.eup %625  ;;  %v440_v29 = vmul.f32 %v624_v26, %v412_v10 }
 0x21f   :  { %v628_v30 = vpop.eup %627  ;;  %v441_v31 = vmul.f32 %v626_v28, %v413_v11 }
 0x220   :  { %v442_v32 = vmul.f32 %v628_v30, %v414_v12  ;;  %v505_v33 = vpack.c.bf16 %v440_v29, %v439_v27 }
 0x222   :  { %506 = vst [vmem:[%s745_s5] sm:$0xff] %v505_v33   ;;  %v510_v34 = vpack.c.bf16 %v442_v32, %v441_v31 }
 0x224   :  { %512 = vst [vmem:[%s745_s5 + $0x8] sm:$0xff] %v510_v34  }

// kernel: vqvae_forward.10
= control target key start
LH: loop header
LB: loop body
LE: loop exit
PB: predicated region body
PF: predicated region fallthrough
CT: control target
= control target key end

     0   :  { %s1279_s0 = inlined_call_operand.vmem [shape: bf16[32,128], index: 0, kind: input, shape index: {}]   ;;  %s1280_s1 = inlined_call_operand.vmem [shape: bf16[128,128], index: 1, kind: input, shape index: {}]   ;;  %s1281_s2 = inlined_call_operand.vmem [shape: f32[1,128], index: 2, kind: input, shape index: {}]   ;;  %s1282_s3 = inlined_call_operand.vmem [shape: f32[128,128], index: 3, kind: input, shape index: {}]   ;;  %s1283_s4 = inlined_call_operand.vmem [shape: f32[128,128], index: 4, kind: input, shape index: {}]   ;;  %s1284_s5 = inlined_call_operand.vmem [shape: f32[1,128], index: 5, kind: input, shape index: {}]   ;;  %s1285_s6 = inlined_call_operand.vmem [shape: bf16[128,128], index: 6, kind: input, shape index: {}]   ;;  %s1286_s7 = inlined_call_operand.vmem [shape: f32[1,128], index: 7, kind: input, shape index: {}]   ;;  %s1287_s8 = inlined_call_operand.vmem [shape: bf16[32,128], index: 8, kind: output, shape index: {0}]   ;;  %s1288_s9 = inlined_call_operand.hbm [shape: f32[1,1], index: 9, kind: output, shape index: {1}]  }
   0x1   :  { %v972_v0 = vld [vmem:[%s1280_s1] sm:$0xff]   ;;  %v973_v1 = vld [vmem:[%s1280_s1 + $0x8] sm:$0xff]   ;;  %v974_v2 = vld [vmem:[%s1280_s1 + $0x10] sm:$0xff]  }
   0x2   :  { %789 = vmatprep.subr.bf16.mxu0 %v972_v0  ;;  %v975_v3 = vld [vmem:[%s1280_s1 + $0x18] sm:$0xff]   ;;  %v980_v4 = vld [vmem:[%s1279_s0] sm:$0xff]   ;;  %v182_v6 = vld [vmem:[%s1282_s3 + $0x8] sm:$0xff] }
   0x3   :  { %790 = vmatpush3.bf16.msra.mxu0 %v972_v0  ;;  %805 = vmatprep.mubr.bf16.mxu0 %v980_v4  ;;  %v181_v5 = vld [vmem:[%s1282_s3] sm:$0xff]  ;;  %v183_v7 = vld [vmem:[%s1282_s3 + $0x10] sm:$0xff]  ;;  %v184_v9 = vld [vmem:[%s1282_s3 + $0x18] sm:$0xff] }
   0x4   :  { %791 = vmatprep.subr.bf16.mxu0 %v973_v1  ;;  %v905_v8 = vpack.c.bf16 %v182_v6, %v181_v5  ;;  %v976_v10 = vld [vmem:[%s1280_s1 + $0x20] sm:$0xff]   ;;  %v909_v11 = vpack.c.bf16 %v184_v9, %v183_v7  ;;  %v186_v13 = vld [vmem:[%s1282_s3 + $0x28] sm:$0xff]  ;;  %v187_v15 = vld [vmem:[%s1282_s3 + $0x30] sm:$0xff] }
   0x5   :  { %v185_v12 = vld [vmem:[%s1282_s3 + $0x20] sm:$0xff]  ;;  %v977_v14 = vld [vmem:[%s1280_s1 + $0x28] sm:$0xff]   ;;  %v188_v16 = vld [vmem:[%s1282_s3 + $0x38] sm:$0xff] }
   0x6   :  { %906 = vmatprep.subr.bf16.mxu1 %v905_v8  ;;  %v913_v17 = vpack.c.bf16 %v186_v13, %v185_v12  ;;  %v978_v18 = vld [vmem:[%s1280_s1 + $0x30] sm:$0xff]   ;;  %v917_v19 = vpack.c.bf16 %v188_v16, %v187_v15  ;;  %v189_v20 = vld [vmem:[%s1282_s3 + $0x40] sm:$0xff]  ;;  %v190_v21 = vld [vmem:[%s1282_s3 + $0x48] sm:$0xff] }
   0x7   :  { %792 = vmatpush3.bf16.msra.mxu0 %v973_v1  ;;  %908 = vmatpush3.bf16.msra.mxu1 %v905_v8 }
   0x8   :  { %793 = vmatprep.subr.bf16.mxu0 %v974_v2  ;;  %910 = vmatprep.subr.bf16.mxu1 %v909_v11 }
   0xb   :  { %794 = vmatpush3.bf16.msra.mxu0 %v974_v2  ;;  %912 = vmatpush3.bf16.msra.mxu1 %v909_v11 }
   0xc   :  { %795 = vmatprep.subr.bf16.mxu0 %v975_v3  ;;  %914 = vmatprep.subr.bf16.mxu1 %v913_v17 }
   0xf   :  { %796 = vmatpush3.bf16.msra.mxu0 %v975_v3 }
  0x10   :  { %797 = vmatprep.subr.bf16.mxu0 %v976_v10 }
  0x13   :  { %798 = vmatpush3.bf16.msra.mxu0 %v976_v10 }
  0x14   :  { %799 = vmatprep.subr.bf16.mxu0 %v977_v14 }
  0x15   :  { %15 = vsyncpa [#allocation3], 0  ;;  %916 = vmatpush3.bf16.msra.mxu1 %v913_v17  ;;  %v921_v22 = vpack.c.bf16 %v190_v21, %v189_v20  ;;  %v979_v23 = vld [vmem:[%s1280_s1 + $0x38] sm:$0xff]   ;;  %v191_v24 = vld [vmem:[%s1282_s3 + $0x50] sm:$0xff]  ;;  %v282_v47 = vlaneseq  ;;  %v1014_v60 = vmov 0.0   ;;  %vm519_vm13 = vcmask 0  }
  0x16   :  { %918 = vmatprep.subr.bf16.mxu1 %v917_v19  ;;  %v192_v25 = vld [vmem:[%s1282_s3 + $0x58] sm:$0xff]  ;;  %v193_v27 = vld [vmem:[%s1282_s3 + $0x60] sm:$0xff]  ;;  %v194_v28 = vld [vmem:[%s1282_s3 + $0x68] sm:$0xff] }
  0x17   :  { %800 = vmatpush3.bf16.msra.mxu0 %v977_v14  ;;  %v925_v26 = vpack.c.bf16 %v192_v25, %v191_v24  ;;  %v981_v29 = vld [vmem:[%s1279_s0 + $0x8] sm:$0xff]   ;;  %v929_v30 = vpack.c.bf16 %v194_v28, %v193_v27  ;;  %v195_v31 = vld [vmem:[%s1282_s3 + $0x70] sm:$0xff]  ;;  %v196_v32 = vld [vmem:[%s1282_s3 + $0x78] sm:$0xff]  ;;  %v1168_v49 = vand.u32 127, %v282_v47 }
  0x18   :  { %801 = vmatprep.subr.bf16.mxu0 %v978_v18  ;;  %v933_v33 = vpack.c.bf16 %v196_v32, %v195_v31  ;;  %v681_v34 = vld [vmem:[%s1281_s2] ss:$0 sm:$0xff]  ;;  %v396_v32 = vld [vmem:[%s1283_s4 + $0x18] sm:$0xff]  ;;  %v403_v47 = vld [vmem:[%s1283_s4 + $0x50] sm:$0xff] }
  0x19   :  { %920 = vmatpush3.bf16.msra.mxu1 %v917_v19  ;;  %v692_v52 = vld [vmem:[%s1284_s5] ss:$0 sm:$0xff]  ;;  %vm284_vm0 = vcmp.ge.s32.totalorder %v1168_v49, 16 }
  0x1a   :  { %922 = vmatprep.subr.bf16.mxu1 %v921_v22  ;;  %v285_v61 = vsel %vm284_vm0, 1e+30, %v1014_v60  ;;  %v393_v28 = vld [vmem:[%s1283_s4] sm:$0xff] }
  0x1b   :  { %802 = vmatpush3.bf16.msra.mxu0 %v978_v18 }
  0x1c   :  { %803 = vmatprep.subr.bf16.mxu0 %v979_v23 }
  0x1d   :  { %924 = vmatpush3.bf16.msra.mxu1 %v921_v22 }
  0x1e   :  { %926 = vmatprep.subr.bf16.mxu1 %v925_v26 }
  0x1f   :  { %804 = vmatpush3.bf16.msra.mxu0 %v979_v23 }
  0x21   :  { %928 = vmatpush3.bf16.msra.mxu1 %v925_v26 }
  0x22   :  { %806 = vmatmul.mubr.bf16.vlgmr.msra.gmra.mrb[0].mxu0 %v981_v29  ;;  %930 = vmatprep.subr.bf16.mxu1 %v929_v30  ;;  %v394_v29 = vld [vmem:[%s1283_s4 + $0x8] sm:$0xff] }
  0x23   :  { %v937_v31 = vpack.c.bf16 %v394_v29, %v393_v28 }
  0x25   :  { %932 = vmatpush3.bf16.msra.mxu1 %v929_v30  ;;  %v395_v30 = vld [vmem:[%s1283_s4 + $0x10] sm:$0xff]  ;;  %938 = vmatprep.subr.bf16.mxu0 %v937_v31 }
  0x26   :  { %934 = vmatprep.subr.bf16.mxu1 %v933_v33  ;;  %940 = vmatpush3.bf16.msra.mxu0 %v937_v31 }
  0x29   :  { %936 = vmatpush3.bf16.msra.mxu1 %v933_v33  ;;  %v941_v33 = vpack.c.bf16 %v396_v32, %v395_v30 }
  0x2b   :  { %942 = vmatprep.subr.bf16.mxu0 %v941_v33 }
  0x2c   :  { %944 = vmatpush3.bf16.msra.mxu0 %v941_v33 }
  0xf5   :  { %v807_v35 = vpop.f32.mrb[0].mxu0 }
  0xf6   :  { %v1148_v36 = vadd.f32 %v807_v35, %v681_v34  ;;  %v154_v37 = vpop.f32.mrb[1].mxu0  ;;  %v398_v35 = vld [vmem:[%s1283_s4 + $0x28] sm:$0xff] }
  0xf7   :  { %v1150_v38 = vadd.f32 %v681_v34, %v154_v37  ;;  %v808_v39 = vpop.f32.mrb[2].mxu0 }
  0xf8   :  { %v1152_v40 = vadd.f32 %v808_v39, %v681_v34  ;;  %v157_v41 = vpop.f32.mrb[3].mxu0  ;;  %v171_v42 = vmul.f32 %v1148_v36, %v1148_v36  ;;  %v399_v39 = vld [vmem:[%s1283_s4 + $0x30] sm:$0xff] }
  0xf9   :  { %v1156_v43 = vadd.f32 %v681_v34, %v157_v41  ;;  %841 = vmatprep.mubr.f32.mxu1 %v1150_v38  ;;  %v169_v44 = vmul.f32 %v1150_v38, %v1150_v38  ;;  %v397_v34 = vld [vmem:[%s1283_s4 + $0x20] sm:$0xff]  ;;  %v400_v41 = vld [vmem:[%s1283_s4 + $0x38] sm:$0xff] }
  0xfa   :  { %177 = vadd.xlane.f32.xlu1 %v171_v42  ;;  %v172_v45 = vmul.f32 %v1152_v40, %v1152_v40  ;;  %v945_v37 = vpack.c.bf16 %v398_v35, %v397_v34  ;;  %v949_v42 = vpack.c.bf16 %v400_v41, %v399_v39  ;;  %v1015_v34 = vmov 1.0   ;;  %v989_v39 = vld [vmem:[%s1285_s6 + $0x38] sm:$0xff]  }
  0xfb   :  { %842 = vmatmul.mubr.f32.vlgmr.msra.gmra.mrb[0].mxu1 %v1156_v43  ;;  %173 = vadd.xlane.f32.xlu0 %v169_v44  ;;  %v170_v46 = vmul.f32 %v1156_v43, %v1156_v43  ;;  %v401_v44 = vld [vmem:[%s1283_s4 + $0x40] sm:$0xff] }
  0xfc   :  { %844 = vmatprep.mubr.f32.mxu1 %v1148_v36  ;;  %946 = vmatprep.subr.bf16.mxu0 %v945_v37 }
  0xfd   :  { %948 = vmatpush3.bf16.msra.mxu0 %v945_v37  ;;  %v988_v37 = vld [vmem:[%s1285_s6 + $0x30] sm:$0xff]  }
  0xfe   :  { %179 = vadd.xlane.f32.xlu1 %v172_v45  ;;  %v402_v45 = vld [vmem:[%s1283_s4 + $0x48] sm:$0xff]  ;;  %950 = vmatprep.subr.bf16.mxu0 %v949_v42 }
  0xff   :  { %845 = vmatmul.mubr.f32.gmra.mrb[2].mxu1 %v1152_v40  ;;  %175 = vadd.xlane.f32.xlu0 %v170_v46  ;;  %v953_v46 = vpack.c.bf16 %v402_v45, %v401_v44 }
 0x101   :  { %952 = vmatpush3.bf16.msra.mxu0 %v949_v42 }
 0x102   :  { %954 = vmatprep.subr.bf16.mxu0 %v953_v46 }
 0x105   :  { %956 = vmatpush3.bf16.msra.mxu0 %v953_v46 }
 0x187   :  { %v178_v50 = vpop.xlane.xlu1 %177 }
 0x188   :  { %v174_v48 = vpop.xlane.xlu0 %173  ;;  %v295_v5 = vadd.f32 %v692_v52, %v178_v50 }
 0x189   :  { %v293_v57 = vadd.f32 %v692_v52, %v174_v48  ;;  %v404_v48 = vld [vmem:[%s1283_s4 + $0x58] sm:$0xff] }
 0x18a   :  { %v957_v50 = vpack.c.bf16 %v404_v48, %v403_v47 }
 0x18b   :  { %v180_v58 = vpop.xlane.xlu1 %179 }
 0x18c   :  { %v176_v51 = vpop.xlane.xlu0 %175  ;;  %v296_v1 = vadd.f32 %v692_v52, %v180_v58  ;;  %958 = vmatprep.subr.bf16.mxu0 %v957_v50 }
 0x18d   :  { %v294_v54 = vadd.f32 %v692_v52, %v176_v51  ;;  %v405_v51 = vld [vmem:[%s1283_s4 + $0x60] sm:$0xff]  ;;  %v406_v52 = vld [vmem:[%s1283_s4 + $0x68] sm:$0xff]  ;;  %960 = vmatpush3.bf16.msra.mxu0 %v957_v50 }
 0x1ce   :  { %v843_v53 = vpop.f32.mrb[0].mxu1 }
 0x1cf   :  { %v298_v55 = vmul.f32 2.0, %v843_v53  ;;  %v263_v56 = vpop.f32.mrb[1].mxu1  ;;  %v961_v53 = vpack.c.bf16 %v406_v52, %v405_v51 }
 0x1d0   :  { %v297_v59 = vmul.f32 2.0, %v263_v56 }
 0x1d1   :  { %v302_v62 = vsub.f32 %v294_v54, %v298_v55  ;;  %962 = vmatprep.subr.bf16.mxu0 %v961_v53 }
 0x1d2   :  { %v301_v63 = vsub.f32 %v293_v57, %v297_v59  ;;  %v846_v0 = vpop.f32.mrb[2].mxu1  ;;  %964 = vmatpush3.bf16.msra.mxu0 %v961_v53 }
 0x1d3   :  { %v300_v2 = vmul.f32 2.0, %v846_v0  ;;  %v273_v3 = vpop.f32.mrb[3].mxu1  ;;  %v306_v4 = vadd.f32 %v302_v62, %v285_v61 }
 0x1d4   :  { %v299_v6 = vmul.f32 2.0, %v273_v3  ;;  %v305_v7 = vadd.f32 %v301_v63, %v285_v61 }
 0x1d5   :  { %v304_v8 = vsub.f32 %v296_v1, %v300_v2  ;;  %311 = vmin.xlane.f32.xlu1 %v306_v4 }
 0x1d6   :  { %v303_v9 = vsub.f32 %v295_v5, %v299_v6  ;;  %309 = vmin.xlane.f32.xlu0 %v305_v7  ;;  %v407_v6 = vld [vmem:[%s1283_s4 + $0x70] sm:$0xff] }
 0x1d7   :  { %v308_v10 = vadd.f32 %v304_v8, %v285_v61 }
 0x1d8   :  { %v307_v11 = vadd.f32 %v303_v9, %v285_v61  ;;  %v982_v9 = vld [vmem:[%s1285_s6] sm:$0xff]  }
 0x1d9   :  { %315 = vmin.xlane.f32.xlu1 %v308_v10  ;;  %885 = vmatprep.subr.bf16.mxu1 %v982_v9 }
 0x1da   :  { %313 = vmin.xlane.f32.xlu0 %v307_v11  ;;  %886 = vmatpush3.bf16.msra.mxu1 %v982_v9 }
 0x262   :  { %v312_v12 = vpop.xlane.xlu1 %311 }
 0x263   :  { %vm318_vm1 = vcmp.eq.f32.partialorder %v306_v4, %v312_v12  ;;  %v310_v13 = vpop.xlane.xlu0 %309  ;;  %v985_v12 = vld [vmem:[%s1285_s6 + $0x18] sm:$0xff]  }
 0x264   :  { %v322_v14 = vsel %vm318_vm1, %v1168_v49, 128  ;;  %vm317_vm2 = vcmp.eq.f32.partialorder %v305_v7, %v310_v13  ;;  %v408_v7 = vld [vmem:[%s1283_s4 + $0x78] sm:$0xff]  ;;  %v986_v13 = vld [vmem:[%s1285_s6 + $0x20] sm:$0xff]  }
 0x265   :  { %v321_v15 = vsel %vm317_vm2, %v1168_v49, 128  ;;  %v340_v16 = vshra.s32 %v322_v14, 16  ;;  %v339_v54 = vand.u32 65535, %v322_v14  ;;  %v965_v8 = vpack.c.bf16 %v408_v7, %v407_v6  ;;  %v987_v14 = vld [vmem:[%s1285_s6 + $0x28] sm:$0xff]  }
 0x266   :  { %v316_v17 = vpop.xlane.xlu1 %315  ;;  %v326_v18 = vshra.s32 %v321_v15, 16  ;;  %v325_v55 = vand.u32 65535, %v321_v15 }
 0x267   :  { %vm320_vm3 = vcmp.eq.f32.partialorder %v308_v10, %v316_v17  ;;  %v314_v19 = vpop.xlane.xlu0 %313  ;;  %v342_v20 = vcvt.s32.f32 %v340_v16  ;;  %v341_v58 = vcvt.s32.f32 %v339_v54  ;;  %966 = vmatprep.subr.bf16.mxu0 %v965_v8  ;;  %v983_v10 = vld [vmem:[%s1285_s6 + $0x8] sm:$0xff]  }
 0x268   :  { %v324_v21 = vsel %vm320_vm3, %v1168_v49, 128  ;;  %vm319_vm4 = vcmp.eq.f32.partialorder %v307_v11, %v314_v19  ;;  %v328_v22 = vcvt.s32.f32 %v326_v18  ;;  %v327_v61 = vcvt.s32.f32 %v325_v55  ;;  %968 = vmatpush3.bf16.msra.mxu0 %v965_v8  ;;  %887 = vmatprep.subr.bf16.mxu1 %v983_v10  ;;  %v984_v11 = vld [vmem:[%s1285_s6 + $0x10] sm:$0xff]   ;;  %s1016_s6 = smov [#allocation2]  }
 0x269   :  { %v323_v23 = vsel %vm319_vm4, %v1168_v49, 128  ;;  %343 = vmin.xlane.f32.xlu1 %v342_v20  ;;  %v368_v24 = vshra.s32 %v324_v21, 16  ;;  %v367_v56 = vand.u32 65535, %v324_v21  ;;  %888 = vmatpush3.bf16.msra.mxu1 %v983_v10  ;;  %s671_s17 = sshll.u32 %s1016_s6, 4  ;;  %s672_s17 = int_to_ptr.vmem [resolvable:$true] %s671_s17 }
 0x26a   :  { %329 = vmin.xlane.f32.xlu0 %v328_v22  ;;  %v354_v25 = vshra.s32 %v323_v23, 16  ;;  %v353_v59 = vand.u32 65535, %v323_v23  ;;  %889 = vmatprep.subr.bf16.mxu1 %v984_v11  ;;  %s990_s0 = scalar_lea.vmem %s672_s17, 16  ;;  %s994_s18 = scalar_lea.vmem %s672_s17, 32 }
 0x26b   :  { %v370_v26 = vcvt.s32.f32 %v368_v24  ;;  %v369_v1 = vcvt.s32.f32 %v367_v56  ;;  %p991_p0 = scmp.ne.s32.totalorder %s672_s17, %s990_s0  ;;  %p995_p1 = scmp.lt.s32.totalorder %s672_s17, %s672_s17 }
 0x26c   :  { %v356_v27 = vcvt.s32.f32 %v354_v25  ;;  %v355_v3 = vcvt.s32.f32 %v353_v59  ;;  %p996_p2 = scmp.lt.s32.totalorder %s994_s18, %s990_s0 }
 0x26d   :  { %371 = vmin.xlane.f32.xlu1 %v370_v26  ;;  %890 = vmatpush3.bf16.msra.mxu1 %v984_v11 }
 0x26e   :  { %357 = vmin.xlane.f32.xlu0 %v356_v27  ;;  %891 = vmatprep.subr.bf16.mxu1 %v985_v12  ;;  %p997_p3 = por %p996_p2, %p995_p1 }
 0x270   :  { %p998_p4 = pnand %p997_p3, %p991_p0 }
 0x271   :  { %892 = vmatpush3.bf16.msra.mxu1 %v985_v12 }
 0x272   :  { %893 = vmatprep.subr.bf16.mxu1 %v986_v13 }
 0x275   :  { %894 = vmatpush3.bf16.msra.mxu1 %v986_v13 }
 0x276   :  { %895 = vmatprep.subr.bf16.mxu1 %v987_v14 }
 0x279   :  { %896 = vmatpush3.bf16.msra.mxu1 %v987_v14 }
 0x27a   :  { %897 = vmatprep.subr.bf16.mxu1 %v988_v37 }
 0x27d   :  { %898 = vmatpush3.bf16.msra.mxu1 %v988_v37 }
 0x27e   :  { %899 = vmatprep.subr.bf16.mxu1 %v989_v39 }
 0x281   :  { %900 = vmatpush3.bf16.msra.mxu1 %v989_v39 }
 0x2f6   :  { %v344_v57 = vpop.xlane.xlu1 %343 }
 0x2f7   :  { %v330_v60 = vpop.xlane.xlu0 %329  ;;  %vm345_vm5 = vcmp.eq.f32.partialorder %v342_v20, %v344_v57  ;;  %v350_v15 = vcvt.f32.s32 %v344_v57 }
 0x2f8   :  { %v346_v62 = vsel %vm345_vm5, %v341_v58, inf  ;;  %vm331_vm6 = vcmp.eq.f32.partialorder %v328_v22, %v330_v60  ;;  %v336_v16 = vcvt.f32.s32 %v330_v60 }
 0x2f9   :  { %347 = vmin.xlane.f32.xlu1 %v346_v62  ;;  %v332_v63 = vsel %vm331_vm6, %v327_v61, inf  ;;  %v351_v18 = vshll.u32 %v350_v15, 16 }
 0x2fa   :  { %v372_v0 = vpop.xlane.xlu1 %371  ;;  %333 = vmin.xlane.f32.xlu0 %v332_v63  ;;  %v337_v22 = vshll.u32 %v336_v16, 16 }
 0x2fb   :  { %v358_v2 = vpop.xlane.xlu0 %357  ;;  %vm373_vm7 = vcmp.eq.f32.partialorder %v370_v26, %v372_v0  ;;  %v378_v19 = vcvt.f32.s32 %v372_v0 }
 0x2fc   :  { %v374_v4 = vsel %vm373_vm7, %v369_v1, inf  ;;  %vm359_vm8 = vcmp.eq.f32.partialorder %v356_v27, %v358_v2  ;;  %v364_v23 = vcvt.f32.s32 %v358_v2 }
 0x2fd   :  { %375 = vmin.xlane.f32.xlu1 %v374_v4  ;;  %v360_v5 = vsel %vm359_vm8, %v355_v3, inf  ;;  %v379_v28 = vshll.u32 %v378_v19, 16 }
 0x2fe   :  { %361 = vmin.xlane.f32.xlu0 %v360_v5  ;;  %v365_v31 = vshll.u32 %v364_v23, 16 }
 0x386   :  { %v348_v17 = vpop.xlane.xlu1 %347 }
 0x387   :  { %v349_v20 = vcvt.f32.s32 %v348_v17  ;;  %v334_v21 = vpop.xlane.xlu0 %333 }
 0x388   :  { %v335_v24 = vcvt.f32.s32 %v334_v21 }
 0x389   :  { %v352_v25 = vadd.s32 %v351_v18, %v349_v20 }
 0x38a   :  { %v338_v26 = vadd.s32 %v337_v22, %v335_v24  ;;  %v376_v27 = vpop.xlane.xlu1 %375 }
 0x38b   :  { %v377_v29 = vcvt.f32.s32 %v376_v27  ;;  %v362_v30 = vpop.xlane.xlu0 %361  ;;  %vm382_vm10 = vcmp.eq.s32.totalorder %v1168_v49, %v352_v25 }
 0x38c   :  { %v363_v32 = vcvt.f32.s32 %v362_v30  ;;  %vm381_vm9 = vcmp.eq.s32.totalorder %v1168_v49, %v338_v26 }
 0x38d   :  { %v380_v33 = vadd.s32 %v379_v28, %v377_v29  ;;  %879 = vmatprep.mubr.msk.f32.mxu0 %vm381_vm9, %v1015_v34 }
 0x38e   :  { %v366_v35 = vadd.s32 %v365_v31, %v363_v32  ;;  %880 = vmatmul.mubr.msk.f32.vlgmr.msra.gmra.mrb[4].mxu0 %vm382_vm10, %v1015_v34 }
 0x38f   :  { %vm384_vm12 = vcmp.eq.s32.totalorder %v1168_v49, %v380_v33 }
 0x390   :  { %vm383_vm11 = vcmp.eq.s32.totalorder %v1168_v49, %v366_v35 }
 0x391   :  { %882 = vmatprep.mubr.msk.f32.mxu0 %vm383_vm11, %v1015_v34 }
 0x392   :  { %883 = vmatmul.mubr.msk.f32.gmra.mrb[6].mxu0 %vm384_vm12, %v1015_v34 }
 0x461   :  { %v881_v41 = vpop.f32.mrb[4].mxu0 }
 0x462   :  { %v495_v42 = vsub.f32 %v881_v41, %v1156_v43  ;;  %v475_v44 = vpop.f32.mrb[5].mxu0 }
 0x463   :  { %v494_v45 = vsub.f32 %v475_v44, %v1150_v38  ;;  %v521_v49 = vpack.c.bf16 %v881_v41, %v475_v44 }
 0x464   :  { %v499_v46 = vmul.f32 %v495_v42, %v495_v42 }
 0x465   :  { %v884_v47 = vpop.f32.mrb[6].mxu0  ;;  %901 = vmatprep.mubr.bf16.mxu1 %v521_v49  ;;  %v498_v48 = vmul.f32 %v494_v45, %v494_v45 }
 0x466   :  { %v497_v50 = vsub.f32 %v884_v47, %v1152_v40  ;;  %504 = vadd.xlane.f32.xlu1 %v499_v46  ;;  %v485_v51 = vpop.f32.mrb[7].mxu0 }
 0x467   :  { %v496_v52 = vsub.f32 %v485_v51, %v1148_v36  ;;  %v522_v53 = vpack.c.bf16 %v884_v47, %v485_v51  ;;  %502 = vadd.xlane.f32.xlu0 %v498_v48 }
 0x468   :  { %v501_v54 = vmul.f32 %v497_v50, %v497_v50 }
 0x469   :  { %v500_v55 = vmul.f32 %v496_v52, %v496_v52  ;;  %902 = vmatmul.mubr.bf16.vlgmr.msra.gmra.mrb[4].mxu1 %v522_v53 }
 0x46a   :  { %508 = vadd.xlane.f32.xlu1 %v501_v54 }
 0x46b   :  { %506 = vadd.xlane.f32.xlu0 %v500_v55 }
 0x4f3   :  { %v505_v43 = vpop.xlane.xlu1 %504 }
 0x4f4   :  { %v503_v38 = vpop.xlane.xlu0 %502 }
 0x4f5   :  { %v510_v56 = vadd.f32 %v505_v43, %v503_v38 }
 0x4f7   :  { %v509_v59 = vpop.xlane.xlu1 %508 }
 0x4f8   :  { %v507_v57 = vpop.xlane.xlu0 %506 }
 0x4f9   :  { %v511_v58 = vadd.f32 %v510_v56, %v507_v57 }
 0x4fb   :  { %v512_v60 = vadd.f32 %v511_v58, %v509_v59 }
 0x4fd   :  { %v513_v61 = vrot.slane %v512_v60, 4 }
 0x4ff   :  { %v514_v40 = vadd.f32 %v513_v61, %v512_v60 }
 0x501   :  { %v515_v62 = vrot.slane %v514_v40, 2 }
 0x503   :  { %v516_v63 = vadd.f32 %v515_v62, %v514_v40 }
 0x505   :  { %v517_v36 = vrot.slane %v516_v63, 1 }
 0x507   :  { %v518_v0 = vadd.f32 %v517_v36, %v516_v63 }
 0x509   :  { %520 = vst.msk [vmem:[#allocation2] sm:$0x1] %vm519_vm13, %v518_v0 }
 0x50a   :  { %1001 = shalt.err (!%p998_p4)
}
 0x50b   :  { %s1002_s5 = scalar_lea.hbm %s1288_s9, 16 }
 0x50c   :  { %p1003_p5 = scmp.ne.s32.totalorder %s1288_s9, %s1002_s5  ;;  %p1006_p6 = scmp.lt.u32.totalorder %s1002_s5, %s1288_s9 }
 0x50e   :  { %p1008_p7 = pnand %p1006_p6, %p1003_p5 }
 0x510   :  { %1011 = shalt.err (!%p1008_p7)
}
 0x511   :  { %674 = dma.vmem_to_hbm [thread:$0]  %s672_s17, 16, %s1288_s9, [#allocation3]   ;;  %v701_v2 = vld [vmem:[%s1286_s7] ss:$0 sm:$0xff] }
 0x53c   :  { %v903_v1 = vpop.f32.mrb[4].mxu1 }
 0x53d   :  { %v628_v3 = vpop.f32.mrb[5].mxu1  ;;  %v637_v5 = vadd.f32 %v903_v1, %v701_v2 }
 0x53e   :  { %v904_v4 = vpop.f32.mrb[6].mxu1  ;;  %v629_v8 = vadd.f32 %v701_v2, %v628_v3 }
 0x53f   :  { %v640_v6 = vadd.f32 %v904_v4, %v701_v2  ;;  %v631_v7 = vpop.f32.mrb[7].mxu1 }
 0x540   :  { %v632_v9 = vadd.f32 %v701_v2, %v631_v7 }
 0x541   :  { %v726_v10 = vpack.c.bf16 %v640_v6, %v637_v5 }
 0x542   :  { %v721_v11 = vpack.c.bf16 %v632_v9, %v629_v8 }
 0x543   :  { %728 = vst [vmem:[%s1287_s8 + $0x8] sm:$0xff] %v726_v10  }
 0x544   :  { %722 = vst [vmem:[%s1287_s8] sm:$0xff] %v721_v11  }
 0x545   :  { %1012 = dma.done.wait [#allocation3], 16  }
 0x546   :  { %1013 = vsyncadd [#allocation3], 4294967280 }
 0x547   :  { %680 = vsyncpa [#allocation3], 1 }

// kernel: vqvae_forward.11
= control target key start
LH: loop header
LB: loop body
LE: loop exit
PB: predicated region body
PF: predicated region fallthrough
CT: control target
= control target key end

     0   :  { %v2056_v20 = vmov 0.0|0.0   ;;  %vm2057_vm0 = vmmov 0   ;;  %v2058_v21 = vmov 0.0   ;;  %vm301_vm1 = vcmask 261120   ;;  %s2469_s1 = inlined_call_operand.vmem [shape: bf16[4,128,128], index: 1, kind: input, shape index: {}]   ;;  %s2470_s0 = inlined_call_operand.vmem [shape: bf16[4,32,128], index: 0, kind: input, shape index: {}]   ;;  %s2471_s2 = inlined_call_operand.vmem [shape: f32[1,128], index: 2, kind: input, shape index: {}]   ;;  %s2472_s3 = inlined_call_operand.vmem [shape: f32[1,128], index: 3, kind: input, shape index: {}]   ;;  %s2473_s4 = inlined_call_operand.vmem [shape: f32[1,128], index: 4, kind: input, shape index: {}]   ;;  %s2474_s5 = inlined_call_operand.vmem [shape: bf16[4,32,128], index: 5, kind: output, shape index: {}]  }
   0x1   :  { %v1950_v0 = vld [vmem:[%s2469_s1 + $0x40] sm:$0xff]   ;;  %v1951_v1 = vld [vmem:[%s2469_s1 + $0x48] sm:$0xff]   ;;  %v1953_v3 = vld [vmem:[%s2469_s1 + $0x50] sm:$0xff]   ;;  %v2059_v50 = vmov 1.0  }
   0x2   :  { %1738 = vmatprep.subr.bf16.mxu1 %v1950_v0  ;;  %v1952_v2 = vld [vmem:[%s2469_s1] sm:$0xff]   ;;  %v1954_v4 = vld [vmem:[%s2469_s1 + $0x8] sm:$0xff]   ;;  %v1956_v5 = vld [vmem:[%s2469_s1 + $0x10] sm:$0xff]  }
   0x3   :  { %1739 = vmatpush3.bf16.msra.mxu1 %v1950_v0  ;;  %1718 = vmatprep.subr.bf16.mxu0 %v1952_v2  ;;  %v1955_v6 = vld [vmem:[%s2469_s1 + $0x58] sm:$0xff]   ;;  %v1957_v8 = vld [vmem:[%s2469_s1 + $0x60] sm:$0xff]   ;;  %v1965_v10 = vld [vmem:[%s2470_s0 + $0x10] sm:$0xff]  }
   0x4   :  { %1740 = vmatprep.subr.bf16.mxu1 %v1951_v1  ;;  %1719 = vmatpush3.bf16.msra.mxu0 %v1952_v2  ;;  %v1958_v7 = vld [vmem:[%s2469_s1 + $0x18] sm:$0xff]   ;;  %v1960_v9 = vld [vmem:[%s2469_s1 + $0x20] sm:$0xff]   ;;  %v1959_v11 = vld [vmem:[%s2469_s1 + $0x68] sm:$0xff]  }
   0x5   :  { %1720 = vmatprep.subr.bf16.mxu0 %v1954_v4  ;;  %v1962_v12 = vld [vmem:[%s2469_s1 + $0x28] sm:$0xff]   ;;  %1754 = vmatprep.mubr.bf16.mxu1 %v1965_v10  ;;  %v1968_v13 = vld [vmem:[%s2470_s0] sm:$0xff]   ;;  %v1961_v14 = vld [vmem:[%s2469_s1 + $0x70] sm:$0xff]  }
   0x6   :  { %v1964_v15 = vld [vmem:[%s2469_s1 + $0x30] sm:$0xff]   ;;  %1734 = vmatprep.mubr.bf16.mxu0 %v1968_v13  ;;  %v1963_v16 = vld [vmem:[%s2469_s1 + $0x78] sm:$0xff]   ;;  %v1969_v19 = vld [vmem:[%s2470_s0 + $0x8] sm:$0xff]  }
   0x7   :  { %1741 = vmatpush3.bf16.msra.mxu1 %v1951_v1  ;;  %v1967_v17 = vld [vmem:[%s2469_s1 + $0x38] sm:$0xff]   ;;  %v2159_v22 = vld [vmem:[%s2471_s2] ss:$0 sm:$0xff]  ;;  %v1971_v58 = vld [vmem:[%s2469_s1 + $0x88] sm:$0xff]  }
   0x8   :  { %1742 = vmatprep.subr.bf16.mxu1 %v1953_v3  ;;  %1721 = vmatpush3.bf16.msra.mxu0 %v1954_v4  ;;  %v1966_v18 = vld [vmem:[%s2470_s0 + $0x18] sm:$0xff]   ;;  %v1970_v54 = vld [vmem:[%s2469_s1 + $0x80] sm:$0xff]   ;;  %v1972_v59 = vld [vmem:[%s2469_s1 + $0x90] sm:$0xff]  }
   0x9   :  { %1722 = vmatprep.subr.bf16.mxu0 %v1956_v5  ;;  %v1978_v57 = vld [vmem:[%s2470_s0 + $0x20] sm:$0xff]   ;;  %v1973_v60 = vld [vmem:[%s2469_s1 + $0x98] sm:$0xff]   ;;  %v1975_v62 = vld [vmem:[%s2469_s1 + $0xa8] sm:$0xff]  }
   0xa   :  { %v1974_v61 = vld [vmem:[%s2469_s1 + $0xa0] sm:$0xff]   ;;  %v1976_v63 = vld [vmem:[%s2469_s1 + $0xb0] sm:$0xff]   ;;  %v1977_v0 = vld [vmem:[%s2469_s1 + $0xb8] sm:$0xff]  }
   0xb   :  { %1743 = vmatpush3.bf16.msra.mxu1 %v1953_v3  ;;  %v1979_v1 = vld [vmem:[%s2470_s0 + $0x28] sm:$0xff]  }
   0xc   :  { %1744 = vmatprep.subr.bf16.mxu1 %v1955_v6  ;;  %1723 = vmatpush3.bf16.msra.mxu0 %v1956_v5 }
   0xd   :  { %1724 = vmatprep.subr.bf16.mxu0 %v1958_v7 }
   0xf   :  { %1745 = vmatpush3.bf16.msra.mxu1 %v1955_v6 }
  0x10   :  { %1746 = vmatprep.subr.bf16.mxu1 %v1957_v8  ;;  %1725 = vmatpush3.bf16.msra.mxu0 %v1958_v7 }
  0x11   :  { %1726 = vmatprep.subr.bf16.mxu0 %v1960_v9 }
  0x13   :  { %1747 = vmatpush3.bf16.msra.mxu1 %v1957_v8 }
  0x14   :  { %1748 = vmatprep.subr.bf16.mxu1 %v1959_v11  ;;  %1727 = vmatpush3.bf16.msra.mxu0 %v1960_v9 }
  0x15   :  { %1728 = vmatprep.subr.bf16.mxu0 %v1962_v12 }
  0x17   :  { %1749 = vmatpush3.bf16.msra.mxu1 %v1959_v11 }
  0x18   :  { %1750 = vmatprep.subr.bf16.mxu1 %v1961_v14  ;;  %1729 = vmatpush3.bf16.msra.mxu0 %v1962_v12 }
  0x19   :  { %1730 = vmatprep.subr.bf16.mxu0 %v1964_v15 }
  0x1b   :  { %1751 = vmatpush3.bf16.msra.mxu1 %v1961_v14 }
  0x1c   :  { %1752 = vmatprep.subr.bf16.mxu1 %v1963_v16  ;;  %1731 = vmatpush3.bf16.msra.mxu0 %v1964_v15 }
  0x1d   :  { %1732 = vmatprep.subr.bf16.mxu0 %v1967_v17 }
  0x1f   :  { %1753 = vmatpush3.bf16.msra.mxu1 %v1963_v16 }
  0x20   :  { %1733 = vmatpush3.bf16.msra.mxu0 %v1967_v17  ;;  %1898 = vmatprep.subr.bf16.mxu1 %v2056_v20  ;;  %v1980_v17 = vld [vmem:[%s2469_s1 + $0xc0] sm:$0xff]  }
  0x21   :  { %1886 = vmatprep.subr.bf16.mxu0 %v2056_v20 }
  0x22   :  { %1755 = vmatmul.mubr.bf16.vlgmr.msra.gmra.mrb[0].mxu1 %v1966_v18 }
  0x23   :  { %1735 = vmatmul.mubr.bf16.vlgmr.msra.gmra.mrb[0].mxu0 %v1969_v19  ;;  %1788 = vmatprep.mubr.msk.f32.mxu1 %vm2057_vm0, %v2058_v21  ;;  %v1988_v19 = vld [vmem:[%s2470_s0 + $0x30] sm:$0xff]  }
  0x24   :  { %1766 = vmatprep.mubr.msk.f32.mxu0 %vm2057_vm0, %v2058_v21 }
  0xf5   :  { %v1756_v23 = vpop.f32.mrb[0].mxu1 }
  0xf6   :  { %v281_v24 = vpop.f32.mrb[1].mxu1  ;;  %v1736_v27 = vpop.f32.mrb[0].mxu0  ;;  %v2171_v34 = vadd.f32 %v1756_v23, %v2159_v22  ;;  %v1981_v23 = vld [vmem:[%s2469_s1 + $0xc8] sm:$0xff]  }
  0xf7   :  { %v2162_v25 = vadd.f32 %v2159_v22, %v281_v24  ;;  %v1757_v26 = vpop.f32.mrb[2].mxu1  ;;  %v142_v29 = vpop.f32.mrb[1].mxu0  ;;  %v2193_v44 = vadd.f32 %v1736_v27, %v2159_v22  ;;  %v1982_v24 = vld [vmem:[%s2469_s1 + $0xd0] sm:$0xff]   ;;  %v1984_v27 = vld [vmem:[%s2469_s1 + $0xe0] sm:$0xff]  }
  0xf8   :  { %v284_v28 = vpop.f32.mrb[3].mxu1  ;;  %v2165_v30 = vadd.f32 %v1757_v26, %v2159_v22  ;;  %v1737_v32 = vpop.f32.mrb[2].mxu0  ;;  %v2182_v40 = vadd.f32 %v2159_v22, %v142_v29  ;;  %v447_v42 = vmul.f32 %v2171_v34, %v2171_v34  ;;  %v1983_v26 = vld [vmem:[%s2469_s1 + $0xd8] sm:$0xff]   ;;  %v1986_v29 = vld [vmem:[%s2469_s1 + $0xf0] sm:$0xff]  }
  0xf9   :  { %v2168_v31 = vadd.f32 %v2159_v22, %v284_v28  ;;  %v145_v33 = vpop.f32.mrb[3].mxu0  ;;  %v445_v35 = vmul.f32 %v2162_v25, %v2162_v25  ;;  %v2199_v47 = vadd.f32 %v1737_v32, %v2159_v22  ;;  %v163_v51 = vmul.f32 %v2193_v44, %v2193_v44  ;;  %v1985_v28 = vld [vmem:[%s2469_s1 + $0xe8] sm:$0xff]   ;;  %v1987_v32 = vld [vmem:[%s2469_s1 + $0xf8] sm:$0xff]  }
  0xfa   :  { %v448_v38 = vmul.f32 %v2165_v30, %v2165_v30  ;;  %v2185_v41 = vadd.f32 %v2159_v22, %v145_v33  ;;  %v1890_v43 = vpack.c.bf16 %v2165_v30, %v2171_v34  ;;  %v161_v46 = vmul.f32 %v2182_v40, %v2182_v40  ;;  %v1989_v33 = vld [vmem:[%s2470_s0 + $0x38] sm:$0xff]  }
  0xfb   :  { %v1887_v36 = vpack.c.bf16 %v2168_v31, %v2162_v25  ;;  %v446_v37 = vmul.f32 %v2168_v31, %v2168_v31  ;;  %v164_v52 = vmul.f32 %v2199_v47, %v2199_v47  ;;  %v1896_v55 = vpack.c.bf16 %v2199_v47, %v2193_v44 }
  0xfc   :  { %v1902_v45 = vpack.c.bf16 %v448_v38, %v447_v42  ;;  %v162_v48 = vmul.f32 %v2185_v41, %v2185_v41  ;;  %v1893_v49 = vpack.c.bf16 %v2185_v41, %v2182_v40 }
  0xfd   :  { %v1899_v39 = vpack.c.bf16 %v446_v37, %v445_v35  ;;  %1888 = vmatpush3.bf16.msra.mxu0 %v1887_v36  ;;  %v1908_v56 = vpack.c.bf16 %v164_v52, %v163_v51 }
  0xfe   :  { %1889 = vmatprep.subr.bf16.mxu0 %v2056_v20  ;;  %v1905_v53 = vpack.c.bf16 %v162_v48, %v161_v46 }
  0xff   :  { %1900 = vmatpush3.bf16.msra.mxu1 %v1899_v39 }
 0x100   :  { %1901 = vmatprep.subr.bf16.mxu1 %v2056_v20 }
 0x101   :  { %1891 = vmatpush3.bf16.msra.mxu0 %v1890_v43 }
 0x102   :  { %1892 = vmatprep.subr.bf16.mxu0 %v2056_v20 }
 0x103   :  { %1903 = vmatpush3.bf16.msra.mxu1 %v1902_v45 }
 0x104   :  { %1767 = vmatmul.mubr.msk.f32.vlgmr.msra.gmra.mrb[4].mxu0 %vm301_vm1, %v2059_v50  ;;  %1904 = vmatprep.subr.bf16.mxu1 %v2056_v20 }
 0x105   :  { %1894 = vmatpush3.bf16.msra.mxu0 %v1893_v49  ;;  %1777 = vmatprep.mubr.msk.f32.mxu0 %vm2057_vm0, %v2058_v21 }
 0x106   :  { %1789 = vmatmul.mubr.msk.f32.vlgmr.msra.gmra.mrb[4].mxu1 %vm301_vm1, %v2059_v50  ;;  %1895 = vmatprep.subr.bf16.mxu0 %v2056_v20 }
 0x107   :  { %1906 = vmatpush3.bf16.msra.mxu1 %v1905_v53  ;;  %1799 = vmatprep.mubr.msk.f32.mxu1 %vm2057_vm0, %v2058_v21 }
 0x108   :  { %1907 = vmatprep.subr.bf16.mxu1 %v2056_v20 }
 0x109   :  { %1897 = vmatpush3.bf16.msra.mxu0 %v1896_v55 }
 0x10a   :  { %1802 = vmatprep.subr.bf16.mxu0 %v1970_v54 }
 0x10b   :  { %1909 = vmatpush3.bf16.msra.mxu1 %v1908_v56 }
 0x10c   :  { %1778 = vmatmul.mubr.msk.f32.vlgmr.msra.gmra.mrb[4].mxu0 %vm301_vm1, %v2059_v50  ;;  %1916 = vmatprep.subr.bf16.mxu1 %v2056_v20 }
 0x10d   :  { %1803 = vmatpush3.bf16.msra.mxu0 %v1970_v54  ;;  %1818 = vmatprep.mubr.bf16.mxu0 %v1978_v57 }
 0x10e   :  { %1804 = vmatprep.subr.bf16.mxu0 %v1971_v58  ;;  %1800 = vmatmul.mubr.msk.f32.vlgmr.msra.gmra.mrb[4].mxu1 %vm301_vm1, %v2059_v50 }
 0x10f   :  { %1841 = vmatprep.mubr.msk.f32.mxu1 %vm2057_vm0, %v2058_v21 }
 0x111   :  { %1805 = vmatpush3.bf16.msra.mxu0 %v1971_v58 }
 0x112   :  { %1806 = vmatprep.subr.bf16.mxu0 %v1972_v59 }
 0x115   :  { %1807 = vmatpush3.bf16.msra.mxu0 %v1972_v59 }
 0x116   :  { %1808 = vmatprep.subr.bf16.mxu0 %v1973_v60 }
 0x119   :  { %1809 = vmatpush3.bf16.msra.mxu0 %v1973_v60 }
 0x11a   :  { %1810 = vmatprep.subr.bf16.mxu0 %v1974_v61 }
 0x11d   :  { %1811 = vmatpush3.bf16.msra.mxu0 %v1974_v61 }
 0x11e   :  { %1812 = vmatprep.subr.bf16.mxu0 %v1975_v62 }
 0x121   :  { %1813 = vmatpush3.bf16.msra.mxu0 %v1975_v62 }
 0x122   :  { %1814 = vmatprep.subr.bf16.mxu0 %v1976_v63 }
 0x125   :  { %1815 = vmatpush3.bf16.msra.mxu0 %v1976_v63 }
 0x126   :  { %1816 = vmatprep.subr.bf16.mxu0 %v1977_v0 }
 0x129   :  { %1817 = vmatpush3.bf16.msra.mxu0 %v1977_v0 }
 0x12a   :  { %1910 = vmatprep.subr.bf16.mxu0 %v2056_v20 }
 0x12c   :  { %1819 = vmatmul.mubr.bf16.vlgmr.msra.gmra.mrb[8].mxu0 %v1979_v1  ;;  %v1160_v1 = vld [vmem:[%s2472_s3] sm:$0x1] }
 0x12d   :  { %1830 = vmatprep.mubr.msk.f32.mxu0 %vm2057_vm0, %v2058_v21 }
 0x1ff   :  { %v1820_v2 = vpop.f32.mrb[8].mxu0 }
 0x200   :  { %v705_v3 = vpop.f32.mrb[9].mxu0  ;;  %v2273_v9 = vadd.f32 %v1820_v2, %v2159_v22 }
 0x201   :  { %v2264_v4 = vadd.f32 %v2159_v22, %v705_v3  ;;  %v1821_v5 = vpop.f32.mrb[10].mxu0 }
 0x202   :  { %v708_v6 = vpop.f32.mrb[11].mxu0  ;;  %v2267_v7 = vadd.f32 %v1821_v5, %v2159_v22  ;;  %v798_v15 = vmul.f32 %v2273_v9, %v2273_v9  ;;  %v1162_v5 = vld [vmem:[%s2473_s4] sm:$0x1] }
 0x203   :  { %v2270_v8 = vadd.f32 %v2159_v22, %v708_v6  ;;  %v796_v10 = vmul.f32 %v2264_v4, %v2264_v4 }
 0x204   :  { %v799_v13 = vmul.f32 %v2267_v7, %v2267_v7  ;;  %v1914_v16 = vpack.c.bf16 %v2267_v7, %v2273_v9 }
 0x205   :  { %v1911_v11 = vpack.c.bf16 %v2270_v8, %v2264_v4  ;;  %v797_v12 = vmul.f32 %v2270_v8, %v2270_v8 }
 0x206   :  { %v1920_v18 = vpack.c.bf16 %v799_v13, %v798_v15 }
 0x207   :  { %v1917_v14 = vpack.c.bf16 %v797_v12, %v796_v10  ;;  %1912 = vmatpush3.bf16.msra.mxu0 %v1911_v11 }
 0x208   :  { %1913 = vmatprep.subr.bf16.mxu0 %v2056_v20 }
 0x209   :  { %1918 = vmatpush3.bf16.msra.mxu1 %v1917_v14 }
 0x20a   :  { %1919 = vmatprep.subr.bf16.mxu1 %v2056_v20 }
 0x20b   :  { %1915 = vmatpush3.bf16.msra.mxu0 %v1914_v16 }
 0x20c   :  { %1922 = vmatprep.subr.bf16.mxu0 %v2056_v20 }
 0x20d   :  { %1921 = vmatpush3.bf16.msra.mxu1 %v1920_v18 }
 0x20e   :  { %1844 = vmatprep.subr.bf16.mxu1 %v1980_v17  ;;  %1831 = vmatmul.mubr.msk.f32.vlgmr.msra.gmra.mrb[4].mxu0 %vm301_vm1, %v2059_v50 }
 0x20f   :  { %1872 = vmatprep.mubr.msk.f32.mxu0 %vm2057_vm0, %v2058_v21 }
 0x210   :  { %1842 = vmatmul.mubr.msk.f32.vlgmr.msra.gmra.mrb[4].mxu1 %vm301_vm1, %v2059_v50 }
 0x211   :  { %1845 = vmatpush3.bf16.msra.mxu1 %v1980_v17  ;;  %1860 = vmatprep.mubr.bf16.mxu1 %v1988_v19 }
 0x212   :  { %1846 = vmatprep.subr.bf16.mxu1 %v1981_v23 }
 0x215   :  { %1847 = vmatpush3.bf16.msra.mxu1 %v1981_v23 }
 0x216   :  { %1848 = vmatprep.subr.bf16.mxu1 %v1982_v24 }
 0x219   :  { %1849 = vmatpush3.bf16.msra.mxu1 %v1982_v24 }
 0x21a   :  { %1850 = vmatprep.subr.bf16.mxu1 %v1983_v26 }
 0x21d   :  { %1851 = vmatpush3.bf16.msra.mxu1 %v1983_v26 }
 0x21e   :  { %1852 = vmatprep.subr.bf16.mxu1 %v1984_v27 }
 0x221   :  { %1853 = vmatpush3.bf16.msra.mxu1 %v1984_v27 }
 0x222   :  { %1854 = vmatprep.subr.bf16.mxu1 %v1985_v28 }
 0x225   :  { %1855 = vmatpush3.bf16.msra.mxu1 %v1985_v28 }
 0x226   :  { %1856 = vmatprep.subr.bf16.mxu1 %v1986_v29 }
 0x229   :  { %1857 = vmatpush3.bf16.msra.mxu1 %v1986_v29 }
 0x22a   :  { %1858 = vmatprep.subr.bf16.mxu1 %v1987_v32 }
 0x22d   :  { %1859 = vmatpush3.bf16.msra.mxu1 %v1987_v32 }
 0x22e   :  { %1928 = vmatprep.subr.bf16.mxu1 %v2056_v20 }
 0x230   :  { %1861 = vmatmul.mubr.bf16.vlgmr.msra.gmra.mrb[8].mxu1 %v1989_v33 }
 0x231   :  { %1883 = vmatprep.mubr.msk.f32.mxu1 %vm2057_vm0, %v2058_v21 }
 0x303   :  { %v1862_v35 = vpop.f32.mrb[8].mxu1 }
 0x304   :  { %v987_v36 = vpop.f32.mrb[9].mxu1  ;;  %v2339_v45 = vadd.f32 %v1862_v35, %v2159_v22 }
 0x305   :  { %v2330_v37 = vadd.f32 %v2159_v22, %v987_v36  ;;  %v1863_v38 = vpop.f32.mrb[10].mxu1 }
 0x306   :  { %v990_v39 = vpop.f32.mrb[11].mxu1  ;;  %v2333_v42 = vadd.f32 %v1863_v38, %v2159_v22 }
 0x307   :  { %v2336_v43 = vadd.f32 %v2159_v22, %v990_v39  ;;  %v1078_v46 = vmul.f32 %v2330_v37, %v2330_v37  ;;  %v1080_v22 = vmul.f32 %v2339_v45, %v2339_v45 }
 0x308   :  { %v1081_v49 = vmul.f32 %v2333_v42, %v2333_v42  ;;  %v1926_v52 = vpack.c.bf16 %v2333_v42, %v2339_v45 }
 0x309   :  { %v1923_v21 = vpack.c.bf16 %v2336_v43, %v2330_v37  ;;  %v1079_v48 = vmul.f32 %v2336_v43, %v2336_v43 }
 0x30a   :  { %v1932_v53 = vpack.c.bf16 %v1081_v49, %v1080_v22 }
 0x30b   :  { %v1929_v51 = vpack.c.bf16 %v1079_v48, %v1078_v46  ;;  %1924 = vmatpush3.bf16.msra.mxu0 %v1923_v21 }
 0x30c   :  { %1925 = vmatprep.subr.bf16.mxu0 %v2056_v20 }
 0x30d   :  { %1930 = vmatpush3.bf16.msra.mxu1 %v1929_v51 }
 0x30e   :  { %1931 = vmatprep.subr.bf16.mxu1 %v2056_v20  ;;  %v1169_v20 = vlaneseq }
 0x30f   :  { %1927 = vmatpush3.bf16.msra.mxu0 %v1926_v52 }
 0x310   :  { %v1170_v0 = vshrl.u32 %v1169_v20, 7 }
 0x311   :  { %1933 = vmatpush3.bf16.msra.mxu1 %v1932_v53 }
 0x312   :  { %1873 = vmatmul.mubr.msk.f32.vlgmr.msra.gmra.mrb[4].mxu0 %vm301_vm1, %v2059_v50  ;;  %v1171_v2 = vsub.s32 0, %v1170_v0 }
 0x314   :  { %1884 = vmatmul.mubr.msk.f32.vlgmr.msra.gmra.mrb[4].mxu1 %vm301_vm1, %v2059_v50 }
 0x3e5   :  { %v1073_v54 = vpop.f32.mrb[4].mxu0 }
 0x3e6   :  { %v1153_v55 = vmul.f32 0.0078125, %v1073_v54  ;;  %v1874_v56 = vpop.f32.mrb[5].mxu0 }
 0x3e7   :  { %v1148_v57 = vpop.f32.mrb[4].mxu1 }
 0x3e8   :  { %v1155_v58 = vmul.f32 %v1153_v55, %v1153_v55  ;;  %v1154_v59 = vmul.f32 0.0078125, %v1148_v57  ;;  %v1885_v60 = vpop.f32.mrb[5].mxu1 }
 0x3ea   :  { %v1156_v61 = vsub.f32 %v1154_v59, %v1155_v58 }
 0x3ec   :  { %v1157_v62 = vmax.f32 %v1156_v61, 0.0 }
 0x3ee   :  { %v1158_v63 = vadd.f32 1e-05, %v1157_v62 }
 0x3f0   :  { %1990 = vrsqrt.f32 %v1158_v63 }
 0x3fa   :  { %v1991_v3 = vpop.eup %1990 }
 0x3fb   :  { %v1161_v50 = vmul.f32 %v1991_v3, %v1160_v1 }
 0x3fd   :  { %v1163_v6 = vmul.f32 %v1161_v50, %v1153_v55  ;;  %v1172_v10 = vrot.slane %v1161_v50, %v1171_v2 }
 0x3ff   :  { %v1164_v11 = vsub.f32 %v1162_v5, %v1163_v6  ;;  %v1173_v12 = vmul.f32 %v1172_v10, %v2182_v40  ;;  %v1174_v13 = vmul.f32 %v1172_v10, %v2185_v41  ;;  %v1175_v14 = vmul.f32 %v1172_v10, %v2193_v44 }
 0x400   :  { %v1176_v15 = vmul.f32 %v1172_v10, %v2199_v47  ;;  %v1239_v17 = vmul.f32 %v1172_v10, %v2162_v25  ;;  %v1240_v18 = vmul.f32 %v1172_v10, %v2168_v31  ;;  %v1241_v19 = vmul.f32 %v1172_v10, %v2171_v34 }
 0x401   :  { %v1181_v16 = vrot.slane %v1164_v11, %v1171_v2  ;;  %v1242_v23 = vmul.f32 %v1172_v10, %v2165_v30  ;;  %v1300_v24 = vmul.f32 %v1172_v10, %v2264_v4  ;;  %v1301_v26 = vmul.f32 %v1172_v10, %v2270_v8 }
 0x402   :  { %v1302_v40 = vmul.f32 %v1172_v10, %v2273_v9  ;;  %v1303_v32 = vmul.f32 %v1172_v10, %v2267_v7  ;;  %v1361_v38 = vmul.f32 %v1172_v10, %v2330_v37  ;;  %v1362_v21 = vmul.f32 %v1172_v10, %v2336_v43 }
 0x403   :  { %v2376_v41 = vadd.f32 %v1181_v16, %v1173_v12  ;;  %v2378_v44 = vadd.f32 %v1181_v16, %v1174_v13  ;;  %v2380_v47 = vadd.f32 %v1181_v16, %v1175_v14  ;;  %v2382_v27 = vadd.f32 %v1181_v16, %v1176_v15 }
 0x404   :  { %v2384_v25 = vadd.f32 %v1239_v17, %v1181_v16  ;;  %v2386_v31 = vadd.f32 %v1240_v18, %v1181_v16  ;;  %v2388_v34 = vadd.f32 %v1241_v19, %v1181_v16  ;;  %v2390_v30 = vadd.f32 %v1242_v23, %v1181_v16 }
 0x405   :  { %v1531_v4 = vmul.f32 -1.442695, %v2376_v41  ;;  %v1532_v8 = vmul.f32 -1.442695, %v2378_v44  ;;  %v1533_v9 = vmul.f32 -1.442695, %v2380_v47  ;;  %v2395_v28 = vadd.f32 %v1300_v24, %v1181_v16 }
 0x406   :  { %v1534_v29 = vmul.f32 -1.442695, %v2382_v27  ;;  %v2399_v33 = vadd.f32 %v1301_v26, %v1181_v16  ;;  %v1539_v35 = vmul.f32 -1.442695, %v2384_v25  ;;  %v2402_v36 = vadd.f32 %v1302_v40, %v1181_v16 }
 0x407   :  { %1992 = vpow2.f32 %v1531_v4  ;;  %v1540_v39 = vmul.f32 -1.442695, %v2386_v31  ;;  %v2406_v46 = vadd.f32 %v1303_v32, %v1181_v16  ;;  %v1541_v48 = vmul.f32 -1.442695, %v2388_v34 }
 0x408   :  { %1994 = vpow2.f32 %v1532_v8  ;;  %v1363_v7 = vmul.f32 %v1172_v10, %v2339_v45  ;;  %v1364_v49 = vmul.f32 %v1172_v10, %v2333_v42  ;;  %v1542_v51 = vmul.f32 -1.442695, %v2390_v30 }
 0x409   :  { %1996 = vpow2.f32 %v1533_v9  ;;  %v2413_v22 = vadd.f32 %v1361_v38, %v1181_v16  ;;  %v2415_v37 = vadd.f32 %v1362_v21, %v1181_v16  ;;  %v1551_v52 = vmul.f32 -1.442695, %v2395_v28 }
 0x40a   :  { %1998 = vpow2.f32 %v1534_v29  ;;  %v2418_v53 = vadd.f32 %v1363_v7, %v1181_v16  ;;  %v2420_v43 = vadd.f32 %v1364_v49, %v1181_v16  ;;  %v1552_v54 = vmul.f32 -1.442695, %v2399_v33 }
 0x40b   :  { %2000 = vpow2.f32 %v1539_v35  ;;  %v1553_v42 = vmul.f32 -1.442695, %v2402_v36  ;;  %v1554_v45 = vmul.f32 -1.442695, %v2406_v46  ;;  %v1563_v55 = vmul.f32 -1.442695, %v2413_v22 }
 0x40c   :  { %2002 = vpow2.f32 %v1540_v39  ;;  %v1564_v17 = vmul.f32 -1.442695, %v2415_v37  ;;  %v1565_v23 = vmul.f32 -1.442695, %v2418_v53  ;;  %v1566_v26 = vmul.f32 -1.442695, %v2420_v43 }
 0x40d   :  { %2004 = vpow2.f32 %v1541_v48 }
 0x40e   :  { %2006 = vpow2.f32 %v1542_v51 }
 0x40f   :  { %2008 = vpow2.f32 %v1551_v52 }
 0x410   :  { %2010 = vpow2.f32 %v1552_v54 }
 0x411   :  { %v1993_v56 = vpop.eup %1992  ;;  %2012 = vpow2.f32 %v1553_v42 }
 0x412   :  { %v1995_v57 = vpop.eup %1994  ;;  %v1199_v58 = vadd.f32 1.0, %v1993_v56  ;;  %2014 = vpow2.f32 %v1554_v45 }
 0x413   :  { %v1997_v59 = vpop.eup %1996  ;;  %v1200_v60 = vadd.f32 1.0, %v1995_v57  ;;  %2016 = vpow2.f32 %v1563_v55 }
 0x414   :  { %v1999_v61 = vpop.eup %1998  ;;  %v1201_v62 = vadd.f32 1.0, %v1997_v59  ;;  %2018 = vrcp.f32 %v1199_v58 }
 0x415   :  { %v2001_v63 = vpop.eup %2000  ;;  %v1202_v20 = vadd.f32 1.0, %v1999_v61  ;;  %2020 = vrcp.f32 %v1200_v60 }
 0x416   :  { %v2003_v0 = vpop.eup %2002  ;;  %2022 = vrcp.f32 %v1201_v62  ;;  %v1259_v1 = vadd.f32 1.0, %v2001_v63 }
 0x417   :  { %v2005_v2 = vpop.eup %2004  ;;  %2024 = vrcp.f32 %v1202_v20  ;;  %v1260_v3 = vadd.f32 1.0, %v2003_v0 }
 0x418   :  { %v2007_v50 = vpop.eup %2006  ;;  %v1261_v5 = vadd.f32 1.0, %v2005_v2  ;;  %2026 = vrcp.f32 %v1259_v1 }
 0x419   :  { %v2009_v6 = vpop.eup %2008  ;;  %v1262_v10 = vadd.f32 1.0, %v2007_v50  ;;  %2028 = vrcp.f32 %v1260_v3 }
 0x41a   :  { %v2011_v11 = vpop.eup %2010  ;;  %2030 = vrcp.f32 %v1261_v5  ;;  %v1320_v12 = vadd.f32 1.0, %v2009_v6 }
 0x41b   :  { %v2013_v13 = vpop.eup %2012  ;;  %2032 = vrcp.f32 %v1262_v10  ;;  %v1321_v14 = vadd.f32 1.0, %v2011_v11 }
 0x41c   :  { %v2015_v15 = vpop.eup %2014  ;;  %v1322_v16 = vadd.f32 1.0, %v2013_v13  ;;  %2034 = vrcp.f32 %v1320_v12 }
 0x41d   :  { %v2017_v18 = vpop.eup %2016  ;;  %v1323_v19 = vadd.f32 1.0, %v2015_v15  ;;  %2036 = vrcp.f32 %v1321_v14 }
 0x41e   :  { %v2019_v24 = vpop.eup %2018  ;;  %2038 = vrcp.f32 %v1322_v16  ;;  %v1381_v51 = vadd.f32 1.0, %v2017_v18 }
 0x41f   :  { %v2021_v40 = vpop.eup %2020  ;;  %v1211_v4 = vmul.f32 %v2019_v24, %v2376_v41  ;;  %2040 = vrcp.f32 %v1323_v19 }
 0x420   :  { %v2023_v8 = vpop.eup %2022  ;;  %v1212_v9 = vmul.f32 %v2021_v40, %v2378_v44  ;;  %2042 = vpow2.f32 %v1564_v17 }
 0x421   :  { %v2025_v29 = vpop.eup %2024  ;;  %v1213_v32 = vmul.f32 %v2023_v8, %v2380_v47  ;;  %2044 = vpow2.f32 %v1565_v23 }
 0x422   :  { %v2027_v35 = vpop.eup %2026  ;;  %v1214_v38 = vmul.f32 %v2025_v29, %v2382_v27  ;;  %v1594_v39 = vpack.c.bf16 %v1212_v9, %v1211_v4  ;;  %2046 = vpow2.f32 %v1566_v26 }
 0x423   :  { %v2029_v21 = vpop.eup %2028  ;;  %v1271_v48 = vmul.f32 %v2027_v35, %v2384_v25  ;;  %2048 = vrcp.f32 %v1381_v51 }
 0x424   :  { %v2031_v7 = vpop.eup %2030  ;;  %1595 = vst [vmem:[%s2474_s5] sm:$0xff] %v1594_v39   ;;  %v1599_v41 = vpack.c.bf16 %v1214_v38, %v1213_v32  ;;  %v1272_v44 = vmul.f32 %v2029_v21, %v2386_v31 }
 0x425   :  { %v2033_v49 = vpop.eup %2032  ;;  %v1273_v47 = vmul.f32 %v2031_v7, %v2388_v34 }
 0x426   :  { %v2035_v52 = vpop.eup %2034  ;;  %1631 = vst [vmem:[%s2474_s5 + $0x8] sm:$0xff] %v1599_v41   ;;  %v1274_v27 = vmul.f32 %v2033_v49, %v2390_v30  ;;  %v1604_v25 = vpack.c.bf16 %v1272_v44, %v1271_v48 }
 0x427   :  { %v2037_v54 = vpop.eup %2036  ;;  %v1332_v42 = vmul.f32 %v2035_v52, %v2395_v28 }
 0x428   :  { %v2039_v45 = vpop.eup %2038  ;;  %1632 = vst [vmem:[%s2474_s5 + $0x10] sm:$0xff] %v1604_v25   ;;  %v1609_v31 = vpack.c.bf16 %v1274_v27, %v1273_v47  ;;  %v1333_v34 = vmul.f32 %v2037_v54, %v2399_v33 }
 0x429   :  { %v2041_v55 = vpop.eup %2040  ;;  %v1334_v56 = vmul.f32 %v2039_v45, %v2402_v36 }
 0x42a   :  { %v2043_v57 = vpop.eup %2042  ;;  %1633 = vst [vmem:[%s2474_s5 + $0x18] sm:$0xff] %v1609_v31   ;;  %v1335_v30 = vmul.f32 %v2041_v55, %v2406_v46  ;;  %v1614_v28 = vpack.c.bf16 %v1333_v34, %v1332_v42 }
 0x42b   :  { %v2045_v58 = vpop.eup %2044  ;;  %v1382_v59 = vadd.f32 1.0, %v2043_v57 }
 0x42c   :  { %v2047_v60 = vpop.eup %2046  ;;  %1634 = vst [vmem:[%s2474_s5 + $0x20] sm:$0xff] %v1614_v28   ;;  %v1619_v33 = vpack.c.bf16 %v1335_v30, %v1334_v56  ;;  %v1383_v61 = vadd.f32 1.0, %v2045_v58 }
 0x42d   :  { %v1384_v62 = vadd.f32 1.0, %v2047_v60  ;;  %2050 = vrcp.f32 %v1382_v59  ;;  %v2049_v36 = vpop.eup %2048 }
 0x42e   :  { %1635 = vst [vmem:[%s2474_s5 + $0x28] sm:$0xff] %v1619_v33   ;;  %2052 = vrcp.f32 %v1383_v61  ;;  %v1393_v46 = vmul.f32 %v2049_v36, %v2413_v22 }
 0x42f   :  { %2054 = vrcp.f32 %v1384_v62 }
 0x437   :  { %v2051_v63 = vpop.eup %2050 }
 0x438   :  { %v2053_v20 = vpop.eup %2052  ;;  %v1394_v0 = vmul.f32 %v2051_v63, %v2415_v37 }
 0x439   :  { %v2055_v1 = vpop.eup %2054  ;;  %v1395_v2 = vmul.f32 %v2053_v20, %v2418_v53 }
 0x43a   :  { %v1396_v3 = vmul.f32 %v2055_v1, %v2420_v43  ;;  %v1624_v50 = vpack.c.bf16 %v1394_v0, %v1393_v46 }
 0x43c   :  { %1636 = vst [vmem:[%s2474_s5 + $0x30] sm:$0xff] %v1624_v50   ;;  %v1629_v5 = vpack.c.bf16 %v1396_v3, %v1395_v2 }
 0x43e   :  { %1637 = vst [vmem:[%s2474_s5 + $0x38] sm:$0xff] %v1629_v5  }

// kernel: vqvae_forward.13
= control target key start
LH: loop header
LB: loop body
LE: loop exit
PB: predicated region body
PF: predicated region fallthrough
CT: control target
= control target key end

     0   :  { %s903_s12 = smov 0   ;;  %s1037_s0 = inlined_call_operand.vmem [shape: bf16[512,128], index: 0, kind: input, shape index: {}]   ;;  %s1038_s1 = inlined_call_operand.vmem [shape: bf16[128,128], index: 1, kind: input, shape index: {}]   ;;  %s1039_s2 = inlined_call_operand.vmem [shape: f32[1,128], index: 2, kind: input, shape index: {}]   ;;  %s1040_s3 = inlined_call_operand.vmem [shape: f32[512,128], index: 3, kind: output, shape index: {}]  }
   0x1 LB: > { %s655_s13 = sadd.s32 4294967295, %s881_s12   ;;  %p659_p0 = scmp.ge.s32.totalorder %s881_s12, 1  ;;  %s881_s12 = sphi %s903_s12, %s13_s12  }
   0x2   : > { %p138_p1 = scmp.lt.s32.totalorder %s881_s12, 3 }
   0x4   : > { %p139_p2 = pnand %p659_p0, %p138_p1 }
   0x5   : > { %v787_v0 = vld [vmem:[%s1038_s1] sm:$0xff] (!%p139_p2)   ;;  %s660_s16 = sshll.u32 (!%p139_p2), %s655_s13, 5  ;;  %v788_v1 = vld [vmem:[%s1038_s1 + $0x8] sm:$0xff] (!%p139_p2)   ;;  %v789_v2 = vld [vmem:[%s1038_s1 + $0x10] sm:$0xff] (!%p139_p2)  }
   0x6   : > { %142 = sbr.rel (%p139_p2) target bundleno = 298 (0x12a), region = 32  ;;  %p163_p3 = scmp.lt.s32.totalorder (!%p139_p2), %s660_s16, 63  ;;  %715 = vmatprep.subr.bf16.mxu0 (!%p139_p2), %v787_v0  ;;  %763 = vmatprep.subr.bf16.mxu1 (!%p139_p2), %v787_v0  ;;  %v790_v3 = vld [vmem:[%s1038_s1 + $0x18] sm:$0xff] (!%p139_p2)   ;;  %v791_v6 = vld [vmem:[%s1038_s1 + $0x20] sm:$0xff] (!%p139_p2)   ;;  %v792_v7 = vld [vmem:[%s1038_s1 + $0x28] sm:$0xff] (!%p139_p2)  }
   0x7   : > { %716 = vmatpush3.bf16.msra.mxu0 (!%p139_p2), %v787_v0  ;;  %771 = vmatpush3.bf16.msra.mxu1 (!%p139_p2), %v787_v0  ;;  %v793_v8 = vld [vmem:[%s1038_s1 + $0x30] sm:$0xff] (!%p139_p2)   ;;  %v794_v9 = vld [vmem:[%s1038_s1 + $0x38] sm:$0xff] (!%p139_p2)   ;;  %v962_v24 = vld [vmem:[%s1039_s2] ss:$0 sm:$0xff] (!%p139_p2) }
   0x8   : > { %717 = vmatprep.subr.bf16.mxu0 (!%p139_p2), %v788_v1  ;;  %764 = vmatprep.subr.bf16.mxu1 (!%p139_p2), %v788_v1 }
   0xb   : > { %718 = vmatpush3.bf16.msra.mxu0 (!%p139_p2), %v788_v1  ;;  %772 = vmatpush3.bf16.msra.mxu1 (!%p139_p2), %v788_v1 }
   0xc   : > { %719 = vmatprep.subr.bf16.mxu0 (!%p139_p2), %v789_v2  ;;  %765 = vmatprep.subr.bf16.mxu1 (!%p139_p2), %v789_v2 }
   0xd   : > { %s1042_s16 = smov (!%p163_p3, %s660_s16), 63 }
   0xe   : > { %s661_s21 = sshll.u32 %s1042_s16, 2  ;;  %s663_s10 = sshll.u32 %s1042_s16, 3 }
   0xf   : > { %s926_s24 = scalar_lea.vmem %s1037_s0, %s661_s21  ;;  %720 = vmatpush3.bf16.msra.mxu0 %v789_v2  ;;  %773 = vmatpush3.bf16.msra.mxu1 %v789_v2  ;;  %s980_s14 = scalar_lea.vmem %s1040_s3, %s663_s10 }
  0x10   : > { %v795_v4 = vld [vmem:[%s926_s24] sm:$0xff]   ;;  %721 = vmatprep.subr.bf16.mxu0 %v790_v3  ;;  %766 = vmatprep.subr.bf16.mxu1 %v790_v3  ;;  %v797_v10 = vld [vmem:[%s926_s24 + $0x8] sm:$0xff]   ;;  %v799_v12 = vld [vmem:[%s926_s24 + $0x10] sm:$0xff]  }
  0x11   : > { %v796_v5 = vld [vmem:[%s926_s24 + $0x40] sm:$0xff]   ;;  %731 = vmatprep.mubr.bf16.mxu0 %v795_v4  ;;  %v798_v11 = vld [vmem:[%s926_s24 + $0x48] sm:$0xff]   ;;  %v800_v13 = vld [vmem:[%s926_s24 + $0x50] sm:$0xff]  }
  0x12   : > { %747 = vmatprep.mubr.bf16.mxu1 %v796_v5  ;;  %v801_v14 = vld [vmem:[%s926_s24 + $0x18] sm:$0xff]   ;;  %v803_v16 = vld [vmem:[%s926_s24 + $0x20] sm:$0xff]   ;;  %v805_v18 = vld [vmem:[%s926_s24 + $0x28] sm:$0xff]  }
  0x13   : > { %722 = vmatpush3.bf16.msra.mxu0 %v790_v3  ;;  %774 = vmatpush3.bf16.msra.mxu1 %v790_v3  ;;  %v802_v15 = vld [vmem:[%s926_s24 + $0x58] sm:$0xff]   ;;  %v804_v17 = vld [vmem:[%s926_s24 + $0x60] sm:$0xff]   ;;  %v806_v19 = vld [vmem:[%s926_s24 + $0x68] sm:$0xff]  }
  0x14   : > { %723 = vmatprep.subr.bf16.mxu0 %v791_v6  ;;  %767 = vmatprep.subr.bf16.mxu1 %v791_v6  ;;  %v807_v20 = vld [vmem:[%s926_s24 + $0x30] sm:$0xff]   ;;  %v809_v22 = vld [vmem:[%s926_s24 + $0x38] sm:$0xff]  }
  0x15   : > { %v808_v21 = vld [vmem:[%s926_s24 + $0x70] sm:$0xff]   ;;  %v810_v23 = vld [vmem:[%s926_s24 + $0x78] sm:$0xff]  }
  0x17   : > { %724 = vmatpush3.bf16.msra.mxu0 %v791_v6  ;;  %775 = vmatpush3.bf16.msra.mxu1 %v791_v6 }
  0x18   : > { %725 = vmatprep.subr.bf16.mxu0 %v792_v7  ;;  %768 = vmatprep.subr.bf16.mxu1 %v792_v7 }
  0x1b   : > { %726 = vmatpush3.bf16.msra.mxu0 %v792_v7  ;;  %776 = vmatpush3.bf16.msra.mxu1 %v792_v7 }
  0x1c   : > { %727 = vmatprep.subr.bf16.mxu0 %v793_v8  ;;  %769 = vmatprep.subr.bf16.mxu1 %v793_v8 }
  0x1f   : > { %728 = vmatpush3.bf16.msra.mxu0 %v793_v8  ;;  %777 = vmatpush3.bf16.msra.mxu1 %v793_v8 }
  0x20   : > { %729 = vmatprep.subr.bf16.mxu0 %v794_v9  ;;  %770 = vmatprep.subr.bf16.mxu1 %v794_v9 }
  0x23   : > { %730 = vmatpush3.bf16.msra.mxu0 %v794_v9  ;;  %778 = vmatpush3.bf16.msra.mxu1 %v794_v9 }
  0x26   : > { %732 = vmatmul.mubr.bf16.vlgmr.msra.gmra.mrb[0].mxu0 %v797_v10  ;;  %748 = vmatmul.mubr.bf16.vlgmr.msra.gmra.mrb[0].mxu1 %v798_v11 }
  0x27   : > { %735 = vmatprep.mubr.bf16.mxu0 %v799_v12  ;;  %751 = vmatprep.mubr.bf16.mxu1 %v800_v13 }
  0x2e   : > { %736 = vmatmul.mubr.bf16.gmra.mrb[4].mxu0 %v801_v14  ;;  %752 = vmatmul.mubr.bf16.gmra.mrb[4].mxu1 %v802_v15 }
  0x2f   : > { %739 = vmatprep.mubr.bf16.mxu0 %v803_v16  ;;  %755 = vmatprep.mubr.bf16.mxu1 %v804_v17 }
  0x36   : > { %740 = vmatmul.mubr.bf16.gmra.mrb[8].mxu0 %v805_v18  ;;  %756 = vmatmul.mubr.bf16.gmra.mrb[8].mxu1 %v806_v19 }
  0x37   : > { %743 = vmatprep.mubr.bf16.mxu0 %v807_v20  ;;  %759 = vmatprep.mubr.bf16.mxu1 %v808_v21 }
  0x3e   : > { %744 = vmatmul.mubr.bf16.gmra.mrb[12].mxu0 %v809_v22  ;;  %760 = vmatmul.mubr.bf16.gmra.mrb[12].mxu1 %v810_v23 }
  0xf9   : > { %v733_v25 = vpop.f32.mrb[0].mxu0  ;;  %v749_v26 = vpop.f32.mrb[0].mxu1 }
  0xfa   : > { %v417_v27 = vadd.f32 %v733_v25, %v962_v24  ;;  %v481_v28 = vadd.f32 %v749_v26, %v962_v24  ;;  %v408_v29 = vpop.f32.mrb[1].mxu0  ;;  %v472_v30 = vpop.f32.mrb[1].mxu1 }
  0xfb   : > { %v409_v31 = vadd.f32 %v962_v24, %v408_v29  ;;  %v473_v32 = vadd.f32 %v962_v24, %v472_v30  ;;  %v734_v33 = vpop.f32.mrb[2].mxu0  ;;  %v750_v34 = vpop.f32.mrb[2].mxu1 }
  0xfc   : > { %811 = vtanh.f32 %v417_v27  ;;  %v420_v35 = vadd.f32 %v734_v33, %v962_v24  ;;  %v411_v36 = vpop.f32.mrb[3].mxu0  ;;  %v475_v37 = vpop.f32.mrb[3].mxu1  ;;  %v484_v38 = vadd.f32 %v750_v34, %v962_v24 }
  0xfd   : > { %813 = vtanh.f32 %v481_v28  ;;  %v412_v39 = vadd.f32 %v962_v24, %v411_v36  ;;  %v476_v40 = vadd.f32 %v962_v24, %v475_v37 }
  0xfe   : > { %815 = vtanh.f32 %v409_v31 }
  0xff   : > { %817 = vtanh.f32 %v473_v32 }
 0x100   : > { %819 = vtanh.f32 %v420_v35 }
 0x101   : > { %821 = vtanh.f32 %v484_v38  ;;  %v737_v41 = vpop.f32.mrb[4].mxu0  ;;  %v753_v42 = vpop.f32.mrb[4].mxu1 }
 0x102   : > { %823 = vtanh.f32 %v412_v39  ;;  %v433_v43 = vadd.f32 %v737_v41, %v962_v24  ;;  %v497_v44 = vadd.f32 %v753_v42, %v962_v24  ;;  %v424_v45 = vpop.f32.mrb[5].mxu0  ;;  %v488_v46 = vpop.f32.mrb[5].mxu1 }
 0x103   : > { %825 = vtanh.f32 %v476_v40  ;;  %v425_v47 = vadd.f32 %v962_v24, %v424_v45  ;;  %v489_v48 = vadd.f32 %v962_v24, %v488_v46  ;;  %v738_v49 = vpop.f32.mrb[6].mxu0  ;;  %v754_v50 = vpop.f32.mrb[6].mxu1 }
 0x104   : > { %827 = vtanh.f32 %v433_v43  ;;  %v436_v51 = vadd.f32 %v738_v49, %v962_v24  ;;  %v427_v52 = vpop.f32.mrb[7].mxu0  ;;  %v491_v53 = vpop.f32.mrb[7].mxu1  ;;  %v500_v54 = vadd.f32 %v754_v50, %v962_v24 }
 0x105   : > { %829 = vtanh.f32 %v497_v44  ;;  %v428_v56 = vadd.f32 %v962_v24, %v427_v52  ;;  %v492_v58 = vadd.f32 %v962_v24, %v491_v53 }
 0x106   : > { %v812_v55 = vpop.eup %811  ;;  %831 = vtanh.f32 %v425_v47 }
 0x107   : > { %v814_v57 = vpop.eup %813  ;;  %569 = vst [vmem:[%s980_s14 + $0x10] sm:$0xff] %v812_v55  ;;  %833 = vtanh.f32 %v489_v48 }
 0x108   : > { %v816_v59 = vpop.eup %815  ;;  %585 = vst [vmem:[%s980_s14 + $0x90] sm:$0xff] %v814_v57  ;;  %835 = vtanh.f32 %v436_v51 }
 0x109   : > { %v818_v60 = vpop.eup %817  ;;  %567 = vst [vmem:[%s980_s14] sm:$0xff] %v816_v59  ;;  %837 = vtanh.f32 %v500_v54  ;;  %v741_v61 = vpop.f32.mrb[8].mxu0 }
 0x10a   : > { %v757_v62 = vpop.f32.mrb[8].mxu1  ;;  %v820_v63 = vpop.eup %819  ;;  %583 = vst [vmem:[%s980_s14 + $0x80] sm:$0xff] %v818_v60  ;;  %839 = vtanh.f32 %v428_v56  ;;  %v449_v0 = vadd.f32 %v741_v61, %v962_v24 }
 0x10b   : > { %v513_v1 = vadd.f32 %v757_v62, %v962_v24  ;;  %v440_v2 = vpop.f32.mrb[9].mxu0  ;;  %v504_v3 = vpop.f32.mrb[9].mxu1  ;;  %570 = vst [vmem:[%s980_s14 + $0x18] sm:$0xff] %v820_v63  ;;  %841 = vtanh.f32 %v492_v58 }
 0x10c   : > { %v822_v4 = vpop.eup %821  ;;  %v441_v5 = vadd.f32 %v962_v24, %v440_v2  ;;  %v505_v6 = vadd.f32 %v962_v24, %v504_v3  ;;  %v742_v7 = vpop.f32.mrb[10].mxu0  ;;  %843 = vtanh.f32 %v449_v0 }
 0x10d   : > { %v758_v8 = vpop.f32.mrb[10].mxu1  ;;  %v824_v9 = vpop.eup %823  ;;  %586 = vst [vmem:[%s980_s14 + $0x98] sm:$0xff] %v822_v4  ;;  %v452_v10 = vadd.f32 %v742_v7, %v962_v24  ;;  %845 = vtanh.f32 %v513_v1 }
 0x10e   : > { %v443_v11 = vpop.f32.mrb[11].mxu0  ;;  %v507_v12 = vpop.f32.mrb[11].mxu1  ;;  %568 = vst [vmem:[%s980_s14 + $0x8] sm:$0xff] %v824_v9  ;;  %v516_v14 = vadd.f32 %v758_v8, %v962_v24  ;;  %847 = vtanh.f32 %v441_v5 }
 0x10f   : > { %v826_v13 = vpop.eup %825  ;;  %v444_v16 = vadd.f32 %v962_v24, %v443_v11  ;;  %849 = vtanh.f32 %v505_v6  ;;  %v508_v18 = vadd.f32 %v962_v24, %v507_v12 }
 0x110   : > { %v828_v15 = vpop.eup %827  ;;  %584 = vst [vmem:[%s980_s14 + $0x88] sm:$0xff] %v826_v13  ;;  %851 = vtanh.f32 %v452_v10 }
 0x111   : > { %v830_v17 = vpop.eup %829  ;;  %573 = vst [vmem:[%s980_s14 + $0x30] sm:$0xff] %v828_v15  ;;  %853 = vtanh.f32 %v516_v14  ;;  %v745_v21 = vpop.f32.mrb[12].mxu0 }
 0x112   : > { %v832_v19 = vpop.eup %831  ;;  %589 = vst [vmem:[%s980_s14 + $0xb0] sm:$0xff] %v830_v17  ;;  %v761_v22 = vpop.f32.mrb[12].mxu1  ;;  %855 = vtanh.f32 %v444_v16  ;;  %v465_v25 = vadd.f32 %v745_v21, %v962_v24 }
 0x113   : > { %v834_v20 = vpop.eup %833  ;;  %571 = vst [vmem:[%s980_s14 + $0x20] sm:$0xff] %v832_v19  ;;  %v529_v26 = vadd.f32 %v761_v22, %v962_v24  ;;  %v456_v27 = vpop.f32.mrb[13].mxu0  ;;  %857 = vtanh.f32 %v508_v18 }
 0x114   : > { %v836_v23 = vpop.eup %835  ;;  %587 = vst [vmem:[%s980_s14 + $0xa0] sm:$0xff] %v834_v20  ;;  %v520_v28 = vpop.f32.mrb[13].mxu1  ;;  %v457_v30 = vadd.f32 %v962_v24, %v456_v27  ;;  %859 = vtanh.f32 %v465_v25 }
 0x115   : > { %v838_v29 = vpop.eup %837  ;;  %574 = vst [vmem:[%s980_s14 + $0x38] sm:$0xff] %v836_v23  ;;  %v521_v31 = vadd.f32 %v962_v24, %v520_v28  ;;  %v746_v32 = vpop.f32.mrb[14].mxu0  ;;  %861 = vtanh.f32 %v529_v26 }
 0x116   : > { %v762_v33 = vpop.f32.mrb[14].mxu1  ;;  %v840_v34 = vpop.eup %839  ;;  %590 = vst [vmem:[%s980_s14 + $0xb8] sm:$0xff] %v838_v29  ;;  %v468_v35 = vadd.f32 %v746_v32, %v962_v24  ;;  %863 = vtanh.f32 %v457_v30 }
 0x117   : > { %v459_v36 = vpop.f32.mrb[15].mxu0  ;;  %v523_v37 = vpop.f32.mrb[15].mxu1  ;;  %572 = vst [vmem:[%s980_s14 + $0x28] sm:$0xff] %v840_v34  ;;  %v532_v39 = vadd.f32 %v762_v33, %v962_v24  ;;  %865 = vtanh.f32 %v521_v31 }
 0x118   : > { %v842_v38 = vpop.eup %841  ;;  %v460_v41 = vadd.f32 %v962_v24, %v459_v36  ;;  %v524_v43 = vadd.f32 %v962_v24, %v523_v37  ;;  %867 = vtanh.f32 %v468_v35 }
 0x119   : > { %v844_v40 = vpop.eup %843  ;;  %588 = vst [vmem:[%s980_s14 + $0xa8] sm:$0xff] %v842_v38  ;;  %869 = vtanh.f32 %v532_v39 }
 0x11a   : > { %v846_v42 = vpop.eup %845  ;;  %577 = vst [vmem:[%s980_s14 + $0x50] sm:$0xff] %v844_v40  ;;  %871 = vtanh.f32 %v460_v41 }
 0x11b   : > { %v848_v44 = vpop.eup %847  ;;  %593 = vst [vmem:[%s980_s14 + $0xd0] sm:$0xff] %v846_v42  ;;  %873 = vtanh.f32 %v524_v43 }
 0x11c   : > { %v850_v45 = vpop.eup %849  ;;  %575 = vst [vmem:[%s980_s14 + $0x40] sm:$0xff] %v848_v44 }
 0x11d   : > { %v852_v46 = vpop.eup %851  ;;  %591 = vst [vmem:[%s980_s14 + $0xc0] sm:$0xff] %v850_v45 }
 0x11e   : > { %v854_v47 = vpop.eup %853  ;;  %578 = vst [vmem:[%s980_s14 + $0x58] sm:$0xff] %v852_v46 }
 0x11f   : > { %v856_v24 = vpop.eup %855  ;;  %594 = vst [vmem:[%s980_s14 + $0xd8] sm:$0xff] %v854_v47 }
 0x120   : > { %v858_v48 = vpop.eup %857  ;;  %576 = vst [vmem:[%s980_s14 + $0x48] sm:$0xff] %v856_v24 }
 0x121   : > { %v860_v49 = vpop.eup %859  ;;  %592 = vst [vmem:[%s980_s14 + $0xc8] sm:$0xff] %v858_v48 }
 0x122   : > { %v862_v50 = vpop.eup %861  ;;  %581 = vst [vmem:[%s980_s14 + $0x70] sm:$0xff] %v860_v49 }
 0x123   : > { %v864_v51 = vpop.eup %863  ;;  %597 = vst [vmem:[%s980_s14 + $0xf0] sm:$0xff] %v862_v50 }
 0x124   : > { %v866_v52 = vpop.eup %865  ;;  %579 = vst [vmem:[%s980_s14 + $0x60] sm:$0xff] %v864_v51 }
 0x125   : > { %v868_v53 = vpop.eup %867  ;;  %595 = vst [vmem:[%s980_s14 + $0xe0] sm:$0xff] %v866_v52 }
 0x126   : > { %v870_v54 = vpop.eup %869  ;;  %582 = vst [vmem:[%s980_s14 + $0x78] sm:$0xff] %v868_v53 }
 0x127   : > { %v872_v55 = vpop.eup %871  ;;  %598 = vst [vmem:[%s980_s14 + $0xf8] sm:$0xff] %v870_v54 }
 0x128   : > { %v874_v56 = vpop.eup %873  ;;  %580 = vst [vmem:[%s980_s14 + $0x68] sm:$0xff] %v872_v55 }
 0x129   : > { %596 = vst [vmem:[%s980_s14 + $0xe8] sm:$0xff] %v874_v56 }
 0x12a PF: > { %s13_s12 = sadd.s32 1, %s881_s12  }
 0x12b   : > { %p10_p4 = scmp.ge.s32.totalorder %s13_s12, 4  }
 0x12d   :  { %12 = sbr.rel (!%p10_p4) target bundleno = 1 (0x1), region = 62 }

// kernel: vqvae_forward.12
= control target key start
LH: loop header
LB: loop body
LE: loop exit
PB: predicated region body
PF: predicated region fallthrough
CT: control target
= control target key end

     0   :  { %vm116_vm0 = vcmask 523264   ;;  %v4213_v24 = vmov 0.0|0.0   ;;  %vm4214_vm1 = vmmov 0   ;;  %v4215_v25 = vmov 0.0   ;;  %s5526_s1 = inlined_call_operand.vmem [shape: bf16[4,64,128], index: 1, kind: input, shape index: {}]   ;;  %s5527_s0 = inlined_call_operand.vmem [shape: bf16[4,128,64], index: 0, kind: input, shape index: {}]   ;;  %s5528_s2 = inlined_call_operand.vmem [shape: f32[1,128], index: 2, kind: input, shape index: {}]   ;;  %s5529_s3 = inlined_call_operand.vmem [shape: f32[1,128], index: 3, kind: input, shape index: {}]   ;;  %s5530_s4 = inlined_call_operand.vmem [shape: f32[1,128], index: 4, kind: input, shape index: {}]   ;;  %s5531_s5 = inlined_call_operand.vmem [shape: bf16[4,128,128], index: 5, kind: output, shape index: {}]  }
   0x1   :  { %v3907_v0 = vld [vmem:[%s5526_s1 + $0x20] sm:$0xff]   ;;  %v3908_v1 = vld [vmem:[%s5526_s1 + $0x28] sm:$0xff]   ;;  %v3909_v2 = vld [vmem:[%s5526_s1 + $0x30] sm:$0xff]  }
   0x2   :  { %3347 = vmatprep.subr.bf16.mxu1 %v3907_v0  ;;  %v3911_v3 = vld [vmem:[%s5527_s0 + $0x40] sm:$0xff]   ;;  %v3910_v4 = vld [vmem:[%s5526_s1 + $0x38] sm:$0xff]   ;;  %v3918_v6 = vld [vmem:[%s5526_s1 + $0x8] sm:$0xff]  }
   0x3   :  { %3348 = vmatpush3.bf16.msra.mxu1 %v3907_v0  ;;  %3355 = vmatprep.mubr.msk.bf16.mxu1 %vm116_vm0, %v3911_v3  ;;  %v3915_v5 = vld [vmem:[%s5526_s1] sm:$0xff]   ;;  %v3919_v7 = vld [vmem:[%s5526_s1 + $0x10] sm:$0xff]   ;;  %v3912_v8 = vld [vmem:[%s5527_s0 + $0x48] sm:$0xff]  }
   0x4   :  { %3349 = vmatprep.subr.bf16.mxu1 %v3908_v1  ;;  %3323 = vmatprep.subr.bf16.mxu0 %v3915_v5  ;;  %v3913_v9 = vld [vmem:[%s5527_s0 + $0x50] sm:$0xff]   ;;  %v3922_v10 = vld [vmem:[%s5526_s1 + $0x18] sm:$0xff]   ;;  %v3923_v11 = vld [vmem:[%s5527_s0] sm:$0xff]  }
   0x5   :  { %3324 = vmatpush3.bf16.msra.mxu0 %v3915_v5  ;;  %3331 = vmatprep.mubr.msk.bf16.mxu0 %vm116_vm0, %v3923_v11  ;;  %v3914_v12 = vld [vmem:[%s5527_s0 + $0x58] sm:$0xff]   ;;  %v3916_v13 = vld [vmem:[%s5527_s0 + $0x60] sm:$0xff]   ;;  %v3924_v14 = vld [vmem:[%s5527_s0 + $0x8] sm:$0xff]  }
   0x6   :  { %3325 = vmatprep.subr.bf16.mxu0 %v3918_v6  ;;  %v3925_v15 = vld [vmem:[%s5527_s0 + $0x10] sm:$0xff]   ;;  %v3917_v16 = vld [vmem:[%s5527_s0 + $0x68] sm:$0xff]   ;;  %v3926_v17 = vld [vmem:[%s5527_s0 + $0x18] sm:$0xff]  }
   0x7   :  { %3350 = vmatpush3.bf16.msra.mxu1 %v3908_v1  ;;  %v3920_v18 = vld [vmem:[%s5527_s0 + $0x70] sm:$0xff]   ;;  %v3927_v19 = vld [vmem:[%s5527_s0 + $0x20] sm:$0xff]   ;;  %v3921_v20 = vld [vmem:[%s5527_s0 + $0x78] sm:$0xff]  }
   0x8   :  { %3351 = vmatprep.subr.bf16.mxu1 %v3909_v2  ;;  %v3928_v21 = vld [vmem:[%s5527_s0 + $0x28] sm:$0xff]   ;;  %v3929_v22 = vld [vmem:[%s5527_s0 + $0x30] sm:$0xff]   ;;  %v3930_v23 = vld [vmem:[%s5527_s0 + $0x38] sm:$0xff]  }
   0x9   :  { %3326 = vmatpush3.bf16.msra.mxu0 %v3918_v6  ;;  %v4344_v26 = vld [vmem:[%s5528_s2] ss:$0 sm:$0xff] }
   0xa   :  { %3327 = vmatprep.subr.bf16.mxu0 %v3919_v7 }
   0xb   :  { %3352 = vmatpush3.bf16.msra.mxu1 %v3909_v2 }
   0xc   :  { %3353 = vmatprep.subr.bf16.mxu1 %v3910_v4 }
   0xd   :  { %3328 = vmatpush3.bf16.msra.mxu0 %v3919_v7 }
   0xe   :  { %3329 = vmatprep.subr.bf16.mxu0 %v3922_v10 }
   0xf   :  { %3354 = vmatpush3.bf16.msra.mxu1 %v3910_v4 }
  0x10   :  { %3747 = vmatprep.subr.bf16.mxu1 %v4213_v24 }
  0x11   :  { %3330 = vmatpush3.bf16.msra.mxu0 %v3922_v10 }
  0x12   :  { %3356 = vmatmul.mubr.msk.bf16.vlgmr.msra.gmra.mrb[0].mxu1 %vm116_vm0, %v3912_v8  ;;  %3699 = vmatprep.subr.bf16.mxu0 %v4213_v24 }
  0x13   :  { %3359 = vmatprep.mubr.msk.bf16.mxu1 %vm116_vm0, %v3913_v9 }
  0x14   :  { %3332 = vmatmul.mubr.msk.bf16.vlgmr.msra.gmra.mrb[0].mxu0 %vm116_vm0, %v3924_v14 }
  0x15   :  { %3335 = vmatprep.mubr.msk.bf16.mxu0 %vm116_vm0, %v3925_v15 }
  0x1a   :  { %3360 = vmatmul.mubr.msk.bf16.gmra.mrb[4].mxu1 %vm116_vm0, %v3914_v12 }
  0x1b   :  { %3363 = vmatprep.mubr.msk.bf16.mxu1 %vm116_vm0, %v3916_v13 }
  0x1c   :  { %3336 = vmatmul.mubr.msk.bf16.gmra.mrb[4].mxu0 %vm116_vm0, %v3926_v17 }
  0x1d   :  { %3339 = vmatprep.mubr.msk.bf16.mxu0 %vm116_vm0, %v3927_v19 }
  0x22   :  { %3364 = vmatmul.mubr.msk.bf16.gmra.mrb[8].mxu1 %vm116_vm0, %v3917_v16 }
  0x23   :  { %3367 = vmatprep.mubr.msk.bf16.mxu1 %vm116_vm0, %v3920_v18 }
  0x24   :  { %3340 = vmatmul.mubr.msk.bf16.gmra.mrb[8].mxu0 %vm116_vm0, %v3928_v21 }
  0x25   :  { %3343 = vmatprep.mubr.msk.bf16.mxu0 %vm116_vm0, %v3929_v22 }
  0x2a   :  { %3368 = vmatmul.mubr.msk.bf16.gmra.mrb[12].mxu1 %vm116_vm0, %v3921_v20 }
  0x2b   :  { %3473 = vmatprep.mubr.msk.f32.mxu1 %vm4214_vm1, %v4215_v25 }
  0x2c   :  { %3344 = vmatmul.mubr.msk.bf16.gmra.mrb[12].mxu0 %vm116_vm0, %v3930_v23 }
  0x2d   :  { %3403 = vmatprep.mubr.msk.f32.mxu0 %vm4214_vm1, %v4215_v25 }
  0xe5   :  { %v3357_v27 = vpop.f32.mrb[0].mxu1 }
  0xe6   :  { %v418_v28 = vpop.f32.mrb[1].mxu1  ;;  %v4356_v34 = vadd.f32 %v3357_v27, %v4344_v26 }
  0xe7   :  { %v4347_v29 = vadd.f32 %v4344_v26, %v418_v28  ;;  %v3358_v30 = vpop.f32.mrb[2].mxu1  ;;  %v4366_v41 = vpop.f32.mrb[0].mxu0 }
  0xe8   :  { %v421_v31 = vpop.f32.mrb[3].mxu1  ;;  %v4350_v32 = vadd.f32 %v3358_v30, %v4344_v26  ;;  %v4369_v43 = vpop.f32.mrb[1].mxu0  ;;  %v640_v44 = vmul.f32 %v4356_v34, %v4356_v34 }
  0xe9   :  { %v4353_v33 = vadd.f32 %v4344_v26, %v421_v31  ;;  %v638_v35 = vmul.f32 %v4347_v29, %v4347_v29  ;;  %v4378_v48 = vpop.f32.mrb[2].mxu0 }
  0xea   :  { %v641_v38 = vmul.f32 %v4350_v32, %v4350_v32  ;;  %v3703_v45 = vpack.c.bf16 %v4350_v32, %v4356_v34  ;;  %v4381_v50 = vpop.f32.mrb[3].mxu0 }
  0xeb   :  { %v3700_v36 = vpack.c.bf16 %v4353_v33, %v4347_v29  ;;  %v639_v37 = vmul.f32 %v4353_v33, %v4353_v33 }
  0xec   :  { %v3751_v51 = vpack.c.bf16 %v641_v38, %v640_v44 }
  0xed   :  { %v3748_v39 = vpack.c.bf16 %v639_v37, %v638_v35  ;;  %v3361_v40 = vpop.f32.mrb[4].mxu1  ;;  %3701 = vmatpush3.bf16.msra.mxu0 %v3700_v36 }
  0xee   :  { %v434_v42 = vpop.f32.mrb[5].mxu1  ;;  %3702 = vmatprep.subr.bf16.mxu0 %v4213_v24  ;;  %v4391_v54 = vadd.f32 %v3361_v40, %v4344_v26 }
  0xef   :  { %v4376_v46 = vadd.f32 %v4344_v26, %v434_v42  ;;  %v3362_v47 = vpop.f32.mrb[6].mxu1  ;;  %3749 = vmatpush3.bf16.msra.mxu1 %v3748_v39  ;;  %v4402_v61 = vpop.f32.mrb[4].mxu0 }
  0xf0   :  { %v437_v49 = vpop.f32.mrb[7].mxu1  ;;  %3750 = vmatprep.subr.bf16.mxu1 %v4213_v24  ;;  %v4384_v52 = vadd.f32 %v3362_v47, %v4344_v26  ;;  %v4405_v63 = vpop.f32.mrb[5].mxu0  ;;  %v644_v0 = vmul.f32 %v4391_v54, %v4391_v54  ;;  %v4480_v47 = vadd.f32 %v4344_v26, %v4381_v50  ;;  %v4495_v50 = vadd.f32 %v4366_v41, %v4344_v26 }
  0xf1   :  { %v4387_v53 = vadd.f32 %v4344_v26, %v437_v49  ;;  %3704 = vmatpush3.bf16.msra.mxu0 %v3703_v45  ;;  %v642_v55 = vmul.f32 %v4376_v46, %v4376_v46  ;;  %v4414_v4 = vpop.f32.mrb[6].mxu0  ;;  %v4476_v45 = vadd.f32 %v4344_v26, %v4369_v43 }
  0xf2   :  { %3705 = vmatprep.subr.bf16.mxu0 %v4213_v24  ;;  %v645_v58 = vmul.f32 %v4384_v52, %v4384_v52  ;;  %v3709_v1 = vpack.c.bf16 %v4384_v52, %v4391_v54  ;;  %v4417_v6 = vpop.f32.mrb[7].mxu0 }
  0xf3   :  { %v3706_v56 = vpack.c.bf16 %v4387_v53, %v4376_v46  ;;  %v643_v57 = vmul.f32 %v4387_v53, %v4387_v53  ;;  %3752 = vmatpush3.bf16.msra.mxu1 %v3751_v51  ;;  %v3724_v41 = vpack.c.bf16 %v4480_v47, %v4476_v45 }
  0xf4   :  { %3753 = vmatprep.subr.bf16.mxu1 %v4213_v24  ;;  %v3757_v7 = vpack.c.bf16 %v645_v58, %v644_v0 }
  0xf5   :  { %v3754_v59 = vpack.c.bf16 %v643_v57, %v642_v55  ;;  %v3365_v60 = vpop.f32.mrb[8].mxu1  ;;  %3707 = vmatpush3.bf16.msra.mxu0 %v3706_v56  ;;  %v4499_v57 = vadd.f32 %v4378_v48, %v4344_v26  ;;  %v256_v48 = vmul.f32 %v4495_v50, %v4495_v50 }
  0xf6   :  { %v450_v62 = vpop.f32.mrb[9].mxu1  ;;  %3708 = vmatprep.subr.bf16.mxu0 %v4213_v24  ;;  %v4427_v10 = vadd.f32 %v3365_v60, %v4344_v26  ;;  %v254_v60 = vmul.f32 %v4476_v45, %v4476_v45 }
  0xf7   :  { %v4412_v2 = vadd.f32 %v4344_v26, %v450_v62  ;;  %v3366_v3 = vpop.f32.mrb[10].mxu1  ;;  %3755 = vmatpush3.bf16.msra.mxu1 %v3754_v59  ;;  %v4438_v17 = vpop.f32.mrb[8].mxu0  ;;  %v255_v62 = vmul.f32 %v4480_v47, %v4480_v47  ;;  %v257_v0 = vmul.f32 %v4499_v57, %v4499_v57 }
  0xf8   :  { %v453_v5 = vpop.f32.mrb[11].mxu1  ;;  %3756 = vmatprep.subr.bf16.mxu1 %v4213_v24  ;;  %v4420_v8 = vadd.f32 %v3366_v3, %v4344_v26  ;;  %v4441_v19 = vpop.f32.mrb[9].mxu0  ;;  %v648_v20 = vmul.f32 %v4427_v10, %v4427_v10 }
  0xf9   :  { %v4423_v9 = vadd.f32 %v4344_v26, %v453_v5  ;;  %3710 = vmatpush3.bf16.msra.mxu0 %v3709_v1  ;;  %v646_v11 = vmul.f32 %v4412_v2, %v4412_v2  ;;  %v4450_v27 = vpop.f32.mrb[10].mxu0  ;;  %v5532_v1 = vmov 1.0   ;;  %v3772_v3 = vpack.c.bf16 %v255_v62, %v254_v60 }
  0xfa   :  { %3711 = vmatprep.subr.bf16.mxu0 %v4213_v24  ;;  %v649_v14 = vmul.f32 %v4420_v8, %v4420_v8  ;;  %v3715_v21 = vpack.c.bf16 %v4420_v8, %v4427_v10  ;;  %v4453_v30 = vpop.f32.mrb[11].mxu0  ;;  %v4517_v5 = vadd.f32 %v4344_v26, %v4405_v63  ;;  %v4533_v63 = vadd.f32 %v4402_v61, %v4344_v26 }
  0xfb   :  { %v3712_v12 = vpack.c.bf16 %v4423_v9, %v4412_v2  ;;  %v647_v13 = vmul.f32 %v4423_v9, %v4423_v9  ;;  %3758 = vmatpush3.bf16.msra.mxu1 %v3757_v7  ;;  %v4521_v7 = vadd.f32 %v4344_v26, %v4417_v6  ;;  %v3775_v6 = vpack.c.bf16 %v257_v0, %v256_v48 }
  0xfc   :  { %3759 = vmatprep.subr.bf16.mxu1 %v4213_v24  ;;  %v3763_v31 = vpack.c.bf16 %v649_v14, %v648_v20  ;;  %v4558_v20 = vadd.f32 %v4344_v26, %v4453_v30 }
  0xfd   :  { %v3760_v15 = vpack.c.bf16 %v647_v13, %v646_v11  ;;  %v3369_v16 = vpop.f32.mrb[12].mxu1  ;;  %3713 = vmatpush3.bf16.msra.mxu0 %v3712_v12  ;;  %v3727_v11 = vpack.c.bf16 %v4499_v57, %v4495_v50  ;;  %v258_v12 = vmul.f32 %v4517_v5, %v4517_v5  ;;  %v4540_v13 = vadd.f32 %v4414_v4, %v4344_v26 }
  0xfe   :  { %v466_v18 = vpop.f32.mrb[13].mxu1  ;;  %3714 = vmatprep.subr.bf16.mxu0 %v4213_v24  ;;  %v4463_v37 = vadd.f32 %v3369_v16, %v4344_v26  ;;  %v259_v14 = vmul.f32 %v4521_v7, %v4521_v7  ;;  %v3730_v61 = vpack.c.bf16 %v4521_v7, %v4517_v5 }
  0xff   :  { %v4448_v22 = vadd.f32 %v4344_v26, %v466_v18  ;;  %v3370_v23 = vpop.f32.mrb[14].mxu1  ;;  %3761 = vmatpush3.bf16.msra.mxu1 %v3760_v15  ;;  %v4482_v49 = vpop.f32.mrb[12].mxu0  ;;  %v260_v15 = vmul.f32 %v4533_v63, %v4533_v63  ;;  %v261_v16 = vmul.f32 %v4540_v13, %v4540_v13  ;;  %v4554_v18 = vadd.f32 %v4344_v26, %v4441_v19 }
 0x100   :  { %v469_v28 = vpop.f32.mrb[15].mxu1  ;;  %3762 = vmatprep.subr.bf16.mxu1 %v4213_v24  ;;  %v4456_v35 = vadd.f32 %v3370_v23, %v4344_v26  ;;  %v4485_v51 = vpop.f32.mrb[13].mxu0  ;;  %v652_v55 = vmul.f32 %v4463_v37, %v4463_v37  ;;  %v3778_v4 = vpack.c.bf16 %v259_v14, %v258_v12  ;;  %v4565_v23 = vadd.f32 %v4438_v17, %v4344_v26  ;;  %v3934_v12 = vld [vmem:[%s5526_s1 + $0x58] sm:$0xff]   ;;  %v3936_v14 = vld [vmem:[%s5527_s0 + $0x88] sm:$0xff]  }
 0x101   :  { %v4459_v36 = vadd.f32 %v4344_v26, %v469_v28  ;;  %3716 = vmatpush3.bf16.msra.mxu0 %v3715_v21  ;;  %v650_v38 = vmul.f32 %v4448_v22, %v4448_v22  ;;  %v4491_v43 = vpop.f32.mrb[14].mxu0  ;;  %v3733_v21 = vpack.c.bf16 %v4540_v13, %v4533_v63  ;;  %v4569_v28 = vadd.f32 %v4450_v27, %v4344_v26 }
 0x102   :  { %3717 = vmatprep.subr.bf16.mxu0 %v4213_v24  ;;  %v653_v42 = vmul.f32 %v4456_v35, %v4456_v35  ;;  %v3721_v56 = vpack.c.bf16 %v4456_v35, %v4463_v37  ;;  %v226_v58 = vpop.f32.mrb[15].mxu0  ;;  %v3781_v19 = vpack.c.bf16 %v261_v16, %v260_v15  ;;  %v262_v30 = vmul.f32 %v4554_v18, %v4554_v18  ;;  %v3938_v15 = vld [vmem:[%s5527_s0 + $0x98] sm:$0xff]   ;;  %v3939_v16 = vld [vmem:[%s5527_s0 + $0xa0] sm:$0xff]  }
 0x103   :  { %v3718_v39 = vpack.c.bf16 %v4459_v36, %v4448_v22  ;;  %v651_v40 = vmul.f32 %v4459_v36, %v4459_v36  ;;  %3764 = vmatpush3.bf16.msra.mxu1 %v3763_v31  ;;  %v263_v31 = vmul.f32 %v4558_v20, %v4558_v20  ;;  %v3736_v17 = vpack.c.bf16 %v4558_v20, %v4554_v18 }
 0x104   :  { %3765 = vmatprep.subr.bf16.mxu1 %v4213_v24  ;;  %v3769_v59 = vpack.c.bf16 %v653_v42, %v652_v55  ;;  %v264_v27 = vmul.f32 %v4565_v23, %v4565_v23  ;;  %v4589_v42 = vadd.f32 %v4344_v26, %v226_v58  ;;  %v4603_v58 = vadd.f32 %v4491_v43, %v4344_v26 }
 0x105   :  { %v3766_v44 = vpack.c.bf16 %v651_v40, %v650_v38  ;;  %3719 = vmatpush3.bf16.msra.mxu0 %v3718_v39  ;;  %v265_v38 = vmul.f32 %v4569_v28, %v4569_v28  ;;  %v3784_v39 = vpack.c.bf16 %v263_v31, %v262_v30  ;;  %v4586_v40 = vadd.f32 %v4344_v26, %v4485_v51 }
 0x106   :  { %3720 = vmatprep.subr.bf16.mxu0 %v4213_v24  ;;  %v269_v62 = vmul.f32 %v4603_v58, %v4603_v58 }
 0x107   :  { %3767 = vmatpush3.bf16.msra.mxu1 %v3766_v44  ;;  %v3739_v44 = vpack.c.bf16 %v4569_v28, %v4565_v23  ;;  %v3787_v55 = vpack.c.bf16 %v265_v38, %v264_v27  ;;  %v266_v51 = vmul.f32 %v4586_v40, %v4586_v40  ;;  %v3742_v60 = vpack.c.bf16 %v4589_v42, %v4586_v40 }
 0x108   :  { %3768 = vmatprep.subr.bf16.mxu1 %v4213_v24 }
 0x109   :  { %3722 = vmatpush3.bf16.msra.mxu0 %v3721_v56  ;;  %v4597_v56 = vadd.f32 %v4482_v49, %v4344_v26 }
 0x10a   :  { %3723 = vmatprep.subr.bf16.mxu0 %v4213_v24 }
 0x10b   :  { %3770 = vmatpush3.bf16.msra.mxu1 %v3769_v59  ;;  %v267_v59 = vmul.f32 %v4589_v42, %v4589_v42  ;;  %v268_v49 = vmul.f32 %v4597_v56, %v4597_v56  ;;  %v3745_v48 = vpack.c.bf16 %v4603_v58, %v4597_v56 }
 0x10c   :  { %3404 = vmatmul.mubr.f32.vlgmr.msra.gmra.mrb[16].mxu0 %v5532_v1  ;;  %3771 = vmatprep.subr.bf16.mxu1 %v4213_v24 }
 0x10d   :  { %3725 = vmatpush3.bf16.msra.mxu0 %v3724_v41  ;;  %3438 = vmatprep.mubr.msk.f32.mxu0 %vm4214_vm1, %v4215_v25  ;;  %v3790_v43 = vpack.c.bf16 %v267_v59, %v266_v51  ;;  %v3931_v41 = vld [vmem:[%s5526_s1 + $0x40] sm:$0xff]   ;;  %v3793_v0 = vpack.c.bf16 %v269_v62, %v268_v49 }
 0x10e   :  { %3474 = vmatmul.mubr.f32.vlgmr.msra.gmra.mrb[16].mxu1 %v5532_v1  ;;  %3726 = vmatprep.subr.bf16.mxu0 %v4213_v24 }
 0x10f   :  { %3773 = vmatpush3.bf16.msra.mxu1 %v3772_v3  ;;  %3508 = vmatprep.mubr.msk.f32.mxu1 %vm4214_vm1, %v4215_v25  ;;  %v3935_v3 = vld [vmem:[%s5527_s0 + $0x80] sm:$0xff]  }
 0x110   :  { %3774 = vmatprep.subr.bf16.mxu1 %v4213_v24 }
 0x111   :  { %3728 = vmatpush3.bf16.msra.mxu0 %v3727_v11  ;;  %v3932_v11 = vld [vmem:[%s5526_s1 + $0x48] sm:$0xff]  }
 0x112   :  { %3729 = vmatprep.subr.bf16.mxu0 %v4213_v24 }
 0x113   :  { %3776 = vmatpush3.bf16.msra.mxu1 %v3775_v6  ;;  %v3933_v6 = vld [vmem:[%s5526_s1 + $0x50] sm:$0xff]  }
 0x114   :  { %3777 = vmatprep.subr.bf16.mxu1 %v4213_v24 }
 0x115   :  { %3731 = vmatpush3.bf16.msra.mxu0 %v3730_v61  ;;  %v3937_v61 = vld [vmem:[%s5527_s0 + $0x90] sm:$0xff]  }
 0x116   :  { %3732 = vmatprep.subr.bf16.mxu0 %v4213_v24 }
 0x117   :  { %3779 = vmatpush3.bf16.msra.mxu1 %v3778_v4  ;;  %v3940_v4 = vld [vmem:[%s5527_s0 + $0xa8] sm:$0xff]  }
 0x118   :  { %3780 = vmatprep.subr.bf16.mxu1 %v4213_v24 }
 0x119   :  { %3734 = vmatpush3.bf16.msra.mxu0 %v3733_v21  ;;  %v3941_v21 = vld [vmem:[%s5527_s0 + $0xb0] sm:$0xff]  }
 0x11a   :  { %3735 = vmatprep.subr.bf16.mxu0 %v4213_v24 }
 0x11b   :  { %3782 = vmatpush3.bf16.msra.mxu1 %v3781_v19  ;;  %v3942_v19 = vld [vmem:[%s5527_s0 + $0xb8] sm:$0xff]  }
 0x11c   :  { %3783 = vmatprep.subr.bf16.mxu1 %v4213_v24 }
 0x11d   :  { %3737 = vmatpush3.bf16.msra.mxu0 %v3736_v17 }
 0x11e   :  { %3738 = vmatprep.subr.bf16.mxu0 %v4213_v24 }
 0x11f   :  { %3785 = vmatpush3.bf16.msra.mxu1 %v3784_v39 }
 0x120   :  { %3786 = vmatprep.subr.bf16.mxu1 %v4213_v24 }
 0x121   :  { %3740 = vmatpush3.bf16.msra.mxu0 %v3739_v44 }
 0x122   :  { %3741 = vmatprep.subr.bf16.mxu0 %v4213_v24 }
 0x123   :  { %3788 = vmatpush3.bf16.msra.mxu1 %v3787_v55 }
 0x124   :  { %3789 = vmatprep.subr.bf16.mxu1 %v4213_v24 }
 0x125   :  { %3743 = vmatpush3.bf16.msra.mxu0 %v3742_v60 }
 0x126   :  { %3744 = vmatprep.subr.bf16.mxu0 %v4213_v24 }
 0x127   :  { %3791 = vmatpush3.bf16.msra.mxu1 %v3790_v43 }
 0x128   :  { %3792 = vmatprep.subr.bf16.mxu1 %v4213_v24 }
 0x129   :  { %3746 = vmatpush3.bf16.msra.mxu0 %v3745_v48 }
 0x12a   :  { %3511 = vmatprep.subr.bf16.mxu0 %v3931_v41 }
 0x12b   :  { %3794 = vmatpush3.bf16.msra.mxu1 %v3793_v0 }
 0x12c   :  { %3439 = vmatmul.mubr.f32.vlgmr.msra.gmra.mrb[16].mxu0 %v5532_v1  ;;  %3819 = vmatprep.subr.bf16.mxu1 %v4213_v24 }
 0x12d   :  { %3512 = vmatpush3.bf16.msra.mxu0 %v3931_v41  ;;  %3519 = vmatprep.mubr.msk.bf16.mxu0 %vm116_vm0, %v3935_v3 }
 0x12e   :  { %3513 = vmatprep.subr.bf16.mxu0 %v3932_v11  ;;  %3509 = vmatmul.mubr.f32.vlgmr.msra.gmra.mrb[16].mxu1 %v5532_v1 }
 0x12f   :  { %3602 = vmatprep.mubr.msk.f32.mxu1 %vm4214_vm1, %v4215_v25 }
 0x131   :  { %3514 = vmatpush3.bf16.msra.mxu0 %v3932_v11 }
 0x132   :  { %3515 = vmatprep.subr.bf16.mxu0 %v3933_v6 }
 0x135   :  { %3516 = vmatpush3.bf16.msra.mxu0 %v3933_v6 }
 0x136   :  { %3517 = vmatprep.subr.bf16.mxu0 %v3934_v12 }
 0x139   :  { %3518 = vmatpush3.bf16.msra.mxu0 %v3934_v12 }
 0x13a   :  { %3795 = vmatprep.subr.bf16.mxu0 %v4213_v24 }
 0x13c   :  { %3520 = vmatmul.mubr.msk.bf16.vlgmr.msra.gmra.mrb[20].mxu0 %vm116_vm0, %v3936_v14 }
 0x13d   :  { %3523 = vmatprep.mubr.msk.bf16.mxu0 %vm116_vm0, %v3937_v61 }
 0x144   :  { %3524 = vmatmul.mubr.msk.bf16.gmra.mrb[24].mxu0 %vm116_vm0, %v3938_v15 }
 0x145   :  { %3527 = vmatprep.mubr.msk.bf16.mxu0 %vm116_vm0, %v3939_v16 }
 0x14c   :  { %3528 = vmatmul.mubr.msk.bf16.gmra.mrb[28].mxu0 %vm116_vm0, %v3940_v4 }
 0x14d   :  { %3531 = vmatprep.mubr.msk.bf16.mxu0 %vm116_vm0, %v3941_v21 }
 0x154   :  { %3532 = vmatmul.mubr.msk.bf16.gmra.mrb[32].mxu0 %vm116_vm0, %v3942_v19 }
 0x155   :  { %3567 = vmatprep.mubr.msk.f32.mxu0 %vm4214_vm1, %v4215_v25 }
 0x20f   :  { %v3521_v30 = vpop.f32.mrb[20].mxu0 }
 0x210   :  { %v942_v31 = vpop.f32.mrb[21].mxu0  ;;  %v4681_v55 = vadd.f32 %v3521_v30, %v4344_v26 }
 0x211   :  { %v4672_v17 = vadd.f32 %v4344_v26, %v942_v31  ;;  %v3522_v27 = vpop.f32.mrb[22].mxu0 }
 0x212   :  { %v945_v38 = vpop.f32.mrb[23].mxu0  ;;  %v4675_v39 = vadd.f32 %v3522_v27, %v4344_v26  ;;  %v1095_v48 = vmul.f32 %v4681_v55, %v4681_v55 }
 0x213   :  { %v4678_v44 = vadd.f32 %v4344_v26, %v945_v38  ;;  %v1093_v51 = vmul.f32 %v4672_v17, %v4672_v17 }
 0x214   :  { %v1096_v49 = vmul.f32 %v4675_v39, %v4675_v39  ;;  %v3799_v0 = vpack.c.bf16 %v4675_v39, %v4681_v55 }
 0x215   :  { %v3796_v59 = vpack.c.bf16 %v4678_v44, %v4672_v17  ;;  %v1094_v60 = vmul.f32 %v4678_v44, %v4678_v44 }
 0x216   :  { %v3823_v12 = vpack.c.bf16 %v1096_v49, %v1095_v48 }
 0x217   :  { %v3820_v62 = vpack.c.bf16 %v1094_v60, %v1093_v51  ;;  %v3525_v43 = vpop.f32.mrb[24].mxu0  ;;  %3797 = vmatpush3.bf16.msra.mxu0 %v3796_v59 }
 0x218   :  { %v958_v41 = vpop.f32.mrb[25].mxu0  ;;  %3798 = vmatprep.subr.bf16.mxu0 %v4213_v24  ;;  %v4708_v15 = vadd.f32 %v3525_v43, %v4344_v26 }
 0x219   :  { %v4697_v3 = vadd.f32 %v4344_v26, %v958_v41  ;;  %v3526_v11 = vpop.f32.mrb[26].mxu0  ;;  %3821 = vmatpush3.bf16.msra.mxu1 %v3820_v62 }
 0x21a   :  { %v961_v6 = vpop.f32.mrb[27].mxu0  ;;  %3822 = vmatprep.subr.bf16.mxu1 %v4213_v24  ;;  %v4701_v14 = vadd.f32 %v3526_v11, %v4344_v26  ;;  %v1099_v38 = vmul.f32 %v4708_v15, %v4708_v15 }
 0x21b   :  { %v4704_v61 = vadd.f32 %v4344_v26, %v961_v6  ;;  %3800 = vmatpush3.bf16.msra.mxu0 %v3799_v0  ;;  %v1097_v16 = vmul.f32 %v4697_v3, %v4697_v3 }
 0x21c   :  { %3801 = vmatprep.subr.bf16.mxu0 %v4213_v24  ;;  %v1100_v19 = vmul.f32 %v4701_v14, %v4701_v14  ;;  %v3805_v51 = vpack.c.bf16 %v4701_v14, %v4708_v15 }
 0x21d   :  { %v3802_v4 = vpack.c.bf16 %v4704_v61, %v4697_v3  ;;  %v1098_v21 = vmul.f32 %v4704_v61, %v4704_v61  ;;  %3824 = vmatpush3.bf16.msra.mxu1 %v3823_v12 }
 0x21e   :  { %3825 = vmatprep.subr.bf16.mxu1 %v4213_v24  ;;  %v3829_v62 = vpack.c.bf16 %v1100_v19, %v1099_v38 }
 0x21f   :  { %v3826_v30 = vpack.c.bf16 %v1098_v21, %v1097_v16  ;;  %v3529_v31 = vpop.f32.mrb[28].mxu0  ;;  %3803 = vmatpush3.bf16.msra.mxu0 %v3802_v4 }
 0x220   :  { %v974_v27 = vpop.f32.mrb[29].mxu0  ;;  %3804 = vmatprep.subr.bf16.mxu0 %v4213_v24  ;;  %v4736_v48 = vadd.f32 %v3529_v31, %v4344_v26 }
 0x221   :  { %v4725_v59 = vadd.f32 %v4344_v26, %v974_v27  ;;  %v3530_v60 = vpop.f32.mrb[30].mxu0  ;;  %3827 = vmatpush3.bf16.msra.mxu1 %v3826_v30 }
 0x222   :  { %v977_v49 = vpop.f32.mrb[31].mxu0  ;;  %3828 = vmatprep.subr.bf16.mxu1 %v4213_v24  ;;  %v4729_v43 = vadd.f32 %v3530_v60, %v4344_v26  ;;  %v1103_v19 = vmul.f32 %v4736_v48, %v4736_v48 }
 0x223   :  { %v4732_v41 = vadd.f32 %v4344_v26, %v977_v49  ;;  %3806 = vmatpush3.bf16.msra.mxu0 %v3805_v51  ;;  %v1101_v0 = vmul.f32 %v4725_v59, %v4725_v59 }
 0x224   :  { %3807 = vmatprep.subr.bf16.mxu0 %v4213_v24  ;;  %v1104_v12 = vmul.f32 %v4729_v43, %v4729_v43  ;;  %v3811_v30 = vpack.c.bf16 %v4729_v43, %v4736_v48 }
 0x225   :  { %v3808_v11 = vpack.c.bf16 %v4732_v41, %v4725_v59  ;;  %v1102_v6 = vmul.f32 %v4732_v41, %v4732_v41  ;;  %3830 = vmatpush3.bf16.msra.mxu1 %v3829_v62 }
 0x226   :  { %3831 = vmatprep.subr.bf16.mxu1 %v4213_v24  ;;  %v3835_v51 = vpack.c.bf16 %v1104_v12, %v1103_v19  ;;  %v3943_v19 = vld [vmem:[%s5526_s1 + $0x60] sm:$0xff]  }
 0x227   :  { %v3832_v16 = vpack.c.bf16 %v1102_v6, %v1101_v0  ;;  %v3533_v4 = vpop.f32.mrb[32].mxu0  ;;  %3809 = vmatpush3.bf16.msra.mxu0 %v3808_v11 }
 0x228   :  { %v990_v21 = vpop.f32.mrb[33].mxu0  ;;  %3810 = vmatprep.subr.bf16.mxu0 %v4213_v24  ;;  %v4764_v62 = vadd.f32 %v3533_v4, %v4344_v26 }
 0x229   :  { %v4753_v31 = vadd.f32 %v4344_v26, %v990_v21  ;;  %v3534_v27 = vpop.f32.mrb[34].mxu0  ;;  %3833 = vmatpush3.bf16.msra.mxu1 %v3832_v16 }
 0x22a   :  { %v993_v38 = vpop.f32.mrb[35].mxu0  ;;  %3834 = vmatprep.subr.bf16.mxu1 %v4213_v24  ;;  %v4757_v60 = vadd.f32 %v3534_v27, %v4344_v26  ;;  %5557 = vst [vmem:[#allocation6_spill] sm:$0xff] %v4764_v62  ;;  %v1107_v4 = vmul.f32 %v4764_v62, %v4764_v62  ;;  %v3947_v27 = vld [vmem:[%s5527_s0 + $0xc0] sm:$0xff]  }
 0x22b   :  { %5554 = vst [vmem:[#allocation3_spill] sm:$0xff] %v4753_v31  ;;  %v4760_v49 = vadd.f32 %v4344_v26, %v993_v38  ;;  %3812 = vmatpush3.bf16.msra.mxu0 %v3811_v30  ;;  %v1105_v0 = vmul.f32 %v4753_v31, %v4753_v31  ;;  %v3944_v38 = vld [vmem:[%s5526_s1 + $0x68] sm:$0xff]  }
 0x22c   :  { %5555 = vst [vmem:[#allocation4_spill] sm:$0xff] %v4757_v60  ;;  %3813 = vmatprep.subr.bf16.mxu0 %v4213_v24  ;;  %v1108_v12 = vmul.f32 %v4757_v60, %v4757_v60  ;;  %v3817_v21 = vpack.c.bf16 %v4757_v60, %v4764_v62 }
 0x22d   :  { %5556 = vst [vmem:[#allocation5_spill] sm:$0xff] %v4760_v49  ;;  %v3814_v11 = vpack.c.bf16 %v4760_v49, %v4753_v31  ;;  %v1106_v6 = vmul.f32 %v4760_v49, %v4760_v49  ;;  %3836 = vmatpush3.bf16.msra.mxu1 %v3835_v51  ;;  %v3945_v51 = vld [vmem:[%s5526_s1 + $0x70] sm:$0xff]  }
 0x22e   :  { %3837 = vmatprep.subr.bf16.mxu1 %v4213_v24  ;;  %v3841_v30 = vpack.c.bf16 %v1108_v12, %v1107_v4  ;;  %v3950_v12 = vld [vmem:[%s5527_s0 + $0xd8] sm:$0xff]   ;;  %v3952_v4 = vld [vmem:[%s5527_s0 + $0xe8] sm:$0xff]  }
 0x22f   :  { %v3838_v16 = vpack.c.bf16 %v1106_v6, %v1105_v0  ;;  %3815 = vmatpush3.bf16.msra.mxu0 %v3814_v11  ;;  %v3946_v0 = vld [vmem:[%s5526_s1 + $0x78] sm:$0xff]   ;;  %v3948_v11 = vld [vmem:[%s5527_s0 + $0xc8] sm:$0xff]   ;;  %v3949_v6 = vld [vmem:[%s5527_s0 + $0xd0] sm:$0xff]  }
 0x230   :  { %3816 = vmatprep.subr.bf16.mxu0 %v4213_v24 }
 0x231   :  { %3839 = vmatpush3.bf16.msra.mxu1 %v3838_v16  ;;  %v3951_v16 = vld [vmem:[%s5527_s0 + $0xe0] sm:$0xff]  }
 0x232   :  { %3840 = vmatprep.subr.bf16.mxu1 %v4213_v24 }
 0x233   :  { %3818 = vmatpush3.bf16.msra.mxu0 %v3817_v21  ;;  %v3953_v21 = vld [vmem:[%s5527_s0 + $0xf0] sm:$0xff]  }
 0x234   :  { %3843 = vmatprep.subr.bf16.mxu0 %v4213_v24 }
 0x235   :  { %3842 = vmatpush3.bf16.msra.mxu1 %v3841_v30 }
 0x236   :  { %3605 = vmatprep.subr.bf16.mxu1 %v3943_v19  ;;  %3568 = vmatmul.mubr.f32.vlgmr.msra.gmra.mrb[16].mxu0 %v5532_v1 }
 0x237   :  { %3661 = vmatprep.mubr.msk.f32.mxu0 %vm4214_vm1, %v4215_v25 }
 0x238   :  { %3603 = vmatmul.mubr.f32.vlgmr.msra.gmra.mrb[16].mxu1 %v5532_v1 }
 0x239   :  { %3606 = vmatpush3.bf16.msra.mxu1 %v3943_v19  ;;  %3613 = vmatprep.mubr.msk.bf16.mxu1 %vm116_vm0, %v3947_v27  ;;  %v3954_v19 = vld [vmem:[%s5527_s0 + $0xf8] sm:$0xff]  }
 0x23a   :  { %3607 = vmatprep.subr.bf16.mxu1 %v3944_v38 }
 0x23d   :  { %3608 = vmatpush3.bf16.msra.mxu1 %v3944_v38 }
 0x23e   :  { %3609 = vmatprep.subr.bf16.mxu1 %v3945_v51 }
 0x241   :  { %3610 = vmatpush3.bf16.msra.mxu1 %v3945_v51 }
 0x242   :  { %3611 = vmatprep.subr.bf16.mxu1 %v3946_v0 }
 0x245   :  { %3612 = vmatpush3.bf16.msra.mxu1 %v3946_v0 }
 0x246   :  { %3867 = vmatprep.subr.bf16.mxu1 %v4213_v24 }
 0x248   :  { %3614 = vmatmul.mubr.msk.bf16.vlgmr.msra.gmra.mrb[20].mxu1 %vm116_vm0, %v3948_v11 }
 0x249   :  { %3617 = vmatprep.mubr.msk.bf16.mxu1 %vm116_vm0, %v3949_v6 }
 0x250   :  { %3618 = vmatmul.mubr.msk.bf16.gmra.mrb[24].mxu1 %vm116_vm0, %v3950_v12 }
 0x251   :  { %3621 = vmatprep.mubr.msk.bf16.mxu1 %vm116_vm0, %v3951_v16 }
 0x258   :  { %3622 = vmatmul.mubr.msk.bf16.gmra.mrb[28].mxu1 %vm116_vm0, %v3952_v4 }
 0x259   :  { %3625 = vmatprep.mubr.msk.bf16.mxu1 %vm116_vm0, %v3953_v21 }
 0x260   :  { %3626 = vmatmul.mubr.msk.bf16.gmra.mrb[32].mxu1 %vm116_vm0, %v3954_v19 }
 0x261   :  { %3696 = vmatprep.mubr.msk.f32.mxu1 %vm4214_vm1, %v4215_v25 }
 0x31b   :  { %v3615_v30 = vpop.f32.mrb[20].mxu1 }
 0x31c   :  { %v1328_v27 = vpop.f32.mrb[21].mxu1  ;;  %v4843_v12 = vadd.f32 %v3615_v30, %v4344_v26 }
 0x31d   :  { %v4834_v38 = vadd.f32 %v4344_v26, %v1328_v27  ;;  %v3616_v51 = vpop.f32.mrb[22].mxu1 }
 0x31e   :  { %v1331_v0 = vpop.f32.mrb[23].mxu1  ;;  %v4837_v11 = vadd.f32 %v3616_v51, %v4344_v26  ;;  %5561 = vst [vmem:[#allocation10_spill] sm:$0xff] %v4843_v12  ;;  %v1481_v30 = vmul.f32 %v4843_v12, %v4843_v12 }
 0x31f   :  { %5558 = vst [vmem:[#allocation7_spill] sm:$0xff] %v4834_v38  ;;  %v4840_v6 = vadd.f32 %v4344_v26, %v1331_v0  ;;  %v1479_v16 = vmul.f32 %v4834_v38, %v4834_v38 }
 0x320   :  { %5559 = vst [vmem:[#allocation8_spill] sm:$0xff] %v4837_v11  ;;  %v1482_v21 = vmul.f32 %v4837_v11, %v4837_v11  ;;  %v3847_v0 = vpack.c.bf16 %v4837_v11, %v4843_v12 }
 0x321   :  { %5560 = vst [vmem:[#allocation9_spill] sm:$0xff] %v4840_v6  ;;  %v3844_v25 = vpack.c.bf16 %v4840_v6, %v4834_v38  ;;  %v1480_v4 = vmul.f32 %v4840_v6, %v4840_v6 }
 0x323   :  { %v3868_v19 = vpack.c.bf16 %v1480_v4, %v1479_v16  ;;  %v3619_v27 = vpop.f32.mrb[24].mxu1  ;;  %3845 = vmatpush3.bf16.msra.mxu0 %v3844_v25  ;;  %v3871_v16 = vpack.c.bf16 %v1482_v21, %v1481_v30 }
 0x324   :  { %v1344_v51 = vpop.f32.mrb[25].mxu1  ;;  %3846 = vmatprep.subr.bf16.mxu0 %v4213_v24  ;;  %v4870_v11 = vadd.f32 %v3619_v27, %v4344_v26 }
 0x325   :  { %v4859_v1 = vadd.f32 %v4344_v26, %v1344_v51  ;;  %v3620_v38 = vpop.f32.mrb[26].mxu1  ;;  %3869 = vmatpush3.bf16.msra.mxu1 %v3868_v19 }
 0x326   :  { %v1347_v6 = vpop.f32.mrb[27].mxu1  ;;  %3870 = vmatprep.subr.bf16.mxu1 %v4213_v24  ;;  %v4863_v25 = vadd.f32 %v3620_v38, %v4344_v26  ;;  %5565 = vst [vmem:[#allocation14_spill] sm:$0xff] %v4870_v11 }
 0x327   :  { %5562 = vst [vmem:[#allocation11_spill] sm:$0xff] %v4859_v1  ;;  %v4866_v4 = vadd.f32 %v4344_v26, %v1347_v6  ;;  %3848 = vmatpush3.bf16.msra.mxu0 %v3847_v0  ;;  %v1483_v51 = vmul.f32 %v4859_v1, %v4859_v1  ;;  %v1485_v0 = vmul.f32 %v4870_v11, %v4870_v11 }
 0x328   :  { %5563 = vst [vmem:[#allocation12_spill] sm:$0xff] %v4863_v25  ;;  %3849 = vmatprep.subr.bf16.mxu0 %v4213_v24  ;;  %v1486_v38 = vmul.f32 %v4863_v25, %v4863_v25 }
 0x329   :  { %5564 = vst [vmem:[#allocation13_spill] sm:$0xff] %v4866_v4  ;;  %v3850_v19 = vpack.c.bf16 %v4866_v4, %v4859_v1  ;;  %v1484_v21 = vmul.f32 %v4866_v4, %v4866_v4  ;;  %3872 = vmatpush3.bf16.msra.mxu1 %v3871_v16  ;;  %v3853_v1 = vpack.c.bf16 %v4863_v25, %v4870_v11 }
 0x32a   :  { %3873 = vmatprep.subr.bf16.mxu1 %v4213_v24 }
 0x32b   :  { %v3874_v6 = vpack.c.bf16 %v1484_v21, %v1483_v51  ;;  %v3623_v30 = vpop.f32.mrb[28].mxu1  ;;  %3851 = vmatpush3.bf16.msra.mxu0 %v3850_v19  ;;  %v3877_v51 = vpack.c.bf16 %v1486_v38, %v1485_v0 }
 0x32c   :  { %v1360_v27 = vpop.f32.mrb[29].mxu1  ;;  %3852 = vmatprep.subr.bf16.mxu0 %v4213_v24  ;;  %v4898_v25 = vadd.f32 %v3623_v30, %v4344_v26 }
 0x32d   :  { %v4887_v4 = vadd.f32 %v4344_v26, %v1360_v27  ;;  %v3624_v16 = vpop.f32.mrb[30].mxu1  ;;  %3875 = vmatpush3.bf16.msra.mxu1 %v3874_v6 }
 0x32e   :  { %v1363_v12 = vpop.f32.mrb[31].mxu1  ;;  %3876 = vmatprep.subr.bf16.mxu1 %v4213_v24  ;;  %v4891_v19 = vadd.f32 %v3624_v16, %v4344_v26  ;;  %5569 = vst [vmem:[#allocation18_spill] sm:$0xff] %v4898_v25  ;;  %v1489_v16 = vmul.f32 %v4898_v25, %v4898_v25 }
 0x32f   :  { %5566 = vst [vmem:[#allocation15_spill] sm:$0xff] %v4887_v4  ;;  %v4894_v21 = vadd.f32 %v4344_v26, %v1363_v12  ;;  %3854 = vmatpush3.bf16.msra.mxu0 %v3853_v1  ;;  %v1487_v27 = vmul.f32 %v4887_v4, %v4887_v4 }
 0x330   :  { %5567 = vst [vmem:[#allocation16_spill] sm:$0xff] %v4891_v19  ;;  %3855 = vmatprep.subr.bf16.mxu0 %v4213_v24  ;;  %v1490_v1 = vmul.f32 %v4891_v19, %v4891_v19 }
 0x331   :  { %5568 = vst [vmem:[#allocation17_spill] sm:$0xff] %v4894_v21  ;;  %v3856_v6 = vpack.c.bf16 %v4894_v21, %v4887_v4  ;;  %v1488_v38 = vmul.f32 %v4894_v21, %v4894_v21  ;;  %3878 = vmatpush3.bf16.msra.mxu1 %v3877_v51  ;;  %v3859_v4 = vpack.c.bf16 %v4891_v19, %v4898_v25 }
 0x332   :  { %3879 = vmatprep.subr.bf16.mxu1 %v4213_v24 }
 0x333   :  { %v3880_v12 = vpack.c.bf16 %v1488_v38, %v1487_v27  ;;  %v3627_v0 = vpop.f32.mrb[32].mxu1  ;;  %3857 = vmatpush3.bf16.msra.mxu0 %v3856_v6  ;;  %v3883_v27 = vpack.c.bf16 %v1490_v1, %v1489_v16 }
 0x334   :  { %v1376_v30 = vpop.f32.mrb[33].mxu1  ;;  %3858 = vmatprep.subr.bf16.mxu0 %v4213_v24  ;;  %v4926_v19 = vadd.f32 %v3627_v0, %v4344_v26 }
 0x335   :  { %v4915_v21 = vadd.f32 %v4344_v26, %v1376_v30  ;;  %v3628_v51 = vpop.f32.mrb[34].mxu1  ;;  %3881 = vmatpush3.bf16.msra.mxu1 %v3880_v12 }
 0x336   :  { %v1379_v11 = vpop.f32.mrb[35].mxu1  ;;  %3882 = vmatprep.subr.bf16.mxu1 %v4213_v24  ;;  %v4919_v6 = vadd.f32 %v3628_v51, %v4344_v26  ;;  %5573 = vst [vmem:[#allocation22_spill] sm:$0xff] %v4926_v19  ;;  %v5574_v51 = vmov 1.0  }
 0x337   :  { %5570 = vst [vmem:[#allocation19_spill] sm:$0xff] %v4915_v21  ;;  %v4922_v38 = vadd.f32 %v4344_v26, %v1379_v11  ;;  %3860 = vmatpush3.bf16.msra.mxu0 %v3859_v4  ;;  %v1491_v30 = vmul.f32 %v4915_v21, %v4915_v21  ;;  %v1493_v26 = vmul.f32 %v4926_v19, %v4926_v19 }
 0x338   :  { %5571 = vst [vmem:[#allocation20_spill] sm:$0xff] %v4919_v6  ;;  %3861 = vmatprep.subr.bf16.mxu0 %v4213_v24  ;;  %v1494_v11 = vmul.f32 %v4919_v6, %v4919_v6  ;;  %v3865_v0 = vpack.c.bf16 %v4919_v6, %v4926_v19 }
 0x339   :  { %5572 = vst [vmem:[#allocation21_spill] sm:$0xff] %v4922_v38  ;;  %v3862_v12 = vpack.c.bf16 %v4922_v38, %v4915_v21  ;;  %v1492_v1 = vmul.f32 %v4922_v38, %v4922_v38  ;;  %3884 = vmatpush3.bf16.msra.mxu1 %v3883_v27 }
 0x33a   :  { %3885 = vmatprep.subr.bf16.mxu1 %v4213_v24  ;;  %v3889_v16 = vpack.c.bf16 %v1494_v11, %v1493_v26  ;;  %v1573_v11 = vld [vmem:[%s5529_s3] sm:$0x1] }
 0x33b   :  { %v3886_v4 = vpack.c.bf16 %v1492_v1, %v1491_v30  ;;  %3863 = vmatpush3.bf16.msra.mxu0 %v3862_v12 }
 0x33c   :  { %3864 = vmatprep.subr.bf16.mxu0 %v4213_v24 }
 0x33d   :  { %3887 = vmatpush3.bf16.msra.mxu1 %v3886_v4  ;;  %v1594_v4 = vlaneseq }
 0x33e   :  { %3888 = vmatprep.subr.bf16.mxu1 %v4213_v24 }
 0x33f   :  { %3866 = vmatpush3.bf16.msra.mxu0 %v3865_v0  ;;  %v1595_v24 = vshrl.u32 %v1594_v4, 7 }
 0x341   :  { %3890 = vmatpush3.bf16.msra.mxu1 %v3889_v16  ;;  %v1596_v16 = vsub.s32 0, %v1595_v24 }
 0x342   :  { %3662 = vmatmul.mubr.f32.vlgmr.msra.gmra.mrb[16].mxu0 %v5574_v51 }
 0x344   :  { %3697 = vmatmul.mubr.f32.vlgmr.msra.gmra.mrb[16].mxu1 %v5574_v51  ;;  %v1575_v51 = vld [vmem:[%s5530_s4] sm:$0x1] }
 0x415   :  { %v1474_v27 = vpop.f32.mrb[16].mxu0 }
 0x416   :  { %v1566_v30 = vmul.f32 0.001953125, %v1474_v27  ;;  %v3663_v12 = vpop.f32.mrb[17].mxu0 }
 0x417   :  { %v1561_v1 = vpop.f32.mrb[16].mxu1 }
 0x418   :  { %v1568_v38 = vmul.f32 %v1566_v30, %v1566_v30  ;;  %v1567_v21 = vmul.f32 0.001953125, %v1561_v1  ;;  %v3698_v25 = vpop.f32.mrb[17].mxu1 }
 0x41a   :  { %v1569_v60 = vsub.f32 %v1567_v21, %v1568_v38 }
 0x41c   :  { %v1570_v62 = vmax.f32 %v1569_v60, 0.0 }
 0x41e   :  { %v1571_v6 = vadd.f32 1e-05, %v1570_v62 }
 0x420   :  { %3955 = vrsqrt.f32 %v1571_v6 }
 0x42a   :  { %v3956_v26 = vpop.eup %3955 }
 0x42b   :  { %v1574_v0 = vmul.f32 %v3956_v26, %v1573_v11 }
 0x42d   :  { %v1576_v27 = vmul.f32 %v1574_v0, %v1566_v30  ;;  %v4951_v25 = vrot.slane %v1574_v0, %v1596_v16 }
 0x42f   :  { %v1577_v12 = vsub.f32 %v1575_v51, %v1576_v27  ;;  %v1598_v60 = vmul.f32 %v4951_v25, %v4476_v45  ;;  %v1599_v62 = vmul.f32 %v4951_v25, %v4480_v47  ;;  %v1600_v21 = vmul.f32 %v4951_v25, %v4495_v50 }
 0x430   :  { %v1601_v38 = vmul.f32 %v4951_v25, %v4499_v57  ;;  %v1602_v30 = vmul.f32 %v4951_v25, %v4517_v5  ;;  %v1603_v47 = vmul.f32 %v4951_v25, %v4521_v7  ;;  %v1604_v57 = vmul.f32 %v4951_v25, %v4533_v63 }
 0x431   :  { %v4959_v6 = vrot.slane %v1577_v12, %v1596_v16  ;;  %v1605_v24 = vmul.f32 %v4951_v25, %v4540_v13  ;;  %v1606_v11 = vmul.f32 %v4951_v25, %v4554_v18  ;;  %v1607_v51 = vmul.f32 %v4951_v25, %v4558_v20 }
 0x432   :  { %v1608_v27 = vmul.f32 %v4951_v25, %v4565_v23 }
 0x433   :  { %v4966_v1 = vadd.f32 %v4959_v6, %v1598_v60  ;;  %v4969_v4 = vadd.f32 %v4959_v6, %v1599_v62  ;;  %v4972_v45 = vadd.f32 %v4959_v6, %v1600_v21  ;;  %v4977_v50 = vadd.f32 %v4959_v6, %v1601_v38 }
 0x434   :  { %v4982_v5 = vadd.f32 %v4959_v6, %v1602_v30  ;;  %v4989_v26 = vadd.f32 %v4959_v6, %v1603_v47  ;;  %v4992_v7 = vadd.f32 %v4959_v6, %v1604_v57  ;;  %v5000_v13 = vadd.f32 %v4959_v6, %v1605_v24 }
 0x435   :  { %v2708_v0 = vmul.f32 -1.442695, %v4966_v1  ;;  %v2709_v16 = vmul.f32 -1.442695, %v4969_v4  ;;  %v2710_v63 = vmul.f32 -1.442695, %v4972_v45  ;;  %v5006_v12 = vadd.f32 %v4959_v6, %v1606_v11 }
 0x436   :  { %v2711_v18 = vmul.f32 -1.442695, %v4977_v50  ;;  %v2712_v60 = vmul.f32 -1.442695, %v4982_v5  ;;  %v1609_v62 = vmul.f32 %v4951_v25, %v4569_v28  ;;  %v5012_v21 = vadd.f32 %v4959_v6, %v1607_v51 }
 0x437   :  { %3957 = vpow2.f32 %v2708_v0  ;;  %v2713_v20 = vmul.f32 -1.442695, %v4989_v26  ;;  %v1610_v38 = vmul.f32 %v4951_v25, %v4586_v40  ;;  %v5018_v23 = vadd.f32 %v4959_v6, %v1608_v27 }
 0x438   :  { %3959 = vpow2.f32 %v2709_v16  ;;  %v2714_v30 = vmul.f32 -1.442695, %v4992_v7  ;;  %v1611_v47 = vmul.f32 %v4951_v25, %v4589_v42  ;;  %v5024_v28 = vadd.f32 %v4959_v6, %v1609_v62 }
 0x439   :  { %3961 = vpow2.f32 %v2710_v63  ;;  %v2715_v57 = vmul.f32 -1.442695, %v5000_v13  ;;  %v1612_v24 = vmul.f32 %v4951_v25, %v4597_v56  ;;  %v5030_v40 = vadd.f32 %v4959_v6, %v1610_v38 }
 0x43a   :  { %3963 = vpow2.f32 %v2711_v18  ;;  %v2716_v11 = vmul.f32 -1.442695, %v5006_v12  ;;  %v1613_v0 = vmul.f32 %v4951_v25, %v4603_v58  ;;  %v5036_v42 = vadd.f32 %v4959_v6, %v1611_v47 }
 0x43b   :  { %3965 = vpow2.f32 %v2712_v60  ;;  %v2717_v16 = vmul.f32 -1.442695, %v5012_v21  ;;  %v5040_v63 = vadd.f32 %v4959_v6, %v1612_v24  ;;  %v2718_v56 = vmul.f32 -1.442695, %v5018_v23 }
 0x43c   :  { %3967 = vpow2.f32 %v2713_v20  ;;  %v5044_v51 = vadd.f32 %v4959_v6, %v1613_v0  ;;  %v2719_v18 = vmul.f32 -1.442695, %v5024_v28  ;;  %v2720_v58 = vmul.f32 -1.442695, %v5030_v40 }
 0x43d   :  { %3969 = vpow2.f32 %v2714_v30  ;;  %v2721_v27 = vmul.f32 -1.442695, %v5036_v42  ;;  %v2722_v62 = vmul.f32 -1.442695, %v5040_v63 }
 0x43e   :  { %3971 = vpow2.f32 %v2715_v57  ;;  %v2723_v38 = vmul.f32 -1.442695, %v5044_v51 }
 0x43f   :  { %3973 = vpow2.f32 %v2716_v11 }
 0x440   :  { %3975 = vpow2.f32 %v2717_v16 }
 0x441   :  { %v3958_v60 = vpop.eup %3957  ;;  %3977 = vpow2.f32 %v2718_v56  ;;  %v1844_v56 = vmul.f32 %v4951_v25, %v4347_v29  ;;  %v1849_v29 = vmul.f32 %v4951_v25, %v4387_v53 }
 0x442   :  { %v3960_v20 = vpop.eup %3959  ;;  %3979 = vpow2.f32 %v2719_v18  ;;  %v1684_v47 = vadd.f32 1.0, %v3958_v60  ;;  %v1845_v18 = vmul.f32 %v4951_v25, %v4353_v33 }
 0x443   :  { %v3962_v30 = vpop.eup %3961  ;;  %3981 = vpow2.f32 %v2720_v58  ;;  %v1685_v24 = vadd.f32 1.0, %v3960_v20  ;;  %v1846_v58 = vmul.f32 %v4951_v25, %v4356_v34  ;;  %v1848_v20 = vmul.f32 %v4951_v25, %v4376_v46 }
 0x444   :  { %v3964_v57 = vpop.eup %3963  ;;  %3983 = vpow2.f32 %v2721_v27  ;;  %v1686_v0 = vadd.f32 1.0, %v3962_v30  ;;  %v1847_v27 = vmul.f32 %v4951_v25, %v4350_v32  ;;  %v1850_v30 = vmul.f32 %v4951_v25, %v4391_v54 }
 0x445   :  { %v3966_v11 = vpop.eup %3965  ;;  %3985 = vpow2.f32 %v2722_v62  ;;  %v1687_v19 = vadd.f32 1.0, %v3964_v57  ;;  %v1851_v34 = vmul.f32 %v4951_v25, %v4384_v52  ;;  %v1852_v57 = vmul.f32 %v4951_v25, %v4412_v2 }
 0x446   :  { %v3968_v16 = vpop.eup %3967  ;;  %3987 = vpow2.f32 %v2723_v38  ;;  %v1688_v31 = vadd.f32 1.0, %v3966_v11  ;;  %v1853_v46 = vmul.f32 %v4951_v25, %v4423_v9  ;;  %v1855_v54 = vmul.f32 %v4951_v25, %v4420_v8 }
 0x447   :  { %v3970_v49 = vpop.eup %3969  ;;  %3989 = vrcp.f32 %v1684_v47  ;;  %v1689_v62 = vadd.f32 1.0, %v3968_v16  ;;  %v5079_v2 = vmul.f32 %v4951_v25, %v4459_v36  ;;  %v5087_v8 = vmul.f32 %v4951_v25, %v4456_v35 }
 0x448   :  { %v3972_v60 = vpop.eup %3971  ;;  %3991 = vrcp.f32 %v1685_v24  ;;  %v1690_v33 = vadd.f32 1.0, %v3970_v49  ;;  %v1854_v49 = vmul.f32 %v4951_v25, %v4427_v10  ;;  %v5093_v36 = vadd.f32 %v1845_v18, %v4959_v6 }
 0x449   :  { %v3974_v38 = vpop.eup %3973  ;;  %3993 = vrcp.f32 %v1686_v0  ;;  %v1691_v32 = vadd.f32 1.0, %v3972_v60 }
 0x44a   :  { %v3976_v47 = vpop.eup %3975  ;;  %3995 = vrcp.f32 %v1687_v19  ;;  %v1692_v53 = vadd.f32 1.0, %v3974_v38  ;;  %v1856_v19 = vmul.f32 %v4951_v25, %v4448_v22  ;;  %v5090_v22 = vadd.f32 %v1844_v56, %v4959_v6 }
 0x44b   :  { %v3978_v24 = vpop.eup %3977  ;;  %3997 = vrcp.f32 %v1688_v31  ;;  %v1693_v52 = vadd.f32 1.0, %v3976_v47  ;;  %v5083_v31 = vmul.f32 %v4951_v25, %v4463_v37  ;;  %v5096_v38 = vadd.f32 %v1846_v58, %v4959_v6 }
 0x44c   :  { %v3980_v11 = vpop.eup %3979  ;;  %3999 = vrcp.f32 %v1689_v62  ;;  %v1694_v0 = vadd.f32 1.0, %v3978_v24  ;;  %v5099_v37 = vadd.f32 %v1847_v27, %v4959_v6  ;;  %v5102_v47 = vadd.f32 %v1848_v20, %v4959_v6 }
 0x44d   :  { %v3982_v9 = vpop.eup %3981  ;;  %4001 = vrcp.f32 %v1690_v33  ;;  %v1695_v16 = vadd.f32 1.0, %v3980_v11  ;;  %v5105_v56 = vadd.f32 %v1849_v29, %v4959_v6  ;;  %v5108_v24 = vadd.f32 %v1850_v30, %v4959_v6 }
 0x44e   :  { %v3984_v10 = vpop.eup %3983  ;;  %4003 = vrcp.f32 %v1691_v32  ;;  %v1696_v62 = vadd.f32 1.0, %v3982_v9  ;;  %v5111_v58 = vadd.f32 %v1851_v34, %v4959_v6  ;;  %v5115_v20 = vadd.f32 %v1852_v57, %v4959_v6 }
 0x44f   :  { %v3986_v60 = vpop.eup %3985  ;;  %4005 = vrcp.f32 %v1692_v53  ;;  %v1697_v33 = vadd.f32 1.0, %v3984_v10  ;;  %v5119_v9 = vadd.f32 %v1853_v46, %v4959_v6  ;;  %v2740_v30 = vmul.f32 -1.442695, %v5090_v22 }
 0x450   :  { %v3988_v35 = vpop.eup %3987  ;;  %4007 = vrcp.f32 %v1693_v52  ;;  %v1698_v32 = vadd.f32 1.0, %v3986_v60  ;;  %v5124_v10 = vadd.f32 %v1854_v49, %v4959_v6 }
 0x451   :  { %v3990_v18 = vpop.eup %3989  ;;  %4009 = vrcp.f32 %v1694_v0  ;;  %v1699_v53 = vadd.f32 1.0, %v3988_v35  ;;  %v5131_v35 = vadd.f32 %v1855_v54, %v4959_v6  ;;  %v2745_v54 = vmul.f32 -1.442695, %v5105_v56 }
 0x452   :  { %v3992_v27 = vpop.eup %3991  ;;  %4011 = vrcp.f32 %v1695_v16  ;;  %v1732_v11 = vmul.f32 %v3990_v18, %v4966_v1  ;;  %v2741_v1 = vmul.f32 -1.442695, %v5093_v36  ;;  %v2744_v18 = vmul.f32 -1.442695, %v5102_v47 }
 0x453   :  { %v3994_v52 = vpop.eup %3993  ;;  %4013 = vrcp.f32 %v1696_v62  ;;  %v1733_v29 = vmul.f32 %v3992_v27, %v4969_v4  ;;  %v2742_v4 = vmul.f32 -1.442695, %v5096_v38 }
 0x454   :  { %v3996_v0 = vpop.eup %3995  ;;  %4015 = vrcp.f32 %v1697_v33  ;;  %v1734_v34 = vmul.f32 %v3994_v52, %v4972_v45  ;;  %v2743_v45 = vmul.f32 -1.442695, %v5099_v37  ;;  %v2746_v52 = vmul.f32 -1.442695, %v5108_v24 }
 0x455   :  { %v3998_v57 = vpop.eup %3997  ;;  %4017 = vrcp.f32 %v1698_v32  ;;  %v1735_v16 = vmul.f32 %v3996_v0, %v4977_v50  ;;  %v2951_v60 = vpack.c.bf16 %v1733_v29, %v1732_v11 }
 0x456   :  { %v4000_v46 = vpop.eup %3999  ;;  %4019 = vrcp.f32 %v1699_v53  ;;  %v1736_v62 = vmul.f32 %v3998_v57, %v4982_v5  ;;  %v5141_v5 = vadd.f32 %v1856_v19, %v4959_v6  ;;  %v5152_v19 = vadd.f32 %v5079_v2, %v4959_v6 }
 0x457   :  { %v4002_v49 = vpop.eup %4001  ;;  %v1737_v33 = vmul.f32 %v4000_v46, %v4989_v26  ;;  %2952 = vst [vmem:[%s5531_s5] sm:$0xff] %v2951_v60   ;;  %v2956_v50 = vpack.c.bf16 %v1735_v16, %v1734_v34  ;;  %4021 = vpow2.f32 %v2740_v30  ;;  %v2747_v30 = vmul.f32 -1.442695, %v5111_v58 }
 0x458   :  { %v4004_v32 = vpop.eup %4003  ;;  %v1738_v27 = vmul.f32 %v4002_v49, %v4992_v7  ;;  %4023 = vpow2.f32 %v2741_v1  ;;  %v2748_v1 = vmul.f32 -1.442695, %v5115_v20  ;;  %v5163_v2 = vadd.f32 %v5083_v31, %v4959_v6 }
 0x459   :  { %v4006_v53 = vpop.eup %4005  ;;  %v1739_v26 = vmul.f32 %v4004_v32, %v5000_v13  ;;  %3108 = vst [vmem:[%s5531_s5 + $0x8] sm:$0xff] %v2956_v50   ;;  %v2961_v11 = vpack.c.bf16 %v1737_v33, %v1736_v62  ;;  %4025 = vpow2.f32 %v2742_v4  ;;  %v2749_v16 = vmul.f32 -1.442695, %v5119_v9 }
 0x45a   :  { %v4008_v29 = vpop.eup %4007  ;;  %v1740_v7 = vmul.f32 %v4006_v53, %v5006_v12  ;;  %4027 = vpow2.f32 %v2743_v45  ;;  %v2750_v46 = vmul.f32 -1.442695, %v5124_v10  ;;  %v5174_v31 = vadd.f32 %v5087_v8, %v4959_v6 }
 0x45b   :  { %v4010_v0 = vpop.eup %4009  ;;  %v1741_v13 = vmul.f32 %v4008_v29, %v5012_v21  ;;  %3109 = vst [vmem:[%s5531_s5 + $0x10] sm:$0xff] %v2961_v11   ;;  %v2966_v34 = vpack.c.bf16 %v1739_v26, %v1738_v27  ;;  %4029 = vpow2.f32 %v2744_v18  ;;  %v2751_v45 = vmul.f32 -1.442695, %v5131_v35 }
 0x45c   :  { %v4012_v57 = vpop.eup %4011  ;;  %v1742_v12 = vmul.f32 %v4010_v0, %v5018_v23  ;;  %4031 = vpow2.f32 %v2745_v54  ;;  %v2752_v50 = vmul.f32 -1.442695, %v5141_v5  ;;  %v2753_v8 = vmul.f32 -1.442695, %v5152_v19 }
 0x45d   :  { %v4014_v60 = vpop.eup %4013  ;;  %v1743_v21 = vmul.f32 %v4012_v57, %v5024_v28  ;;  %3110 = vst [vmem:[%s5531_s5 + $0x18] sm:$0xff] %v2966_v34   ;;  %v2971_v4 = vpack.c.bf16 %v1741_v13, %v1740_v7  ;;  %4033 = vpow2.f32 %v2746_v52  ;;  %v2754_v54 = vmul.f32 -1.442695, %v5163_v2 }
 0x45e   :  { %v4016_v62 = vpop.eup %4015  ;;  %v1744_v23 = vmul.f32 %v4014_v60, %v5030_v40  ;;  %4035 = vpow2.f32 %v2747_v30  ;;  %v2755_v26 = vmul.f32 -1.442695, %v5174_v31  ;;  %v2085_v34 = vmul.f32 %v4951_v25, %v4672_v17 }
 0x45f   :  { %v4018_v49 = vpop.eup %4017  ;;  %v1745_v28 = vmul.f32 %v4016_v62, %v5036_v42  ;;  %3111 = vst [vmem:[%s5531_s5 + $0x20] sm:$0xff] %v2971_v4   ;;  %v2976_v33 = vpack.c.bf16 %v1743_v21, %v1742_v12  ;;  %4037 = vpow2.f32 %v2748_v1  ;;  %v2086_v1 = vmul.f32 %v4951_v25, %v4678_v44 }
 0x460   :  { %v4020_v18 = vpop.eup %4019  ;;  %v1746_v40 = vmul.f32 %v4018_v49, %v5040_v63  ;;  %4039 = vpow2.f32 %v2749_v16  ;;  %v2087_v16 = vmul.f32 %v4951_v25, %v4681_v55  ;;  %v2088_v60 = vmul.f32 %v4951_v25, %v4675_v39 }
 0x461   :  { %v4022_v32 = vpop.eup %4021  ;;  %v1747_v27 = vmul.f32 %v4020_v18, %v5044_v51  ;;  %3112 = vst [vmem:[%s5531_s5 + $0x28] sm:$0xff] %v2976_v33   ;;  %v2981_v42 = vpack.c.bf16 %v1745_v28, %v1744_v23  ;;  %4041 = vpow2.f32 %v2750_v46  ;;  %v2089_v46 = vmul.f32 %v4951_v25, %v4697_v3  ;;  %v5575_v18 = vld [vmem:[#allocation3_spill] sm:$0xff] }
 0x462   :  { %v4024_v53 = vpop.eup %4023  ;;  %4043 = vpow2.f32 %v2751_v45  ;;  %v1924_v51 = vadd.f32 1.0, %v4022_v32  ;;  %v2090_v17 = vmul.f32 %v4951_v25, %v4704_v61  ;;  %v2091_v23 = vmul.f32 %v4951_v25, %v4708_v15 }
 0x463   :  { %v4026_v11 = vpop.eup %4025  ;;  %3113 = vst [vmem:[%s5531_s5 + $0x30] sm:$0xff] %v2981_v42   ;;  %v2986_v63 = vpack.c.bf16 %v1747_v27, %v1746_v40  ;;  %4045 = vpow2.f32 %v2752_v50  ;;  %v1925_v29 = vadd.f32 1.0, %v4024_v53  ;;  %v2092_v55 = vmul.f32 %v4951_v25, %v4701_v14  ;;  %v5577_v27 = vld [vmem:[#allocation6_spill] sm:$0xff] }
 0x464   :  { %v4028_v52 = vpop.eup %4027  ;;  %4047 = vpow2.f32 %v2753_v8  ;;  %v1926_v30 = vadd.f32 1.0, %v4026_v11  ;;  %v2093_v49 = vmul.f32 %v4951_v25, %v4725_v59  ;;  %v2094_v3 = vmul.f32 %v4951_v25, %v4732_v41  ;;  %v5576_v8 = vld [vmem:[#allocation5_spill] sm:$0xff] }
 0x465   :  { %v4030_v7 = vpop.eup %4029  ;;  %3114 = vst [vmem:[%s5531_s5 + $0x38] sm:$0xff] %v2986_v63   ;;  %4049 = vpow2.f32 %v2754_v54  ;;  %v1927_v13 = vadd.f32 1.0, %v4028_v52  ;;  %v2095_v33 = vmul.f32 %v4951_v25, %v4736_v48  ;;  %v2096_v15 = vmul.f32 %v4951_v25, %v4729_v43  ;;  %v5578_v48 = vld [vmem:[#allocation4_spill] sm:$0xff] }
 0x466   :  { %v4032_v0 = vpop.eup %4031  ;;  %4051 = vpow2.f32 %v2755_v26  ;;  %v1928_v12 = vadd.f32 1.0, %v4030_v7  ;;  %v2097_v40 = vmul.f32 %v4951_v25, %v5575_v18  ;;  %v5224_v59 = vmul.f32 %v4951_v25, %v5576_v8 }
 0x467   :  { %v4034_v57 = vpop.eup %4033  ;;  %4053 = vrcp.f32 %v1924_v51  ;;  %v1929_v4 = vadd.f32 1.0, %v4032_v0  ;;  %v5228_v42 = vmul.f32 %v4951_v25, %v5577_v27  ;;  %v5232_v43 = vmul.f32 %v4951_v25, %v5578_v48 }
 0x468   :  { %v4036_v21 = vpop.eup %4035  ;;  %4055 = vrcp.f32 %v1925_v29  ;;  %v1930_v44 = vadd.f32 1.0, %v4034_v57  ;;  %v5235_v26 = vadd.f32 %v2085_v34, %v4959_v6  ;;  %v5238_v11 = vadd.f32 %v2086_v1, %v4959_v6 }
 0x469   :  { %v4038_v62 = vpop.eup %4037  ;;  %4057 = vrcp.f32 %v1926_v30  ;;  %v1931_v39 = vadd.f32 1.0, %v4036_v21  ;;  %v5241_v52 = vadd.f32 %v2087_v16, %v4959_v6  ;;  %v5244_v29 = vadd.f32 %v2088_v60, %v4959_v6 }
 0x46a   :  { %v4040_v45 = vpop.eup %4039  ;;  %4059 = vrcp.f32 %v1927_v13  ;;  %v1932_v61 = vadd.f32 1.0, %v4038_v62  ;;  %v5247_v0 = vadd.f32 %v2089_v46, %v4959_v6  ;;  %v5250_v13 = vadd.f32 %v2090_v17, %v4959_v6 }
 0x46b   :  { %v4042_v28 = vpop.eup %4041  ;;  %4061 = vrcp.f32 %v1928_v12  ;;  %v1933_v14 = vadd.f32 1.0, %v4040_v45  ;;  %v5253_v57 = vadd.f32 %v2091_v23, %v4959_v6  ;;  %v5256_v12 = vadd.f32 %v2092_v55, %v4959_v6 }
 0x46c   :  { %v4044_v50 = vpop.eup %4043  ;;  %4063 = vrcp.f32 %v1929_v4  ;;  %v1934_v32 = vadd.f32 1.0, %v4042_v28  ;;  %v5260_v4 = vadd.f32 %v2093_v49, %v4959_v6  ;;  %v5264_v62 = vadd.f32 %v2094_v3, %v4959_v6 }
 0x46d   :  { %v4046_v41 = vpop.eup %4045  ;;  %4065 = vrcp.f32 %v1930_v44  ;;  %v1935_v53 = vadd.f32 1.0, %v4044_v50  ;;  %v2788_v44 = vmul.f32 -1.442695, %v5235_v26  ;;  %v5269_v45 = vadd.f32 %v2095_v33, %v4959_v6 }
 0x46e   :  { %v4048_v54 = vpop.eup %4047  ;;  %4067 = vrcp.f32 %v1931_v39  ;;  %v1936_v51 = vadd.f32 1.0, %v4046_v41  ;;  %v5276_v50 = vadd.f32 %v2096_v15, %v4959_v6  ;;  %v2792_v18 = vmul.f32 -1.442695, %v5247_v0 }
 0x46f   :  { %v4050_v63 = vpop.eup %4049  ;;  %4069 = vrcp.f32 %v1932_v61  ;;  %v1937_v30 = vadd.f32 1.0, %v4048_v54  ;;  %v2793_v15 = vmul.f32 -1.442695, %v5250_v13  ;;  %v2794_v48 = vmul.f32 -1.442695, %v5253_v57 }
 0x470   :  { %v4052_v7 = vpop.eup %4051  ;;  %4071 = vrcp.f32 %v1933_v14  ;;  %v1938_v1 = vadd.f32 1.0, %v4050_v63 }
 0x471   :  { %v4054_v34 = vpop.eup %4053  ;;  %4073 = vrcp.f32 %v1934_v32  ;;  %v1939_v60 = vadd.f32 1.0, %v4052_v7  ;;  %v2796_v7 = vmul.f32 -1.442695, %v5260_v4 }
 0x472   :  { %v4056_v16 = vpop.eup %4055  ;;  %4075 = vrcp.f32 %v1935_v53  ;;  %v1972_v21 = vmul.f32 %v4054_v34, %v5090_v22  ;;  %v2789_v22 = vmul.f32 -1.442695, %v5238_v11  ;;  %v2795_v53 = vmul.f32 -1.442695, %v5256_v12 }
 0x473   :  { %v4058_v46 = vpop.eup %4057  ;;  %4077 = vrcp.f32 %v1936_v51  ;;  %v1973_v17 = vmul.f32 %v4056_v16, %v5093_v36  ;;  %v2790_v36 = vmul.f32 -1.442695, %v5241_v52  ;;  %v2797_v34 = vmul.f32 -1.442695, %v5264_v62 }
 0x474   :  { %v4060_v23 = vpop.eup %4059  ;;  %4079 = vrcp.f32 %v1937_v30  ;;  %v1974_v55 = vmul.f32 %v4058_v46, %v5096_v38  ;;  %v2791_v38 = vmul.f32 -1.442695, %v5244_v29  ;;  %v2799_v46 = vmul.f32 -1.442695, %v5276_v50 }
 0x475   :  { %v4062_v39 = vpop.eup %4061  ;;  %4081 = vrcp.f32 %v1938_v1  ;;  %v1975_v49 = vmul.f32 %v4060_v23, %v5099_v37  ;;  %v2991_v28 = vpack.c.bf16 %v1973_v17, %v1972_v21 }
 0x476   :  { %v4064_v3 = vpop.eup %4063  ;;  %4083 = vrcp.f32 %v1939_v60  ;;  %v1976_v61 = vmul.f32 %v4062_v39, %v5102_v47  ;;  %v5286_v47 = vadd.f32 %v2097_v40, %v4959_v6  ;;  %v5297_v40 = vadd.f32 %v5224_v59, %v4959_v6 }
 0x477   :  { %v4066_v33 = vpop.eup %4065  ;;  %v1977_v14 = vmul.f32 %v4064_v3, %v5105_v56  ;;  %3115 = vst [vmem:[%s5531_s5 + $0x40] sm:$0xff] %v2991_v28   ;;  %v2996_v37 = vpack.c.bf16 %v1975_v49, %v1974_v55  ;;  %4085 = vpow2.f32 %v2788_v44  ;;  %v5308_v59 = vadd.f32 %v5228_v42, %v4959_v6 }
 0x478   :  { %v4068_v8 = vpop.eup %4067  ;;  %v1978_v41 = vmul.f32 %v4066_v33, %v5108_v24  ;;  %4087 = vpow2.f32 %v2789_v22  ;;  %v2798_v60 = vmul.f32 -1.442695, %v5269_v45  ;;  %v5319_v42 = vadd.f32 %v5232_v43, %v4959_v6 }
 0x479   :  { %v4070_v32 = vpop.eup %4069  ;;  %v1979_v56 = vmul.f32 %v4068_v8, %v5111_v58  ;;  %3116 = vst [vmem:[%s5531_s5 + $0x48] sm:$0xff] %v2996_v37   ;;  %v3001_v27 = vpack.c.bf16 %v1977_v14, %v1976_v61  ;;  %4089 = vpow2.f32 %v2790_v36  ;;  %v2800_v23 = vmul.f32 -1.442695, %v5286_v47  ;;  %v5579_v8 = vld [vmem:[#allocation7_spill] sm:$0xff] }
 0x47a   :  { %v4072_v54 = vpop.eup %4071  ;;  %v1980_v24 = vmul.f32 %v4070_v32, %v5115_v20  ;;  %4091 = vpow2.f32 %v2791_v38  ;;  %v2801_v43 = vmul.f32 -1.442695, %v5297_v40  ;;  %v2802_v49 = vmul.f32 -1.442695, %v5308_v59 }
 0x47b   :  { %v4074_v63 = vpop.eup %4073  ;;  %v1981_v58 = vmul.f32 %v4072_v54, %v5119_v9  ;;  %3117 = vst [vmem:[%s5531_s5 + $0x50] sm:$0xff] %v3001_v27   ;;  %v3006_v51 = vpack.c.bf16 %v1979_v56, %v1978_v41  ;;  %4093 = vpow2.f32 %v2792_v18  ;;  %v2803_v36 = vmul.f32 -1.442695, %v5319_v42 }
 0x47c   :  { %v4076_v30 = vpop.eup %4075  ;;  %v1982_v20 = vmul.f32 %v4074_v63, %v5124_v10  ;;  %4095 = vpow2.f32 %v2793_v15  ;;  %v2326_v41 = vmul.f32 %v4951_v25, %v5579_v8  ;;  %v5580_v15 = vld [vmem:[#allocation9_spill] sm:$0xff] }
 0x47d   :  { %v4078_v1 = vpop.eup %4077  ;;  %v1983_v9 = vmul.f32 %v4076_v30, %v5131_v35  ;;  %3118 = vst [vmem:[%s5531_s5 + $0x58] sm:$0xff] %v3006_v51   ;;  %v3011_v16 = vpack.c.bf16 %v1981_v58, %v1980_v24  ;;  %4097 = vpow2.f32 %v2794_v48  ;;  %v2327_v32 = vmul.f32 %v4951_v25, %v5580_v15  ;;  %v5581_v48 = vld [vmem:[#allocation10_spill] sm:$0xff]  ;;  %v5582_v24 = vld [vmem:[#allocation8_spill] sm:$0xff]  ;;  %v5583_v51 = vld [vmem:[#allocation11_spill] sm:$0xff] }
 0x47e   :  { %v4080_v21 = vpop.eup %4079  ;;  %v1984_v10 = vmul.f32 %v4078_v1, %v5141_v5  ;;  %4099 = vpow2.f32 %v2795_v53  ;;  %v2328_v54 = vmul.f32 %v4951_v25, %v5581_v48  ;;  %v2329_v53 = vmul.f32 %v4951_v25, %v5582_v24  ;;  %v5584_v30 = vld [vmem:[#allocation13_spill] sm:$0xff] }
 0x47f   :  { %v4082_v17 = vpop.eup %4081  ;;  %v1985_v35 = vmul.f32 %v4080_v21, %v5152_v19  ;;  %3119 = vst [vmem:[%s5531_s5 + $0x60] sm:$0xff] %v3011_v16   ;;  %v3016_v44 = vpack.c.bf16 %v1983_v9, %v1982_v20  ;;  %4101 = vpow2.f32 %v2796_v7  ;;  %v2330_v7 = vmul.f32 %v4951_v25, %v5583_v51  ;;  %v5585_v9 = vld [vmem:[#allocation14_spill] sm:$0xff] }
 0x480   :  { %v4084_v55 = vpop.eup %4083  ;;  %v1986_v5 = vmul.f32 %v4082_v17, %v5163_v2  ;;  %4103 = vpow2.f32 %v2797_v34  ;;  %v2331_v20 = vmul.f32 %v4951_v25, %v5584_v30  ;;  %v2332_v16 = vmul.f32 %v4951_v25, %v5585_v9  ;;  %v5587_v17 = vld [vmem:[#allocation15_spill] sm:$0xff] }
 0x481   :  { %v4086_v22 = vpop.eup %4085  ;;  %v1987_v39 = vmul.f32 %v4084_v55, %v5174_v31  ;;  %3120 = vst [vmem:[%s5531_s5 + $0x68] sm:$0xff] %v3016_v44   ;;  %v3021_v19 = vpack.c.bf16 %v1985_v35, %v1984_v10  ;;  %4105 = vpow2.f32 %v2798_v60  ;;  %v5586_v60 = vld [vmem:[#allocation12_spill] sm:$0xff]  ;;  %v2334_v35 = vmul.f32 %v4951_v25, %v5587_v17  ;;  %v5588_v44 = vld [vmem:[#allocation17_spill] sm:$0xff] }
 0x482   :  { %v4088_v28 = vpop.eup %4087  ;;  %4107 = vpow2.f32 %v2799_v46  ;;  %v2165_v31 = vadd.f32 1.0, %v4086_v22  ;;  %v2333_v21 = vmul.f32 %v4951_v25, %v5586_v60  ;;  %v5392_v30 = vadd.f32 %v2330_v7, %v4959_v6 }
 0x483   :  { %v4090_v3 = vpop.eup %4089  ;;  %3121 = vst [vmem:[%s5531_s5 + $0x70] sm:$0xff] %v3021_v19   ;;  %v3026_v2 = vpack.c.bf16 %v1987_v39, %v1986_v5  ;;  %4109 = vpow2.f32 %v2800_v23  ;;  %v2166_v38 = vadd.f32 1.0, %v4088_v28  ;;  %v2335_v23 = vmul.f32 %v4951_v25, %v5588_v44  ;;  %v5590_v39 = vld [vmem:[#allocation16_spill] sm:$0xff] }
 0x484   :  { %v4092_v61 = vpop.eup %4091  ;;  %4111 = vpow2.f32 %v2801_v43  ;;  %v2167_v14 = vadd.f32 1.0, %v4090_v3  ;;  %v5589_v43 = vld [vmem:[#allocation18_spill] sm:$0xff]  ;;  %v2337_v19 = vmul.f32 %v4951_v25, %v5590_v39  ;;  %v5405_v7 = vadd.f32 %v2334_v35, %v4959_v6 }
 0x485   :  { %v4094_v33 = vpop.eup %4093  ;;  %3122 = vst [vmem:[%s5531_s5 + $0x78] sm:$0xff] %v3026_v2   ;;  %4113 = vpow2.f32 %v2802_v49  ;;  %v2168_v18 = vadd.f32 1.0, %v4092_v61  ;;  %v2336_v22 = vmul.f32 %v4951_v25, %v5589_v43  ;;  %v5592_v2 = vld [vmem:[#allocation21_spill] sm:$0xff] }
 0x486   :  { %v4096_v37 = vpop.eup %4095  ;;  %4115 = vpow2.f32 %v2803_v36  ;;  %v2169_v27 = vadd.f32 1.0, %v4094_v33  ;;  %v5591_v36 = vld [vmem:[#allocation19_spill] sm:$0xff]  ;;  %v5593_v33 = vld [vmem:[#allocation22_spill] sm:$0xff]  ;;  %v5421_v39 = vadd.f32 %v2337_v19, %v4959_v6 }
 0x487   :  { %v4098_v56 = vpop.eup %4097  ;;  %4117 = vrcp.f32 %v2165_v31  ;;  %v2170_v58 = vadd.f32 1.0, %v4096_v37  ;;  %v2338_v3 = vmul.f32 %v4951_v25, %v5591_v36  ;;  %v5369_v31 = vmul.f32 %v4951_v25, %v5592_v2  ;;  %v5594_v37 = vld [vmem:[#allocation20_spill] sm:$0xff] }
 0x488   :  { %v4100_v63 = vpop.eup %4099  ;;  %4119 = vrcp.f32 %v2166_v38  ;;  %v2171_v1 = vadd.f32 1.0, %v4098_v56  ;;  %v5380_v56 = vadd.f32 %v2326_v41, %v4959_v6  ;;  %v5395_v41 = vadd.f32 %v2331_v20, %v4959_v6 }
 0x489   :  { %v4102_v34 = vpop.eup %4101  ;;  %4121 = vrcp.f32 %v2167_v14  ;;  %v2172_v46 = vadd.f32 1.0, %v4100_v63  ;;  %v5373_v14 = vmul.f32 %v4951_v25, %v5593_v33  ;;  %v5386_v63 = vadd.f32 %v2328_v54, %v4959_v6 }
 0x48a   :  { %v4104_v10 = vpop.eup %4103  ;;  %4123 = vrcp.f32 %v2168_v18  ;;  %v2173_v5 = vadd.f32 1.0, %v4102_v34  ;;  %v5377_v18 = vmul.f32 %v4951_v25, %v5594_v37  ;;  %v5401_v54 = vadd.f32 %v2333_v21, %v4959_v6 }
 0x48b   :  { %v4106_v55 = vpop.eup %4105  ;;  %4125 = vrcp.f32 %v2169_v27  ;;  %v2174_v28 = vadd.f32 1.0, %v4104_v10  ;;  %v5383_v27 = vadd.f32 %v2327_v32, %v4959_v6  ;;  %v5414_v44 = vadd.f32 %v2336_v22, %v4959_v6 }
 0x48c   :  { %v4108_v49 = vpop.eup %4107  ;;  %4127 = vrcp.f32 %v2170_v58  ;;  %v2175_v38 = vadd.f32 1.0, %v4106_v55  ;;  %v5389_v58 = vadd.f32 %v2329_v53, %v4959_v6  ;;  %v2841_v19 = vmul.f32 -1.442695, %v5395_v41 }
 0x48d   :  { %v4110_v61 = vpop.eup %4109  ;;  %4129 = vrcp.f32 %v2171_v1  ;;  %v2176_v15 = vadd.f32 1.0, %v4108_v49  ;;  %v5398_v1 = vadd.f32 %v2332_v16, %v4959_v6  ;;  %v2836_v16 = vmul.f32 -1.442695, %v5380_v56 }
 0x48e   :  { %v4112_v8 = vpop.eup %4111  ;;  %4131 = vrcp.f32 %v2172_v46  ;;  %v2177_v24 = vadd.f32 1.0, %v4110_v61  ;;  %v5409_v46 = vadd.f32 %v2335_v23, %v4959_v6 }
 0x48f   :  { %v4114_v48 = vpop.eup %4113  ;;  %4133 = vrcp.f32 %v2173_v5  ;;  %v2178_v51 = vadd.f32 1.0, %v4112_v8  ;;  %v2842_v33 = vmul.f32 -1.442695, %v5398_v1  ;;  %v2843_v8 = vmul.f32 -1.442695, %v5401_v54 }
 0x490   :  { %v4116_v25 = vpop.eup %4115  ;;  %4135 = vrcp.f32 %v2174_v28  ;;  %v2179_v34 = vadd.f32 1.0, %v4114_v48  ;;  %v2840_v28 = vmul.f32 -1.442695, %v5392_v30 }
 0x491   :  { %v4118_v32 = vpop.eup %4117  ;;  %4137 = vrcp.f32 %v2175_v38  ;;  %v2180_v9 = vadd.f32 1.0, %v4116_v25 }
 0x492   :  { %v4120_v53 = vpop.eup %4119  ;;  %4139 = vrcp.f32 %v2176_v15  ;;  %v2213_v60 = vmul.f32 %v4118_v32, %v5235_v26  ;;  %v2837_v26 = vmul.f32 -1.442695, %v5383_v27 }
 0x493   :  { %v4122_v10 = vpop.eup %4121  ;;  %4141 = vrcp.f32 %v2177_v24  ;;  %v2214_v20 = vmul.f32 %v4120_v53, %v5238_v11  ;;  %v2838_v11 = vmul.f32 -1.442695, %v5386_v63  ;;  %v2844_v24 = vmul.f32 -1.442695, %v5405_v7 }
 0x494   :  { %v4124_v17 = vpop.eup %4123  ;;  %4143 = vrcp.f32 %v2178_v51  ;;  %v2215_v21 = vmul.f32 %v4122_v10, %v5241_v52  ;;  %v2839_v52 = vmul.f32 -1.442695, %v5389_v58  ;;  %v2845_v51 = vmul.f32 -1.442695, %v5409_v46 }
 0x495   :  { %v4126_v35 = vpop.eup %4125  ;;  %4145 = vrcp.f32 %v2179_v34  ;;  %v2216_v55 = vmul.f32 %v4124_v17, %v5244_v29  ;;  %v3031_v5 = vpack.c.bf16 %v2214_v20, %v2213_v60  ;;  %v2846_v53 = vmul.f32 -1.442695, %v5414_v44 }
 0x496   :  { %v4128_v23 = vpop.eup %4127  ;;  %4147 = vrcp.f32 %v2180_v9  ;;  %v2217_v43 = vmul.f32 %v4126_v35, %v5247_v0  ;;  %v5431_v0 = vadd.f32 %v2338_v3, %v4959_v6  ;;  %v5442_v3 = vadd.f32 %v5369_v31, %v4959_v6 }
 0x497   :  { %v4130_v22 = vpop.eup %4129  ;;  %v2218_v49 = vmul.f32 %v4128_v23, %v5250_v13  ;;  %3123 = vst [vmem:[%s5531_s5 + $0x80] sm:$0xff] %v3031_v5   ;;  %v3036_v29 = vpack.c.bf16 %v2216_v55, %v2215_v21  ;;  %4149 = vpow2.f32 %v2836_v16  ;;  %v5453_v31 = vadd.f32 %v5373_v14, %v4959_v6 }
 0x498   :  { %v4132_v36 = vpop.eup %4131  ;;  %v2219_v2 = vmul.f32 %v4130_v22, %v5253_v57  ;;  %4151 = vpow2.f32 %v2837_v26  ;;  %v5464_v14 = vadd.f32 %v5377_v18, %v4959_v6  ;;  %v2847_v60 = vmul.f32 -1.442695, %v5421_v39 }
 0x499   :  { %v4134_v61 = vpop.eup %4133  ;;  %v2220_v13 = vmul.f32 %v4132_v36, %v5256_v12  ;;  %3124 = vst [vmem:[%s5531_s5 + $0x88] sm:$0xff] %v3036_v29   ;;  %v3041_v38 = vpack.c.bf16 %v2218_v49, %v2217_v43  ;;  %4153 = vpow2.f32 %v2838_v11  ;;  %v2848_v16 = vmul.f32 -1.442695, %v5431_v0 }
 0x49a   :  { %v4136_v37 = vpop.eup %4135  ;;  %v2221_v57 = vmul.f32 %v4134_v61, %v5260_v4  ;;  %4155 = vpow2.f32 %v2839_v52  ;;  %v2849_v6 = vmul.f32 -1.442695, %v5442_v3  ;;  %v2850_v26 = vmul.f32 -1.442695, %v5453_v31 }
 0x49b   :  { %v4138_v15 = vpop.eup %4137  ;;  %v2222_v12 = vmul.f32 %v4136_v37, %v5264_v62  ;;  %3125 = vst [vmem:[%s5531_s5 + $0x90] sm:$0xff] %v3041_v38   ;;  %v3046_v48 = vpack.c.bf16 %v2220_v13, %v2219_v2  ;;  %4157 = vpow2.f32 %v2840_v28  ;;  %v2851_v55 = vmul.f32 -1.442695, %v5464_v14 }
 0x49c   :  { %v4140_v25 = vpop.eup %4139  ;;  %v2223_v4 = vmul.f32 %v4138_v15, %v5269_v45  ;;  %4159 = vpow2.f32 %v2841_v19 }
 0x49d   :  { %v4142_v32 = vpop.eup %4141  ;;  %v2224_v62 = vmul.f32 %v4140_v25, %v5276_v50  ;;  %3126 = vst [vmem:[%s5531_s5 + $0x98] sm:$0xff] %v3046_v48   ;;  %v3051_v34 = vpack.c.bf16 %v2222_v12, %v2221_v57  ;;  %4161 = vpow2.f32 %v2842_v33 }
 0x49e   :  { %v4144_v9 = vpop.eup %4143  ;;  %v2225_v45 = vmul.f32 %v4142_v32, %v5286_v47  ;;  %4163 = vpow2.f32 %v2843_v8 }
 0x49f   :  { %v4146_v10 = vpop.eup %4145  ;;  %v2226_v50 = vmul.f32 %v4144_v9, %v5297_v40  ;;  %3127 = vst [vmem:[%s5531_s5 + $0xa0] sm:$0xff] %v3051_v34   ;;  %v3056_v20 = vpack.c.bf16 %v2224_v62, %v2223_v4  ;;  %4165 = vpow2.f32 %v2844_v24 }
 0x4a0   :  { %v4148_v17 = vpop.eup %4147  ;;  %v2227_v47 = vmul.f32 %v4146_v10, %v5308_v59  ;;  %4167 = vpow2.f32 %v2845_v51 }
 0x4a1   :  { %v4150_v18 = vpop.eup %4149  ;;  %v2228_v21 = vmul.f32 %v4148_v17, %v5319_v42  ;;  %3128 = vst [vmem:[%s5531_s5 + $0xa8] sm:$0xff] %v3056_v20   ;;  %v3061_v40 = vpack.c.bf16 %v2226_v50, %v2225_v45  ;;  %4169 = vpow2.f32 %v2846_v53 }
 0x4a2   :  { %v4152_v35 = vpop.eup %4151  ;;  %4171 = vpow2.f32 %v2847_v60  ;;  %v2406_v42 = vadd.f32 1.0, %v4150_v18 }
 0x4a3   :  { %v4154_v5 = vpop.eup %4153  ;;  %3129 = vst [vmem:[%s5531_s5 + $0xb0] sm:$0xff] %v3061_v40   ;;  %v3066_v59 = vpack.c.bf16 %v2228_v21, %v2227_v47  ;;  %4173 = vpow2.f32 %v2848_v16  ;;  %v2407_v23 = vadd.f32 1.0, %v4152_v35 }
 0x4a4   :  { %v4156_v11 = vpop.eup %4155  ;;  %4175 = vpow2.f32 %v2849_v6  ;;  %v2408_v52 = vadd.f32 1.0, %v4154_v5 }
 0x4a5   :  { %v4158_v43 = vpop.eup %4157  ;;  %3130 = vst [vmem:[%s5531_s5 + $0xb8] sm:$0xff] %v3066_v59   ;;  %4177 = vpow2.f32 %v2850_v26  ;;  %v2409_v49 = vadd.f32 1.0, %v4156_v11 }
 0x4a6   :  { %v4160_v22 = vpop.eup %4159  ;;  %4179 = vpow2.f32 %v2851_v55  ;;  %v2410_v28 = vadd.f32 1.0, %v4158_v43 }
 0x4a7   :  { %v4162_v29 = vpop.eup %4161  ;;  %4181 = vrcp.f32 %v2406_v42  ;;  %v2411_v2 = vadd.f32 1.0, %v4160_v22 }
 0x4a8   :  { %v4164_v36 = vpop.eup %4163  ;;  %4183 = vrcp.f32 %v2407_v23  ;;  %v2412_v61 = vadd.f32 1.0, %v4162_v29 }
 0x4a9   :  { %v4166_v19 = vpop.eup %4165  ;;  %4185 = vrcp.f32 %v2408_v52  ;;  %v2413_v38 = vadd.f32 1.0, %v4164_v36 }
 0x4aa   :  { %v4168_v13 = vpop.eup %4167  ;;  %4187 = vrcp.f32 %v2409_v49  ;;  %v2414_v37 = vadd.f32 1.0, %v4166_v19 }
 0x4ab   :  { %v4170_v33 = vpop.eup %4169  ;;  %4189 = vrcp.f32 %v2410_v28  ;;  %v2415_v8 = vadd.f32 1.0, %v4168_v13 }
 0x4ac   :  { %v4172_v57 = vpop.eup %4171  ;;  %4191 = vrcp.f32 %v2411_v2  ;;  %v2416_v12 = vadd.f32 1.0, %v4170_v33 }
 0x4ad   :  { %v4174_v15 = vpop.eup %4173  ;;  %4193 = vrcp.f32 %v2412_v61  ;;  %v2417_v24 = vadd.f32 1.0, %v4172_v57 }
 0x4ae   :  { %v4176_v48 = vpop.eup %4175  ;;  %4195 = vrcp.f32 %v2413_v38  ;;  %v2418_v4 = vadd.f32 1.0, %v4174_v15 }
 0x4af   :  { %v4178_v25 = vpop.eup %4177  ;;  %4197 = vrcp.f32 %v2414_v37  ;;  %v2419_v32 = vadd.f32 1.0, %v4176_v48 }
 0x4b0   :  { %v4180_v51 = vpop.eup %4179  ;;  %4199 = vrcp.f32 %v2415_v8  ;;  %v2420_v34 = vadd.f32 1.0, %v4178_v25 }
 0x4b1   :  { %v4182_v62 = vpop.eup %4181  ;;  %4201 = vrcp.f32 %v2416_v12  ;;  %v2421_v9 = vadd.f32 1.0, %v4180_v51 }
 0x4b2   :  { %v4184_v53 = vpop.eup %4183  ;;  %4203 = vrcp.f32 %v2417_v24  ;;  %v2454_v45 = vmul.f32 %v4182_v62, %v5380_v56 }
 0x4b3   :  { %v4186_v60 = vpop.eup %4185  ;;  %4205 = vrcp.f32 %v2418_v4  ;;  %v2455_v10 = vmul.f32 %v4184_v53, %v5383_v27 }
 0x4b4   :  { %v4188_v50 = vpop.eup %4187  ;;  %4207 = vrcp.f32 %v2419_v32  ;;  %v2456_v20 = vmul.f32 %v4186_v60, %v5386_v63 }
 0x4b5   :  { %v4190_v16 = vpop.eup %4189  ;;  %4209 = vrcp.f32 %v2420_v34  ;;  %v2457_v17 = vmul.f32 %v4188_v50, %v5389_v58  ;;  %v3071_v47 = vpack.c.bf16 %v2455_v10, %v2454_v45 }
 0x4b6   :  { %v4192_v6 = vpop.eup %4191  ;;  %4211 = vrcp.f32 %v2421_v9  ;;  %v2458_v18 = vmul.f32 %v4190_v16, %v5392_v30 }
 0x4b7   :  { %v4194_v21 = vpop.eup %4193  ;;  %v2459_v56 = vmul.f32 %v4192_v6, %v5395_v41  ;;  %3131 = vst [vmem:[%s5531_s5 + $0xc0] sm:$0xff] %v3071_v47   ;;  %v3076_v27 = vpack.c.bf16 %v2457_v17, %v2456_v20 }
 0x4b8   :  { %v4196_v40 = vpop.eup %4195  ;;  %v2460_v63 = vmul.f32 %v4194_v21, %v5398_v1 }
 0x4b9   :  { %v4198_v26 = vpop.eup %4197  ;;  %v2461_v35 = vmul.f32 %v4196_v40, %v5401_v54  ;;  %3132 = vst [vmem:[%s5531_s5 + $0xc8] sm:$0xff] %v3076_v27   ;;  %v3081_v58 = vpack.c.bf16 %v2459_v56, %v2458_v18 }
 0x4ba   :  { %v4200_v30 = vpop.eup %4199  ;;  %v2462_v55 = vmul.f32 %v4198_v26, %v5405_v7 }
 0x4bb   :  { %v4202_v41 = vpop.eup %4201  ;;  %v2463_v5 = vmul.f32 %v4200_v30, %v5409_v46  ;;  %3133 = vst [vmem:[%s5531_s5 + $0xd0] sm:$0xff] %v3081_v58   ;;  %v3086_v59 = vpack.c.bf16 %v2461_v35, %v2460_v63 }
 0x4bc   :  { %v4204_v1 = vpop.eup %4203  ;;  %v2464_v42 = vmul.f32 %v4202_v41, %v5414_v44 }
 0x4bd   :  { %v4206_v54 = vpop.eup %4205  ;;  %v2465_v11 = vmul.f32 %v4204_v1, %v5421_v39  ;;  %3134 = vst [vmem:[%s5531_s5 + $0xd8] sm:$0xff] %v3086_v59   ;;  %v3091_v23 = vpack.c.bf16 %v2463_v5, %v2462_v55 }
 0x4be   :  { %v4208_v7 = vpop.eup %4207  ;;  %v2466_v43 = vmul.f32 %v4206_v54, %v5431_v0 }
 0x4bf   :  { %v4210_v46 = vpop.eup %4209  ;;  %v2467_v52 = vmul.f32 %v4208_v7, %v5442_v3  ;;  %3135 = vst [vmem:[%s5531_s5 + $0xe0] sm:$0xff] %v3091_v23   ;;  %v3096_v22 = vpack.c.bf16 %v2465_v11, %v2464_v42 }
 0x4c0   :  { %v4212_v44 = vpop.eup %4211  ;;  %v2468_v49 = vmul.f32 %v4210_v46, %v5453_v31 }
 0x4c1   :  { %v2469_v39 = vmul.f32 %v4212_v44, %v5464_v14  ;;  %3136 = vst [vmem:[%s5531_s5 + $0xe8] sm:$0xff] %v3096_v22   ;;  %v3101_v29 = vpack.c.bf16 %v2467_v52, %v2466_v43 }
 0x4c3   :  { %3137 = vst [vmem:[%s5531_s5 + $0xf0] sm:$0xff] %v3101_v29   ;;  %v3106_v0 = vpack.c.bf16 %v2469_v39, %v2468_v49 }
 0x4c5   :  { %3138 = vst [vmem:[%s5531_s5 + $0xf8] sm:$0xff] %v3106_v0  }

</bundles_post_ra>
